<compile_context>
chip_gen: v7x
topology: tpu7x:2x2x1
jax: 0.10.0
libtpu: 0.0.40
codegen_flags: <defaults>
</compile_context>

<pallas_src>
import functools

import jax
import jax.numpy as jnp
from jax.experimental import pallas as pl
from jax.experimental.pallas import tpu as pltpu

L = 512      # instance feature dim (fixed by the module)
D = 128      # attention hidden dim (fixed by the module)
K = 1        # number of attention heads (fixed by the module)
NCORES = 2   # leading "parallel" grid axis (both TensorCores on v7x; serial elsewhere)


def _gated_attention_kernel(x_ref, w_ref, b_ref, ww_ref,        # inputs
                            acc_ref, a_ref,                     # outputs
                            m_sc, acc_sc,                       # scratch
                            *, n_valid, tile_n, tiles_per_core):
    c = pl.program_id(0)                  # core-split index ("parallel")
    i = pl.program_id(1)                  # tile index within this half ("arbitrary")
    tile_idx = c * tiles_per_core + i     # logical tile index over the whole bag

    @pl.when(i == 0)
    def _init():
        m_sc[...] = jnp.full_like(m_sc, -1e30)    # running max of this half's logits
        acc_sc[...] = jnp.zeros_like(acc_sc)      # running un-normalized sum exp(s-m)*x

    # ---- gated projection: one 256-wide bf16 MXU matmul, f32 accumulation ----
    x_bf = x_ref[...].astype(jnp.bfloat16)                               # (TN, L)
    h = jnp.dot(x_bf, w_ref[...], preferred_element_type=jnp.float32) + b_ref[...]
    hg = h.astype(jnp.bfloat16)                                          # bf16 gating
    gated = jnp.tanh(hg[:, :D]) * jax.nn.sigmoid(hg[:, D:])              # (TN, D) bf16

    # ---- K=1 logits, directly lane-dense: (1, D) x (TN, D)^T -> (1, TN) on the MXU ----
    s_row = jnp.einsum("od,nd->on", ww_ref[...], gated,
                       preferred_element_type=jnp.float32)               # (1, TN)
    col = jax.lax.broadcasted_iota(jnp.int32, (1, tile_n), 1) + tile_idx * tile_n
    s_row = jnp.where(col < n_valid, s_row, -1e30)    # mask ragged / phantom positions
    a_ref[...] = s_row                                                   # raw logits

    # ---- online-softmax accumulation of sum_i exp(s_i - m) * x_i on the MXU ----
    m_prev = m_sc[...]                                                   # (1, 1)
    m_new = jnp.maximum(m_prev, jnp.max(s_row, axis=-1, keepdims=True))
    alpha = jnp.exp(m_prev - m_new)
    p_bf = jnp.exp(s_row - m_new).astype(jnp.bfloat16)                   # (1, TN)

    # Re-stream x from VMEM (keeps its live range short) and zero out-of-range
    # rows so stale data in a partially filled block can never contribute.
    rows = jax.lax.broadcasted_iota(jnp.int32, (tile_n, 1), 0) + tile_idx * tile_n
    x_acc = jnp.where(rows < n_valid, x_ref[...].astype(jnp.bfloat16), 0.0)
    acc_sc[...] = alpha * acc_sc[...] + jnp.dot(p_bf, x_acc,
                                                preferred_element_type=jnp.float32)
    m_sc[...] = m_new

    @pl.when(i == pl.num_programs(1) - 1)
    def _finalize():
        acc_ref[...] = acc_sc[...].reshape(1, 1, L)


def gated_attention_forward(x, params, *, tile_n=1024):
    """x: (1, N, L) like the PyTorch module; returns (M, A) = ((K, L), (K, N))."""
    assert tile_n % 16 == 0
    x2 = jnp.squeeze(x, axis=0)                      # (N, L), kept in incoming dtype
    n = x2.shape[0]
    assert x2.shape[1] == L
    wv, bv, wu, bu, ww, bw = params
    del bw  # uniform logit shift; cancels exactly in the softmax -> no effect on M or A

    num_tiles = pl.cdiv(n, tile_n)
    tpc = pl.cdiv(num_tiles, NCORES)                 # tiles per core-split
    n_pad = NCORES * tpc * tile_n

    # Fuse the two hidden projections into one 256-wide bf16 weight.
    w_fused = jnp.concatenate([wv, wu], axis=1).astype(jnp.bfloat16)     # (L, 2D)
    b_fused = jnp.concatenate([bv, bu], axis=1).astype(jnp.float32)      # (1, 2D)
    ww_row = ww.reshape(1, D).astype(jnp.bfloat16)                       # (1, D)

    kernel = functools.partial(_gated_attention_kernel, n_valid=n,
                               tile_n=tile_n, tiles_per_core=tpc)

    # Phantom tiles (when NCORES*tpc > num_tiles) clamp their x read to the last
    # real tile; their rows are masked in-kernel and their logits land in the
    # padded tail of the logits output, which is sliced off below.
    x_index_map = lambda c, i: (jnp.minimum(c * tpc + i, num_tiles - 1), 0)

    acc, logits = pl.pallas_call(
        kernel,
        grid=(NCORES, tpc),
        in_specs=[
            pl.BlockSpec((tile_n, L), x_index_map),            # x tile (streamed once)
            pl.BlockSpec((L, 2 * D), lambda c, i: (0, 0)),     # fused Wv|Wu (bf16)
            pl.BlockSpec((1, 2 * D), lambda c, i: (0, 0)),     # fused bv|bu (f32)
            pl.BlockSpec((1, D), lambda c, i: (0, 0)),         # attention_weights row
        ],
        out_specs=(
            pl.BlockSpec((1, 1, L), lambda c, i: (c, 0, 0)),           # per-half partial M
            pl.BlockSpec((1, tile_n), lambda c, i: (0, c * tpc + i)),  # lane-dense logits
        ),
        out_shape=(
            jax.ShapeDtypeStruct((NCORES, 1, L), jnp.float32),
            jax.ShapeDtypeStruct((1, n_pad), jnp.float32),
        ),
        scratch_shapes=[
            pltpu.VMEM((1, 1), jnp.float32),     # running max
            pltpu.VMEM((1, L), jnp.float32),     # running un-normalized accumulator
        ],
        compiler_params=pltpu.CompilerParams(
            dimension_semantics=("parallel", "arbitrary")),
    )(x2, w_fused, b_fused, ww_row)

    logits_flat = logits[0]                       # (n_pad,)
    valid = logits_flat[:n]                       # (n,) raw logits

    # A = softmax over the N instances (tiny (1, N) op).
    a = jax.nn.softmax(valid[None, :], axis=1)    # (K, N)

    # Exact merge of the per-half online-softmax partials:
    #   acc[c] = sum_{i in half c} exp(s_i - m_c) * x_i, with m_c equal (bitwise)
    # to the max of half c's stored logits, so
    #   M = sum_c exp(m_c - m_glob) * acc[c] / sum_i exp(s_i - m_glob).
    m_glob = jnp.max(valid)
    l_glob = jnp.sum(jnp.exp(valid - m_glob))
    m_c = jnp.max(logits_flat.reshape(NCORES, tpc * tile_n), axis=1)     # (NCORES,)
    w_c = jnp.exp(m_c - m_glob)                                          # (NCORES,)
    m = jnp.sum(w_c[:, None] * acc.reshape(NCORES, L), axis=0,
                keepdims=True) / l_glob                                  # (K, L)
    return m, a


def init_params(key):
    """Deterministic parameter init matching the module's shapes.

    PyTorch Linear stores weight as (out, in); we store the transpose (in, out).
    """
    k1, k2, k3, k4, k5, k6 = jax.random.split(key, 6)
    wv = jax.random.normal(k1, (L, D), jnp.float32) * 0.02            # attention_V Linear
    bv = jax.random.normal(k2, (1, D), jnp.float32) * 0.02
    wu = jax.random.normal(k3, (L, D), jnp.float32) * 0.02            # attention_U Linear
    bu = jax.random.normal(k4, (1, D), jnp.float32) * 0.02
    ww = jax.random.normal(k5, (D, K), jnp.float32) * 0.02            # attention_weights
    bw = jax.random.normal(k6, (1, K), jnp.float32) * 0.02
    # TODO(synk): self.classifier is defined in __init__ but never used in
    # forward(), so it is intentionally not materialized here.
    return (wv, bv, wu, bu, ww, bw)


def reference_forward(x, params, *, mirror_kernel_precision=False):
    """Pure-JAX reference mirroring the PyTorch forward.

    With mirror_kernel_precision=True the kernel's bf16 roundings (x, weights,
    gating) are reproduced for a tight numerical comparison.
    """
    x2 = jnp.squeeze(x, axis=0).astype(jnp.float32)
    wv, bv, wu, bu, ww, bw = params
    if mirror_kernel_precision:
        xb = x2.astype(jnp.bfloat16)
        wf = jnp.concatenate([wv, wu], axis=1).astype(jnp.bfloat16)
        bf = jnp.concatenate([bv, bu], axis=1).astype(jnp.float32)
        h = jnp.dot(xb, wf, preferred_element_type=jnp.float32) + bf
        hg = h.astype(jnp.bfloat16)
        gated = jnp.tanh(hg[:, :D]) * jax.nn.sigmoid(hg[:, D:])
        s = jnp.einsum("od,nd->on", ww.reshape(1, D).astype(jnp.bfloat16), gated,
                       preferred_element_type=jnp.float32)   # (1, N); bw cancels
        a = jax.nn.softmax(s, axis=1)
        m = jnp.dot(a, xb.astype(jnp.float32))                # (K, L)
        return m, a
    hv = jnp.tanh(x2 @ wv + bv)
    hu = jax.nn.sigmoid(x2 @ wu + bu)
    a = (hv * hu) @ ww + bw          # (N, K)
    a = jax.nn.softmax(a.T, axis=1)  # (K, N)
    m = a @ x2                       # (K, L)
    return m, a


if __name__ == "__main__":
    key = jax.random.PRNGKey(0)
    kx, kp = jax.random.split(key)

    # Small bag; 600 instances exercises the ragged last tile, the multi-tile
    # online softmax (tile_n=256) and the idle second-core-half path.
    N = 600
    x = jax.random.normal(kx, (1, N, L), jnp.float32)
    params = init_params(kp)

    m1, a1 = gated_attention_forward(x, params)                 # default tile_n=1024
    m2, a2 = gated_attention_forward(x, params, tile_n=256)     # multi-tile path
    m1, a1, m2, a2 = jax.block_until_ready((m1, a1, m2, a2))

    assert m1.shape == (K, L) and a1.shape == (K, N)
    assert m2.shape == (K, L) and a2.shape == (K, N)

    m_tight, a_tight = reference_forward(x, params, mirror_kernel_precision=True)
    m_f32, a_f32 = reference_forward(x, params)

    for m, a in ((m1, a1), (m2, a2)):
        # Tight check against a reference with the kernel's bf16 roundings.
        assert jnp.allclose(m, m_tight, atol=2e-3, rtol=1e-2)
        assert jnp.allclose(a, a_tight, atol=1e-5, rtol=1e-2)
        # Looser check against the pure-f32 math of the PyTorch module.
        assert jnp.allclose(m, m_f32, atol=5e-3, rtol=5e-2)
        assert jnp.allclose(a, a_f32, atol=1e-4, rtol=5e-2)

    print("KERNEL_OK")
</pallas_src>

<mosaic_0001>
module attributes {stable_mosaic.version = 11 : i64} {
  func.func @_gated_attention_kernel(%arg0: i32, %arg1: i32, %arg2: memref<1024x512xf32, #tpu.memory_space<vmem>>, %arg3: memref<512x256xbf16, #tpu.memory_space<vmem>>, %arg4: memref<1x256xf32, #tpu.memory_space<vmem>>, %arg5: memref<1x128xbf16, #tpu.memory_space<vmem>>, %arg6: memref<1x1x512xf32, #tpu.memory_space<vmem>>, %arg7: memref<1x1024xf32, #tpu.memory_space<vmem>>, %arg8: memref<1x1xf32, #tpu.memory_space<vmem>>, %arg9: memref<1x512xf32, #tpu.memory_space<vmem>>) attributes {dimension_semantics = [#tpu.dimension_semantics<parallel>, #tpu.dimension_semantics<arbitrary>], iteration_bounds = array<i64: 2, 1>, scalar_prefetch = 0 : i64, scratch_operands = 2 : i64, tpu.core_type = #tpu.core_type<tc>, window_params = [{transform_indices = @transform_0, window_bounds = array<i64: 1024, 512>}, {pipeline_mode = #tpu.pipeline_mode<synchronous>, transform_indices = @transform_1, window_bounds = array<i64: 512, 256>}, {pipeline_mode = #tpu.pipeline_mode<synchronous>, transform_indices = @transform_2, window_bounds = array<i64: 1, 256>}, {pipeline_mode = #tpu.pipeline_mode<synchronous>, transform_indices = @transform_3, window_bounds = array<i64: 1, 128>}, {transform_indices = @transform_4, window_bounds = array<i64: 1, 1, 512>}, {transform_indices = @transform_5, window_bounds = array<i64: 1, 1024>}]} {
    %c1_i32 = arith.constant 1 : i32
    %0 = arith.muli %arg0, %c1_i32 : i32
    %1 = arith.addi %0, %arg1 : i32
    %c0_i32 = arith.constant 0 : i32
    %2 = arith.cmpi eq, %arg1, %c0_i32 : i32
    %3 = arith.extui %2 : i1 to i32
    %c0_i32_0 = arith.constant 0 : i32
    %4 = arith.cmpi ne, %3, %c0_i32_0 : i32
    scf.if %4 {
      %cst_30 = arith.constant -1.000000e+30 : f32
      %66 = vector.broadcast %cst_30 : f32 to vector<1x1xf32>
      %c0_31 = arith.constant 0 : index
      %c0_32 = arith.constant 0 : index
      %67 = vector.load %arg8[%c0_31, %c0_32] : memref<1x1xf32, #tpu.memory_space<vmem>>, vector<1x1xf32>
      tpu.vector_store %arg8[%c0_31, %c0_32], %66 {strides = array<i32>} : memref<1x1xf32, #tpu.memory_space<vmem>>, vector<1x1xf32>,
      %cst_33 = arith.constant 0.000000e+00 : f32
      %68 = vector.broadcast %cst_33 : f32 to vector<1x512xf32>
      %c0_34 = arith.constant 0 : index
      %c0_35 = arith.constant 0 : index
      %69 = vector.load %arg9[%c0_34, %c0_35] : memref<1x512xf32, #tpu.memory_space<vmem>>, vector<1x512xf32>
      tpu.vector_store %arg9[%c0_34, %c0_35], %68 {strides = array<i32>} : memref<1x512xf32, #tpu.memory_space<vmem>>, vector<1x512xf32>,
    } else {
    }
    %c0 = arith.constant 0 : index
    %c0_1 = arith.constant 0 : index
    %5 = vector.load %arg2[%c0, %c0_1] : memref<1024x512xf32, #tpu.memory_space<vmem>>, vector<1024x512xf32>
    %6 = arith.truncf %5 : vector<1024x512xf32> to vector<1024x512xbf16>
    %c0_2 = arith.constant 0 : index
    %c0_3 = arith.constant 0 : index
    %7 = vector.load %arg3[%c0_2, %c0_3] : memref<512x256xbf16, #tpu.memory_space<vmem>>, vector<512x256xbf16>
    %cst = arith.constant dense<0.000000e+00> : vector<1024x256xf32>
    %8 = tpu.matmul %6, %7, %cst {dimension_numbers = #tpu.dot_dimension_numbers<[1], [0], [0], [1], [0, 0, 1, 1], [], []>} : vector<1024x512xbf16>, vector<512x256xbf16>, vector<1024x256xf32> -> vector<1024x256xf32>
    %c0_4 = arith.constant 0 : index
    %c0_5 = arith.constant 0 : index
    %9 = vector.load %arg4[%c0_4, %c0_5] : memref<1x256xf32, #tpu.memory_space<vmem>>, vector<1x256xf32>
    %10 = vector.broadcast %9 : vector<1x256xf32> to vector<1024x256xf32>
    %11 = arith.addf %8, %10 : vector<1024x256xf32>
    %12 = arith.truncf %11 : vector<1024x256xf32> to vector<1024x256xbf16>
    %13 = vector.extract_strided_slice %12 {offsets = [0, 0], sizes = [1024, 128], strides = [1, 1]} : vector<1024x256xbf16> to vector<1024x128xbf16>
    %14 = math.tanh %13 : vector<1024x128xbf16>
    %15 = vector.extract_strided_slice %12 {offsets = [0, 128], sizes = [1024, 128], strides = [1, 1]} : vector<1024x256xbf16> to vector<1024x128xbf16>
    %16 = arith.negf %15 : vector<1024x128xbf16>
    %17 = math.exp %16 : vector<1024x128xbf16>
    %cst_6 = arith.constant 1.000000e+00 : bf16
    %18 = vector.broadcast %cst_6 : bf16 to vector<1024x128xbf16>
    %19 = arith.addf %18, %17 : vector<1024x128xbf16>
    %20 = arith.divf %18, %19 : vector<1024x128xbf16>
    %21 = arith.mulf %14, %20 : vector<1024x128xbf16>
    %c0_7 = arith.constant 0 : index
    %c0_8 = arith.constant 0 : index
    %22 = vector.load %arg5[%c0_7, %c0_8] : memref<1x128xbf16, #tpu.memory_space<vmem>>, vector<1x128xbf16>
    "tpu.trace_start"() <{level = 10 : i32, message = "od,nd->on"}> : () -> ()
    %cst_9 = arith.constant dense<0.000000e+00> : vector<1x1024xf32>
    %23 = tpu.matmul %22, %21, %cst_9 {dimension_numbers = #tpu.dot_dimension_numbers<[1], [1], [0], [0], [0, 0, 1, 0], [], []>} : vector<1x128xbf16>, vector<1024x128xbf16>, vector<1x1024xf32> -> vector<1x1024xf32>
    "tpu.trace_stop"() : () -> ()
    %24 = tpu.iota {dimensions = array<i32: 1>} : vector<1x1024xi32>
    %c1024_i32 = arith.constant 1024 : i32
    %25 = arith.muli %1, %c1024_i32 : i32
    %26 = vector.broadcast %25 : i32 to vector<1x1024xi32>
    %27 = arith.addi %24, %26 : vector<1x1024xi32>
    %c600_i32 = arith.constant 600 : i32
    %28 = vector.broadcast %c600_i32 : i32 to vector<1x1024xi32>
    %29 = arith.cmpi slt, %27, %28 : vector<1x1024xi32>
    %cst_10 = arith.constant -1.000000e+30 : f32
    %30 = vector.broadcast %cst_10 : f32 to vector<1x1024xf32>
    %31 = arith.select %29, %23, %30 : vector<1x1024xi1>, vector<1x1024xf32>
    %c0_11 = arith.constant 0 : index
    %c0_12 = arith.constant 0 : index
    %32 = vector.load %arg7[%c0_11, %c0_12] : memref<1x1024xf32, #tpu.memory_space<vmem>>, vector<1x1024xf32>
    tpu.vector_store %arg7[%c0_11, %c0_12], %31 {strides = array<i32>} : memref<1x1024xf32, #tpu.memory_space<vmem>>, vector<1x1024xf32>,
    %c0_13 = arith.constant 0 : index
    %c0_14 = arith.constant 0 : index
    %33 = vector.load %arg8[%c0_13, %c0_14] : memref<1x1xf32, #tpu.memory_space<vmem>>, vector<1x1xf32>
    %cst_15 = arith.constant dense<0xFF800000> : vector<1xf32>
    %34 = vector.multi_reduction <maximumf>, %31, %cst_15 [1] : vector<1x1024xf32> to vector<1xf32>
    %35 = vector.shape_cast %34 : vector<1xf32> to vector<1x1xf32>
    %36 = arith.maximumf %33, %35 : vector<1x1xf32>
    %37 = arith.subf %33, %36 : vector<1x1xf32>
    %38 = math.exp %37 : vector<1x1xf32>
    %39 = vector.broadcast %36 : vector<1x1xf32> to vector<1x1024xf32>
    %40 = arith.subf %31, %39 : vector<1x1024xf32>
    %41 = math.exp %40 : vector<1x1024xf32>
    %42 = arith.truncf %41 : vector<1x1024xf32> to vector<1x1024xbf16>
    %43 = tpu.iota {dimensions = array<i32: 0>} : vector<1024x1xi32>
    %c1024_i32_16 = arith.constant 1024 : i32
    %44 = arith.muli %1, %c1024_i32_16 : i32
    %45 = vector.broadcast %44 : i32 to vector<1024x1xi32>
    %46 = arith.addi %43, %45 : vector<1024x1xi32>
    %c600_i32_17 = arith.constant 600 : i32
    %47 = vector.broadcast %c600_i32_17 : i32 to vector<1024x1xi32>
    %48 = arith.cmpi slt, %46, %47 : vector<1024x1xi32>
    %c0_18 = arith.constant 0 : index
    %c0_19 = arith.constant 0 : index
    %49 = vector.load %arg2[%c0_18, %c0_19] : memref<1024x512xf32, #tpu.memory_space<vmem>>, vector<1024x512xf32>
    %50 = arith.truncf %49 : vector<1024x512xf32> to vector<1024x512xbf16>
    %cst_20 = arith.constant 0.000000e+00 : f32
    %51 = arith.truncf %cst_20 : f32 to bf16
    %52 = vector.shape_cast %48 : vector<1024x1xi1> to vector<1024x1xi1>
    %53 = vector.broadcast %52 : vector<1024x1xi1> to vector<1024x512xi1>
    %54 = vector.broadcast %51 : bf16 to vector<1024x512xbf16>
    %55 = arith.select %53, %50, %54 : vector<1024x512xi1>, vector<1024x512xbf16>
    %c0_21 = arith.constant 0 : index
    %c0_22 = arith.constant 0 : index
    %56 = vector.load %arg9[%c0_21, %c0_22] : memref<1x512xf32, #tpu.memory_space<vmem>>, vector<1x512xf32>
    %57 = vector.broadcast %38 : vector<1x1xf32> to vector<1x512xf32>
    %58 = arith.mulf %57, %56 : vector<1x512xf32>
    %cst_23 = arith.constant dense<0.000000e+00> : vector<1x512xf32>
    %59 = tpu.matmul %42, %55, %cst_23 {dimension_numbers = #tpu.dot_dimension_numbers<[1], [0], [0], [1], [0, 0, 1, 1], [], []>} : vector<1x1024xbf16>, vector<1024x512xbf16>, vector<1x512xf32> -> vector<1x512xf32>
    %60 = arith.addf %58, %59 : vector<1x512xf32>
    %c0_24 = arith.constant 0 : index
    %c0_25 = arith.constant 0 : index
    %61 = vector.load %arg9[%c0_24, %c0_25] : memref<1x512xf32, #tpu.memory_space<vmem>>, vector<1x512xf32>
    tpu.vector_store %arg9[%c0_24, %c0_25], %60 {strides = array<i32>} : memref<1x512xf32, #tpu.memory_space<vmem>>, vector<1x512xf32>,
    %c0_26 = arith.constant 0 : index
    %c0_27 = arith.constant 0 : index
    %62 = vector.load %arg8[%c0_26, %c0_27] : memref<1x1xf32, #tpu.memory_space<vmem>>, vector<1x1xf32>
    tpu.vector_store %arg8[%c0_26, %c0_27], %36 {strides = array<i32>} : memref<1x1xf32, #tpu.memory_space<vmem>>, vector<1x1xf32>,
    %c0_i32_28 = arith.constant 0 : i32
    %63 = arith.cmpi eq, %arg1, %c0_i32_28 : i32
    %64 = arith.extui %63 : i1 to i32
    %c0_i32_29 = arith.constant 0 : i32
    %65 = arith.cmpi ne, %64, %c0_i32_29 : i32
    scf.if %65 {
      %c0_30 = arith.constant 0 : index
      %c0_31 = arith.constant 0 : index
      %66 = vector.load %arg9[%c0_30, %c0_31] : memref<1x512xf32, #tpu.memory_space<vmem>>, vector<1x512xf32>
      %67 = vector.shape_cast %66 : vector<1x512xf32> to vector<1x1x512xf32>
      %c0_32 = arith.constant 0 : index
      %c0_33 = arith.constant 0 : index
      %c0_34 = arith.constant 0 : index
      %68 = vector.load %arg6[%c0_32, %c0_33, %c0_34] : memref<1x1x512xf32, #tpu.memory_space<vmem>>, vector<1x1x512xf32>
      tpu.vector_store %arg6[%c0_32, %c0_33, %c0_34], %67 {strides = array<i32>} : memref<1x1x512xf32, #tpu.memory_space<vmem>>, vector<1x1x512xf32>,
    } else {
    }
    return
  }
  func.func @transform_0(%arg0: i32, %arg1: i32) -> (i32, i32) {
    %c1_i32 = arith.constant 1 : i32
    %0 = arith.muli %arg0, %c1_i32 : i32
    %1 = arith.addi %0, %arg1 : i32
    %c0_i32 = arith.constant 0 : i32
    %2 = arith.minsi %1, %c0_i32 : i32
    %c0_i32_0 = arith.constant 0 : i32
    %c0_i32_1 = arith.constant 0 : i32
    return %2, %c0_i32_0 : i32, i32
  }
  func.func @transform_1(%arg0: i32, %arg1: i32) -> (i32, i32) {
    %c0_i32 = arith.constant 0 : i32
    %c0_i32_0 = arith.constant 0 : i32
    %c0_i32_1 = arith.constant 0 : i32
    return %c0_i32, %c0_i32_0 : i32, i32
  }
  func.func @transform_2(%arg0: i32, %arg1: i32) -> (i32, i32) {
    %c0_i32 = arith.constant 0 : i32
    %c0_i32_0 = arith.constant 0 : i32
    %c0_i32_1 = arith.constant 0 : i32
    return %c0_i32, %c0_i32_0 : i32, i32
  }
  func.func @transform_3(%arg0: i32, %arg1: i32) -> (i32, i32) {
    %c0_i32 = arith.constant 0 : i32
    %c0_i32_0 = arith.constant 0 : i32
    %c0_i32_1 = arith.constant 0 : i32
    return %c0_i32, %c0_i32_0 : i32, i32
  }
  func.func @transform_4(%arg0: i32, %arg1: i32) -> (i32, i32, i32) {
    %c0_i32 = arith.constant 0 : i32
    %c0_i32_0 = arith.constant 0 : i32
    %c0_i32_1 = arith.constant 0 : i32
    return %arg0, %c0_i32, %c0_i32_0 : i32, i32, i32
  }
  func.func @transform_5(%arg0: i32, %arg1: i32) -> (i32, i32) {
    %c1_i32 = arith.constant 1 : i32
    %0 = arith.muli %arg0, %c1_i32 : i32
    %1 = arith.addi %0, %arg1 : i32
    %c0_i32 = arith.constant 0 : i32
    %c0_i32_0 = arith.constant 0 : i32
    return %c0_i32, %1 : i32, i32
  }
}

</mosaic_0001>

<bundles_post_ra>
// kernel: tpu_custom_call.1
= control target key start
LH: loop header
LB: loop body
LE: loop exit
PB: predicated region body
PF: predicated region fallthrough
CT: control target
= control target key end

     0   :  { %11 = vsyncpa [#allocation5], 0  ;;  %s12792_s0 = inlined_call_operand.hbm [shape: f32[600,512], index: 0, kind: input, shape index: {}]   ;;  %s12793_s1 = inlined_call_operand.hbm [shape: bf16[512,256], index: 1, kind: input, shape index: {}]   ;;  %s12794_s2 = inlined_call_operand.hbm [shape: f32[1,256], index: 2, kind: input, shape index: {}]   ;;  %s12795_s3 = inlined_call_operand.hbm [shape: bf16[1,128], index: 3, kind: input, shape index: {}]   ;;  %s12796_s4 = inlined_call_operand.hbm [shape: f32[2,1,512], index: 4, kind: output, shape index: {0}]   ;;  %s12797_s5 = inlined_call_operand.hbm [shape: f32[1,2048], index: 5, kind: output, shape index: {1}]  }
   0x1   :  { %13 = vsyncpa [#allocation5 + $0x1], 0 }
   0x2   :  { %14 = vsyncpa [#allocation8], 0 }
   0x3   :  { %15 = vsyncpa [#allocation11], 0 }
   0x4   :  { %16 = vsyncpa [#allocation6], 0 }
   0x5   :  { %18 = vsyncpa [#allocation6 + $0x1], 0 }
   0x6   :  { %19 = vsyncpa [#allocation14], 0 }
   0x7   :  { %21 = vsyncpa [#allocation14 + $0x1], 0  ;;  %s8544_s18 = smov 0   ;;  %s8546_s19 = smov 0  }
   0x8   :  { %s8548_s20 = smov 0   ;;  %s8550_s21 = smov 0  }
   0x9   :  { %s8552_s22 = smov 0   ;;  %s8554_s23 = smov 0  }
   0xa   :  { %s8556_s24 = smov 0   ;;  %s8558_s25 = smov 0  }
   0xb LB: > { %12984 = sst [smem:[#allocation20_spill]] %s8470_s18  ;;  %s6618_s26 = sadd.s32 4294967295, %s8498_s25   ;;  %s8498_s25 = sphi %s8558_s25, %s27_s25   ;;  %s8494_s24 = sphi %s8556_s24, %s13486_s24   ;;  %s8490_s23 = sphi %s8554_s23, %s13485_s23   ;;  %s8486_s22 = sphi %s8552_s22, %s12782_s22   ;;  %s8482_s21 = sphi %s8550_s21, %s13489_s21   ;;  %s8478_s20 = sphi %s8548_s20, %s13484_s20   ;;  %s8474_s19 = sphi %s8546_s19, %s13488_s19   ;;  %s8470_s18 = sphi %s8544_s18, %s13487_s18  }
   0xc   : > { %12985 = sst [smem:[#allocation21_spill]] %s8478_s20  ;;  %s6619_s27 = sadd.s32 4294967294, %s8498_s25  }
   0xd   : > { %12986 = sst [smem:[#allocation22_spill]] %s8494_s24  ;;  %s39_s28 = sadd.s32 1, %s8494_s24 }
   0xe   : > { %p41_p0 = scmp.ge.s32.totalorder %s39_s28, 2  ;;  %p8467_p1 = scmp.ne.s32.totalorder %s8486_s22, 0 }
   0xf   : > { %p60_p2 = scmp.eq.s32.totalorder %s8498_s25, 0  ;;  %p65_p3 = scmp.ne.s32.totalorder %s8486_s22, %s8482_s21 }
  0x10   : > { %s13491_s28 = smov (%p41_p0, %s39_s28), 0  ;;  %p8594_p5 = scmp.eq.s32.totalorder %s6618_s26, 0 }
  0x11   : > { %12987 = sst [smem:[#allocation23_spill]] %s13491_s28  ;;  %p8590_p4 = por %p8467_p1, %p60_p2 }
  0x12   : > { %s12989_s30 = scalar_select %p8594_p5, 1, 0 }
  0x13   : > { %p8600_p6 = por %p8594_p5, %p65_p3  ;;  %s138_s7 = ssub.s32 %s8494_s24, %s13491_s28 }
  0x14   : > { %p139_p7 = scmp.eq.s32.totalorder %s138_s7, 0  ;;  %s141_s8 = sadd.s32 1, %s8478_s20 }
  0x15   : > { %s12990_s6 = scalar_select %p8600_p6, 1, 0 }
  0x16   : > { %s8608_s9 = scalar_select %p139_p7, %s8478_s20, %s141_s8  }
  0x17   : > { %p151_p8 = scmp.ne.s32.totalorder %s8478_s20, %s8474_s19  ;;  %p152_p9 = scmp.eq.s32.totalorder %s6618_s26, 1 }
  0x18   : > { %12991 = sst [smem:[#allocation24_spill]] %s8608_s9  ;;  %p157_p10 = scmp.ne.s32.totalorder %s8474_s19, %s8470_s18 }
  0x19   : > { %p158_p11 = scmp.eq.s32.totalorder %s6619_s27, 1  ;;  %p8614_p12 = por %p152_p9, %p151_p8 }
  0x1a   : > { %p6620_p13 = scmp.ge.s32.totalorder %s8498_s25, 1  ;;  %p193_p1 = scmp.lt.s32.totalorder %s8498_s25, 3 }
  0x1b   : > { %s12992_s10 = scalar_select %p8614_p12, 1, 0 }
  0x1c   : > { %p8619_p0 = por %p158_p11, %p157_p10  ;;  %p8624_p2 = pnand %p6620_p13, %p193_p1 }
  0x1d   : > { %s8500_s13 = smov [#allocation7]   ;;  %s8501_s16 = smov [#allocation9]  }
  0x1e   : > { %s12993_s11 = scalar_select %p8619_p0, 1, 0 }
  0x1f   : > { %s205_s14 = sshll.u32 %s8500_s13, 4  ;;  %p7632_p3 = pneg %p8624_p2  ;;  %s8628_s14 = int_to_ptr.vmem [resolvable:$true] %s205_s14 }
  0x20   : > { %12994 = sst [smem:[#allocation25_spill]] %s12993_s11  ;;  %s219_s17 = sshll.u32 %s8501_s16, 4  ;;  %s8638_s17 = int_to_ptr.vmem [resolvable:$true] %s219_s17 }
  0x21   : > { %p8634_p7 = pnand %p7632_p3, %p8594_p5  ;;  %s8502_s21 = smov [#allocation10]  }
  0x22   : > { %s230_s26 = sshll.u32 %s8502_s21, 4  ;;  %s8241_s8 = scalar_lea.hbm %s12793_s1, 8192  ;;  %s8640_s26 = int_to_ptr.vmem [resolvable:$true] %s230_s26 }
  0x23   : > { %p8242_p8 = scmp.ne.s32.totalorder %s12793_s1, %s8241_s8  ;;  %p8650_p9 = pneg %p8634_p7 }
  0x24   : > { %p8248_p13 = scmp.lt.u32.totalorder %s8241_s8, %s12793_s1 }
  0x25   : > { %p8244_p10 = pnand %p8650_p9, %p8242_p8 }
  0x27   : > { %p8245_p11 = pneg %p8244_p10 }
  0x29   : > { %p8250_p1 = pnand %p8248_p13, %p8245_p11 }
  0x2b   : > { %8253 = shalt.err (!%p8250_p1)
}
  0x2c   : > { %s8254_s28 = scalar_lea.vmem %s8628_s14, 8192  ;;  %p8262_p5 = scmp.lt.s32.totalorder %s8628_s14, %s8628_s14 }
  0x2d   : > { %p8255_p3 = scmp.ne.s32.totalorder %s8628_s14, %s8254_s28  ;;  %p8263_p6 = scmp.lt.s32.totalorder %s8254_s28, %s8254_s28 }
  0x2f   : > { %p8257_p0 = pnand %p8255_p3, %p8650_p9  ;;  %p8264_p8 = por %p8263_p6, %p8262_p5 }
  0x31   : > { %p8258_p12 = pneg %p8257_p0 }
  0x33   : > { %p8265_p10 = pnand %p8264_p8, %p8258_p12 }
  0x35   : > { %8268 = shalt.err (!%p8265_p10)
}
  0x36   : > { %s8503_s27 = smov 128   ;;  %s8504_s7 = smov 8  }
  0x37   : > { %7635 = dma.hbm_to_vmem [thread:$0]  (!%p8634_p7), %s12793_s1, 8192, %s8628_s14, [#allocation8], %s8503_s27, %s8503_s27, %s8504_s7  }
  0x38   : > { %s8269_s9 = scalar_lea.hbm %s12794_s2, 32 }
  0x39   : > { %p8270_p5 = scmp.ne.s32.totalorder %s12794_s2, %s8269_s9  ;;  %p8276_p0 = scmp.lt.u32.totalorder %s8269_s9, %s12794_s2 }
  0x3b   : > { %p8272_p6 = pnand %p8270_p5, %p8650_p9 }
  0x3d   : > { %p8273_p12 = pneg %p8272_p6 }
  0x3f   : > { %p8278_p11 = pnand %p8276_p0, %p8273_p12 }
  0x41   : > { %8281 = shalt.err (!%p8278_p11)
}
  0x42   : > { %s8282_s14 = scalar_lea.vmem %s8638_s17, 32  ;;  %p8290_p8 = scmp.lt.s32.totalorder %s8638_s17, %s8638_s17 }
  0x43   : > { %p8283_p13 = scmp.ne.s32.totalorder %s8638_s17, %s8282_s14  ;;  %p8291_p10 = scmp.lt.s32.totalorder %s8282_s14, %s8282_s14 }
  0x45   : > { %p8285_p1 = pnand %p8283_p13, %p8650_p9  ;;  %p8292_p5 = por %p8291_p10, %p8290_p8 }
  0x47   : > { %p8286_p3 = pneg %p8285_p1 }
  0x49   : > { %p8293_p6 = pnand %p8292_p5, %p8286_p3 }
  0x4b   : > { %8296 = shalt.err (!%p8293_p6)
}
  0x4c   : > { %7638 = dma.hbm_to_vmem [thread:$0]  (!%p8634_p7), %s12794_s2, 32, %s8638_s17, [#allocation8]  }
  0x4d   : > { %s8297_s27 = scalar_lea.hbm %s12795_s3, 16 }
  0x4e   : > { %p8298_p12 = scmp.ne.s32.totalorder %s12795_s3, %s8297_s27  ;;  %p8304_p13 = scmp.lt.u32.totalorder %s8297_s27, %s12795_s3 }
  0x50   : > { %p8300_p0 = pnand %p8298_p12, %p8650_p9 }
  0x52   : > { %p8301_p11 = pneg %p8300_p0 }
  0x54   : > { %p8306_p1 = pnand %p8304_p13, %p8301_p11 }
  0x56   : > { %8309 = shalt.err (!%p8306_p1)
}
  0x57   : > { %s8310_s17 = scalar_lea.vmem %s8640_s26, 16  ;;  %s8317_s21 = scalar_lea.vmem %s8640_s26, 32 }
  0x58   : > { %p8311_p3 = scmp.ne.s32.totalorder %s8640_s26, %s8310_s17  ;;  %p8318_p5 = scmp.lt.s32.totalorder %s8640_s26, %s8640_s26 }
  0x59   : > { %p8319_p6 = scmp.lt.s32.totalorder %s8317_s21, %s8310_s17 }
  0x5a   : > { %p8313_p8 = pnand %p8311_p3, %p8650_p9 }
  0x5b   : > { %p8320_p12 = por %p8319_p6, %p8318_p5 }
  0x5c   : > { %p8314_p10 = pneg %p8313_p8 }
  0x5e   : > { %p8321_p0 = pnand %p8320_p12, %p8314_p10 }
  0x60   : > { %8324 = shalt.err (!%p8321_p0)
}
  0x61   : > { %7641 = dma.hbm_to_vmem [thread:$0]  (!%p8634_p7), %s12795_s3, 16, %s8640_s26, [#allocation11]  }
  0x62   : > { %p6624_p11 = scmp.ge.s32.totalorder %s8498_s25, 2 }
  0x64   : > { %237 = sbr.rel (%p6624_p11) target bundleno = 134 (0x86), region = 28 }
  0x6b   : > { %240 = sbr.rel (!%p8590_p4) target bundleno = 134 (0x86), region = 32 }
  0x72   : > { %255 = vsyncadd [#allocation5], 27136  ;;  %s8505_s24 = smov [#allocation4]   ;;  %s8325_s15 = scalar_lea.hbm %s12792_s0, 38400 }
  0x73   : > { %s261_s18 = sshll.u32 %s8505_s24, 4  ;;  %p8326_p7 = scmp.ne.s32.totalorder %s12792_s0, %s8325_s15  ;;  %s262_s18 = int_to_ptr.vmem [resolvable:$true] %s261_s18 }
  0x74   : > { %p8331_p9 = scmp.lt.u32.totalorder %s8325_s15, %s8325_s15  ;;  %p8333_p13 = scmp.lt.u32.totalorder %s8325_s15, %s12792_s0 }
  0x76   : > { %p8334_p1 = por %p8333_p13, %p8331_p9 }
  0x78   : > { %p8335_p3 = pnand %p8334_p1, %p8326_p7 }
  0x7a   : > { %8338 = shalt.err (!%p8335_p3)
}
  0x7b   : > { %s8339_s29 = scalar_lea.vmem %s262_s18, 38400  ;;  %s8345_s8 = scalar_lea.vmem %s262_s18, 131072 }
  0x7c   : > { %p8340_p4 = scmp.ne.s32.totalorder %s262_s18, %s8339_s29  ;;  %p8346_p8 = scmp.lt.s32.totalorder %s262_s18, %s262_s18 }
  0x7d   : > { %p8347_p10 = scmp.lt.s32.totalorder %s8345_s8, %s8339_s29 }
  0x7f   : > { %p8348_p5 = por %p8347_p10, %p8346_p8 }
  0x81   : > { %p8349_p6 = pnand %p8348_p5, %p8340_p4 }
  0x83   : > { %8352 = shalt.err (!%p8349_p6)
}
  0x84   : > { %s8506_s13 = smov 512   ;;  %s8507_s16 = smov 32  }
  0x85   : > { %267 = dma.hbm_to_vmem [thread:$0]  %s12792_s0, 38400, %s262_s18, [#allocation5], %s8506_s13, %s8506_s13, %s8507_s16  }
  0x86 PF: > { %273 = sbr.rel (%p8624_p2) target bundleno = 2544 (0x9f0), region = 36 }
  0x8d   : > { %s275_s28 = sand.u32 1, %s8486_s22   ;;  %p12998_p12 = scmp.ne.s32.totalorder %s12990_s6, 0 }
  0x8e   : > { %s6635_s14 = sshll.u32 %s275_s28, 12  ;;  %s276_s24 = scalar_lea.sflag [#allocation5], %s275_s28 }
  0x8f   : > { %s8738_s20 = scalar_lea.vmem [#allocation4], %s6635_s14 }
  0x90   : > { %8446 = dma.done.wait (%p12998_p12), %s276_s24, 65536  }
  0x91   : > { %8448 = vsyncadd (%p12998_p12), %s276_s24, 4294901760  ;;  %p12999_p0 = scmp.ne.s32.totalorder %s12989_s30, 0 }
  0x93   : > { %8450 = dma.done.wait (%p12999_p0), [#allocation8], 8224  }
  0x94   : > { %8452 = vsyncadd (%p12999_p0), [#allocation8], 4294959072 }
  0x95   : > { %8454 = dma.done.wait (%p12999_p0), [#allocation11], 16  }
  0x96   : > { %8456 = vsyncadd (%p12999_p0), [#allocation11], 4294967280  ;;  %v7741_v0 = vld [vmem:[#allocation7 + $0x4] ss:$8 sps:$4 sm:$0xff]   ;;  %v7743_v1 = vld [vmem:[#allocation7] ss:$8 sps:$4 sm:$0xff]  }
  0x97   : > { %1512 = vmatprep.subr.bf16.mxu0 %v7741_v0  ;;  %v7744_v2 = vld [vmem:[#allocation7 + $0x14] ss:$8 sps:$4 sm:$0xff]   ;;  %7047 = vmatprep.subr.bf16.mxu1 %v7741_v0  ;;  %v7746_v3 = vld [vmem:[#allocation7 + $0x10] ss:$8 sps:$4 sm:$0xff]   ;;  %v7747_v4 = vld [vmem:[#allocation7 + $0x24] ss:$8 sps:$4 sm:$0xff]  }
  0x98   : > { %1513 = vmatpush1.bf16.msra.mxu0 %v7743_v1  ;;  %7063 = vmatpush1.bf16.msra.mxu1 %v7743_v1  ;;  %v7749_v5 = vld [vmem:[#allocation7 + $0x20] ss:$8 sps:$4 sm:$0xff]   ;;  %v7750_v6 = vld [vmem:[#allocation7 + $0x34] ss:$8 sps:$4 sm:$0xff]   ;;  %v7752_v7 = vld [vmem:[#allocation7 + $0x30] ss:$8 sps:$4 sm:$0xff]  }
  0x99   : > { %1514 = vmatprep.subr.bf16.mxu0 %v7744_v2  ;;  %7048 = vmatprep.subr.bf16.mxu1 %v7744_v2  ;;  %v7753_v8 = vld [vmem:[#allocation7 + $0x44] ss:$8 sps:$4 sm:$0xff]   ;;  %v7755_v9 = vld [vmem:[#allocation7 + $0x40] ss:$8 sps:$4 sm:$0xff]   ;;  %v7756_v10 = vld [vmem:[#allocation7 + $0x54] ss:$8 sps:$4 sm:$0xff]  }
  0x9a   : > { %v7758_v11 = vld [vmem:[#allocation7 + $0x50] ss:$8 sps:$4 sm:$0xff]   ;;  %v7759_v12 = vld [vmem:[#allocation7 + $0x64] ss:$8 sps:$4 sm:$0xff]   ;;  %v7761_v16 = vld [vmem:[#allocation7 + $0x60] ss:$8 sps:$4 sm:$0xff]  }
  0x9b   : > { %v349_v13 = vld [vmem:[%s8738_s20 + $0x8] sm:$0xff]  ;;  %v7762_v17 = vld [vmem:[#allocation7 + $0x74] ss:$8 sps:$4 sm:$0xff]   ;;  %v7764_v18 = vld [vmem:[#allocation7 + $0x70] ss:$8 sps:$4 sm:$0xff]   ;;  %vm12815_vm0 = vcmask 0  }
  0x9c   : > { %1515 = vmatpush1.bf16.msra.mxu0 %v7746_v3  ;;  %7064 = vmatpush1.bf16.msra.mxu1 %v7746_v3  ;;  %v353_v14 = vld [vmem:[%s8738_s20 + $0x28] sm:$0xff]  ;;  %v7768_v21 = vld [vmem:[#allocation7 + $0x94] ss:$8 sps:$4 sm:$0xff]   ;;  %v7770_v22 = vld [vmem:[#allocation7 + $0x90] ss:$8 sps:$4 sm:$0xff]   ;;  %s6769_s30 = sshll.u32 %s8490_s23, 10 }
  0x9d   : > { %1516 = vmatprep.subr.bf16.mxu0 %v7747_v4  ;;  %7049 = vmatprep.subr.bf16.mxu1 %v7747_v4  ;;  %v861_v15 = vpack.c.bf16 %v353_v14, %v349_v13  ;;  %v7765_v19 = vld [vmem:[#allocation7 + $0x84] ss:$8 sps:$4 sm:$0xff]   ;;  %v7767_v20 = vld [vmem:[#allocation7 + $0x80] ss:$8 sps:$4 sm:$0xff]   ;;  %v7774_v25 = vld [vmem:[#allocation7 + $0xb4] ss:$8 sps:$4 sm:$0xff]  }
  0x9e   : > { %v7771_v23 = vld [vmem:[#allocation7 + $0xa4] ss:$8 sps:$4 sm:$0xff]   ;;  %v7773_v24 = vld [vmem:[#allocation7 + $0xa0] ss:$8 sps:$4 sm:$0xff]   ;;  %v7776_v26 = vld [vmem:[#allocation7 + $0xb0] ss:$8 sps:$4 sm:$0xff]  }
  0x9f   : > { %1544 = vmatprep.mubr.bf16.mxu0 %v861_v15  ;;  %v7777_v27 = vld [vmem:[#allocation7 + $0xc4] ss:$8 sps:$4 sm:$0xff]   ;;  %v7779_v28 = vld [vmem:[#allocation7 + $0xc0] ss:$8 sps:$4 sm:$0xff]   ;;  %v7780_v29 = vld [vmem:[#allocation7 + $0xd4] ss:$8 sps:$4 sm:$0xff]  }
  0xa0   : > { %1517 = vmatpush1.bf16.msra.mxu0 %v7749_v5  ;;  %7065 = vmatpush1.bf16.msra.mxu1 %v7749_v5  ;;  %v7782_v30 = vld [vmem:[#allocation7 + $0xd0] ss:$8 sps:$4 sm:$0xff]   ;;  %v7783_v31 = vld [vmem:[#allocation7 + $0xe4] ss:$8 sps:$4 sm:$0xff]   ;;  %v7785_v32 = vld [vmem:[#allocation7 + $0xe0] ss:$8 sps:$4 sm:$0xff]  }
  0xa1   : > { %1518 = vmatprep.subr.bf16.mxu0 %v7750_v6  ;;  %7050 = vmatprep.subr.bf16.mxu1 %v7750_v6  ;;  %v7786_v33 = vld [vmem:[#allocation7 + $0xf4] ss:$8 sps:$4 sm:$0xff]   ;;  %v7788_v34 = vld [vmem:[#allocation7 + $0xf0] ss:$8 sps:$4 sm:$0xff]   ;;  %v348_v35 = vld [vmem:[%s8738_s20] sm:$0xff]  ;;  %vm3822_vm7 = vcmask 1040384  }
  0xa2   : > { %v352_v36 = vld [vmem:[%s8738_s20 + $0x20] sm:$0xff]  ;;  %v357_v38 = vld [vmem:[%s8738_s20 + $0x48] sm:$0xff]  ;;  %v7794_v43 = vld [vmem:[#allocation7 + $0x114] ss:$8 sps:$4 sm:$0xff]   ;;  %s10436_s6 = sand.u32 1, %s8474_s19   ;;  %s6974_s9 = sshll.u32 %s8490_s23, 7 }
  0xa3   : > { %v7791_v37 = vld [vmem:[#allocation7 + $0x104] ss:$8 sps:$4 sm:$0xff]   ;;  %v860_v40 = vpack.c.bf16 %v352_v36, %v348_v35  ;;  %v7789_v41 = vld [vmem:[#allocation7 + $0x100] ss:$8 sps:$4 sm:$0xff]   ;;  %v7792_v46 = vld [vmem:[#allocation7 + $0x110] ss:$8 sps:$4 sm:$0xff]   ;;  %s12702_s26 = scalar_lea.hbm %s12797_s5, %s6974_s9 }
  0xa4   : > { %1519 = vmatpush1.bf16.msra.mxu0 %v7752_v7  ;;  %7066 = vmatpush1.bf16.msra.mxu1 %v7752_v7  ;;  %v361_v39 = vld [vmem:[%s8738_s20 + $0x68] sm:$0xff]  ;;  %v356_v44 = vld [vmem:[%s8738_s20 + $0x40] sm:$0xff]  ;;  %v7800_v53 = vld [vmem:[#allocation7 + $0x134] ss:$8 sps:$4 sm:$0xff]   ;;  %s6640_s12 = sshll.u32 %s10436_s6, 3  ;;  %s6449_s7 = scalar_lea.sflag [#allocation14], %s10436_s6 }
  0xa5   : > { %1520 = vmatprep.subr.bf16.mxu0 %v7753_v8  ;;  %7051 = vmatprep.subr.bf16.mxu1 %v7753_v8  ;;  %v865_v42 = vpack.c.bf16 %v361_v39, %v357_v38  ;;  %v360_v45 = vld [vmem:[%s8738_s20 + $0x60] sm:$0xff]  ;;  %v365_v47 = vld [vmem:[%s8738_s20 + $0x88] sm:$0xff]  ;;  %v7798_v56 = vld [vmem:[#allocation7 + $0x130] ss:$8 sps:$4 sm:$0xff]   ;;  %s10443_s18 = scalar_lea.vmem [#allocation13], %s6640_s12  ;;  %p13475_p7 = scmp.ne.s32.totalorder %s12992_s10, 0 }
  0xa6   : > { %v369_v48 = vld [vmem:[%s8738_s20 + $0xa8] sm:$0xff]  ;;  %v864_v50 = vpack.c.bf16 %v360_v45, %v356_v44  ;;  %v364_v54 = vld [vmem:[%s8738_s20 + $0x80] sm:$0xff]  ;;  %v7806_v63 = vld [vmem:[#allocation7 + $0x154] ss:$8 sps:$4 sm:$0xff]   ;;  %s6478_s15 = sshll.u32 %s10443_s18, 4  ;;  %s8512_s8 = smov [#allocation13]   ;;  %s6479_s15 = int_to_ptr.vmem [resolvable:$true] %s6478_s15 }
  0xa7   : > { %v7797_v49 = vld [vmem:[#allocation7 + $0x124] ss:$8 sps:$4 sm:$0xff]   ;;  %v869_v51 = vpack.c.bf16 %v369_v48, %v365_v47  ;;  %v7795_v52 = vld [vmem:[#allocation7 + $0x120] ss:$8 sps:$4 sm:$0xff]   ;;  %v7804_v2 = vld [vmem:[#allocation7 + $0x150] ss:$8 sps:$4 sm:$0xff]  }
  0xa8   : > { %1521 = vmatpush1.bf16.msra.mxu0 %v7755_v9  ;;  %7067 = vmatpush1.bf16.msra.mxu1 %v7755_v9  ;;  %v368_v55 = vld [vmem:[%s8738_s20 + $0xa0] sm:$0xff]  ;;  %v373_v57 = vld [vmem:[%s8738_s20 + $0xc8] sm:$0xff]  ;;  %v7812_v9 = vld [vmem:[#allocation7 + $0x174] ss:$8 sps:$4 sm:$0xff]   ;;  %s8353_s29 = scalar_lea.vmem %s6479_s15, 128  ;;  %s8357_s13 = sshll.u32 %s8512_s8, 4  ;;  %s8358_s13 = int_to_ptr.vmem [resolvable:$false] %s8357_s13 }
  0xa9   : > { %1522 = vmatprep.subr.bf16.mxu0 %v7756_v10  ;;  %7052 = vmatprep.subr.bf16.mxu1 %v7756_v10  ;;  %v377_v58 = vld [vmem:[%s8738_s20 + $0xe8] sm:$0xff]  ;;  %v868_v60 = vpack.c.bf16 %v368_v55, %v364_v54  ;;  %v372_v0 = vld [vmem:[%s8738_s20 + $0xc0] sm:$0xff]  ;;  %p8354_p2 = scmp.ne.s32.totalorder %s6479_s15, %s8353_s29  ;;  %s8359_s16 = scalar_lea.vmem %s8358_s13, 256 }
  0xaa   : > { %v7803_v59 = vld [vmem:[#allocation7 + $0x144] ss:$8 sps:$4 sm:$0xff]   ;;  %v873_v61 = vpack.c.bf16 %v377_v58, %v373_v57  ;;  %v7801_v62 = vld [vmem:[#allocation7 + $0x140] ss:$8 sps:$4 sm:$0xff]   ;;  %p8360_p1 = scmp.lt.s32.totalorder %s6479_s15, %s8358_s13  ;;  %p8361_p3 = scmp.lt.s32.totalorder %s8359_s16, %s8353_s29 }
  0xab   : > { %v376_v1 = vld [vmem:[%s8738_s20 + $0xe0] sm:$0xff]  ;;  %v381_v3 = vld [vmem:[%s8738_s20 + $0x108] sm:$0xff]  ;;  %p8355_p9 = pnand %p8354_p2, %p13475_p7 }
  0xac   : > { %1523 = vmatpush1.bf16.msra.mxu0 %v7758_v11  ;;  %7068 = vmatpush1.bf16.msra.mxu1 %v7758_v11  ;;  %v385_v4 = vld [vmem:[%s8738_s20 + $0x128] sm:$0xff]  ;;  %v872_v6 = vpack.c.bf16 %v376_v1, %v372_v0  ;;  %v380_v10 = vld [vmem:[%s8738_s20 + $0x100] sm:$0xff]  ;;  %p8362_p4 = por %p8361_p3, %p8360_p1 }
  0xad   : > { %1524 = vmatprep.subr.bf16.mxu0 %v7759_v12  ;;  %7053 = vmatprep.subr.bf16.mxu1 %v7759_v12  ;;  %v7809_v5 = vld [vmem:[#allocation7 + $0x164] ss:$8 sps:$4 sm:$0xff]   ;;  %v877_v7 = vpack.c.bf16 %v385_v4, %v381_v3  ;;  %v7807_v8 = vld [vmem:[#allocation7 + $0x160] ss:$8 sps:$4 sm:$0xff]   ;;  %v7810_v12 = vld [vmem:[#allocation7 + $0x170] ss:$8 sps:$4 sm:$0xff]   ;;  %p8356_p13 = pneg %p8355_p9 }
  0xae   : > { %v384_v11 = vld [vmem:[%s8738_s20 + $0x120] sm:$0xff]  ;;  %v389_v13 = vld [vmem:[%s8738_s20 + $0x148] sm:$0xff] }
  0xaf   : > { %v393_v14 = vld [vmem:[%s8738_s20 + $0x168] sm:$0xff]  ;;  %v876_v15 = vpack.c.bf16 %v384_v11, %v380_v10  ;;  %v416_v38 = vld [vmem:[%s8738_s20 + $0x220] sm:$0xff]  ;;  %p8363_p8 = pnand %p8362_p4, %p8356_p13 }
  0xb0   : > { %1525 = vmatpush1.bf16.msra.mxu0 %v7761_v16  ;;  %7069 = vmatpush1.bf16.msra.mxu1 %v7761_v16  ;;  %v881_v16 = vpack.c.bf16 %v393_v14, %v389_v13  ;;  %v421_v39 = vld [vmem:[%s8738_s20 + $0x248] sm:$0xff]  ;;  %v424_v44 = vld [vmem:[%s8738_s20 + $0x260] sm:$0xff] }
  0xb1   : > { %1526 = vmatprep.subr.bf16.mxu0 %v7762_v17  ;;  %7054 = vmatprep.subr.bf16.mxu1 %v7762_v17  ;;  %v388_v17 = vld [vmem:[%s8738_s20 + $0x140] sm:$0xff]  ;;  %v429_v45 = vld [vmem:[%s8738_s20 + $0x288] sm:$0xff] }
  0xb2   : > { %v441_v54 = vld [vmem:[%s8738_s20 + $0x2e8] sm:$0xff]  ;;  %v436_v57 = vld [vmem:[%s8738_s20 + $0x2c0] sm:$0xff] }
  0xb3   : > { %v440_v58 = vld [vmem:[%s8738_s20 + $0x2e0] sm:$0xff]  ;;  %v453_v1 = vld [vmem:[%s8738_s20 + $0x348] sm:$0xff] }
  0xb4   : > { %1527 = vmatpush1.bf16.msra.mxu0 %v7764_v18  ;;  %7070 = vmatpush1.bf16.msra.mxu1 %v7764_v18  ;;  %v392_v18 = vld [vmem:[%s8738_s20 + $0x160] sm:$0xff]  ;;  %v465_v10 = vld [vmem:[%s8738_s20 + $0x3a8] sm:$0xff] }
  0xb5   : > { %1528 = vmatprep.subr.bf16.mxu0 %v7765_v19  ;;  %7055 = vmatprep.subr.bf16.mxu1 %v7765_v19  ;;  %v397_v19 = vld [vmem:[%s8738_s20 + $0x188] sm:$0xff]  ;;  %v448_v0 = vld [vmem:[%s8738_s20 + $0x320] sm:$0xff] }
  0xb6   : > { %v460_v13 = vld [vmem:[%s8738_s20 + $0x380] sm:$0xff] }
  0xb7   : > { %v464_v14 = vld [vmem:[%s8738_s20 + $0x3a0] sm:$0xff] }
  0xb8   : > { %1529 = vmatpush1.bf16.msra.mxu0 %v7767_v20  ;;  %7071 = vmatpush1.bf16.msra.mxu1 %v7767_v20  ;;  %v401_v20 = vld [vmem:[%s8738_s20 + $0x1a8] sm:$0xff] }
  0xb9   : > { %1530 = vmatprep.subr.bf16.mxu0 %v7768_v21  ;;  %7056 = vmatprep.subr.bf16.mxu1 %v7768_v21  ;;  %v880_v21 = vpack.c.bf16 %v392_v18, %v388_v17  ;;  %v916_v17 = vpack.c.bf16 %v464_v14, %v460_v13 }
  0xbc   : > { %1531 = vmatpush1.bf16.msra.mxu0 %v7770_v22  ;;  %7072 = vmatpush1.bf16.msra.mxu1 %v7770_v22  ;;  %v885_v22 = vpack.c.bf16 %v401_v20, %v397_v19  ;;  %v468_v19 = vld [vmem:[%s8738_s20 + $0x3c0] sm:$0xff] }
  0xbd   : > { %1532 = vmatprep.subr.bf16.mxu0 %v7771_v23  ;;  %7057 = vmatprep.subr.bf16.mxu1 %v7771_v23  ;;  %v396_v23 = vld [vmem:[%s8738_s20 + $0x180] sm:$0xff] }
  0xbe   : > { %v472_v20 = vld [vmem:[%s8738_s20 + $0x3e0] sm:$0xff] }
  0xc0   : > { %1533 = vmatpush1.bf16.msra.mxu0 %v7773_v24  ;;  %7073 = vmatpush1.bf16.msra.mxu1 %v7773_v24  ;;  %v400_v24 = vld [vmem:[%s8738_s20 + $0x1a0] sm:$0xff] }
  0xc1   : > { %1534 = vmatprep.subr.bf16.mxu0 %v7774_v25  ;;  %7058 = vmatprep.subr.bf16.mxu1 %v7774_v25  ;;  %v405_v25 = vld [vmem:[%s8738_s20 + $0x1c8] sm:$0xff] }
  0xc4   : > { %1535 = vmatpush1.bf16.msra.mxu0 %v7776_v26  ;;  %7074 = vmatpush1.bf16.msra.mxu1 %v7776_v26  ;;  %v409_v26 = vld [vmem:[%s8738_s20 + $0x1e8] sm:$0xff] }
  0xc5   : > { %1536 = vmatprep.subr.bf16.mxu0 %v7777_v27  ;;  %7059 = vmatprep.subr.bf16.mxu1 %v7777_v27  ;;  %v884_v27 = vpack.c.bf16 %v400_v24, %v396_v23  ;;  %v920_v23 = vpack.c.bf16 %v472_v20, %v468_v19  ;;  %v549_v19 = vld [vmem:[%s8738_s20 + $0x648] sm:$0xff] }
  0xc6   : > { %v553_v20 = vld [vmem:[%s8738_s20 + $0x668] sm:$0xff] }
  0xc8   : > { %1537 = vmatpush1.bf16.msra.mxu0 %v7779_v28  ;;  %7075 = vmatpush1.bf16.msra.mxu1 %v7779_v28  ;;  %v889_v28 = vpack.c.bf16 %v409_v26, %v405_v25  ;;  %v7822_v25 = vld [vmem:[#allocation7 + $0x1b0] ss:$8 sps:$4 sm:$0xff]   ;;  %v7824_v26 = vld [vmem:[#allocation7 + $0x1b4] ss:$8 sps:$4 sm:$0xff]  }
  0xc9   : > { %1538 = vmatprep.subr.bf16.mxu0 %v7780_v29  ;;  %7060 = vmatprep.subr.bf16.mxu1 %v7780_v29  ;;  %v7813_v29 = vld [vmem:[#allocation7 + $0x180] ss:$8 sps:$4 sm:$0xff]  }
  0xcc   : > { %1539 = vmatpush1.bf16.msra.mxu0 %v7782_v30  ;;  %7076 = vmatpush1.bf16.msra.mxu1 %v7782_v30  ;;  %v7815_v30 = vld [vmem:[#allocation7 + $0x184] ss:$8 sps:$4 sm:$0xff]  }
  0xcd   : > { %1540 = vmatprep.subr.bf16.mxu0 %v7783_v31  ;;  %7061 = vmatprep.subr.bf16.mxu1 %v7783_v31  ;;  %v404_v31 = vld [vmem:[%s8738_s20 + $0x1c0] sm:$0xff] }
  0xd0   : > { %1541 = vmatpush1.bf16.msra.mxu0 %v7785_v32  ;;  %7077 = vmatpush1.bf16.msra.mxu1 %v7785_v32  ;;  %v408_v32 = vld [vmem:[%s8738_s20 + $0x1e0] sm:$0xff] }
  0xd1   : > { %1542 = vmatprep.subr.bf16.mxu0 %v7786_v33  ;;  %7062 = vmatprep.subr.bf16.mxu1 %v7786_v33  ;;  %v413_v33 = vld [vmem:[%s8738_s20 + $0x208] sm:$0xff]  ;;  %v888_v35 = vpack.c.bf16 %v408_v32, %v404_v31 }
  0xd4   : > { %1543 = vmatpush1.bf16.msra.mxu0 %v7788_v34  ;;  %7078 = vmatpush1.bf16.msra.mxu1 %v7788_v34  ;;  %v417_v34 = vld [vmem:[%s8738_s20 + $0x228] sm:$0xff] }
  0xd5   : > { %2185 = vmatprep.subr.bf16.mxu0 %v7791_v37  ;;  %v893_v36 = vpack.c.bf16 %v417_v34, %v413_v33  ;;  %v412_v37 = vld [vmem:[%s8738_s20 + $0x200] sm:$0xff] }
  0xd6   : > { %v484_v33 = vld [vmem:[%s8738_s20 + $0x440] sm:$0xff] }
  0xd7   : > { %1545 = vmatmul.mubr.bf16.vlgmr.msra.gmra.mrb[0].mxu0 %v860_v40  ;;  %v425_v40 = vld [vmem:[%s8738_s20 + $0x268] sm:$0xff]  ;;  %v488_v34 = vld [vmem:[%s8738_s20 + $0x460] sm:$0xff] }
  0xd8   : > { %2186 = vmatpush1.bf16.msra.mxu0 %v7789_v41  ;;  %1554 = vmatprep.mubr.bf16.mxu0 %v865_v42  ;;  %v892_v41 = vpack.c.bf16 %v416_v38, %v412_v37  ;;  %v897_v42 = vpack.c.bf16 %v425_v40, %v421_v39  ;;  %v928_v37 = vpack.c.bf16 %v488_v34, %v484_v33  ;;  %v7825_v39 = vld [vmem:[#allocation7 + $0x1c0] ss:$8 sps:$4 sm:$0xff]   ;;  %v7827_v40 = vld [vmem:[#allocation7 + $0x1c4] ss:$8 sps:$4 sm:$0xff]  }
  0xd9   : > { %2187 = vmatprep.subr.bf16.mxu0 %v7794_v43  ;;  %v420_v43 = vld [vmem:[%s8738_s20 + $0x240] sm:$0xff] }
  0xda   : > { %v896_v47 = vpack.c.bf16 %v424_v44, %v420_v43  ;;  %v501_v43 = vld [vmem:[%s8738_s20 + $0x4c8] sm:$0xff] }
  0xdb   : > { %v505_v44 = vld [vmem:[%s8738_s20 + $0x4e8] sm:$0xff] }
  0xdc   : > { %2188 = vmatpush1.bf16.msra.mxu0 %v7792_v46  ;;  %v433_v46 = vld [vmem:[%s8738_s20 + $0x2a8] sm:$0xff] }
  0xdd   : > { %2189 = vmatprep.subr.bf16.mxu0 %v7797_v49  ;;  %v901_v48 = vpack.c.bf16 %v433_v46, %v429_v45  ;;  %v7816_v49 = vld [vmem:[#allocation7 + $0x190] ss:$8 sps:$4 sm:$0xff]   ;;  %v937_v46 = vpack.c.bf16 %v505_v44, %v501_v43  ;;  %v572_v43 = vld [vmem:[%s8738_s20 + $0x700] sm:$0xff] }
  0xde   : > { %v576_v44 = vld [vmem:[%s8738_s20 + $0x720] sm:$0xff] }
  0xdf   : > { %1555 = vmatmul.mubr.bf16.gmra.mrb[4].mxu0 %v864_v50  ;;  %v7818_v50 = vld [vmem:[#allocation7 + $0x194] ss:$8 sps:$4 sm:$0xff]  }
  0xe0   : > { %1564 = vmatprep.mubr.bf16.mxu0 %v869_v51  ;;  %2190 = vmatpush1.bf16.msra.mxu0 %v7795_v52  ;;  %v428_v51 = vld [vmem:[%s8738_s20 + $0x280] sm:$0xff] }
  0xe1   : > { %2191 = vmatprep.subr.bf16.mxu0 %v7800_v53  ;;  %v432_v52 = vld [vmem:[%s8738_s20 + $0x2a0] sm:$0xff]  ;;  %v437_v53 = vld [vmem:[%s8738_s20 + $0x2c8] sm:$0xff] }
  0xe2   : > { %v900_v55 = vpack.c.bf16 %v432_v52, %v428_v51 }
  0xe4   : > { %2192 = vmatpush1.bf16.msra.mxu0 %v7798_v56  ;;  %v905_v56 = vpack.c.bf16 %v441_v54, %v437_v53  ;;  %v508_v53 = vld [vmem:[%s8738_s20 + $0x500] sm:$0xff] }
  0xe5   : > { %2193 = vmatprep.subr.bf16.mxu0 %v7803_v59  ;;  %v445_v59 = vld [vmem:[%s8738_s20 + $0x308] sm:$0xff]  ;;  %v512_v54 = vld [vmem:[%s8738_s20 + $0x520] sm:$0xff] }
  0xe7   : > { %1565 = vmatmul.mubr.bf16.gmra.mrb[8].mxu0 %v868_v60  ;;  %v449_v60 = vld [vmem:[%s8738_s20 + $0x328] sm:$0xff] }
  0xe8   : > { %1574 = vmatprep.mubr.bf16.mxu0 %v873_v61  ;;  %2194 = vmatpush1.bf16.msra.mxu0 %v7801_v62  ;;  %v904_v61 = vpack.c.bf16 %v440_v58, %v436_v57  ;;  %v909_v62 = vpack.c.bf16 %v449_v60, %v445_v59  ;;  %v940_v57 = vpack.c.bf16 %v512_v54, %v508_v53  ;;  %v7828_v59 = vld [vmem:[#allocation7 + $0x1d0] ss:$8 sps:$4 sm:$0xff]   ;;  %v7830_v60 = vld [vmem:[#allocation7 + $0x1d4] ss:$8 sps:$4 sm:$0xff]  }
  0xe9   : > { %2195 = vmatprep.subr.bf16.mxu0 %v7806_v63  ;;  %v444_v63 = vld [vmem:[%s8738_s20 + $0x300] sm:$0xff] }
  0xea   : > { %v908_v3 = vpack.c.bf16 %v448_v0, %v444_v63  ;;  %v525_v63 = vld [vmem:[%s8738_s20 + $0x588] sm:$0xff] }
  0xeb   : > { %v529_v0 = vld [vmem:[%s8738_s20 + $0x5a8] sm:$0xff] }
  0xec   : > { %2196 = vmatpush1.bf16.msra.mxu0 %v7804_v2  ;;  %v457_v2 = vld [vmem:[%s8738_s20 + $0x368] sm:$0xff] }
  0xed   : > { %2197 = vmatprep.subr.bf16.mxu0 %v7809_v5  ;;  %v913_v4 = vpack.c.bf16 %v457_v2, %v453_v1  ;;  %v7819_v5 = vld [vmem:[#allocation7 + $0x1a0] ss:$8 sps:$4 sm:$0xff]   ;;  %v949_v2 = vpack.c.bf16 %v529_v0, %v525_v63 }
  0xee   : > { %v605_v63 = vld [vmem:[%s8738_s20 + $0x808] sm:$0xff] }
  0xef   : > { %1575 = vmatmul.mubr.bf16.gmra.mrb[12].mxu0 %v872_v6  ;;  %v7821_v6 = vld [vmem:[#allocation7 + $0x1a4] ss:$8 sps:$4 sm:$0xff]  }
  0xf0   : > { %1584 = vmatprep.mubr.bf16.mxu0 %v877_v7  ;;  %2198 = vmatpush1.bf16.msra.mxu0 %v7807_v8  ;;  %v452_v7 = vld [vmem:[%s8738_s20 + $0x340] sm:$0xff]  ;;  %v609_v0 = vld [vmem:[%s8738_s20 + $0x828] sm:$0xff] }
  0xf1   : > { %2199 = vmatprep.subr.bf16.mxu0 %v7812_v9  ;;  %v456_v8 = vld [vmem:[%s8738_s20 + $0x360] sm:$0xff]  ;;  %v461_v9 = vld [vmem:[%s8738_s20 + $0x388] sm:$0xff] }
  0xf2   : > { %v912_v11 = vpack.c.bf16 %v456_v8, %v452_v7 }
  0xf4   : > { %2200 = vmatpush1.bf16.msra.mxu0 %v7810_v12  ;;  %v917_v12 = vpack.c.bf16 %v465_v10, %v461_v9  ;;  %v532_v9 = vld [vmem:[%s8738_s20 + $0x5c0] sm:$0xff] }
  0xf5   : > { %2201 = vmatprep.subr.bf16.mxu0 %v7815_v30  ;;  %v489_v30 = vld [vmem:[%s8738_s20 + $0x468] sm:$0xff]  ;;  %v536_v10 = vld [vmem:[%s8738_s20 + $0x5e0] sm:$0xff] }
  0xf6   : > { %v952_v13 = vpack.c.bf16 %v536_v10, %v532_v9  ;;  %v612_v9 = vld [vmem:[%s8738_s20 + $0x840] sm:$0xff] }
  0xf7   : > { %1585 = vmatmul.mubr.bf16.gmra.mrb[16].mxu0 %v876_v15  ;;  %v469_v15 = vld [vmem:[%s8738_s20 + $0x3c8] sm:$0xff]  ;;  %v616_v10 = vld [vmem:[%s8738_s20 + $0x860] sm:$0xff] }
  0xf8   : > { %1594 = vmatprep.mubr.bf16.mxu0 %v881_v16  ;;  %2202 = vmatpush1.bf16.msra.mxu0 %v7813_v29  ;;  %v473_v16 = vld [vmem:[%s8738_s20 + $0x3e8] sm:$0xff] }
  0xf9   : > { %2203 = vmatprep.subr.bf16.mxu0 %v7818_v50  ;;  %v921_v18 = vpack.c.bf16 %v473_v16, %v469_v15  ;;  %v485_v29 = vld [vmem:[%s8738_s20 + $0x448] sm:$0xff] }
  0xfa   : > { %v929_v32 = vpack.c.bf16 %v489_v30, %v485_v29  ;;  %v513_v50 = vld [vmem:[%s8738_s20 + $0x528] sm:$0xff]  ;;  %v556_v29 = vld [vmem:[%s8738_s20 + $0x680] sm:$0xff] }
  0xfb   : > { %v7831_v15 = vld [vmem:[#allocation7 + $0x1e0] ss:$8 sps:$4 sm:$0xff]   ;;  %v7833_v16 = vld [vmem:[#allocation7 + $0x1e4] ss:$8 sps:$4 sm:$0xff]  }
  0xfc   : > { %2204 = vmatpush1.bf16.msra.mxu0 %v7816_v49  ;;  %v509_v49 = vld [vmem:[%s8738_s20 + $0x508] sm:$0xff]  ;;  %v560_v30 = vld [vmem:[%s8738_s20 + $0x6a0] sm:$0xff] }
  0xfd   : > { %2205 = vmatprep.subr.bf16.mxu0 %v7821_v6  ;;  %v941_v52 = vpack.c.bf16 %v513_v50, %v509_v49  ;;  %v537_v6 = vld [vmem:[%s8738_s20 + $0x5e8] sm:$0xff]  ;;  %v964_v33 = vpack.c.bf16 %v560_v30, %v556_v29  ;;  %v580_v49 = vld [vmem:[%s8738_s20 + $0x740] sm:$0xff] }
  0xfe   : > { %v584_v50 = vld [vmem:[%s8738_s20 + $0x760] sm:$0xff]  ;;  %v645_v29 = vld [vmem:[%s8738_s20 + $0x948] sm:$0xff] }
  0xff   : > { %1595 = vmatmul.mubr.bf16.gmra.mrb[20].mxu0 %v880_v21  ;;  %v477_v21 = vld [vmem:[%s8738_s20 + $0x408] sm:$0xff]  ;;  %v976_v53 = vpack.c.bf16 %v584_v50, %v580_v49 }
 0x100   : > { %1604 = vmatprep.mubr.bf16.mxu0 %v885_v22  ;;  %2206 = vmatpush1.bf16.msra.mxu0 %v7819_v5  ;;  %v481_v22 = vld [vmem:[%s8738_s20 + $0x428] sm:$0xff] }
 0x101   : > { %v925_v24 = vpack.c.bf16 %v481_v22, %v477_v21  ;;  %2207 = vmatprep.subr.bf16.mxu0 %v7824_v26  ;;  %v533_v5 = vld [vmem:[%s8738_s20 + $0x5c8] sm:$0xff]  ;;  %v961_v22 = vpack.c.bf16 %v553_v20, %v549_v19 }
 0x102   : > { %v953_v8 = vpack.c.bf16 %v537_v6, %v533_v5  ;;  %v561_v26 = vld [vmem:[%s8738_s20 + $0x6a8] sm:$0xff] }
 0x103   : > { %v613_v5 = vld [vmem:[%s8738_s20 + $0x848] sm:$0xff] }
 0x104   : > { %2208 = vmatpush1.bf16.msra.mxu0 %v7822_v25  ;;  %v557_v25 = vld [vmem:[%s8738_s20 + $0x688] sm:$0xff] }
 0x105   : > { %2209 = vmatprep.subr.bf16.mxu0 %v7827_v40  ;;  %v577_v40 = vld [vmem:[%s8738_s20 + $0x728] sm:$0xff] }
 0x106   : > { %v617_v6 = vld [vmem:[%s8738_s20 + $0x868] sm:$0xff] }
 0x107   : > { %1605 = vmatmul.mubr.bf16.gmra.mrb[24].mxu0 %v884_v27  ;;  %v476_v27 = vld [vmem:[%s8738_s20 + $0x400] sm:$0xff]  ;;  %v649_v30 = vld [vmem:[%s8738_s20 + $0x968] sm:$0xff] }
 0x108   : > { %1614 = vmatprep.mubr.bf16.mxu0 %v889_v28  ;;  %v480_v28 = vld [vmem:[%s8738_s20 + $0x420] sm:$0xff]  ;;  %2210 = vmatpush1.bf16.msra.mxu0 %v7825_v39  ;;  %v573_v39 = vld [vmem:[%s8738_s20 + $0x708] sm:$0xff] }
 0x109   : > { %v924_v31 = vpack.c.bf16 %v480_v28, %v476_v27  ;;  %2211 = vmatprep.subr.bf16.mxu0 %v7830_v60  ;;  %v965_v28 = vpack.c.bf16 %v561_v26, %v557_v25 }
 0x10c   : > { %2212 = vmatpush1.bf16.msra.mxu0 %v7828_v59 }
 0x10d   : > { %2213 = vmatprep.subr.bf16.mxu0 %v7833_v16  ;;  %v624_v16 = vld [vmem:[%s8738_s20 + $0x8a0] sm:$0xff] }
 0x10f   : > { %1615 = vmatmul.mubr.bf16.gmra.mrb[28].mxu0 %v888_v35  ;;  %v493_v35 = vld [vmem:[%s8738_s20 + $0x488] sm:$0xff] }
 0x110   : > { %1624 = vmatprep.mubr.bf16.mxu0 %v893_v36  ;;  %v497_v36 = vld [vmem:[%s8738_s20 + $0x4a8] sm:$0xff]  ;;  %2214 = vmatpush1.bf16.msra.mxu0 %v7831_v15  ;;  %v620_v15 = vld [vmem:[%s8738_s20 + $0x880] sm:$0xff] }
 0x111   : > { %v933_v38 = vpack.c.bf16 %v497_v36, %v493_v35  ;;  %v7834_v35 = vld [vmem:[#allocation7 + $0x1f0] ss:$8 sps:$4 sm:$0xff]   ;;  %v7836_v36 = vld [vmem:[#allocation7 + $0x1f4] ss:$8 sps:$4 sm:$0xff]   ;;  %v996_v19 = vpack.c.bf16 %v624_v16, %v620_v15 }
 0x112   : > { %2215 = vmatprep.subr.bf16.mxu0 %v7836_v36  ;;  %v657_v36 = vld [vmem:[%s8738_s20 + $0x9a8] sm:$0xff] }
 0x114   : > { %2216 = vmatpush1.bf16.msra.mxu0 %v7834_v35  ;;  %v653_v35 = vld [vmem:[%s8738_s20 + $0x988] sm:$0xff] }
 0x117   : > { %1625 = vmatmul.mubr.bf16.gmra.mrb[32].mxu0 %v892_v41  ;;  %v492_v41 = vld [vmem:[%s8738_s20 + $0x480] sm:$0xff] }
 0x118   : > { %1634 = vmatprep.mubr.bf16.mxu0 %v897_v42  ;;  %v496_v42 = vld [vmem:[%s8738_s20 + $0x4a0] sm:$0xff] }
 0x119   : > { %v932_v45 = vpack.c.bf16 %v496_v42, %v492_v41  ;;  %v973_v42 = vpack.c.bf16 %v577_v40, %v573_v39  ;;  %v652_v39 = vld [vmem:[%s8738_s20 + $0x980] sm:$0xff] }
 0x11a   : > { %v656_v40 = vld [vmem:[%s8738_s20 + $0x9a0] sm:$0xff] }
 0x11f   : > { %1635 = vmatmul.mubr.bf16.gmra.mrb[36].mxu0 %v896_v47  ;;  %v500_v47 = vld [vmem:[%s8738_s20 + $0x4c0] sm:$0xff] }
 0x120   : > { %1644 = vmatprep.mubr.bf16.mxu0 %v901_v48  ;;  %v504_v48 = vld [vmem:[%s8738_s20 + $0x4e0] sm:$0xff] }
 0x121   : > { %v936_v51 = vpack.c.bf16 %v504_v48, %v500_v47  ;;  %v972_v47 = vpack.c.bf16 %v576_v44, %v572_v43  ;;  %v1012_v43 = vpack.c.bf16 %v656_v40, %v652_v39 }
 0x127   : > { %1645 = vmatmul.mubr.bf16.gmra.mrb[40].mxu0 %v900_v55  ;;  %v517_v55 = vld [vmem:[%s8738_s20 + $0x548] sm:$0xff] }
 0x128   : > { %1654 = vmatprep.mubr.bf16.mxu0 %v905_v56  ;;  %v521_v56 = vld [vmem:[%s8738_s20 + $0x568] sm:$0xff] }
 0x129   : > { %v945_v58 = vpack.c.bf16 %v521_v56, %v517_v55  ;;  %v588_v55 = vld [vmem:[%s8738_s20 + $0x780] sm:$0xff] }
 0x12a   : > { %v592_v56 = vld [vmem:[%s8738_s20 + $0x7a0] sm:$0xff] }
 0x12b   : > { %v980_v59 = vpack.c.bf16 %v592_v56, %v588_v55 }
 0x12f   : > { %1655 = vmatmul.mubr.bf16.gmra.mrb[44].mxu0 %v904_v61  ;;  %v516_v61 = vld [vmem:[%s8738_s20 + $0x540] sm:$0xff] }
 0x130   : > { %1664 = vmatprep.mubr.bf16.mxu0 %v909_v62  ;;  %v520_v62 = vld [vmem:[%s8738_s20 + $0x560] sm:$0xff] }
 0x131   : > { %v944_v1 = vpack.c.bf16 %v520_v62, %v516_v61  ;;  %v596_v61 = vld [vmem:[%s8738_s20 + $0x7c0] sm:$0xff] }
 0x132   : > { %v600_v62 = vld [vmem:[%s8738_s20 + $0x7e0] sm:$0xff] }
 0x137   : > { %1665 = vmatmul.mubr.bf16.gmra.mrb[48].mxu0 %v908_v3  ;;  %v524_v3 = vld [vmem:[%s8738_s20 + $0x580] sm:$0xff] }
 0x138   : > { %1674 = vmatprep.mubr.bf16.mxu0 %v913_v4  ;;  %v528_v4 = vld [vmem:[%s8738_s20 + $0x5a0] sm:$0xff] }
 0x139   : > { %v948_v7 = vpack.c.bf16 %v528_v4, %v524_v3  ;;  %v604_v3 = vld [vmem:[%s8738_s20 + $0x800] sm:$0xff] }
 0x13a   : > { %v608_v4 = vld [vmem:[%s8738_s20 + $0x820] sm:$0xff] }
 0x13f   : > { %1675 = vmatmul.mubr.bf16.gmra.mrb[52].mxu0 %v912_v11  ;;  %v541_v11 = vld [vmem:[%s8738_s20 + $0x608] sm:$0xff] }
 0x140   : > { %1684 = vmatprep.mubr.bf16.mxu0 %v917_v12  ;;  %v545_v12 = vld [vmem:[%s8738_s20 + $0x628] sm:$0xff] }
 0x141   : > { %v957_v14 = vpack.c.bf16 %v545_v12, %v541_v11  ;;  %v621_v11 = vld [vmem:[%s8738_s20 + $0x888] sm:$0xff] }
 0x142   : > { %v625_v12 = vld [vmem:[%s8738_s20 + $0x8a8] sm:$0xff] }
 0x147   : > { %1685 = vmatmul.mubr.bf16.gmra.mrb[56].mxu0 %v916_v17  ;;  %v540_v17 = vld [vmem:[%s8738_s20 + $0x600] sm:$0xff] }
 0x148   : > { %1694 = vmatprep.mubr.bf16.mxu0 %v921_v18  ;;  %v544_v18 = vld [vmem:[%s8738_s20 + $0x620] sm:$0xff] }
 0x149   : > { %v956_v21 = vpack.c.bf16 %v544_v18, %v540_v17  ;;  %v629_v17 = vld [vmem:[%s8738_s20 + $0x8c8] sm:$0xff] }
 0x14a   : > { %v633_v18 = vld [vmem:[%s8738_s20 + $0x8e8] sm:$0xff] }
 0x14b   : > { %v1001_v20 = vpack.c.bf16 %v633_v18, %v629_v17  ;;  %v350_v17 = vld [vmem:[%s8738_s20 + $0x10] sm:$0xff] }
 0x14c   : > { %v354_v18 = vld [vmem:[%s8738_s20 + $0x30] sm:$0xff] }
 0x14f   : > { %1695 = vmatmul.mubr.bf16.gmra.mrb[60].mxu0 %v920_v23  ;;  %v548_v23 = vld [vmem:[%s8738_s20 + $0x640] sm:$0xff] }
 0x150   : > { %1704 = vmatprep.mubr.bf16.mxu0 %v925_v24  ;;  %v552_v24 = vld [vmem:[%s8738_s20 + $0x660] sm:$0xff] }
 0x151   : > { %v960_v27 = vpack.c.bf16 %v552_v24, %v548_v23  ;;  %v637_v23 = vld [vmem:[%s8738_s20 + $0x908] sm:$0xff] }
 0x152   : > { %v641_v24 = vld [vmem:[%s8738_s20 + $0x928] sm:$0xff] }
 0x153   : > { %v1005_v26 = vpack.c.bf16 %v641_v24, %v637_v23  ;;  %v358_v23 = vld [vmem:[%s8738_s20 + $0x50] sm:$0xff] }
 0x154   : > { %v362_v24 = vld [vmem:[%s8738_s20 + $0x70] sm:$0xff] }
 0x157   : > { %1705 = vmatmul.mubr.bf16.gmra.mrb[64].mxu0 %v924_v31  ;;  %v565_v31 = vld [vmem:[%s8738_s20 + $0x6c8] sm:$0xff] }
 0x158   : > { %1714 = vmatprep.mubr.bf16.mxu0 %v929_v32  ;;  %v569_v32 = vld [vmem:[%s8738_s20 + $0x6e8] sm:$0xff] }
 0x159   : > { %v969_v34 = vpack.c.bf16 %v569_v32, %v565_v31  ;;  %v1009_v32 = vpack.c.bf16 %v649_v30, %v645_v29  ;;  %v366_v29 = vld [vmem:[%s8738_s20 + $0x90] sm:$0xff] }
 0x15a   : > { %v370_v30 = vld [vmem:[%s8738_s20 + $0xb0] sm:$0xff] }
 0x15f   : > { %1715 = vmatmul.mubr.bf16.gmra.mrb[68].mxu0 %v928_v37  ;;  %v564_v37 = vld [vmem:[%s8738_s20 + $0x6c0] sm:$0xff] }
 0x160   : > { %1724 = vmatprep.mubr.bf16.mxu0 %v933_v38  ;;  %v568_v38 = vld [vmem:[%s8738_s20 + $0x6e0] sm:$0xff] }
 0x161   : > { %v968_v41 = vpack.c.bf16 %v568_v38, %v564_v37  ;;  %v1013_v38 = vpack.c.bf16 %v657_v36, %v653_v35  ;;  %v374_v35 = vld [vmem:[%s8738_s20 + $0xd0] sm:$0xff] }
 0x162   : > { %v378_v36 = vld [vmem:[%s8738_s20 + $0xf0] sm:$0xff] }
 0x163   : > { %v874_v39 = vpack.c.bf16 %v378_v36, %v374_v35 }
 0x167   : > { %1725 = vmatmul.mubr.bf16.gmra.mrb[72].mxu0 %v932_v45  ;;  %v581_v45 = vld [vmem:[%s8738_s20 + $0x748] sm:$0xff] }
 0x168   : > { %1734 = vmatprep.mubr.bf16.mxu0 %v937_v46  ;;  %v585_v46 = vld [vmem:[%s8738_s20 + $0x768] sm:$0xff] }
 0x169   : > { %v977_v48 = vpack.c.bf16 %v585_v46, %v581_v45  ;;  %v660_v45 = vld [vmem:[%s8738_s20 + $0x9c0] sm:$0xff] }
 0x16a   : > { %v664_v46 = vld [vmem:[%s8738_s20 + $0x9e0] sm:$0xff] }
 0x16b   : > { %v1016_v49 = vpack.c.bf16 %v664_v46, %v660_v45 }
 0x16f   : > { %1735 = vmatmul.mubr.bf16.gmra.mrb[76].mxu0 %v936_v51  ;;  %v589_v51 = vld [vmem:[%s8738_s20 + $0x788] sm:$0xff] }
 0x170   : > { %1744 = vmatprep.mubr.bf16.mxu0 %v941_v52  ;;  %v593_v52 = vld [vmem:[%s8738_s20 + $0x7a8] sm:$0xff] }
 0x171   : > { %v981_v54 = vpack.c.bf16 %v593_v52, %v589_v51  ;;  %v668_v51 = vld [vmem:[%s8738_s20 + $0xa00] sm:$0xff] }
 0x172   : > { %v672_v52 = vld [vmem:[%s8738_s20 + $0xa20] sm:$0xff] }
 0x173   : > { %v1020_v55 = vpack.c.bf16 %v672_v52, %v668_v51 }
 0x177   : > { %1745 = vmatmul.mubr.bf16.gmra.mrb[80].mxu0 %v940_v57  ;;  %v597_v57 = vld [vmem:[%s8738_s20 + $0x7c8] sm:$0xff] }
 0x178   : > { %1754 = vmatprep.mubr.bf16.mxu0 %v945_v58  ;;  %v601_v58 = vld [vmem:[%s8738_s20 + $0x7e8] sm:$0xff] }
 0x179   : > { %v985_v60 = vpack.c.bf16 %v601_v58, %v597_v57  ;;  %v676_v57 = vld [vmem:[%s8738_s20 + $0xa40] sm:$0xff] }
 0x17a   : > { %v680_v58 = vld [vmem:[%s8738_s20 + $0xa60] sm:$0xff] }
 0x17f   : > { %1755 = vmatmul.mubr.bf16.gmra.mrb[84].mxu0 %v944_v1  ;;  %v984_v1 = vpack.c.bf16 %v600_v62, %v596_v61  ;;  %v1024_v61 = vpack.c.bf16 %v680_v58, %v676_v57 }
 0x180   : > { %1764 = vmatprep.mubr.bf16.mxu0 %v949_v2  ;;  %v989_v2 = vpack.c.bf16 %v609_v0, %v605_v63  ;;  %v684_v63 = vld [vmem:[%s8738_s20 + $0xa80] sm:$0xff] }
 0x181   : > { %v688_v0 = vld [vmem:[%s8738_s20 + $0xaa0] sm:$0xff] }
 0x187   : > { %1765 = vmatmul.mubr.bf16.gmra.mrb[88].mxu0 %v948_v7  ;;  %v988_v7 = vpack.c.bf16 %v608_v4, %v604_v3  ;;  %v1028_v3 = vpack.c.bf16 %v688_v0, %v684_v63 }
 0x188   : > { %1774 = vmatprep.mubr.bf16.mxu0 %v953_v8  ;;  %v993_v8 = vpack.c.bf16 %v617_v6, %v613_v5  ;;  %v692_v5 = vld [vmem:[%s8738_s20 + $0xac0] sm:$0xff] }
 0x189   : > { %v696_v6 = vld [vmem:[%s8738_s20 + $0xae0] sm:$0xff] }
 0x18f   : > { %1775 = vmatmul.mubr.bf16.gmra.mrb[92].mxu0 %v952_v13  ;;  %v992_v13 = vpack.c.bf16 %v616_v10, %v612_v9  ;;  %v1032_v9 = vpack.c.bf16 %v696_v6, %v692_v5 }
 0x190   : > { %1784 = vmatprep.mubr.bf16.mxu0 %v957_v14  ;;  %v997_v14 = vpack.c.bf16 %v625_v12, %v621_v11  ;;  %v700_v11 = vld [vmem:[%s8738_s20 + $0xb00] sm:$0xff] }
 0x191   : > { %v704_v12 = vld [vmem:[%s8738_s20 + $0xb20] sm:$0xff] }
 0x192   : > { %v1036_v15 = vpack.c.bf16 %v704_v12, %v700_v11 }
 0x197   : > { %1785 = vmatmul.mubr.bf16.gmra.mrb[96].mxu0 %v956_v21  ;;  %v628_v21 = vld [vmem:[%s8738_s20 + $0x8c0] sm:$0xff] }
 0x198   : > { %1794 = vmatprep.mubr.bf16.mxu0 %v961_v22  ;;  %v632_v22 = vld [vmem:[%s8738_s20 + $0x8e0] sm:$0xff] }
 0x199   : > { %v1000_v25 = vpack.c.bf16 %v632_v22, %v628_v21  ;;  %v862_v21 = vpack.c.bf16 %v354_v18, %v350_v17 }
 0x19f   : > { %1795 = vmatmul.mubr.bf16.gmra.mrb[100].mxu0 %v960_v27  ;;  %v636_v27 = vld [vmem:[%s8738_s20 + $0x900] sm:$0xff] }
 0x1a0   : > { %1804 = vmatprep.mubr.bf16.mxu0 %v965_v28  ;;  %v640_v28 = vld [vmem:[%s8738_s20 + $0x920] sm:$0xff] }
 0x1a1   : > { %v1004_v31 = vpack.c.bf16 %v640_v28, %v636_v27  ;;  %v866_v27 = vpack.c.bf16 %v362_v24, %v358_v23 }
 0x1a7   : > { %1805 = vmatmul.mubr.bf16.gmra.mrb[104].mxu0 %v964_v33  ;;  %v644_v33 = vld [vmem:[%s8738_s20 + $0x940] sm:$0xff] }
 0x1a8   : > { %1814 = vmatprep.mubr.bf16.mxu0 %v969_v34  ;;  %v648_v34 = vld [vmem:[%s8738_s20 + $0x960] sm:$0xff] }
 0x1a9   : > { %v1008_v37 = vpack.c.bf16 %v648_v34, %v644_v33  ;;  %v870_v33 = vpack.c.bf16 %v370_v30, %v366_v29 }
 0x1af   : > { %1815 = vmatmul.mubr.bf16.gmra.mrb[108].mxu0 %v968_v41  ;;  %v661_v41 = vld [vmem:[%s8738_s20 + $0x9c8] sm:$0xff] }
 0x1b0   : > { %1824 = vmatprep.mubr.bf16.mxu0 %v973_v42  ;;  %v665_v42 = vld [vmem:[%s8738_s20 + $0x9e8] sm:$0xff] }
 0x1b1   : > { %v1017_v44 = vpack.c.bf16 %v665_v42, %v661_v41  ;;  %v382_v41 = vld [vmem:[%s8738_s20 + $0x110] sm:$0xff] }
 0x1b2   : > { %v386_v42 = vld [vmem:[%s8738_s20 + $0x130] sm:$0xff] }
 0x1b3   : > { %v878_v45 = vpack.c.bf16 %v386_v42, %v382_v41 }
 0x1b7   : > { %1825 = vmatmul.mubr.bf16.gmra.mrb[112].mxu0 %v972_v47  ;;  %v669_v47 = vld [vmem:[%s8738_s20 + $0xa08] sm:$0xff] }
 0x1b8   : > { %1834 = vmatprep.mubr.bf16.mxu0 %v977_v48  ;;  %v673_v48 = vld [vmem:[%s8738_s20 + $0xa28] sm:$0xff] }
 0x1b9   : > { %v1021_v50 = vpack.c.bf16 %v673_v48, %v669_v47  ;;  %v390_v47 = vld [vmem:[%s8738_s20 + $0x150] sm:$0xff] }
 0x1ba   : > { %v394_v48 = vld [vmem:[%s8738_s20 + $0x170] sm:$0xff] }
 0x1bb   : > { %v882_v51 = vpack.c.bf16 %v394_v48, %v390_v47 }
 0x1bf   : > { %1835 = vmatmul.mubr.bf16.gmra.mrb[116].mxu0 %v976_v53  ;;  %v677_v53 = vld [vmem:[%s8738_s20 + $0xa48] sm:$0xff] }
 0x1c0   : > { %1844 = vmatprep.mubr.bf16.mxu0 %v981_v54  ;;  %v681_v54 = vld [vmem:[%s8738_s20 + $0xa68] sm:$0xff] }
 0x1c1   : > { %v1025_v56 = vpack.c.bf16 %v681_v54, %v677_v53  ;;  %v398_v53 = vld [vmem:[%s8738_s20 + $0x190] sm:$0xff] }
 0x1c2   : > { %v402_v54 = vld [vmem:[%s8738_s20 + $0x1b0] sm:$0xff] }
 0x1c3   : > { %v886_v57 = vpack.c.bf16 %v402_v54, %v398_v53 }
 0x1c7   : > { %1845 = vmatmul.mubr.bf16.gmra.mrb[120].mxu0 %v980_v59  ;;  %v685_v59 = vld [vmem:[%s8738_s20 + $0xa88] sm:$0xff] }
 0x1c8   : > { %1854 = vmatprep.mubr.bf16.mxu0 %v985_v60  ;;  %v689_v60 = vld [vmem:[%s8738_s20 + $0xaa8] sm:$0xff] }
 0x1c9   : > { %v1029_v62 = vpack.c.bf16 %v689_v60, %v685_v59  ;;  %v406_v59 = vld [vmem:[%s8738_s20 + $0x1d0] sm:$0xff] }
 0x1ca   : > { %v410_v60 = vld [vmem:[%s8738_s20 + $0x1f0] sm:$0xff] }
 0x1cb   : > { %v890_v63 = vpack.c.bf16 %v410_v60, %v406_v59 }
 0x1cf   : > { %1855 = vmatmul.mubr.bf16.gmra.mrb[124].mxu0 %v984_v1  ;;  %v693_v1 = vld [vmem:[%s8738_s20 + $0xac8] sm:$0xff] }
 0x1d0   : > { %1864 = vmatprep.mubr.bf16.mxu0 %v989_v2  ;;  %v697_v2 = vld [vmem:[%s8738_s20 + $0xae8] sm:$0xff] }
 0x1d1   : > { %v1033_v4 = vpack.c.bf16 %v697_v2, %v693_v1  ;;  %v414_v1 = vld [vmem:[%s8738_s20 + $0x210] sm:$0xff] }
 0x1d2   : > { %v418_v2 = vld [vmem:[%s8738_s20 + $0x230] sm:$0xff] }
 0x1d3   : > { %v894_v5 = vpack.c.bf16 %v418_v2, %v414_v1 }
 0x1d7   : > { %1865 = vmatmul.mubr.bf16.gmra.mrb[128].mxu0 %v988_v7  ;;  %v701_v7 = vld [vmem:[%s8738_s20 + $0xb08] sm:$0xff] }
 0x1d8   : > { %1874 = vmatprep.mubr.bf16.mxu0 %v993_v8  ;;  %v705_v8 = vld [vmem:[%s8738_s20 + $0xb28] sm:$0xff] }
 0x1d9   : > { %v1037_v10 = vpack.c.bf16 %v705_v8, %v701_v7  ;;  %v422_v7 = vld [vmem:[%s8738_s20 + $0x250] sm:$0xff] }
 0x1da   : > { %v426_v8 = vld [vmem:[%s8738_s20 + $0x270] sm:$0xff] }
 0x1db   : > { %v898_v11 = vpack.c.bf16 %v426_v8, %v422_v7 }
 0x1df   : > { %1875 = vmatmul.mubr.bf16.gmra.mrb[132].mxu0 %v992_v13  ;;  %v351_v13 = vld [vmem:[%s8738_s20 + $0x18] sm:$0xff] }
 0x1e0   : > { %1884 = vmatprep.mubr.bf16.mxu0 %v997_v14  ;;  %v355_v14 = vld [vmem:[%s8738_s20 + $0x38] sm:$0xff] }
 0x1e1   : > { %v863_v16 = vpack.c.bf16 %v355_v14, %v351_v13  ;;  %v430_v13 = vld [vmem:[%s8738_s20 + $0x290] sm:$0xff] }
 0x1e2   : > { %v434_v14 = vld [vmem:[%s8738_s20 + $0x2b0] sm:$0xff] }
 0x1e3   : > { %v902_v17 = vpack.c.bf16 %v434_v14, %v430_v13 }
 0x1e7   : > { %1885 = vmatmul.mubr.bf16.gmra.mrb[136].mxu0 %v996_v19  ;;  %v359_v19 = vld [vmem:[%s8738_s20 + $0x58] sm:$0xff] }
 0x1e8   : > { %1894 = vmatprep.mubr.bf16.mxu0 %v1001_v20  ;;  %v363_v20 = vld [vmem:[%s8738_s20 + $0x78] sm:$0xff] }
 0x1e9   : > { %v867_v22 = vpack.c.bf16 %v363_v20, %v359_v19  ;;  %v438_v19 = vld [vmem:[%s8738_s20 + $0x2d0] sm:$0xff] }
 0x1ea   : > { %v442_v20 = vld [vmem:[%s8738_s20 + $0x2f0] sm:$0xff] }
 0x1eb   : > { %v906_v23 = vpack.c.bf16 %v442_v20, %v438_v19  ;;  %v708_v20 = vld [vmem:[%s8738_s20 + $0xb40] sm:$0xff] }
 0x1ef   : > { %1895 = vmatmul.mubr.bf16.gmra.mrb[140].mxu0 %v1000_v25  ;;  %v367_v25 = vld [vmem:[%s8738_s20 + $0x98] sm:$0xff] }
 0x1f0   : > { %1904 = vmatprep.mubr.bf16.mxu0 %v1005_v26  ;;  %v371_v26 = vld [vmem:[%s8738_s20 + $0xb8] sm:$0xff] }
 0x1f1   : > { %v871_v28 = vpack.c.bf16 %v371_v26, %v367_v25  ;;  %v446_v25 = vld [vmem:[%s8738_s20 + $0x310] sm:$0xff] }
 0x1f2   : > { %v450_v26 = vld [vmem:[%s8738_s20 + $0x330] sm:$0xff] }
 0x1f3   : > { %v910_v29 = vpack.c.bf16 %v450_v26, %v446_v25 }
 0x1f7   : > { %1905 = vmatmul.mubr.bf16.gmra.mrb[144].mxu0 %v1004_v31  ;;  %v375_v31 = vld [vmem:[%s8738_s20 + $0xd8] sm:$0xff] }
 0x1f8   : > { %1914 = vmatprep.mubr.bf16.mxu0 %v1009_v32  ;;  %v379_v32 = vld [vmem:[%s8738_s20 + $0xf8] sm:$0xff] }
 0x1f9   : > { %v875_v34 = vpack.c.bf16 %v379_v32, %v375_v31  ;;  %v454_v31 = vld [vmem:[%s8738_s20 + $0x350] sm:$0xff] }
 0x1fa   : > { %v458_v32 = vld [vmem:[%s8738_s20 + $0x370] sm:$0xff] }
 0x1fb   : > { %v914_v35 = vpack.c.bf16 %v458_v32, %v454_v31  ;;  %v716_v32 = vld [vmem:[%s8738_s20 + $0xb80] sm:$0xff] }
 0x1ff   : > { %1915 = vmatmul.mubr.bf16.gmra.mrb[148].mxu0 %v1008_v37  ;;  %v383_v37 = vld [vmem:[%s8738_s20 + $0x118] sm:$0xff] }
 0x200   : > { %1924 = vmatprep.mubr.bf16.mxu0 %v1013_v38  ;;  %v387_v38 = vld [vmem:[%s8738_s20 + $0x138] sm:$0xff] }
 0x201   : > { %v879_v40 = vpack.c.bf16 %v387_v38, %v383_v37  ;;  %v462_v37 = vld [vmem:[%s8738_s20 + $0x390] sm:$0xff] }
 0x202   : > { %v466_v38 = vld [vmem:[%s8738_s20 + $0x3b0] sm:$0xff] }
 0x203   : > { %v918_v41 = vpack.c.bf16 %v466_v38, %v462_v37 }
 0x207   : > { %1925 = vmatmul.mubr.bf16.gmra.mrb[152].mxu0 %v1012_v43  ;;  %v391_v43 = vld [vmem:[%s8738_s20 + $0x158] sm:$0xff] }
 0x208   : > { %1934 = vmatprep.mubr.bf16.mxu0 %v1017_v44  ;;  %v395_v44 = vld [vmem:[%s8738_s20 + $0x178] sm:$0xff] }
 0x209   : > { %v883_v46 = vpack.c.bf16 %v395_v44, %v391_v43  ;;  %v470_v43 = vld [vmem:[%s8738_s20 + $0x3d0] sm:$0xff] }
 0x20a   : > { %v474_v44 = vld [vmem:[%s8738_s20 + $0x3f0] sm:$0xff] }
 0x20b   : > { %v922_v47 = vpack.c.bf16 %v474_v44, %v470_v43  ;;  %v724_v44 = vld [vmem:[%s8738_s20 + $0xbc0] sm:$0xff] }
 0x20f   : > { %1935 = vmatmul.mubr.bf16.gmra.mrb[156].mxu0 %v1016_v49  ;;  %v399_v49 = vld [vmem:[%s8738_s20 + $0x198] sm:$0xff] }
 0x210   : > { %1944 = vmatprep.mubr.bf16.mxu0 %v1021_v50  ;;  %v403_v50 = vld [vmem:[%s8738_s20 + $0x1b8] sm:$0xff] }
 0x211   : > { %v887_v52 = vpack.c.bf16 %v403_v50, %v399_v49  ;;  %v478_v49 = vld [vmem:[%s8738_s20 + $0x410] sm:$0xff] }
 0x212   : > { %v482_v50 = vld [vmem:[%s8738_s20 + $0x430] sm:$0xff] }
 0x213   : > { %v926_v53 = vpack.c.bf16 %v482_v50, %v478_v49 }
 0x217   : > { %1945 = vmatmul.mubr.bf16.gmra.mrb[160].mxu0 %v1020_v55  ;;  %v407_v55 = vld [vmem:[%s8738_s20 + $0x1d8] sm:$0xff] }
 0x218   : > { %1954 = vmatprep.mubr.bf16.mxu0 %v1025_v56  ;;  %v411_v56 = vld [vmem:[%s8738_s20 + $0x1f8] sm:$0xff] }
 0x219   : > { %v891_v58 = vpack.c.bf16 %v411_v56, %v407_v55  ;;  %v486_v55 = vld [vmem:[%s8738_s20 + $0x450] sm:$0xff] }
 0x21a   : > { %v490_v56 = vld [vmem:[%s8738_s20 + $0x470] sm:$0xff] }
 0x21b   : > { %v930_v59 = vpack.c.bf16 %v490_v56, %v486_v55  ;;  %v732_v56 = vld [vmem:[%s8738_s20 + $0xc00] sm:$0xff] }
 0x21f   : > { %1955 = vmatmul.mubr.bf16.gmra.mrb[164].mxu0 %v1024_v61  ;;  %v415_v61 = vld [vmem:[%s8738_s20 + $0x218] sm:$0xff] }
 0x220   : > { %1964 = vmatprep.mubr.bf16.mxu0 %v1029_v62  ;;  %v419_v62 = vld [vmem:[%s8738_s20 + $0x238] sm:$0xff] }
 0x221   : > { %v895_v0 = vpack.c.bf16 %v419_v62, %v415_v61  ;;  %v494_v61 = vld [vmem:[%s8738_s20 + $0x490] sm:$0xff] }
 0x222   : > { %v498_v62 = vld [vmem:[%s8738_s20 + $0x4b0] sm:$0xff] }
 0x223   : > { %v934_v1 = vpack.c.bf16 %v498_v62, %v494_v61 }
 0x227   : > { %1965 = vmatmul.mubr.bf16.gmra.mrb[168].mxu0 %v1028_v3  ;;  %v423_v3 = vld [vmem:[%s8738_s20 + $0x258] sm:$0xff] }
 0x228   : > { %1974 = vmatprep.mubr.bf16.mxu0 %v1033_v4  ;;  %v427_v4 = vld [vmem:[%s8738_s20 + $0x278] sm:$0xff] }
 0x229   : > { %v899_v6 = vpack.c.bf16 %v427_v4, %v423_v3  ;;  %v502_v3 = vld [vmem:[%s8738_s20 + $0x4d0] sm:$0xff] }
 0x22a   : > { %v506_v4 = vld [vmem:[%s8738_s20 + $0x4f0] sm:$0xff] }
 0x22b   : > { %v938_v7 = vpack.c.bf16 %v506_v4, %v502_v3  ;;  %v740_v4 = vld [vmem:[%s8738_s20 + $0xc40] sm:$0xff] }
 0x22f   : > { %1975 = vmatmul.mubr.bf16.gmra.mrb[172].mxu0 %v1032_v9  ;;  %v431_v9 = vld [vmem:[%s8738_s20 + $0x298] sm:$0xff] }
 0x230   : > { %1984 = vmatprep.mubr.bf16.mxu0 %v1037_v10  ;;  %v435_v10 = vld [vmem:[%s8738_s20 + $0x2b8] sm:$0xff] }
 0x231   : > { %v903_v12 = vpack.c.bf16 %v435_v10, %v431_v9  ;;  %v510_v9 = vld [vmem:[%s8738_s20 + $0x510] sm:$0xff] }
 0x232   : > { %v514_v10 = vld [vmem:[%s8738_s20 + $0x530] sm:$0xff] }
 0x233   : > { %v942_v13 = vpack.c.bf16 %v514_v10, %v510_v9 }
 0x237   : > { %1985 = vmatmul.mubr.bf16.gmra.mrb[176].mxu0 %v1036_v15  ;;  %v439_v15 = vld [vmem:[%s8738_s20 + $0x2d8] sm:$0xff] }
 0x238   : > { %2217 = vmatprep.mubr.bf16.mxu0 %v863_v16  ;;  %v443_v16 = vld [vmem:[%s8738_s20 + $0x2f8] sm:$0xff] }
 0x239   : > { %v907_v18 = vpack.c.bf16 %v443_v16, %v439_v15  ;;  %v518_v15 = vld [vmem:[%s8738_s20 + $0x550] sm:$0xff]  ;;  %v709_v16 = vld [vmem:[%s8738_s20 + $0xb48] sm:$0xff] }
 0x23f   : > { %2218 = vmatmul.mubr.bf16.vlgmr.msra.gmra.mrb[0].mxu0 %v862_v21  ;;  %v447_v21 = vld [vmem:[%s8738_s20 + $0x318] sm:$0xff] }
 0x240   : > { %2227 = vmatprep.mubr.bf16.mxu0 %v867_v22  ;;  %v451_v22 = vld [vmem:[%s8738_s20 + $0x338] sm:$0xff] }
 0x241   : > { %v911_v24 = vpack.c.bf16 %v451_v22, %v447_v21  ;;  %v712_v21 = vld [vmem:[%s8738_s20 + $0xb60] sm:$0xff]  ;;  %v527_v22 = vld [vmem:[%s8738_s20 + $0x598] sm:$0xff] }
 0x247   : > { %2228 = vmatmul.mubr.bf16.gmra.mrb[4].mxu0 %v866_v27  ;;  %v455_v27 = vld [vmem:[%s8738_s20 + $0x358] sm:$0xff] }
 0x248   : > { %2237 = vmatprep.mubr.bf16.mxu0 %v871_v28  ;;  %v459_v28 = vld [vmem:[%s8738_s20 + $0x378] sm:$0xff] }
 0x249   : > { %v915_v30 = vpack.c.bf16 %v459_v28, %v455_v27  ;;  %v526_v27 = vld [vmem:[%s8738_s20 + $0x590] sm:$0xff]  ;;  %v717_v28 = vld [vmem:[%s8738_s20 + $0xb88] sm:$0xff] }
 0x24f   : > { %2238 = vmatmul.mubr.bf16.gmra.mrb[8].mxu0 %v870_v33  ;;  %v463_v33 = vld [vmem:[%s8738_s20 + $0x398] sm:$0xff] }
 0x250   : > { %2247 = vmatprep.mubr.bf16.mxu0 %v875_v34  ;;  %v467_v34 = vld [vmem:[%s8738_s20 + $0x3b8] sm:$0xff] }
 0x251   : > { %v919_v36 = vpack.c.bf16 %v467_v34, %v463_v33  ;;  %v720_v33 = vld [vmem:[%s8738_s20 + $0xba0] sm:$0xff]  ;;  %v535_v34 = vld [vmem:[%s8738_s20 + $0x5d8] sm:$0xff] }
 0x257   : > { %2248 = vmatmul.mubr.bf16.gmra.mrb[12].mxu0 %v874_v39  ;;  %v471_v39 = vld [vmem:[%s8738_s20 + $0x3d8] sm:$0xff] }
 0x258   : > { %2257 = vmatprep.mubr.bf16.mxu0 %v879_v40  ;;  %v475_v40 = vld [vmem:[%s8738_s20 + $0x3f8] sm:$0xff] }
 0x259   : > { %v923_v42 = vpack.c.bf16 %v475_v40, %v471_v39  ;;  %v534_v39 = vld [vmem:[%s8738_s20 + $0x5d0] sm:$0xff]  ;;  %v725_v40 = vld [vmem:[%s8738_s20 + $0xbc8] sm:$0xff] }
 0x25f   : > { %2258 = vmatmul.mubr.bf16.gmra.mrb[16].mxu0 %v878_v45  ;;  %v479_v45 = vld [vmem:[%s8738_s20 + $0x418] sm:$0xff] }
 0x260   : > { %2267 = vmatprep.mubr.bf16.mxu0 %v883_v46  ;;  %v483_v46 = vld [vmem:[%s8738_s20 + $0x438] sm:$0xff] }
 0x261   : > { %v927_v48 = vpack.c.bf16 %v483_v46, %v479_v45  ;;  %v728_v45 = vld [vmem:[%s8738_s20 + $0xbe0] sm:$0xff]  ;;  %v543_v46 = vld [vmem:[%s8738_s20 + $0x618] sm:$0xff] }
 0x267   : > { %2268 = vmatmul.mubr.bf16.gmra.mrb[20].mxu0 %v882_v51  ;;  %v487_v51 = vld [vmem:[%s8738_s20 + $0x458] sm:$0xff] }
 0x268   : > { %2277 = vmatprep.mubr.bf16.mxu0 %v887_v52  ;;  %v491_v52 = vld [vmem:[%s8738_s20 + $0x478] sm:$0xff] }
 0x269   : > { %v931_v54 = vpack.c.bf16 %v491_v52, %v487_v51  ;;  %v542_v51 = vld [vmem:[%s8738_s20 + $0x610] sm:$0xff]  ;;  %v733_v52 = vld [vmem:[%s8738_s20 + $0xc08] sm:$0xff] }
 0x26f   : > { %2278 = vmatmul.mubr.bf16.gmra.mrb[24].mxu0 %v886_v57  ;;  %v495_v57 = vld [vmem:[%s8738_s20 + $0x498] sm:$0xff] }
 0x270   : > { %2287 = vmatprep.mubr.bf16.mxu0 %v891_v58  ;;  %v499_v58 = vld [vmem:[%s8738_s20 + $0x4b8] sm:$0xff] }
 0x271   : > { %v935_v60 = vpack.c.bf16 %v499_v58, %v495_v57  ;;  %v736_v57 = vld [vmem:[%s8738_s20 + $0xc20] sm:$0xff]  ;;  %v551_v58 = vld [vmem:[%s8738_s20 + $0x658] sm:$0xff] }
 0x277   : > { %2288 = vmatmul.mubr.bf16.gmra.mrb[28].mxu0 %v890_v63  ;;  %v503_v63 = vld [vmem:[%s8738_s20 + $0x4d8] sm:$0xff] }
 0x278   : > { %2297 = vmatprep.mubr.bf16.mxu0 %v895_v0  ;;  %v507_v0 = vld [vmem:[%s8738_s20 + $0x4f8] sm:$0xff] }
 0x279   : > { %v939_v2 = vpack.c.bf16 %v507_v0, %v503_v63  ;;  %v550_v63 = vld [vmem:[%s8738_s20 + $0x650] sm:$0xff]  ;;  %v741_v0 = vld [vmem:[%s8738_s20 + $0xc48] sm:$0xff] }
 0x27f   : > { %2298 = vmatmul.mubr.bf16.gmra.mrb[32].mxu0 %v894_v5  ;;  %v511_v5 = vld [vmem:[%s8738_s20 + $0x518] sm:$0xff] }
 0x280   : > { %2307 = vmatprep.mubr.bf16.mxu0 %v899_v6  ;;  %v515_v6 = vld [vmem:[%s8738_s20 + $0x538] sm:$0xff] }
 0x281   : > { %v943_v8 = vpack.c.bf16 %v515_v6, %v511_v5  ;;  %v744_v5 = vld [vmem:[%s8738_s20 + $0xc60] sm:$0xff]  ;;  %v559_v6 = vld [vmem:[%s8738_s20 + $0x698] sm:$0xff] }
 0x287   : > { %2308 = vmatmul.mubr.bf16.gmra.mrb[36].mxu0 %v898_v11  ;;  %v519_v11 = vld [vmem:[%s8738_s20 + $0x558] sm:$0xff] }
 0x288   : > { %2317 = vmatprep.mubr.bf16.mxu0 %v903_v12  ;;  %v523_v12 = vld [vmem:[%s8738_s20 + $0x578] sm:$0xff] }
 0x289   : > { %v947_v14 = vpack.c.bf16 %v523_v12, %v519_v11  ;;  %v12807_v11 = vlaneseq  ;;  %v558_v12 = vld [vmem:[%s8738_s20 + $0x690] sm:$0xff] }
 0x28f   : > { %2318 = vmatmul.mubr.bf16.gmra.mrb[40].mxu0 %v902_v17  ;;  %v713_v17 = vld [vmem:[%s8738_s20 + $0xb68] sm:$0xff] }
 0x290   : > { %2327 = vmatprep.mubr.bf16.mxu0 %v907_v18  ;;  %v522_v18 = vld [vmem:[%s8738_s20 + $0x570] sm:$0xff]  ;;  %v1041_v19 = vpack.c.bf16 %v713_v17, %v709_v16  ;;  %v748_v17 = vld [vmem:[%s8738_s20 + $0xc80] sm:$0xff] }
 0x291   : > { %v946_v25 = vpack.c.bf16 %v522_v18, %v518_v15  ;;  %v562_v15 = vld [vmem:[%s8738_s20 + $0x6b0] sm:$0xff]  ;;  %v752_v18 = vld [vmem:[%s8738_s20 + $0xca0] sm:$0xff] }
 0x292   : > { %1994 = vmatprep.mubr.bf16.mxu1 %v1041_v19  ;;  %v9065_v19 = vshrl.u32 %v12807_v11, 7 }
 0x294   : > { %13000 = vst [vmem:[#allocation26_spill] sm:$0xff] %v9065_v19 }
 0x297   : > { %2328 = vmatmul.mubr.bf16.gmra.mrb[44].mxu0 %v906_v23  ;;  %v531_v23 = vld [vmem:[%s8738_s20 + $0x5b8] sm:$0xff] }
 0x298   : > { %2337 = vmatprep.mubr.bf16.mxu0 %v911_v24  ;;  %v1040_v24 = vpack.c.bf16 %v712_v21, %v708_v20  ;;  %v951_v26 = vpack.c.bf16 %v531_v23, %v527_v22  ;;  %v567_v20 = vld [vmem:[%s8738_s20 + $0x6d8] sm:$0xff]  ;;  %v1060_v22 = vpack.c.bf16 %v752_v18, %v748_v17  ;;  %v966_v23 = vpack.c.bf16 %v562_v15, %v558_v12  ;;  %v773_v12 = vld [vmem:[%s8738_s20 + $0xd48] sm:$0xff]  ;;  %v586_v15 = vld [vmem:[%s8738_s20 + $0x770] sm:$0xff] }
 0x299   : > { %v571_v21 = vld [vmem:[%s8738_s20 + $0x6f8] sm:$0xff]  ;;  %v772_v17 = vld [vmem:[%s8738_s20 + $0xd40] sm:$0xff] }
 0x29a   : > { %1995 = vmatmul.mubr.bf16.vlgmr.msra.gmra.mrb[0].mxu1 %v1040_v24  ;;  %v971_v24 = vpack.c.bf16 %v571_v21, %v567_v20  ;;  %v776_v18 = vld [vmem:[%s8738_s20 + $0xd60] sm:$0xff]  ;;  %v591_v20 = vld [vmem:[%s8738_s20 + $0x798] sm:$0xff] }
 0x29b   : > { %v595_v21 = vld [vmem:[%s8738_s20 + $0x7b8] sm:$0xff] }
 0x29f   : > { %2338 = vmatmul.mubr.bf16.gmra.mrb[48].mxu0 %v910_v29  ;;  %v721_v29 = vld [vmem:[%s8738_s20 + $0xba8] sm:$0xff] }
 0x2a0   : > { %2347 = vmatprep.mubr.bf16.mxu0 %v915_v30  ;;  %v530_v30 = vld [vmem:[%s8738_s20 + $0x5b0] sm:$0xff]  ;;  %v1045_v31 = vpack.c.bf16 %v721_v29, %v717_v28  ;;  %v757_v29 = vld [vmem:[%s8738_s20 + $0xcc8] sm:$0xff] }
 0x2a1   : > { %v950_v37 = vpack.c.bf16 %v530_v30, %v526_v27  ;;  %v1188_v27 = vsub.s32 1, %v9065_v19  ;;  %v566_v28 = vld [vmem:[%s8738_s20 + $0x6d0] sm:$0xff]  ;;  %v761_v30 = vld [vmem:[%s8738_s20 + $0xce8] sm:$0xff] }
 0x2a2   : > { %2004 = vmatprep.mubr.bf16.mxu1 %v1045_v31  ;;  %v570_v31 = vld [vmem:[%s8738_s20 + $0x6f0] sm:$0xff] }
 0x2a7   : > { %2348 = vmatmul.mubr.bf16.gmra.mrb[52].mxu0 %v914_v35  ;;  %v539_v35 = vld [vmem:[%s8738_s20 + $0x5f8] sm:$0xff] }
 0x2a8   : > { %2357 = vmatprep.mubr.bf16.mxu0 %v919_v36  ;;  %v1044_v36 = vpack.c.bf16 %v720_v33, %v716_v32  ;;  %v955_v38 = vpack.c.bf16 %v539_v35, %v535_v34  ;;  %v1065_v32 = vpack.c.bf16 %v761_v30, %v757_v29  ;;  %v756_v33 = vld [vmem:[%s8738_s20 + $0xcc0] sm:$0xff]  ;;  %v983_v29 = vpack.c.bf16 %v595_v21, %v591_v20 }
 0x2a9   : > { %v760_v34 = vld [vmem:[%s8738_s20 + $0xce0] sm:$0xff] }
 0x2aa   : > { %2005 = vmatmul.mubr.bf16.gmra.mrb[4].mxu1 %v1044_v36  ;;  %v575_v36 = vld [vmem:[%s8738_s20 + $0x718] sm:$0xff] }
 0x2af   : > { %2358 = vmatmul.mubr.bf16.gmra.mrb[56].mxu0 %v918_v41  ;;  %v729_v41 = vld [vmem:[%s8738_s20 + $0xbe8] sm:$0xff] }
 0x2b0   : > { %2367 = vmatprep.mubr.bf16.mxu0 %v923_v42  ;;  %v538_v42 = vld [vmem:[%s8738_s20 + $0x5f0] sm:$0xff]  ;;  %v1049_v43 = vpack.c.bf16 %v729_v41, %v725_v40 }
 0x2b1   : > { %v954_v49 = vpack.c.bf16 %v538_v42, %v534_v39  ;;  %v970_v42 = vpack.c.bf16 %v570_v31, %v566_v28 }
 0x2b2   : > { %2014 = vmatprep.mubr.bf16.mxu1 %v1049_v43 }
 0x2b7   : > { %2368 = vmatmul.mubr.bf16.gmra.mrb[60].mxu0 %v922_v47  ;;  %v547_v47 = vld [vmem:[%s8738_s20 + $0x638] sm:$0xff] }
 0x2b8   : > { %2377 = vmatprep.mubr.bf16.mxu0 %v927_v48  ;;  %v1048_v48 = vpack.c.bf16 %v728_v45, %v724_v44  ;;  %v959_v50 = vpack.c.bf16 %v547_v47, %v543_v46 }
 0x2ba   : > { %2015 = vmatmul.mubr.bf16.gmra.mrb[8].mxu1 %v1048_v48 }
 0x2bf   : > { %2378 = vmatmul.mubr.bf16.gmra.mrb[64].mxu0 %v926_v53  ;;  %v737_v53 = vld [vmem:[%s8738_s20 + $0xc28] sm:$0xff] }
 0x2c0   : > { %2387 = vmatprep.mubr.bf16.mxu0 %v931_v54  ;;  %v546_v54 = vld [vmem:[%s8738_s20 + $0x630] sm:$0xff]  ;;  %v1053_v55 = vpack.c.bf16 %v737_v53, %v733_v52  ;;  %v765_v52 = vld [vmem:[%s8738_s20 + $0xd08] sm:$0xff] }
 0x2c1   : > { %v958_v61 = vpack.c.bf16 %v546_v54, %v542_v51  ;;  %v574_v51 = vld [vmem:[%s8738_s20 + $0x710] sm:$0xff]  ;;  %v769_v53 = vld [vmem:[%s8738_s20 + $0xd28] sm:$0xff] }
 0x2c2   : > { %2024 = vmatprep.mubr.bf16.mxu1 %v1053_v55  ;;  %v578_v55 = vld [vmem:[%s8738_s20 + $0x730] sm:$0xff] }
 0x2c7   : > { %2388 = vmatmul.mubr.bf16.gmra.mrb[68].mxu0 %v930_v59  ;;  %v555_v59 = vld [vmem:[%s8738_s20 + $0x678] sm:$0xff] }
 0x2c8   : > { %2397 = vmatprep.mubr.bf16.mxu0 %v935_v60  ;;  %v1052_v60 = vpack.c.bf16 %v736_v57, %v732_v56  ;;  %v963_v62 = vpack.c.bf16 %v555_v59, %v551_v58  ;;  %v1069_v56 = vpack.c.bf16 %v769_v53, %v765_v52  ;;  %v764_v57 = vld [vmem:[%s8738_s20 + $0xd00] sm:$0xff]  ;;  %v583_v59 = vld [vmem:[%s8738_s20 + $0x758] sm:$0xff] }
 0x2c9   : > { %v768_v58 = vld [vmem:[%s8738_s20 + $0xd20] sm:$0xff]  ;;  %v603_v52 = vld [vmem:[%s8738_s20 + $0x7f8] sm:$0xff] }
 0x2ca   : > { %2025 = vmatmul.mubr.bf16.gmra.mrb[12].mxu1 %v1052_v60  ;;  %v587_v60 = vld [vmem:[%s8738_s20 + $0x778] sm:$0xff] }
 0x2cf   : > { %2398 = vmatmul.mubr.bf16.gmra.mrb[72].mxu0 %v934_v1  ;;  %v745_v1 = vld [vmem:[%s8738_s20 + $0xc68] sm:$0xff] }
 0x2d0   : > { %2407 = vmatprep.mubr.bf16.mxu0 %v939_v2  ;;  %v554_v2 = vld [vmem:[%s8738_s20 + $0x670] sm:$0xff]  ;;  %v1057_v3 = vpack.c.bf16 %v745_v1, %v741_v0  ;;  %v974_v1 = vpack.c.bf16 %v578_v55, %v574_v51  ;;  %v599_v51 = vld [vmem:[%s8738_s20 + $0x7d8] sm:$0xff] }
 0x2d1   : > { %v962_v9 = vpack.c.bf16 %v554_v2, %v550_v63 }
 0x2d2   : > { %2034 = vmatprep.mubr.bf16.mxu1 %v1057_v3  ;;  %v979_v3 = vpack.c.bf16 %v587_v60, %v583_v59  ;;  %v987_v59 = vpack.c.bf16 %v603_v52, %v599_v51 }
 0x2d7   : > { %2408 = vmatmul.mubr.bf16.gmra.mrb[76].mxu0 %v938_v7  ;;  %v563_v7 = vld [vmem:[%s8738_s20 + $0x6b8] sm:$0xff] }
 0x2d8   : > { %2417 = vmatprep.mubr.bf16.mxu0 %v943_v8  ;;  %v1056_v8 = vpack.c.bf16 %v744_v5, %v740_v4  ;;  %v967_v10 = vpack.c.bf16 %v563_v7, %v559_v6 }
 0x2da   : > { %2035 = vmatmul.mubr.bf16.gmra.mrb[16].mxu1 %v1056_v8 }
 0x2df   : > { %2418 = vmatmul.mubr.bf16.gmra.mrb[80].mxu0 %v942_v13  ;;  %v749_v13 = vld [vmem:[%s8738_s20 + $0xc88] sm:$0xff] }
 0x2e0   : > { %2427 = vmatprep.mubr.bf16.mxu0 %v947_v14  ;;  %v753_v14 = vld [vmem:[%s8738_s20 + $0xca8] sm:$0xff] }
 0x2e1   : > { %v1061_v16 = vpack.c.bf16 %v753_v14, %v749_v13  ;;  %v777_v13 = vld [vmem:[%s8738_s20 + $0xd68] sm:$0xff] }
 0x2e3   : > { %2044 = vmatprep.mubr.bf16.mxu1 %v1061_v16  ;;  %v1073_v16 = vpack.c.bf16 %v777_v13, %v773_v12  ;;  %v792_v12 = vld [vmem:[%s8738_s20 + $0xde0] sm:$0xff]  ;;  %v607_v13 = vld [vmem:[%s8738_s20 + $0x818] sm:$0xff] }
 0x2e4   : > { %2045 = vmatmul.mubr.bf16.gmra.mrb[20].mxu1 %v1060_v22  ;;  %v1072_v22 = vpack.c.bf16 %v776_v18, %v772_v17 }
 0x2e5   : > { %2054 = vmatprep.mubr.bf16.mxu1 %v1065_v32 }
 0x2e7   : > { %2428 = vmatmul.mubr.bf16.gmra.mrb[84].mxu0 %v946_v25  ;;  %v9070_v25 = vsub.s32 0, %v9065_v19 }
 0x2e8   : > { %2437 = vmatprep.mubr.bf16.mxu0 %v951_v26  ;;  %v1180_v26 = vld [vmem:[#allocation9] sm:$0x3] }
 0x2e9   : > { %13001 = vst [vmem:[#allocation27_spill] sm:$0xff] %v9070_v25  ;;  %v9080_v35 = vrot.slane %v1180_v26, %v9070_v25  ;;  %v9084_v40 = vrot.slane %v1180_v26, %v1188_v27 }
 0x2ef   : > { %2438 = vmatmul.mubr.bf16.gmra.mrb[88].mxu0 %v950_v37  ;;  %v579_v37 = vld [vmem:[%s8738_s20 + $0x738] sm:$0xff] }
 0x2f0   : > { %2447 = vmatprep.mubr.bf16.mxu0 %v955_v38  ;;  %v1064_v38 = vpack.c.bf16 %v760_v34, %v756_v33  ;;  %v975_v44 = vpack.c.bf16 %v579_v37, %v575_v36 }
 0x2f2   : > { %2055 = vmatmul.mubr.bf16.gmra.mrb[24].mxu1 %v1064_v38  ;;  %v590_v38 = vld [vmem:[%s8738_s20 + $0x790] sm:$0xff] }
 0x2f3   : > { %2064 = vmatprep.mubr.bf16.mxu1 %v1069_v56 }
 0x2f7   : > { %2448 = vmatmul.mubr.bf16.gmra.mrb[92].mxu0 %v954_v49 }
 0x2f8   : > { %2457 = vmatprep.mubr.bf16.mxu0 %v959_v50 }
 0x2ff   : > { %2458 = vmatmul.mubr.bf16.gmra.mrb[96].mxu0 %v958_v61  ;;  %v1068_v61 = vpack.c.bf16 %v768_v58, %v764_v57 }
 0x300   : > { %2467 = vmatprep.mubr.bf16.mxu0 %v963_v62 }
 0x301   : > { %2065 = vmatmul.mubr.bf16.gmra.mrb[28].mxu1 %v1068_v61 }
 0x302   : > { %2074 = vmatprep.mubr.bf16.mxu1 %v1073_v16 }
 0x307   : > { %2468 = vmatmul.mubr.bf16.gmra.mrb[100].mxu0 %v962_v9 }
 0x308   : > { %2477 = vmatprep.mubr.bf16.mxu0 %v967_v10  ;;  %v582_v10 = vld [vmem:[%s8738_s20 + $0x750] sm:$0xff] }
 0x309   : > { %v978_v27 = vpack.c.bf16 %v586_v15, %v582_v10  ;;  %2075 = vmatmul.mubr.bf16.gmra.mrb[32].mxu1 %v1072_v22  ;;  %v788_v10 = vld [vmem:[%s8738_s20 + $0xdc0] sm:$0xff] }
 0x30a   : > { %v1080_v15 = vpack.c.bf16 %v792_v12, %v788_v10 }
 0x30f   : > { %2478 = vmatmul.mubr.bf16.gmra.mrb[104].mxu0 %v966_v23 }
 0x310   : > { %2487 = vmatprep.mubr.bf16.mxu0 %v971_v24 }
 0x312   : > { %v2219_v39 = vpop.f32.mrb[0].mxu0 }
 0x313   : > { %v2221_v41 = vpop.f32.mrb[1].mxu0  ;;  %v9087_v45 = vadd.f32 %v2219_v39, %v9080_v35  ;;  %v781_v39 = vld [vmem:[%s8738_s20 + $0xd88] sm:$0xff] }
 0x314   : > { %v2223_v43 = vpop.f32.mrb[2].mxu0  ;;  %v7080_v48 = vadd.f32 %v2221_v41, %v9084_v40  ;;  %v785_v41 = vld [vmem:[%s8738_s20 + $0xda8] sm:$0xff] }
 0x315   : > { %v9090_v46 = vadd.f32 %v2223_v43, %v9080_v35  ;;  %v2225_v47 = vpop.f32.mrb[3].mxu0 }
 0x316   : > { %v7082_v49 = vadd.f32 %v2225_v47, %v9084_v40  ;;  %v1077_v47 = vpack.c.bf16 %v785_v41, %v781_v39  ;;  %v610_v41 = vld [vmem:[%s8738_s20 + $0x830] sm:$0xff] }
 0x317   : > { %v2858_v50 = vpack.c.bf16 %v9090_v46, %v9087_v45  ;;  %2488 = vmatmul.mubr.bf16.gmra.mrb[108].mxu0 %v970_v42 }
 0x318   : > { %v2859_v54 = vpack.c.bf16 %v7082_v49, %v7080_v48  ;;  %2497 = vmatprep.mubr.bf16.mxu0 %v975_v44  ;;  %v594_v44 = vld [vmem:[%s8738_s20 + $0x7b0] sm:$0xff]  ;;  %v780_v48 = vld [vmem:[%s8738_s20 + $0xd80] sm:$0xff]  ;;  %2084 = vmatprep.mubr.bf16.mxu1 %v1077_v47 }
 0x319   : > { %v784_v49 = vld [vmem:[%s8738_s20 + $0xda0] sm:$0xff]  ;;  %v982_v57 = vpack.c.bf16 %v594_v44, %v590_v38 }
 0x31a   : > { %v6705_v62 = vmul.bf16 3216621497, %v2859_v54  ;;  %v2229_v63 = vpop.f32.mrb[4].mxu0  ;;  %v1076_v53 = vpack.c.bf16 %v784_v49, %v780_v48  ;;  %v796_v44 = vld [vmem:[%s8738_s20 + $0xe00] sm:$0xff]  ;;  %v615_v48 = vld [vmem:[%s8738_s20 + $0x858] sm:$0xff] }
 0x31b   : > { %v2231_v0 = vpop.f32.mrb[5].mxu0  ;;  %v9105_v4 = vadd.f32 %v2229_v63, %v9080_v35  ;;  %v800_v47 = vld [vmem:[%s8738_s20 + $0xe20] sm:$0xff]  ;;  %v619_v49 = vld [vmem:[%s8738_s20 + $0x878] sm:$0xff] }
 0x31c   : > { %7837 = vpow.bf16 %v6705_v62  ;;  %v2233_v2 = vpop.f32.mrb[6].mxu0  ;;  %v7084_v7 = vadd.f32 %v2231_v0, %v9084_v40  ;;  %2085 = vmatmul.mubr.bf16.gmra.mrb[36].mxu1 %v1076_v53  ;;  %v598_v0 = vld [vmem:[%s8738_s20 + $0x7d0] sm:$0xff]  ;;  %v1084_v51 = vpack.c.bf16 %v800_v47, %v796_v44 }
 0x31d   : > { %v9108_v5 = vadd.f32 %v2233_v2, %v9080_v35  ;;  %v2235_v6 = vpop.f32.mrb[7].mxu0  ;;  %v793_v2 = vld [vmem:[%s8738_s20 + $0xde8] sm:$0xff]  ;;  %v626_v44 = vld [vmem:[%s8738_s20 + $0x8b0] sm:$0xff] }
 0x31e   : > { %v7086_v8 = vadd.f32 %v2235_v6, %v9084_v40 }
 0x31f   : > { %v2860_v9 = vpack.c.bf16 %v9108_v5, %v9105_v4  ;;  %2498 = vmatmul.mubr.bf16.gmra.mrb[112].mxu0 %v974_v1  ;;  %v789_v1 = vld [vmem:[%s8738_s20 + $0xdc8] sm:$0xff] }
 0x320   : > { %v2861_v14 = vpack.c.bf16 %v7086_v8, %v7084_v7  ;;  %2507 = vmatprep.mubr.bf16.mxu0 %v979_v3  ;;  %v602_v7 = vld [vmem:[%s8738_s20 + $0x7f0] sm:$0xff]  ;;  %v1081_v8 = vpack.c.bf16 %v793_v2, %v789_v1  ;;  %v805_v2 = vld [vmem:[%s8738_s20 + $0xe48] sm:$0xff] }
 0x321   : > { %v986_v20 = vpack.c.bf16 %v602_v7, %v598_v0  ;;  %v614_v1 = vld [vmem:[%s8738_s20 + $0x850] sm:$0xff] }
 0x322   : > { %v6706_v23 = vmul.bf16 3216621497, %v2861_v14  ;;  %v2239_v24 = vpop.f32.mrb[8].mxu0  ;;  %v611_v14 = vld [vmem:[%s8738_s20 + $0x838] sm:$0xff]  ;;  %2094 = vmatprep.mubr.bf16.mxu1 %v1081_v8  ;;  %v618_v8 = vld [vmem:[%s8738_s20 + $0x870] sm:$0xff] }
 0x323   : > { %v2241_v26 = vpop.f32.mrb[9].mxu0  ;;  %v9123_v30 = vadd.f32 %v2239_v24, %v9080_v35  ;;  %v991_v22 = vpack.c.bf16 %v611_v14, %v607_v13  ;;  %v804_v13 = vld [vmem:[%s8738_s20 + $0xe40] sm:$0xff] }
 0x324   : > { %7839 = vpow.bf16 %v6706_v23  ;;  %v2243_v28 = vpop.f32.mrb[10].mxu0  ;;  %v7088_v33 = vadd.f32 %v2241_v26, %v9084_v40  ;;  %2095 = vmatmul.mubr.bf16.gmra.mrb[40].mxu1 %v1080_v15  ;;  %v808_v14 = vld [vmem:[%s8738_s20 + $0xe60] sm:$0xff]  ;;  %v623_v15 = vld [vmem:[%s8738_s20 + $0x898] sm:$0xff] }
 0x325   : > { %v9126_v31 = vadd.f32 %v2243_v28, %v9080_v35  ;;  %v2245_v32 = vpop.f32.mrb[11].mxu0 }
 0x326   : > { %v7090_v34 = vadd.f32 %v2245_v32, %v9084_v40 }
 0x327   : > { %v7838_v36 = vpop.eup %7837  ;;  %v2862_v37 = vpack.c.bf16 %v9126_v31, %v9123_v30  ;;  %2508 = vmatmul.mubr.bf16.gmra.mrb[116].mxu0 %v978_v27 }
 0x328   : > { %v3306_v42 = vadd.bf16 1065369472, %v7838_v36  ;;  %v2863_v43 = vpack.c.bf16 %v7090_v34, %v7088_v33  ;;  %2517 = vmatprep.mubr.bf16.mxu0 %v983_v29  ;;  %v606_v33 = vld [vmem:[%s8738_s20 + $0x810] sm:$0xff]  ;;  %v797_v34 = vld [vmem:[%s8738_s20 + $0xe08] sm:$0xff] }
 0x329   : > { %v801_v36 = vld [vmem:[%s8738_s20 + $0xe28] sm:$0xff] }
 0x32a   : > { %7841 = vrcp.bf16 %v3306_v42  ;;  %v6707_v54 = vmul.bf16 3216621497, %v2863_v43  ;;  %v2249_v55 = vpop.f32.mrb[12].mxu0  ;;  %v1085_v43 = vpack.c.bf16 %v801_v36, %v797_v34  ;;  %v622_v36 = vld [vmem:[%s8738_s20 + $0x890] sm:$0xff] }
 0x32b   : > { %7843 = vtanh.bf16 %v2858_v50  ;;  %v2251_v56 = vpop.f32.mrb[13].mxu0  ;;  %v9144_v60 = vadd.f32 %v2249_v55, %v9080_v35  ;;  %v990_v55 = vpack.c.bf16 %v610_v41, %v606_v33 }
 0x32c   : > { %7845 = vpow.bf16 %v6707_v54  ;;  %v2253_v58 = vpop.f32.mrb[14].mxu0  ;;  %v7092_v46 = vadd.f32 %v2251_v56, %v9084_v40  ;;  %2104 = vmatprep.mubr.bf16.mxu1 %v1085_v43 }
 0x32d   : > { %v9147_v61 = vadd.f32 %v2253_v58, %v9080_v35  ;;  %v2255_v45 = vpop.f32.mrb[15].mxu0  ;;  %2105 = vmatmul.mubr.bf16.gmra.mrb[44].mxu1 %v1084_v51  ;;  %v816_v51 = vld [vmem:[%s8738_s20 + $0xea0] sm:$0xff] }
 0x32e   : > { %v7094_v50 = vadd.f32 %v2255_v45, %v9084_v40 }
 0x32f   : > { %v7840_v62 = vpop.eup %7839  ;;  %v2864_v63 = vpack.c.bf16 %v9147_v61, %v9144_v60  ;;  %2518 = vmatmul.mubr.bf16.gmra.mrb[120].mxu0 %v982_v57  ;;  %v995_v57 = vpack.c.bf16 %v619_v49, %v615_v48  ;;  %v812_v49 = vld [vmem:[%s8738_s20 + $0xe80] sm:$0xff] }
 0x330   : > { %v3307_v3 = vadd.bf16 1065369472, %v7840_v62  ;;  %v2865_v6 = vpack.c.bf16 %v7094_v50, %v7092_v46  ;;  %2527 = vmatprep.mubr.bf16.mxu0 %v987_v59 }
 0x332   : > { %7847 = vrcp.bf16 %v3307_v3  ;;  %v6708_v16 = vmul.bf16 3216621497, %v2865_v6  ;;  %v2259_v17 = vpop.f32.mrb[16].mxu0  ;;  %v809_v3 = vld [vmem:[%s8738_s20 + $0xe68] sm:$0xff] }
 0x333   : > { %7849 = vtanh.bf16 %v2860_v9  ;;  %v2261_v18 = vpop.f32.mrb[17].mxu0  ;;  %v9165_v24 = vadd.f32 %v2259_v17, %v9080_v35  ;;  %v1089_v12 = vpack.c.bf16 %v809_v3, %v805_v2  ;;  %v1088_v17 = vpack.c.bf16 %v808_v14, %v804_v13  ;;  %v634_v14 = vld [vmem:[%s8738_s20 + $0x8f0] sm:$0xff] }
 0x334   : > { %7851 = vpow.bf16 %v6708_v16  ;;  %v2263_v21 = vpop.f32.mrb[18].mxu0  ;;  %v7096_v5 = vadd.f32 %v2261_v18, %v9084_v40  ;;  %v627_v16 = vld [vmem:[%s8738_s20 + $0x8b8] sm:$0xff] }
 0x335   : > { %v7842_v23 = vpop.eup %7841  ;;  %v9168_v26 = vadd.f32 %v2263_v21, %v9080_v35  ;;  %v2265_v27 = vpop.f32.mrb[19].mxu0  ;;  %2114 = vmatprep.mubr.bf16.mxu1 %v1089_v12 }
 0x336   : > { %v7844_v4 = vpop.eup %7843  ;;  %v7098_v9 = vadd.f32 %v2265_v27, %v9084_v40  ;;  %v3371_v28 = vmul.bf16 1065369472, %v7842_v23  ;;  %2115 = vmatmul.mubr.bf16.gmra.mrb[48].mxu1 %v1088_v17  ;;  %v999_v27 = vpack.c.bf16 %v627_v16, %v623_v15  ;;  %v820_v17 = vld [vmem:[%s8738_s20 + $0xec0] sm:$0xff] }
 0x337   : > { %v7846_v29 = vpop.eup %7845  ;;  %v2866_v32 = vpack.c.bf16 %v9168_v26, %v9165_v24  ;;  %2528 = vmatmul.mubr.bf16.gmra.mrb[124].mxu0 %v986_v20 }
 0x338   : > { %v3308_v38 = vadd.bf16 1065369472, %v7846_v29  ;;  %v2867_v39 = vpack.c.bf16 %v7098_v9, %v7096_v5  ;;  %2537 = vmatprep.mubr.bf16.mxu0 %v991_v22  ;;  %v9178_v42 = vmul.bf16 %v7844_v4, %v3371_v28  ;;  %v994_v22 = vpack.c.bf16 %v618_v8, %v614_v1  ;;  %v825_v8 = vld [vmem:[%s8738_s20 + $0xee8] sm:$0xff] }
 0x33a   : > { %7853 = vrcp.bf16 %v3308_v38  ;;  %v6709_v52 = vmul.bf16 3216621497, %v2867_v39  ;;  %v2269_v53 = vpop.f32.mrb[20].mxu0  ;;  %v813_v38 = vld [vmem:[%s8738_s20 + $0xe88] sm:$0xff] }
 0x33b   : > { %7855 = vtanh.bf16 %v2862_v37  ;;  %v2271_v54 = vpop.f32.mrb[21].mxu0  ;;  %v9188_v59 = vadd.f32 %v2269_v53, %v9080_v35  ;;  %v817_v39 = vld [vmem:[%s8738_s20 + $0xea8] sm:$0xff]  ;;  %v635_v53 = vld [vmem:[%s8738_s20 + $0x8f8] sm:$0xff] }
 0x33c   : > { %7857 = vpow.bf16 %v6709_v52  ;;  %v2273_v56 = vpop.f32.mrb[22].mxu0  ;;  %v7100_v31 = vadd.f32 %v2271_v54, %v9084_v40  ;;  %v1093_v48 = vpack.c.bf16 %v817_v39, %v813_v38  ;;  %v631_v52 = vld [vmem:[%s8738_s20 + $0x8d8] sm:$0xff]  ;;  %v1092_v54 = vpack.c.bf16 %v816_v51, %v812_v49 }
 0x33d   : > { %v7848_v58 = vpop.eup %7847  ;;  %v9191_v45 = vadd.f32 %v2273_v56, %v9080_v35  ;;  %v2275_v46 = vpop.f32.mrb[23].mxu0 }
 0x33e   : > { %v7850_v30 = vpop.eup %7849  ;;  %v7102_v37 = vadd.f32 %v2275_v46, %v9084_v40  ;;  %v3373_v50 = vmul.bf16 1065369472, %v7848_v58  ;;  %2124 = vmatprep.mubr.bf16.mxu1 %v1093_v48  ;;  %v998_v58 = vpack.c.bf16 %v626_v44, %v622_v36  ;;  %v829_v44 = vld [vmem:[%s8738_s20 + $0xf08] sm:$0xff] }
 0x33f   : > { %v7852_v62 = vpop.eup %7851  ;;  %v2868_v0 = vpack.c.bf16 %v9191_v45, %v9188_v59  ;;  %2538 = vmatmul.mubr.bf16.gmra.mrb[128].mxu0 %v990_v55  ;;  %2125 = vmatmul.mubr.bf16.gmra.mrb[52].mxu1 %v1092_v54  ;;  %v833_v48 = vld [vmem:[%s8738_s20 + $0xf28] sm:$0xff] }
 0x340   : > { %v3309_v6 = vadd.bf16 1065369472, %v7852_v62  ;;  %v2869_v7 = vpack.c.bf16 %v7102_v37, %v7100_v31  ;;  %2547 = vmatprep.mubr.bf16.mxu0 %v995_v57  ;;  %v9201_v10 = vmul.bf16 %v7850_v30, %v3373_v50  ;;  %v1003_v30 = vpack.c.bf16 %v635_v53, %v631_v52  ;;  %v642_v52 = vld [vmem:[%s8738_s20 + $0x930] sm:$0xff] }
 0x341   : > { %v1101_v54 = vpack.c.bf16 %v833_v48, %v829_v44 }
 0x342   : > { %7859 = vrcp.bf16 %v3309_v6  ;;  %v6710_v18 = vmul.bf16 3216621497, %v2869_v7  ;;  %v2279_v20 = vpop.f32.mrb[24].mxu0  ;;  %v630_v6 = vld [vmem:[%s8738_s20 + $0x8d0] sm:$0xff]  ;;  %v821_v7 = vld [vmem:[%s8738_s20 + $0xec8] sm:$0xff] }
 0x343   : > { %7861 = vtanh.bf16 %v2864_v63  ;;  %v2281_v21 = vpop.f32.mrb[25].mxu0  ;;  %v9211_v5 = vadd.f32 %v2279_v20, %v9080_v35  ;;  %v1097_v16 = vpack.c.bf16 %v825_v8, %v821_v7  ;;  %v639_v20 = vld [vmem:[%s8738_s20 + $0x918] sm:$0xff] }
 0x344   : > { %7863 = vpow.bf16 %v6710_v18  ;;  %v2283_v23 = vpop.f32.mrb[26].mxu0  ;;  %v7104_v61 = vadd.f32 %v2281_v21, %v9084_v40  ;;  %v824_v18 = vld [vmem:[%s8738_s20 + $0xee0] sm:$0xff]  ;;  %v643_v21 = vld [vmem:[%s8738_s20 + $0x938] sm:$0xff] }
 0x345   : > { %v7854_v4 = vpop.eup %7853  ;;  %v9214_v9 = vadd.f32 %v2283_v23, %v9080_v35  ;;  %v2285_v28 = vpop.f32.mrb[27].mxu0  ;;  %2134 = vmatprep.mubr.bf16.mxu1 %v1097_v16  ;;  %v837_v16 = vld [vmem:[%s8738_s20 + $0xf48] sm:$0xff] }
 0x346   : > { %v7856_v60 = vpop.eup %7855  ;;  %v7106_v63 = vadd.f32 %v2285_v28, %v9084_v40  ;;  %v3375_v29 = vmul.bf16 1065369472, %v7854_v4  ;;  %v1002_v28 = vpack.c.bf16 %v634_v14, %v630_v6  ;;  %v646_v14 = vld [vmem:[%s8738_s20 + $0x950] sm:$0xff] }
 0x347   : > { %v7858_v33 = vpop.eup %7857  ;;  %v2870_v34 = vpack.c.bf16 %v9214_v9, %v9211_v5  ;;  %2548 = vmatmul.mubr.bf16.gmra.mrb[132].mxu0 %v994_v22  ;;  %v1096_v22 = vpack.c.bf16 %v824_v18, %v820_v17  ;;  %v841_v17 = vld [vmem:[%s8738_s20 + $0xf68] sm:$0xff] }
 0x348   : > { %v3310_v41 = vadd.bf16 1065369472, %v7858_v33  ;;  %v2871_v43 = vpack.c.bf16 %v7106_v63, %v7104_v61  ;;  %2557 = vmatprep.mubr.bf16.mxu0 %v999_v27  ;;  %v9224_v47 = vmul.bf16 %v7856_v60, %v3375_v29  ;;  %v1007_v61 = vpack.c.bf16 %v643_v21, %v639_v20  ;;  %v650_v21 = vld [vmem:[%s8738_s20 + $0x970] sm:$0xff] }
 0x349   : > { %2135 = vmatmul.mubr.bf16.gmra.mrb[56].mxu1 %v1096_v22 }
 0x34a   : > { %7865 = vrcp.bf16 %v3310_v41  ;;  %v6711_v55 = vmul.bf16 3216621497, %v2871_v43  ;;  %v2289_v56 = vpop.f32.mrb[28].mxu0  ;;  %v638_v43 = vld [vmem:[%s8738_s20 + $0x910] sm:$0xff]  ;;  %2144 = vmatprep.mubr.bf16.mxu1 %v1101_v54 }
 0x34b   : > { %7867 = vtanh.bf16 %v2866_v32  ;;  %v2291_v57 = vpop.f32.mrb[29].mxu0  ;;  %v9234_v37 = vadd.f32 %v2289_v56, %v9080_v35  ;;  %v832_v56 = vld [vmem:[%s8738_s20 + $0xf20] sm:$0xff]  ;;  %v654_v54 = vld [vmem:[%s8738_s20 + $0x990] sm:$0xff] }
 0x34c   : > { %7869 = vpow.bf16 %v6711_v55  ;;  %v2293_v46 = vpop.f32.mrb[30].mxu0  ;;  %v7108_v26 = vadd.f32 %v2291_v57, %v9084_v40  ;;  %v828_v55 = vld [vmem:[%s8738_s20 + $0xf00] sm:$0xff]  ;;  %v647_v57 = vld [vmem:[%s8738_s20 + $0x958] sm:$0xff] }
 0x34d   : > { %v7860_v31 = vpop.eup %7859  ;;  %v9237_v50 = vadd.f32 %v2293_v46, %v9080_v35  ;;  %v2295_v62 = vpop.f32.mrb[31].mxu0  ;;  %v1100_v46 = vpack.c.bf16 %v832_v56, %v828_v55  ;;  %v845_v55 = vld [vmem:[%s8738_s20 + $0xf88] sm:$0xff] }
 0x34e   : > { %v7862_v24 = vpop.eup %7861  ;;  %v7110_v32 = vadd.f32 %v2295_v62, %v9084_v40  ;;  %v3377_v1 = vmul.bf16 1065369472, %v7860_v31  ;;  %v849_v56 = vld [vmem:[%s8738_s20 + $0xfa8] sm:$0xff] }
 0x34f   : > { %v7864_v2 = vpop.eup %7863  ;;  %v2872_v3 = vpack.c.bf16 %v9237_v50, %v9234_v37  ;;  %2558 = vmatmul.mubr.bf16.gmra.mrb[136].mxu0 %v998_v58  ;;  %v651_v58 = vld [vmem:[%s8738_s20 + $0x978] sm:$0xff] }
 0x350   : > { %v3311_v12 = vadd.bf16 1065369472, %v7864_v2  ;;  %v2873_v13 = vpack.c.bf16 %v7110_v32, %v7108_v26  ;;  %2567 = vmatprep.mubr.bf16.mxu0 %v1003_v30  ;;  %v9247_v15 = vmul.bf16 %v7862_v24, %v3377_v1  ;;  %v1006_v24 = vpack.c.bf16 %v642_v52, %v638_v43 }
 0x351   : > { %2145 = vmatmul.mubr.bf16.gmra.mrb[60].mxu1 %v1100_v46  ;;  %v1011_v32 = vpack.c.bf16 %v651_v58, %v647_v57  ;;  %v658_v46 = vld [vmem:[%s8738_s20 + $0x9b0] sm:$0xff] }
 0x352   : > { %7871 = vrcp.bf16 %v3311_v12  ;;  %v6712_v23 = vmul.bf16 3216621497, %v2873_v13  ;;  %v2299_v27 = vpop.f32.mrb[32].mxu0 }
 0x353   : > { %7873 = vtanh.bf16 %v2868_v0  ;;  %v2301_v4 = vpop.f32.mrb[33].mxu0  ;;  %v9257_v29 = vadd.f32 %v2299_v27, %v9080_v35  ;;  %v836_v27 = vld [vmem:[%s8738_s20 + $0xf40] sm:$0xff] }
 0x354   : > { %7875 = vpow.bf16 %v6712_v23  ;;  %v2303_v60 = vpop.f32.mrb[34].mxu0  ;;  %v7112_v45 = vadd.f32 %v2301_v4, %v9084_v40  ;;  %v1105_v23 = vpack.c.bf16 %v841_v17, %v837_v16  ;;  %v840_v4 = vld [vmem:[%s8738_s20 + $0xf60] sm:$0xff] }
 0x355   : > { %v7866_v63 = vpop.eup %7865  ;;  %v9260_v33 = vadd.f32 %v2303_v60, %v9080_v35  ;;  %v2305_v36 = vpop.f32.mrb[35].mxu0  ;;  %v659_v60 = vld [vmem:[%s8738_s20 + $0x9b8] sm:$0xff] }
 0x356   : > { %v7868_v59 = vpop.eup %7867  ;;  %v7114_v0 = vadd.f32 %v2305_v36, %v9084_v40  ;;  %v3379_v38 = vmul.bf16 1065369472, %v7866_v63  ;;  %2154 = vmatprep.mubr.bf16.mxu1 %v1105_v23 }
 0x357   : > { %v7870_v39 = vpop.eup %7869  ;;  %v2874_v41 = vpack.c.bf16 %v9260_v33, %v9257_v29  ;;  %2568 = vmatmul.mubr.bf16.gmra.mrb[140].mxu0 %v1002_v28  ;;  %v655_v28 = vld [vmem:[%s8738_s20 + $0x998] sm:$0xff] }
 0x358   : > { %v3312_v49 = vadd.bf16 1065369472, %v7870_v39  ;;  %v2875_v51 = vpack.c.bf16 %v7114_v0, %v7112_v45  ;;  %2577 = vmatprep.mubr.bf16.mxu0 %v1007_v61  ;;  %v9270_v53 = vmul.bf16 %v7868_v59, %v3379_v38  ;;  %v1104_v61 = vpack.c.bf16 %v840_v4, %v836_v27  ;;  %v662_v27 = vld [vmem:[%s8738_s20 + $0x9d0] sm:$0xff]  ;;  %v853_v4 = vld [vmem:[%s8738_s20 + $0xfc8] sm:$0xff] }
 0x359   : > { %v1010_v45 = vpack.c.bf16 %v650_v21, %v646_v14  ;;  %v1015_v38 = vpack.c.bf16 %v659_v60, %v655_v28  ;;  %v857_v28 = vld [vmem:[%s8738_s20 + $0xfe8] sm:$0xff] }
 0x35a   : > { %7877 = vrcp.bf16 %v3312_v49  ;;  %v6713_v30 = vmul.bf16 3216621497, %v2875_v51  ;;  %v2309_v31 = vpop.f32.mrb[36].mxu0  ;;  %2155 = vmatmul.mubr.bf16.gmra.mrb[64].mxu1 %v1104_v61 }
 0x35b   : > { %7879 = vtanh.bf16 %v2870_v34  ;;  %v2311_v62 = vpop.f32.mrb[37].mxu0  ;;  %v9280_v2 = vadd.f32 %v2309_v31, %v9080_v35  ;;  %v1109_v31 = vpack.c.bf16 %v849_v56, %v845_v55 }
 0x35c   : > { %7881 = vpow.bf16 %v6713_v30  ;;  %v2313_v26 = vpop.f32.mrb[38].mxu0  ;;  %v7116_v9 = vadd.f32 %v2311_v62, %v9084_v40  ;;  %v844_v62 = vld [vmem:[%s8738_s20 + $0xf80] sm:$0xff] }
 0x35d   : > { %v7872_v1 = vpop.eup %7871  ;;  %v9283_v6 = vadd.f32 %v2313_v26, %v9080_v35  ;;  %v2315_v7 = vpop.f32.mrb[39].mxu0  ;;  %v663_v26 = vld [vmem:[%s8738_s20 + $0x9d8] sm:$0xff]  ;;  %2164 = vmatprep.mubr.bf16.mxu1 %v1109_v31 }
 0x35e   : > { %v7874_v5 = vpop.eup %7873  ;;  %v7118_v34 = vadd.f32 %v2315_v7, %v9084_v40  ;;  %v3381_v8 = vmul.bf16 1065369472, %v7872_v1 }
 0x35f   : > { %v7876_v12 = vpop.eup %7875  ;;  %v2876_v13 = vpack.c.bf16 %v9283_v6, %v9280_v2  ;;  %2578 = vmatmul.mubr.bf16.gmra.mrb[144].mxu0 %v1006_v24  ;;  %v848_v24 = vld [vmem:[%s8738_s20 + $0xfa0] sm:$0xff] }
 0x360   : > { %v3313_v18 = vadd.bf16 1065369472, %v7876_v12  ;;  %v2877_v20 = vpack.c.bf16 %v7118_v34, %v7116_v9  ;;  %2587 = vmatprep.mubr.bf16.mxu0 %v1011_v32  ;;  %v9293_v22 = vmul.bf16 %v7874_v5, %v3381_v8  ;;  %v667_v32 = vld [vmem:[%s8738_s20 + $0x9f8] sm:$0xff]  ;;  %v1108_v1 = vpack.c.bf16 %v848_v24, %v844_v62 }
 0x361   : > { %v1014_v34 = vpack.c.bf16 %v658_v46, %v654_v54  ;;  %v1019_v12 = vpack.c.bf16 %v667_v32, %v663_v26 }
 0x362   : > { %7883 = vrcp.bf16 %v3313_v18  ;;  %v6714_v63 = vmul.bf16 3216621497, %v2877_v20  ;;  %v2319_v36 = vpop.f32.mrb[40].mxu0  ;;  %2165 = vmatmul.mubr.bf16.gmra.mrb[68].mxu1 %v1108_v1  ;;  %v670_v1 = vld [vmem:[%s8738_s20 + $0xa10] sm:$0xff] }
 0x363   : > { %7885 = vtanh.bf16 %v2872_v3  ;;  %v2321_v59 = vpop.f32.mrb[41].mxu0  ;;  %v9303_v43 = vadd.f32 %v2319_v36, %v9080_v35 }
 0x364   : > { %7887 = vpow.bf16 %v6714_v63  ;;  %v2323_v0 = vpop.f32.mrb[42].mxu0  ;;  %v7120_v50 = vadd.f32 %v2321_v59, %v9084_v40  ;;  %v666_v63 = vld [vmem:[%s8738_s20 + $0x9f0] sm:$0xff]  ;;  %v1113_v59 = vpack.c.bf16 %v857_v28, %v853_v4 }
 0x365   : > { %v7878_v39 = vpop.eup %7877  ;;  %v9306_v44 = vadd.f32 %v2323_v0, %v9080_v35  ;;  %v2325_v48 = vpop.f32.mrb[43].mxu0  ;;  %v856_v0 = vld [vmem:[%s8738_s20 + $0xfe0] sm:$0xff] }
 0x366   : > { %v7880_v37 = vpop.eup %7879  ;;  %v7122_v3 = vadd.f32 %v2325_v48, %v9084_v40  ;;  %v3383_v49 = vmul.bf16 1065369472, %v7878_v39  ;;  %v675_v39 = vld [vmem:[%s8738_s20 + $0xa38] sm:$0xff]  ;;  %2174 = vmatprep.mubr.bf16.mxu1 %v1113_v59  ;;  %v678_v59 = vld [vmem:[%s8738_s20 + $0xa50] sm:$0xff] }
 0x367   : > { %v7882_v51 = vpop.eup %7881  ;;  %v2878_v52 = vpack.c.bf16 %v9306_v44, %v9303_v43  ;;  %2588 = vmatmul.mubr.bf16.gmra.mrb[148].mxu0 %v1010_v45  ;;  %v852_v45 = vld [vmem:[%s8738_s20 + $0xfc0] sm:$0xff] }
 0x368   : > { %v3314_v57 = vadd.bf16 1065369472, %v7882_v51  ;;  %v2879_v58 = vpack.c.bf16 %v7122_v3, %v7120_v50  ;;  %2597 = vmatprep.mubr.bf16.mxu0 %v1015_v38  ;;  %v9316_v30 = vmul.bf16 %v7880_v37, %v3383_v49  ;;  %v671_v38 = vld [vmem:[%s8738_s20 + $0xa18] sm:$0xff]  ;;  %v1112_v48 = vpack.c.bf16 %v856_v0, %v852_v45  ;;  %v682_v45 = vld [vmem:[%s8738_s20 + $0xa70] sm:$0xff] }
 0x369   : > { %v1018_v49 = vpack.c.bf16 %v666_v63, %v662_v27  ;;  %v1023_v54 = vpack.c.bf16 %v675_v39, %v671_v38  ;;  %v687_v0 = vld [vmem:[%s8738_s20 + $0xa98] sm:$0xff] }
 0x36a   : > { %7889 = vrcp.bf16 %v3314_v57  ;;  %v6715_v7 = vmul.bf16 3216621497, %v2879_v58  ;;  %v2329_v5 = vpop.f32.mrb[44].mxu0  ;;  %2175 = vmatmul.mubr.bf16.gmra.mrb[72].mxu1 %v1112_v48  ;;  %v691_v38 = vld [vmem:[%s8738_s20 + $0xab8] sm:$0xff] }
 0x36b   : > { %7891 = vtanh.bf16 %v2874_v41  ;;  %v2331_v9 = vpop.f32.mrb[45].mxu0  ;;  %v9326_v16 = vadd.f32 %v2329_v5, %v9080_v35  ;;  %v679_v5 = vld [vmem:[%s8738_s20 + $0xa58] sm:$0xff] }
 0x36c   : > { %7893 = vpow.bf16 %v6715_v7  ;;  %v2333_v8 = vpop.f32.mrb[46].mxu0  ;;  %v7124_v33 = vadd.f32 %v2331_v9, %v9084_v40  ;;  %v674_v7 = vld [vmem:[%s8738_s20 + $0xa30] sm:$0xff]  ;;  %v683_v9 = vld [vmem:[%s8738_s20 + $0xa78] sm:$0xff] }
 0x36d   : > { %v7884_v14 = vpop.eup %7883  ;;  %v9329_v17 = vadd.f32 %v2333_v8, %v9080_v35  ;;  %v2335_v18 = vpop.f32.mrb[47].mxu0 }
 0x36e   : > { %v7886_v29 = vpop.eup %7885  ;;  %v7126_v41 = vadd.f32 %v2335_v18, %v9084_v40  ;;  %v3385_v20 = vmul.bf16 1065369472, %v7884_v14  ;;  %v1022_v18 = vpack.c.bf16 %v674_v7, %v670_v1  ;;  %v699_v1 = vld [vmem:[%s8738_s20 + $0xaf8] sm:$0xff] }
 0x36f   : > { %v7888_v21 = vpop.eup %7887  ;;  %v2880_v23 = vpack.c.bf16 %v9329_v17, %v9326_v16  ;;  %2598 = vmatmul.mubr.bf16.gmra.mrb[152].mxu0 %v1014_v34  ;;  %v9362_v34 = vld [vmem:[#allocation10] sm:$0x1] }
 0x370   : > { %v3315_v60 = vadd.bf16 1065369472, %v7888_v21  ;;  %v2881_v61 = vpack.c.bf16 %v7126_v41, %v7124_v33  ;;  %2607 = vmatprep.mubr.bf16.mxu0 %v1019_v12  ;;  %v9339_v36 = vmul.bf16 %v7886_v29, %v3385_v20  ;;  %6991 = vmatprep.mubr.bf16.mxu1 %v9362_v34  ;;  %v1027_v33 = vpack.c.bf16 %v683_v9, %v679_v5 }
 0x372   : > { %7895 = vrcp.bf16 %v3315_v60  ;;  %v6716_v37 = vmul.bf16 3216621497, %v2881_v61  ;;  %v2339_v50 = vpop.f32.mrb[48].mxu0 }
 0x373   : > { %7897 = vtanh.bf16 %v2876_v13  ;;  %v2341_v3 = vpop.f32.mrb[49].mxu0  ;;  %v9349_v56 = vadd.f32 %v2339_v50, %v9080_v35  ;;  %v1026_v50 = vpack.c.bf16 %v682_v45, %v678_v59 }
 0x374   : > { %7899 = vpow.bf16 %v6716_v37  ;;  %v2343_v51 = vpop.f32.mrb[50].mxu0  ;;  %v7128_v6 = vadd.f32 %v2341_v3, %v9084_v40 }
 0x375   : > { %v7890_v55 = vpop.eup %7889  ;;  %v9352_v57 = vadd.f32 %v2343_v51, %v9080_v35  ;;  %v2345_v58 = vpop.f32.mrb[51].mxu0 }
 0x376   : > { %v7892_v2 = vpop.eup %7891  ;;  %v7130_v13 = vadd.f32 %v2345_v58, %v9084_v40  ;;  %v3387_v46 = vmul.bf16 1065369472, %v7890_v55 }
 0x377   : > { %v7894_v31 = vpop.eup %7893  ;;  %v2882_v62 = vpack.c.bf16 %v9352_v57, %v9349_v56  ;;  %2608 = vmatmul.mubr.bf16.gmra.mrb[156].mxu0 %v1018_v49  ;;  %v1031_v49 = vpack.c.bf16 %v691_v38, %v687_v0 }
 0x378   : > { %v3316_v24 = vadd.bf16 1065369472, %v7894_v31  ;;  %v2883_v26 = vpack.c.bf16 %v7130_v13, %v7128_v6  ;;  %v3506_v32 = vmul.bf16 %v7892_v2, %v3387_v46  ;;  %2617 = vmatprep.mubr.bf16.mxu0 %v1023_v54 }
 0x37a   : > { %7901 = vrcp.bf16 %v3316_v24  ;;  %v6717_v8 = vmul.bf16 3216621497, %v2883_v26  ;;  %v2349_v12 = vpop.f32.mrb[52].mxu0  ;;  %6975 = vmatprep.subr.bf16.mxu1 %v3506_v32  ;;  %v686_v24 = vld [vmem:[%s8738_s20 + $0xa90] sm:$0xff]  ;;  %v695_v32 = vld [vmem:[%s8738_s20 + $0xad8] sm:$0xff] }
 0x37b   : > { %7903 = vtanh.bf16 %v2878_v52  ;;  %v2351_v14 = vpop.f32.mrb[53].mxu0  ;;  %6976 = vmatpush3.bf16.xpose.msra.mxu1 %v9178_v42  ;;  %v9370_v20 = vadd.f32 %v2349_v12, %v9080_v35  ;;  %v690_v26 = vld [vmem:[%s8738_s20 + $0xab0] sm:$0xff] }
 0x37c   : > { %7905 = vpow.bf16 %v6717_v8  ;;  %v2353_v29 = vpop.f32.mrb[54].mxu0  ;;  %v7132_v52 = vadd.f32 %v2351_v14, %v9084_v40  ;;  %v1030_v8 = vpack.c.bf16 %v690_v26, %v686_v24  ;;  %v1035_v14 = vpack.c.bf16 %v699_v1, %v695_v32 }
 0x37d   : > { %v7896_v41 = vpop.eup %7895  ;;  %v9373_v21 = vadd.f32 %v2353_v29, %v9080_v35  ;;  %v2355_v43 = vpop.f32.mrb[55].mxu0 }
 0x37e   : > { %v7898_v44 = vpop.eup %7897  ;;  %v7134_v42 = vadd.f32 %v2355_v43, %v9084_v40  ;;  %v3389_v27 = vmul.bf16 1065369472, %v7896_v41 }
 0x37f   : > { %v7900_v4 = vpop.eup %7899  ;;  %v2884_v28 = vpack.c.bf16 %v9373_v21, %v9370_v20  ;;  %2618 = vmatmul.mubr.bf16.gmra.mrb[160].mxu0 %v1022_v18 }
 0x380   : > { %v3317_v60 = vadd.bf16 1065369472, %v7900_v4  ;;  %v2885_v61 = vpack.c.bf16 %v7134_v42, %v7132_v52  ;;  %v3507_v63 = vmul.bf16 %v7898_v44, %v3389_v27  ;;  %2627 = vmatprep.mubr.bf16.mxu0 %v1027_v33  ;;  %v694_v4 = vld [vmem:[%s8738_s20 + $0xad0] sm:$0xff] }
 0x382   : > { %7907 = vrcp.bf16 %v3317_v60  ;;  %v6718_v39 = vmul.bf16 3216621497, %v2885_v61  ;;  %v2359_v48 = vpop.f32.mrb[56].mxu0  ;;  %6977 = vmatprep.subr.bf16.mxu1 %v3507_v63  ;;  %v698_v60 = vld [vmem:[%s8738_s20 + $0xaf0] sm:$0xff]  ;;  %v703_v61 = vld [vmem:[%s8738_s20 + $0xb18] sm:$0xff] }
 0x383   : > { %7909 = vtanh.bf16 %v2880_v23  ;;  %v2361_v37 = vpop.f32.mrb[57].mxu0  ;;  %6978 = vmatpush3.bf16.xpose.msra.mxu1 %v9201_v10  ;;  %v9388_v54 = vadd.f32 %v2359_v48, %v9080_v35  ;;  %v707_v63 = vld [vmem:[%s8738_s20 + $0xb38] sm:$0xff]  ;;  %v1034_v38 = vpack.c.bf16 %v698_v60, %v694_v4 }
 0x384   : > { %7911 = vpow.bf16 %v6718_v39  ;;  %v2363_v3 = vpop.f32.mrb[58].mxu0  ;;  %v7136_v23 = vadd.f32 %v2361_v37, %v9084_v40  ;;  %v1039_v48 = vpack.c.bf16 %v707_v63, %v703_v61 }
 0x385   : > { %v7902_v51 = vpop.eup %7901  ;;  %v9391_v55 = vadd.f32 %v2363_v3, %v9080_v35  ;;  %v2365_v16 = vpop.f32.mrb[59].mxu0 }
 0x386   : > { %v7904_v17 = vpop.eup %7903  ;;  %v7138_v10 = vadd.f32 %v2365_v16, %v9084_v40  ;;  %v3391_v58 = vmul.bf16 1065369472, %v7902_v51 }
 0x387   : > { %v7906_v2 = vpop.eup %7905  ;;  %v2886_v6 = vpack.c.bf16 %v9391_v55, %v9388_v54  ;;  %2628 = vmatmul.mubr.bf16.gmra.mrb[164].mxu0 %v1026_v50 }
 0x388   : > { %v3318_v13 = vadd.bf16 1065369472, %v7906_v2  ;;  %v2887_v46 = vpack.c.bf16 %v7138_v10, %v7136_v23  ;;  %v3508_v31 = vmul.bf16 %v7904_v17, %v3391_v58  ;;  %2637 = vmatprep.mubr.bf16.mxu0 %v1031_v49  ;;  %v702_v58 = vld [vmem:[%s8738_s20 + $0xb10] sm:$0xff] }
 0x389   : > { %v706_v2 = vld [vmem:[%s8738_s20 + $0xb30] sm:$0xff] }
 0x38a   : > { %7913 = vrcp.bf16 %v3318_v13  ;;  %v6719_v7 = vmul.bf16 3216621497, %v2887_v46  ;;  %v2369_v5 = vpop.f32.mrb[60].mxu0  ;;  %6979 = vmatprep.subr.bf16.mxu1 %v3508_v31  ;;  %v711_v13 = vld [vmem:[%s8738_s20 + $0xb58] sm:$0xff]  ;;  %v1038_v32 = vpack.c.bf16 %v706_v2, %v702_v58 }
 0x38b   : > { %7915 = vtanh.bf16 %v2882_v62  ;;  %v2371_v9 = vpop.f32.mrb[61].mxu0  ;;  %6980 = vmatpush3.bf16.xpose.msra.mxu1 %v9224_v47  ;;  %v9406_v29 = vadd.f32 %v2369_v5, %v9080_v35  ;;  %v715_v46 = vld [vmem:[%s8738_s20 + $0xb78] sm:$0xff] }
 0x38c   : > { %7917 = vpow.bf16 %v6719_v7  ;;  %v2373_v12 = vpop.f32.mrb[62].mxu0  ;;  %v7140_v62 = vadd.f32 %v2371_v9, %v9084_v40  ;;  %v1043_v7 = vpack.c.bf16 %v715_v46, %v711_v13 }
 0x38d   : > { %v7908_v18 = vpop.eup %7907  ;;  %v9409_v33 = vadd.f32 %v2373_v12, %v9080_v35  ;;  %v2375_v56 = vpop.f32.mrb[63].mxu0 }
 0x38e   : > { %v7910_v57 = vpop.eup %7909  ;;  %v7142_v47 = vadd.f32 %v2375_v56, %v9084_v40  ;;  %v3393_v41 = vmul.bf16 1065369472, %v7908_v18 }
 0x38f   : > { %v7912_v43 = vpop.eup %7911  ;;  %v2888_v44 = vpack.c.bf16 %v9409_v33, %v9406_v29  ;;  %2638 = vmatmul.mubr.bf16.gmra.mrb[168].mxu0 %v1030_v8 }
 0x390   : > { %v3319_v52 = vadd.bf16 1065369472, %v7912_v43  ;;  %v2889_v42 = vpack.c.bf16 %v7142_v47, %v7140_v62  ;;  %v3509_v27 = vmul.bf16 %v7910_v57, %v3393_v41  ;;  %2647 = vmatprep.mubr.bf16.mxu0 %v1035_v14  ;;  %v710_v47 = vld [vmem:[%s8738_s20 + $0xb50] sm:$0xff]  ;;  %v719_v43 = vld [vmem:[%s8738_s20 + $0xb98] sm:$0xff] }
 0x391   : > { %v714_v41 = vld [vmem:[%s8738_s20 + $0xb70] sm:$0xff] }
 0x392   : > { %7919 = vrcp.bf16 %v3319_v52  ;;  %v6720_v59 = vmul.bf16 3216621497, %v2889_v42  ;;  %v2379_v45 = vpop.f32.mrb[64].mxu0  ;;  %6981 = vmatprep.subr.bf16.mxu1 %v3509_v27  ;;  %v723_v52 = vld [vmem:[%s8738_s20 + $0xbb8] sm:$0xff]  ;;  %v1042_v60 = vpack.c.bf16 %v714_v41, %v710_v47 }
 0x393   : > { %7921 = vtanh.bf16 %v2884_v28  ;;  %v2381_v0 = vpop.f32.mrb[65].mxu0  ;;  %6982 = vmatpush3.bf16.xpose.msra.mxu1 %v9247_v15  ;;  %v9424_v50 = vadd.f32 %v2379_v45, %v9080_v35  ;;  %v1047_v63 = vpack.c.bf16 %v723_v52, %v719_v43 }
 0x394   : > { %7923 = vpow.bf16 %v6720_v59  ;;  %v2383_v39 = vpop.f32.mrb[66].mxu0  ;;  %v7144_v28 = vadd.f32 %v2381_v0, %v9084_v40 }
 0x395   : > { %v7914_v37 = vpop.eup %7913  ;;  %v9427_v3 = vadd.f32 %v2383_v39, %v9080_v35  ;;  %v2385_v20 = vpop.f32.mrb[67].mxu0 }
 0x396   : > { %v7916_v21 = vpop.eup %7915  ;;  %v7146_v15 = vadd.f32 %v2385_v20, %v9084_v40  ;;  %v3395_v49 = vmul.bf16 1065369472, %v7914_v37 }
 0x397   : > { %v7918_v51 = vpop.eup %7917  ;;  %v2890_v16 = vpack.c.bf16 %v9427_v3, %v9424_v50  ;;  %2648 = vmatmul.mubr.bf16.gmra.mrb[172].mxu0 %v1034_v38 }
 0x398   : > { %v3320_v17 = vadd.bf16 1065369472, %v7918_v51  ;;  %v2891_v23 = vpack.c.bf16 %v7146_v15, %v7144_v28  ;;  %v3510_v10 = vmul.bf16 %v7916_v21, %v3395_v49  ;;  %2657 = vmatprep.mubr.bf16.mxu0 %v1039_v48  ;;  %v718_v28 = vld [vmem:[%s8738_s20 + $0xb90] sm:$0xff]  ;;  %v727_v49 = vld [vmem:[%s8738_s20 + $0xbd8] sm:$0xff] }
 0x399   : > { %v722_v15 = vld [vmem:[%s8738_s20 + $0xbb0] sm:$0xff]  ;;  %v731_v51 = vld [vmem:[%s8738_s20 + $0xbf8] sm:$0xff] }
 0x39a   : > { %7925 = vrcp.bf16 %v3320_v17  ;;  %v6721_v31 = vmul.bf16 3216621497, %v2891_v23  ;;  %v2389_v24 = vpop.f32.mrb[68].mxu0  ;;  %6983 = vmatprep.subr.bf16.mxu1 %v3510_v10  ;;  %v1046_v58 = vpack.c.bf16 %v722_v15, %v718_v28  ;;  %v1051_v13 = vpack.c.bf16 %v731_v51, %v727_v49 }
 0x39b   : > { %7927 = vtanh.bf16 %v2886_v6  ;;  %v2391_v26 = vpop.f32.mrb[69].mxu0  ;;  %6984 = vmatpush3.bf16.xpose.msra.mxu1 %v9270_v53  ;;  %v9442_v9 = vadd.f32 %v2389_v24, %v9080_v35 }
 0x39c   : > { %7929 = vpow.bf16 %v6721_v31  ;;  %v2393_v1 = vpop.f32.mrb[70].mxu0  ;;  %v7148_v6 = vadd.f32 %v2391_v26, %v9084_v40 }
 0x39d   : > { %v7920_v5 = vpop.eup %7919  ;;  %v9445_v8 = vadd.f32 %v2393_v1, %v9080_v35  ;;  %v2395_v54 = vpop.f32.mrb[71].mxu0 }
 0x39e   : > { %v7922_v55 = vpop.eup %7921  ;;  %v7150_v53 = vadd.f32 %v2395_v54, %v9084_v40  ;;  %v3397_v12 = vmul.bf16 1065369472, %v7920_v5 }
 0x39f   : > { %v7924_v14 = vpop.eup %7923  ;;  %v2892_v18 = vpack.c.bf16 %v9445_v8, %v9442_v9  ;;  %2658 = vmatmul.mubr.bf16.gmra.mrb[176].mxu0 %v1038_v32 }
 0x3a0   : > { %v3321_v56 = vadd.bf16 1065369472, %v7924_v14  ;;  %v2893_v57 = vpack.c.bf16 %v7150_v53, %v7148_v6  ;;  %v3511_v62 = vmul.bf16 %v7922_v55, %v3397_v12  ;;  %2667 = vmatprep.mubr.bf16.mxu0 %v1043_v7  ;;  %v726_v55 = vld [vmem:[%s8738_s20 + $0xbd0] sm:$0xff]  ;;  %v735_v53 = vld [vmem:[%s8738_s20 + $0xc18] sm:$0xff] }
 0x3a1   : > { %v730_v6 = vld [vmem:[%s8738_s20 + $0xbf0] sm:$0xff]  ;;  %v739_v12 = vld [vmem:[%s8738_s20 + $0xc38] sm:$0xff] }
 0x3a2   : > { %7931 = vrcp.bf16 %v3321_v56  ;;  %v6722_v42 = vmul.bf16 3216621497, %v2893_v57  ;;  %v2399_v27 = vpop.f32.mrb[72].mxu0  ;;  %6985 = vmatprep.subr.bf16.mxu1 %v3511_v62  ;;  %v1050_v62 = vpack.c.bf16 %v730_v6, %v726_v55  ;;  %v1055_v41 = vpack.c.bf16 %v739_v12, %v735_v53 }
 0x3a3   : > { %7933 = vtanh.bf16 %v2888_v44  ;;  %v2401_v4 = vpop.f32.mrb[73].mxu0  ;;  %6986 = vmatpush3.bf16.xpose.msra.mxu1 %v9293_v22  ;;  %v9460_v45 = vadd.f32 %v2399_v27, %v9080_v35 }
 0x3a4   : > { %7935 = vpow.bf16 %v6722_v42  ;;  %v2403_v61 = vpop.f32.mrb[74].mxu0  ;;  %v7152_v44 = vadd.f32 %v2401_v4, %v9084_v40 }
 0x3a5   : > { %v7926_v59 = vpop.eup %7925  ;;  %v9463_v0 = vadd.f32 %v2403_v61, %v9080_v35  ;;  %v2405_v29 = vpop.f32.mrb[75].mxu0 }
 0x3a6   : > { %v7928_v33 = vpop.eup %7927  ;;  %v7154_v22 = vadd.f32 %v2405_v29, %v9084_v40  ;;  %v3399_v38 = vmul.bf16 1065369472, %v7926_v59  ;;  %v734_v59 = vld [vmem:[%s8738_s20 + $0xc10] sm:$0xff] }
 0x3a7   : > { %v7930_v39 = vpop.eup %7929  ;;  %v2894_v48 = vpack.c.bf16 %v9463_v0, %v9460_v45  ;;  %2668 = vmatmul.mubr.bf16.gmra.mrb[180].mxu0 %v1042_v60  ;;  %v738_v29 = vld [vmem:[%s8738_s20 + $0xc30] sm:$0xff] }
 0x3a8   : > { %v3322_v37 = vadd.bf16 1065369472, %v7930_v39  ;;  %v2895_v20 = vpack.c.bf16 %v7154_v22, %v7152_v44  ;;  %v3512_v21 = vmul.bf16 %v7928_v33, %v3399_v38  ;;  %2677 = vmatprep.mubr.bf16.mxu0 %v1047_v63  ;;  %v743_v44 = vld [vmem:[%s8738_s20 + $0xc58] sm:$0xff] }
 0x3a9   : > { %v747_v22 = vld [vmem:[%s8738_s20 + $0xc78] sm:$0xff] }
 0x3aa   : > { %7937 = vrcp.bf16 %v3322_v37  ;;  %v6723_v17 = vmul.bf16 3216621497, %v2895_v20  ;;  %v2409_v23 = vpop.f32.mrb[76].mxu0  ;;  %6987 = vmatprep.subr.bf16.mxu1 %v3512_v21  ;;  %v1054_v20 = vpack.c.bf16 %v738_v29, %v734_v59  ;;  %v1059_v28 = vpack.c.bf16 %v747_v22, %v743_v44 }
 0x3ab   : > { %7939 = vtanh.bf16 %v2890_v16  ;;  %v2411_v10 = vpop.f32.mrb[77].mxu0  ;;  %6988 = vmatpush3.bf16.xpose.msra.mxu1 %v9316_v30  ;;  %v9478_v31 = vadd.f32 %v2409_v23, %v9080_v35 }
 0x3ac   : > { %7941 = vpow.bf16 %v6723_v17  ;;  %v2413_v2 = vpop.f32.mrb[78].mxu0  ;;  %v7156_v16 = vadd.f32 %v2411_v10, %v9084_v40 }
 0x3ad   : > { %v7932_v46 = vpop.eup %7931  ;;  %v9481_v24 = vadd.f32 %v2413_v2, %v9080_v35  ;;  %v2415_v50 = vpop.f32.mrb[79].mxu0 }
 0x3ae   : > { %v7934_v3 = vpop.eup %7933  ;;  %v7158_v30 = vadd.f32 %v2415_v50, %v9084_v40  ;;  %v3401_v26 = vmul.bf16 1065369472, %v7932_v46  ;;  %v746_v46 = vld [vmem:[%s8738_s20 + $0xc70] sm:$0xff] }
 0x3af   : > { %v7936_v32 = vpop.eup %7935  ;;  %v2896_v1 = vpack.c.bf16 %v9481_v24, %v9478_v31  ;;  %2678 = vmatmul.mubr.bf16.gmra.mrb[184].mxu0 %v1046_v58 }
 0x3b0   : > { %v3323_v7 = vadd.bf16 1065369472, %v7936_v32  ;;  %v2897_v5 = vpack.c.bf16 %v7158_v30, %v7156_v16  ;;  %v3513_v54 = vmul.bf16 %v7934_v3, %v3401_v26  ;;  %2687 = vmatprep.mubr.bf16.mxu0 %v1051_v13  ;;  %v742_v13 = vld [vmem:[%s8738_s20 + $0xc50] sm:$0xff]  ;;  %v751_v3 = vld [vmem:[%s8738_s20 + $0xc98] sm:$0xff] }
 0x3b1   : > { %v755_v16 = vld [vmem:[%s8738_s20 + $0xcb8] sm:$0xff] }
 0x3b2   : > { %7943 = vrcp.bf16 %v3323_v7  ;;  %v6724_v14 = vmul.bf16 3216621497, %v2897_v5  ;;  %v2419_v56 = vpop.f32.mrb[80].mxu0  ;;  %6989 = vmatprep.subr.bf16.mxu1 %v3513_v54  ;;  %v1058_v7 = vpack.c.bf16 %v746_v46, %v742_v13  ;;  %v1063_v54 = vpack.c.bf16 %v755_v16, %v751_v3 }
 0x3b3   : > { %7945 = vtanh.bf16 %v2892_v18  ;;  %v2421_v57 = vpop.f32.mrb[81].mxu0  ;;  %6990 = vmatpush3.bf16.xpose.msra.mxu1 %v9339_v36  ;;  %v9496_v52 = vadd.f32 %v2419_v56, %v9080_v35 }
 0x3b4   : > { %7947 = vpow.bf16 %v6724_v14  ;;  %v2423_v47 = vpop.f32.mrb[82].mxu0  ;;  %v7160_v18 = vadd.f32 %v2421_v57, %v9084_v40 }
 0x3b5   : > { %v7938_v43 = vpop.eup %7937  ;;  %v9499_v42 = vadd.f32 %v2423_v47, %v9080_v35  ;;  %v2425_v9 = vpop.f32.mrb[83].mxu0 }
 0x3b6   : > { %v7940_v8 = vpop.eup %7939  ;;  %v7162_v36 = vadd.f32 %v2425_v9, %v9084_v40  ;;  %v3403_v27 = vmul.bf16 1065369472, %v7938_v43  ;;  %v754_v43 = vld [vmem:[%s8738_s20 + $0xcb0] sm:$0xff] }
 0x3b7   : > { %v7942_v4 = vpop.eup %7941  ;;  %v2898_v60 = vpack.c.bf16 %v9499_v42, %v9496_v52  ;;  %2688 = vmatmul.mubr.bf16.gmra.mrb[188].mxu0 %v1050_v62 }
 0x3b8   : > { %v3324_v61 = vadd.bf16 1065369472, %v7942_v4  ;;  %v2899_v63 = vpack.c.bf16 %v7162_v36, %v7160_v18  ;;  %2697 = vmatprep.mubr.bf16.mxu0 %v1055_v41  ;;  %v9507_v33 = vmul.bf16 %v7940_v8, %v3403_v27  ;;  %v750_v41 = vld [vmem:[%s8738_s20 + $0xc90] sm:$0xff]  ;;  %v759_v8 = vld [vmem:[%s8738_s20 + $0xcd8] sm:$0xff] }
 0x3b9   : > { %v763_v18 = vld [vmem:[%s8738_s20 + $0xcf8] sm:$0xff] }
 0x3ba   : > { %7949 = vrcp.bf16 %v3324_v61  ;;  %v6725_v38 = vmul.bf16 3216621497, %v2899_v63  ;;  %v2429_v39 = vpop.f32.mrb[84].mxu0  ;;  %6992 = vmatmul.mubr.bf16.vlgmr.msra.gmra.mrb[76].mxu1 %v9362_v34  ;;  %v1062_v61 = vpack.c.bf16 %v754_v43, %v750_v41  ;;  %v1067_v59 = vpack.c.bf16 %v763_v18, %v759_v8 }
 0x3bb   : > { %7951 = vtanh.bf16 %v2894_v48  ;;  %v2431_v37 = vpop.f32.mrb[85].mxu0  ;;  %7009 = vmatprep.mubr.bf16.mxu1 %v9362_v34  ;;  %v9517_v49 = vadd.f32 %v2429_v39, %v9080_v35 }
 0x3bc   : > { %7953 = vpow.bf16 %v6725_v38  ;;  %v2433_v21 = vpop.f32.mrb[86].mxu0  ;;  %v7164_v48 = vadd.f32 %v2431_v37, %v9084_v40 }
 0x3bd   : > { %v7944_v15 = vpop.eup %7943  ;;  %v9520_v51 = vadd.f32 %v2433_v21, %v9080_v35  ;;  %v2435_v45 = vpop.f32.mrb[87].mxu0 }
 0x3be   : > { %v7946_v0 = vpop.eup %7945  ;;  %v7166_v34 = vadd.f32 %v2435_v45, %v9084_v40  ;;  %v3405_v17 = vmul.bf16 1065369472, %v7944_v15  ;;  %v758_v15 = vld [vmem:[%s8738_s20 + $0xcd0] sm:$0xff] }
 0x3bf   : > { %v7948_v23 = vpop.eup %7947  ;;  %v2900_v10 = vpack.c.bf16 %v9520_v51, %v9517_v49  ;;  %2698 = vmatmul.mubr.bf16.gmra.mrb[192].mxu0 %v1054_v20  ;;  %v762_v45 = vld [vmem:[%s8738_s20 + $0xcf0] sm:$0xff] }
 0x3c0   : > { %v3325_v58 = vadd.bf16 1065369472, %v7948_v23  ;;  %v2901_v2 = vpack.c.bf16 %v7166_v34, %v7164_v48  ;;  %2707 = vmatprep.mubr.bf16.mxu0 %v1059_v28  ;;  %v9528_v50 = vmul.bf16 %v7946_v0, %v3405_v17  ;;  %v767_v48 = vld [vmem:[%s8738_s20 + $0xd18] sm:$0xff] }
 0x3c1   : > { %v771_v34 = vld [vmem:[%s8738_s20 + $0xd38] sm:$0xff] }
 0x3c2   : > { %7955 = vrcp.bf16 %v3325_v58  ;;  %v6726_v30 = vmul.bf16 3216621497, %v2901_v2  ;;  %v2439_v26 = vpop.f32.mrb[88].mxu0  ;;  %v1066_v2 = vpack.c.bf16 %v762_v45, %v758_v15  ;;  %v1071_v46 = vpack.c.bf16 %v771_v34, %v767_v48 }
 0x3c3   : > { %7957 = vtanh.bf16 %v2896_v1  ;;  %v2441_v32 = vpop.f32.mrb[89].mxu0  ;;  %v9536_v6 = vadd.f32 %v2439_v26, %v9080_v35 }
 0x3c4   : > { %7959 = vpow.bf16 %v6726_v30  ;;  %v2443_v5 = vpop.f32.mrb[90].mxu0  ;;  %v7168_v31 = vadd.f32 %v2441_v32, %v9084_v40 }
 0x3c5   : > { %v7950_v55 = vpop.eup %7949  ;;  %v9539_v53 = vadd.f32 %v2443_v5, %v9080_v35  ;;  %v2445_v12 = vpop.f32.mrb[91].mxu0 }
 0x3c6   : > { %v7952_v14 = vpop.eup %7951  ;;  %v7170_v24 = vadd.f32 %v2445_v12, %v9084_v40  ;;  %v3407_v1 = vmul.bf16 1065369472, %v7950_v55  ;;  %v766_v12 = vld [vmem:[%s8738_s20 + $0xd10] sm:$0xff] }
 0x3c7   : > { %v7954_v56 = vpop.eup %7953  ;;  %v2902_v57 = vpack.c.bf16 %v9539_v53, %v9536_v6  ;;  %2708 = vmatmul.mubr.bf16.gmra.mrb[196].mxu0 %v1058_v7 }
 0x3c8   : > { %v3326_v62 = vadd.bf16 1065369472, %v7954_v56  ;;  %v2903_v47 = vpack.c.bf16 %v7170_v24, %v7168_v31  ;;  %2717 = vmatprep.mubr.bf16.mxu0 %v1063_v54  ;;  %v9547_v9 = vmul.bf16 %v7952_v14, %v3407_v1  ;;  %v770_v14 = vld [vmem:[%s8738_s20 + $0xd30] sm:$0xff]  ;;  %v775_v24 = vld [vmem:[%s8738_s20 + $0xd58] sm:$0xff] }
 0x3c9   : > { %v779_v1 = vld [vmem:[%s8738_s20 + $0xd78] sm:$0xff]  ;;  %v1070_v41 = vpack.c.bf16 %v770_v14, %v766_v12 }
 0x3ca   : > { %7961 = vrcp.bf16 %v3326_v62  ;;  %v6727_v36 = vmul.bf16 3216621497, %v2903_v47  ;;  %v2449_v27 = vpop.f32.mrb[92].mxu0  ;;  %v1075_v8 = vpack.c.bf16 %v779_v1, %v775_v24 }
 0x3cb   : > { %7963 = vtanh.bf16 %v2898_v60  ;;  %v2451_v4 = vpop.f32.mrb[93].mxu0  ;;  %v9555_v44 = vadd.f32 %v2449_v27, %v9080_v35 }
 0x3cc   : > { %7965 = vpow.bf16 %v6727_v36  ;;  %v2453_v63 = vpop.f32.mrb[94].mxu0  ;;  %v7172_v52 = vadd.f32 %v2451_v4, %v9084_v40 }
 0x3cd   : > { %v7956_v29 = vpop.eup %7955  ;;  %v9558_v22 = vadd.f32 %v2453_v63, %v9080_v35  ;;  %v2455_v38 = vpop.f32.mrb[95].mxu0 }
 0x3ce   : > { %v7958_v39 = vpop.eup %7957  ;;  %v7174_v42 = vadd.f32 %v2455_v38, %v9084_v40  ;;  %v3409_v60 = vmul.bf16 1065369472, %v7956_v29 }
 0x3cf   : > { %v7960_v37 = vpop.eup %7959  ;;  %v2904_v20 = vpack.c.bf16 %v9558_v22, %v9555_v44  ;;  %2718 = vmatmul.mubr.bf16.gmra.mrb[200].mxu0 %v1062_v61 }
 0x3d0   : > { %v3327_v21 = vadd.bf16 1065369472, %v7960_v37  ;;  %v2905_v28 = vpack.c.bf16 %v7174_v42, %v7172_v52  ;;  %2727 = vmatprep.mubr.bf16.mxu0 %v1067_v59  ;;  %v9566_v0 = vmul.bf16 %v7958_v39, %v3409_v60  ;;  %v774_v39 = vld [vmem:[%s8738_s20 + $0xd50] sm:$0xff]  ;;  %v783_v60 = vld [vmem:[%s8738_s20 + $0xd98] sm:$0xff] }
 0x3d1   : > { %v778_v52 = vld [vmem:[%s8738_s20 + $0xd70] sm:$0xff]  ;;  %v787_v37 = vld [vmem:[%s8738_s20 + $0xdb8] sm:$0xff] }
 0x3d2   : > { %7967 = vrcp.bf16 %v3327_v21  ;;  %v6728_v17 = vmul.bf16 3216621497, %v2905_v28  ;;  %v2459_v23 = vpop.f32.mrb[96].mxu0  ;;  %v1074_v45 = vpack.c.bf16 %v778_v52, %v774_v39  ;;  %v1079_v34 = vpack.c.bf16 %v787_v37, %v783_v60 }
 0x3d3   : > { %7969 = vtanh.bf16 %v2900_v10  ;;  %v2461_v58 = vpop.f32.mrb[97].mxu0  ;;  %v9574_v16 = vadd.f32 %v2459_v23, %v9080_v35 }
 0x3d4   : > { %7971 = vpow.bf16 %v6728_v17  ;;  %v2463_v13 = vpop.f32.mrb[98].mxu0  ;;  %v7176_v49 = vadd.f32 %v2461_v58, %v9084_v40 }
 0x3d5   : > { %v7962_v3 = vpop.eup %7961  ;;  %v9577_v30 = vadd.f32 %v2463_v13, %v9080_v35  ;;  %v2465_v26 = vpop.f32.mrb[99].mxu0 }
 0x3d6   : > { %v7964_v32 = vpop.eup %7963  ;;  %v7178_v51 = vadd.f32 %v2465_v26, %v9084_v40  ;;  %v3411_v10 = vmul.bf16 1065369472, %v7962_v3 }
 0x3d7   : > { %v7966_v7 = vpop.eup %7965  ;;  %v2906_v5 = vpack.c.bf16 %v9577_v30, %v9574_v16  ;;  %2728 = vmatmul.mubr.bf16.gmra.mrb[204].mxu0 %v1066_v2 }
 0x3d8   : > { %v3328_v54 = vadd.bf16 1065369472, %v7966_v7  ;;  %v2907_v55 = vpack.c.bf16 %v7178_v51, %v7176_v49  ;;  %2737 = vmatprep.mubr.bf16.mxu0 %v1071_v46  ;;  %v9585_v31 = vmul.bf16 %v7964_v32, %v3411_v10  ;;  %v782_v49 = vld [vmem:[%s8738_s20 + $0xd90] sm:$0xff]  ;;  %v791_v7 = vld [vmem:[%s8738_s20 + $0xdd8] sm:$0xff] }
 0x3d9   : > { %v786_v51 = vld [vmem:[%s8738_s20 + $0xdb0] sm:$0xff] }
 0x3da   : > { %7973 = vrcp.bf16 %v3328_v54  ;;  %v6729_v56 = vmul.bf16 3216621497, %v2907_v55  ;;  %v2469_v62 = vpop.f32.mrb[100].mxu0  ;;  %v795_v54 = vld [vmem:[%s8738_s20 + $0xdf8] sm:$0xff]  ;;  %v1078_v24 = vpack.c.bf16 %v786_v51, %v782_v49  ;;  %v798_v49 = vld [vmem:[%s8738_s20 + $0xe10] sm:$0xff] }
 0x3db   : > { %7975 = vtanh.bf16 %v2902_v57  ;;  %v2471_v47 = vpop.f32.mrb[101].mxu0  ;;  %v9593_v36 = vadd.f32 %v2469_v62, %v9080_v35  ;;  %v802_v51 = vld [vmem:[%s8738_s20 + $0xe30] sm:$0xff] }
 0x3dc   : > { %7977 = vpow.bf16 %v6729_v56  ;;  %v2473_v43 = vpop.f32.mrb[102].mxu0  ;;  %v7180_v6 = vadd.f32 %v2471_v47, %v9084_v40  ;;  %v1083_v56 = vpack.c.bf16 %v795_v54, %v791_v7  ;;  %v807_v54 = vld [vmem:[%s8738_s20 + $0xe58] sm:$0xff] }
 0x3dd   : > { %v7968_v18 = vpop.eup %7967  ;;  %v9596_v27 = vadd.f32 %v2473_v43, %v9080_v35  ;;  %v2475_v4 = vpop.f32.mrb[103].mxu0 }
 0x3de   : > { %v7970_v61 = vpop.eup %7969  ;;  %v7182_v53 = vadd.f32 %v2475_v4, %v9084_v40  ;;  %v3413_v57 = vmul.bf16 1065369472, %v7968_v18 }
 0x3df   : > { %v7972_v63 = vpop.eup %7971  ;;  %v2908_v59 = vpack.c.bf16 %v9596_v27, %v9593_v36  ;;  %2738 = vmatmul.mubr.bf16.gmra.mrb[208].mxu0 %v1070_v41 }
 0x3e0   : > { %v3329_v29 = vadd.bf16 1065369472, %v7972_v63  ;;  %v2909_v38 = vpack.c.bf16 %v7182_v53, %v7180_v6  ;;  %2747 = vmatprep.mubr.bf16.mxu0 %v1075_v8  ;;  %v9604_v42 = vmul.bf16 %v7970_v61, %v3413_v57  ;;  %v790_v53 = vld [vmem:[%s8738_s20 + $0xdd0] sm:$0xff] }
 0x3e1   : > { %v794_v57 = vld [vmem:[%s8738_s20 + $0xdf0] sm:$0xff] }
 0x3e2   : > { %7979 = vrcp.bf16 %v3329_v29  ;;  %v6730_v21 = vmul.bf16 3216621497, %v2909_v38  ;;  %v2479_v28 = vpop.f32.mrb[104].mxu0  ;;  %v799_v29 = vld [vmem:[%s8738_s20 + $0xe18] sm:$0xff]  ;;  %v1082_v37 = vpack.c.bf16 %v794_v57, %v790_v53 }
 0x3e3   : > { %7981 = vtanh.bf16 %v2904_v20  ;;  %v2481_v15 = vpop.f32.mrb[105].mxu0  ;;  %v9612_v23 = vadd.f32 %v2479_v28, %v9080_v35  ;;  %v803_v38 = vld [vmem:[%s8738_s20 + $0xe38] sm:$0xff] }
 0x3e4   : > { %7983 = vpow.bf16 %v6730_v21  ;;  %v2483_v48 = vpop.f32.mrb[106].mxu0  ;;  %v7184_v44 = vadd.f32 %v2481_v15, %v9084_v40  ;;  %v1087_v28 = vpack.c.bf16 %v803_v38, %v799_v29 }
 0x3e5   : > { %v7974_v17 = vpop.eup %7973  ;;  %v9615_v58 = vadd.f32 %v2483_v48, %v9080_v35  ;;  %v2485_v2 = vpop.f32.mrb[107].mxu0 }
 0x3e6   : > { %v7976_v13 = vpop.eup %7975  ;;  %v7186_v22 = vadd.f32 %v2485_v2, %v9084_v40  ;;  %v3415_v20 = vmul.bf16 1065369472, %v7974_v17  ;;  %v9655_v17 = vpop.f32.mrb[0].mxu1 }
 0x3e7   : > { %v7978_v46 = vpop.eup %7977  ;;  %v2910_v3 = vpack.c.bf16 %v9615_v58, %v9612_v23  ;;  %2748 = vmatmul.mubr.bf16.gmra.mrb[212].mxu0 %v1074_v45 }
 0x3e8   : > { %v3330_v26 = vadd.bf16 1065369472, %v7978_v46  ;;  %v2911_v32 = vpack.c.bf16 %v7186_v22, %v7184_v44  ;;  %2757 = vmatprep.mubr.bf16.mxu0 %v1079_v34  ;;  %v9623_v10 = vmul.bf16 %v7976_v13, %v3415_v20  ;;  %v9659_v13 = vpop.f32.mrb[1].mxu1 }
 0x3e9   : > { %v9663_v20 = vpop.f32.mrb[2].mxu1 }
 0x3ea   : > { %7985 = vrcp.bf16 %v3330_v26  ;;  %v6731_v55 = vmul.bf16 3216621497, %v2911_v32  ;;  %v2489_v12 = vpop.f32.mrb[108].mxu0  ;;  %v9667_v7 = vpop.f32.mrb[3].mxu1 }
 0x3eb   : > { %7987 = vtanh.bf16 %v2906_v5  ;;  %v2491_v14 = vpop.f32.mrb[109].mxu0  ;;  %v9631_v47 = vadd.f32 %v2489_v12, %v9080_v35 }
 0x3ec   : > { %7989 = vpow.bf16 %v6731_v55  ;;  %v2493_v1 = vpop.f32.mrb[110].mxu0  ;;  %v7188_v16 = vadd.f32 %v2491_v14, %v9084_v40  ;;  %v811_v55 = vld [vmem:[%s8738_s20 + $0xe78] sm:$0xff] }
 0x3ed   : > { %v7980_v62 = vpop.eup %7979  ;;  %v9634_v41 = vadd.f32 %v2493_v1, %v9080_v35  ;;  %v2495_v43 = vpop.f32.mrb[111].mxu0  ;;  %v1086_v1 = vpack.c.bf16 %v802_v51, %v798_v49 }
 0x3ee   : > { %v7982_v8 = vpop.eup %7981  ;;  %v7190_v30 = vadd.f32 %v2495_v43, %v9084_v40  ;;  %v3417_v5 = vmul.bf16 1065369472, %v7980_v62  ;;  %v1091_v62 = vpack.c.bf16 %v811_v55, %v807_v54 }
 0x3ef   : > { %v7984_v18 = vpop.eup %7983  ;;  %v2912_v4 = vpack.c.bf16 %v9634_v41, %v9631_v47  ;;  %2758 = vmatmul.mubr.bf16.gmra.mrb[216].mxu0 %v1078_v24 }
 0x3f0   : > { %v3331_v61 = vadd.bf16 1065369472, %v7984_v18  ;;  %v2913_v6 = vpack.c.bf16 %v7190_v30, %v7188_v16  ;;  %2767 = vmatprep.mubr.bf16.mxu0 %v1083_v56  ;;  %v9642_v63 = vmul.bf16 %v7982_v8, %v3417_v5  ;;  %v9681_v5 = vpop.f32.mrb[4].mxu1 }
 0x3f1   : > { %v9685_v18 = vpop.f32.mrb[5].mxu1 }
 0x3f2   : > { %7991 = vrcp.bf16 %v3331_v61  ;;  %v6732_v39 = vmul.bf16 3216621497, %v2913_v6  ;;  %v2499_v52 = vpop.f32.mrb[112].mxu0  ;;  %v9689_v53 = vpop.f32.mrb[6].mxu1 }
 0x3f3   : > { %7993 = vtanh.bf16 %v2908_v59  ;;  %v2501_v60 = vpop.f32.mrb[113].mxu0  ;;  %v9650_v45 = vadd.f32 %v2499_v52, %v9080_v35  ;;  %v810_v52 = vld [vmem:[%s8738_s20 + $0xe70] sm:$0xff] }
 0x3f4   : > { %7995 = vpow.bf16 %v6732_v39  ;;  %v2503_v21 = vpop.f32.mrb[114].mxu0  ;;  %v7192_v36 = vadd.f32 %v2501_v60, %v9084_v40  ;;  %v806_v39 = vld [vmem:[%s8738_s20 + $0xe50] sm:$0xff]  ;;  %v9693_v60 = vpop.f32.mrb[7].mxu1 }
 0x3f5   : > { %v7986_v15 = vpop.eup %7985  ;;  %v9653_v48 = vadd.f32 %v2503_v21, %v9080_v35  ;;  %v2505_v34 = vpop.f32.mrb[115].mxu0  ;;  %v819_v21 = vld [vmem:[%s8738_s20 + $0xeb8] sm:$0xff] }
 0x3f6   : > { %v7988_v2 = vpop.eup %7987  ;;  %v7194_v27 = vadd.f32 %v2505_v34, %v9084_v40  ;;  %v3419_v59 = vmul.bf16 1065369472, %v7986_v15 }
 0x3f7   : > { %v7990_v44 = vpop.eup %7989  ;;  %v2914_v22 = vpack.c.bf16 %v9653_v48, %v9650_v45  ;;  %2768 = vmatmul.mubr.bf16.gmra.mrb[220].mxu0 %v1082_v37  ;;  %v815_v37 = vld [vmem:[%s8738_s20 + $0xe98] sm:$0xff] }
 0x3f8   : > { %v3332_v46 = vadd.bf16 1065369472, %v7990_v44  ;;  %v2915_v26 = vpack.c.bf16 %v7194_v27, %v7192_v36  ;;  %v3522_v32 = vmul.bf16 %v7988_v2, %v3419_v59  ;;  %2777 = vmatprep.mubr.bf16.mxu0 %v1087_v28  ;;  %v1090_v2 = vpack.c.bf16 %v810_v52, %v806_v39 }
 0x3f9   : > { %v1095_v27 = vpack.c.bf16 %v819_v21, %v815_v37 }
 0x3fa   : > { %7997 = vrcp.bf16 %v3332_v46  ;;  %v6733_v12 = vmul.bf16 3216621497, %v2915_v26  ;;  %v2509_v14 = vpop.f32.mrb[116].mxu0  ;;  %6993 = vmatprep.subr.bf16.mxu1 %v3522_v32  ;;  %v9707_v32 = vpop.f32.mrb[8].mxu1 }
 0x3fb   : > { %7999 = vtanh.bf16 %v2910_v3  ;;  %v2511_v24 = vpop.f32.mrb[117].mxu0  ;;  %6994 = vmatpush3.bf16.xpose.msra.mxu1 %v9507_v33  ;;  %v9676_v8 = vadd.f32 %v2509_v14, %v9080_v35  ;;  %v9711_v49 = vpop.f32.mrb[9].mxu1 }
 0x3fc   : > { %8001 = vpow.bf16 %v6733_v12  ;;  %v2513_v56 = vpop.f32.mrb[118].mxu0  ;;  %v7196_v33 = vadd.f32 %v2511_v24, %v9084_v40  ;;  %v9715_v55 = vpop.f32.mrb[10].mxu1 }
 0x3fd   : > { %v7992_v43 = vpop.eup %7991  ;;  %v9679_v16 = vadd.f32 %v2513_v56, %v9080_v35  ;;  %v2515_v30 = vpop.f32.mrb[119].mxu0  ;;  %v818_v56 = vld [vmem:[%s8738_s20 + $0xeb0] sm:$0xff] }
 0x3fe   : > { %v7994_v23 = vpop.eup %7993  ;;  %v7198_v58 = vadd.f32 %v2515_v30, %v9084_v40  ;;  %v3421_v3 = vmul.bf16 1065369472, %v7992_v43  ;;  %v823_v43 = vld [vmem:[%s8738_s20 + $0xed8] sm:$0xff] }
 0x3ff   : > { %v7996_v61 = vpop.eup %7995  ;;  %v2916_v6 = vpack.c.bf16 %v9679_v16, %v9676_v8  ;;  %2778 = vmatmul.mubr.bf16.gmra.mrb[224].mxu0 %v1086_v1  ;;  %v814_v1 = vld [vmem:[%s8738_s20 + $0xe90] sm:$0xff]  ;;  %v827_v30 = vld [vmem:[%s8738_s20 + $0xef8] sm:$0xff] }
 0x400   : > { %v3333_v57 = vadd.bf16 1065369472, %v7996_v61  ;;  %v2917_v29 = vpack.c.bf16 %v7198_v58, %v7196_v33  ;;  %v3523_v38 = vmul.bf16 %v7994_v23, %v3421_v3  ;;  %2787 = vmatprep.mubr.bf16.mxu0 %v1091_v62  ;;  %v9719_v62 = vpop.f32.mrb[11].mxu1  ;;  %v1094_v3 = vpack.c.bf16 %v818_v56, %v814_v1 }
 0x401   : > { %v9733_v37 = vpop.f32.mrb[12].mxu1 }
 0x402   : > { %8003 = vrcp.bf16 %v3333_v57  ;;  %v6734_v28 = vmul.bf16 3216621497, %v2917_v29  ;;  %v2519_v15 = vpop.f32.mrb[120].mxu0  ;;  %6995 = vmatprep.subr.bf16.mxu1 %v3523_v38  ;;  %v1099_v57 = vpack.c.bf16 %v827_v30, %v823_v43  ;;  %v9737_v21 = vpop.f32.mrb[13].mxu1 }
 0x403   : > { %8005 = vtanh.bf16 %v2912_v4  ;;  %v2521_v34 = vpop.f32.mrb[121].mxu0  ;;  %6996 = vmatpush3.bf16.xpose.msra.mxu1 %v9528_v50  ;;  %v9702_v44 = vadd.f32 %v2519_v15, %v9080_v35 }
 0x404   : > { %8007 = vpow.bf16 %v6734_v28  ;;  %v2523_v36 = vpop.f32.mrb[122].mxu0  ;;  %v7200_v50 = vadd.f32 %v2521_v34, %v9084_v40  ;;  %v9741_v34 = vpop.f32.mrb[14].mxu1 }
 0x405   : > { %v7998_v59 = vpop.eup %7997  ;;  %v9705_v46 = vadd.f32 %v2523_v36, %v9080_v35  ;;  %v2525_v26 = vpop.f32.mrb[123].mxu0 }
 0x406   : > { %v8000_v47 = vpop.eup %7999  ;;  %v7202_v41 = vadd.f32 %v2525_v26, %v9084_v40  ;;  %v3423_v4 = vmul.bf16 1065369472, %v7998_v59  ;;  %v822_v59 = vld [vmem:[%s8738_s20 + $0xed0] sm:$0xff] }
 0x407   : > { %v8002_v51 = vpop.eup %8001  ;;  %v2918_v54 = vpack.c.bf16 %v9705_v46, %v9702_v44  ;;  %2788 = vmatmul.mubr.bf16.gmra.mrb[228].mxu0 %v1090_v2  ;;  %v826_v26 = vld [vmem:[%s8738_s20 + $0xef0] sm:$0xff] }
 0x408   : > { %v3334_v12 = vadd.bf16 1065369472, %v8002_v51  ;;  %v2919_v14 = vpack.c.bf16 %v7202_v41, %v7200_v50  ;;  %v3524_v24 = vmul.bf16 %v8000_v47, %v3423_v4  ;;  %2797 = vmatprep.mubr.bf16.mxu0 %v1095_v27  ;;  %v9745_v47 = vpop.f32.mrb[15].mxu1  ;;  %v831_v50 = vld [vmem:[%s8738_s20 + $0xf18] sm:$0xff] }
 0x409   : > { %v835_v41 = vld [vmem:[%s8738_s20 + $0xf38] sm:$0xff] }
 0x40a   : > { %8009 = vrcp.bf16 %v3334_v12  ;;  %v6735_v23 = vmul.bf16 3216621497, %v2919_v14  ;;  %v2529_v33 = vpop.f32.mrb[124].mxu0  ;;  %6997 = vmatprep.subr.bf16.mxu1 %v3524_v24  ;;  %v1098_v14 = vpack.c.bf16 %v826_v26, %v822_v59  ;;  %v1103_v1 = vpack.c.bf16 %v835_v41, %v831_v50 }
 0x40b   : > { %8011 = vtanh.bf16 %v2914_v22  ;;  %v2531_v58 = vpop.f32.mrb[125].mxu0  ;;  %6998 = vmatpush3.bf16.xpose.msra.mxu1 %v9547_v9  ;;  %v9728_v38 = vadd.f32 %v2529_v33, %v9080_v35  ;;  %v9759_v33 = vpop.f32.mrb[16].mxu1 }
 0x40c   : > { %8013 = vpow.bf16 %v6735_v23  ;;  %v2533_v61 = vpop.f32.mrb[126].mxu0  ;;  %v7204_v9 = vadd.f32 %v2531_v58, %v9084_v40  ;;  %v9763_v58 = vpop.f32.mrb[17].mxu1 }
 0x40d   : > { %v8004_v29 = vpop.eup %8003  ;;  %v9731_v39 = vadd.f32 %v2533_v61, %v9080_v35  ;;  %v2535_v52 = vpop.f32.mrb[127].mxu0 }
 0x40e   : > { %v8006_v45 = vpop.eup %8005  ;;  %v7206_v48 = vadd.f32 %v2535_v52, %v9084_v40  ;;  %v3425_v22 = vmul.bf16 1065369472, %v8004_v29 }
 0x40f   : > { %v8008_v28 = vpop.eup %8007  ;;  %v2920_v15 = vpack.c.bf16 %v9731_v39, %v9728_v38  ;;  %2798 = vmatmul.mubr.bf16.gmra.mrb[232].mxu0 %v1094_v3 }
 0x410   : > { %v3335_v2 = vadd.bf16 1065369472, %v8008_v28  ;;  %v2921_v36 = vpack.c.bf16 %v7206_v48, %v7204_v9  ;;  %v3525_v27 = vmul.bf16 %v8006_v45, %v3425_v22  ;;  %2807 = vmatprep.mubr.bf16.mxu0 %v1099_v57  ;;  %v9767_v57 = vpop.f32.mrb[18].mxu1  ;;  %v830_v9 = vld [vmem:[%s8738_s20 + $0xf10] sm:$0xff]  ;;  %v839_v28 = vld [vmem:[%s8738_s20 + $0xf58] sm:$0xff] }
 0x411   : > { %v834_v48 = vld [vmem:[%s8738_s20 + $0xf30] sm:$0xff]  ;;  %v9771_v22 = vpop.f32.mrb[19].mxu1 }
 0x412   : > { %8015 = vrcp.bf16 %v3335_v2  ;;  %v6736_v4 = vmul.bf16 3216621497, %v2921_v36  ;;  %v2539_v51 = vpop.f32.mrb[128].mxu0  ;;  %6999 = vmatprep.subr.bf16.mxu1 %v3525_v27  ;;  %v843_v2 = vld [vmem:[%s8738_s20 + $0xf78] sm:$0xff]  ;;  %v1102_v26 = vpack.c.bf16 %v834_v48, %v830_v9 }
 0x413   : > { %8017 = vtanh.bf16 %v2916_v6  ;;  %v2541_v12 = vpop.f32.mrb[129].mxu0  ;;  %7000 = vmatpush3.bf16.xpose.msra.mxu1 %v9566_v0  ;;  %v9754_v43 = vadd.f32 %v2539_v51, %v9080_v35  ;;  %v1107_v41 = vpack.c.bf16 %v843_v2, %v839_v28  ;;  %v851_v9 = vld [vmem:[%s8738_s20 + $0xfb8] sm:$0xff] }
 0x414   : > { %8019 = vpow.bf16 %v6736_v4  ;;  %v2543_v24 = vpop.f32.mrb[130].mxu0  ;;  %v7208_v0 = vadd.f32 %v2541_v12, %v9084_v40 }
 0x415   : > { %v8010_v56 = vpop.eup %8009  ;;  %v9757_v30 = vadd.f32 %v2543_v24, %v9080_v35  ;;  %v2545_v23 = vpop.f32.mrb[131].mxu0 }
 0x416   : > { %v8012_v8 = vpop.eup %8011  ;;  %v7210_v16 = vadd.f32 %v2545_v23, %v9084_v40  ;;  %v3427_v6 = vmul.bf16 1065369472, %v8010_v56  ;;  %v9785_v24 = vpop.f32.mrb[20].mxu1 }
 0x417   : > { %v8014_v3 = vpop.eup %8013  ;;  %v2922_v61 = vpack.c.bf16 %v9757_v30, %v9754_v43  ;;  %2808 = vmatmul.mubr.bf16.gmra.mrb[236].mxu0 %v1098_v14 }
 0x418   : > { %v3336_v29 = vadd.bf16 1065369472, %v8014_v3  ;;  %v2923_v52 = vpack.c.bf16 %v7210_v16, %v7208_v0  ;;  %v3526_v45 = vmul.bf16 %v8012_v8, %v3427_v6  ;;  %2817 = vmatprep.mubr.bf16.mxu0 %v1103_v1  ;;  %v9789_v1 = vpop.f32.mrb[21].mxu1  ;;  %v838_v3 = vld [vmem:[%s8738_s20 + $0xf50] sm:$0xff] }
 0x419   : > { %v9793_v8 = vpop.f32.mrb[22].mxu1 }
 0x41a   : > { %8021 = vrcp.bf16 %v3336_v29  ;;  %v6737_v36 = vmul.bf16 3216621497, %v2923_v52  ;;  %v2549_v27 = vpop.f32.mrb[132].mxu0  ;;  %7001 = vmatprep.subr.bf16.mxu1 %v3526_v45  ;;  %v842_v29 = vld [vmem:[%s8738_s20 + $0xf70] sm:$0xff]  ;;  %v9797_v52 = vpop.f32.mrb[23].mxu1  ;;  %v847_v45 = vld [vmem:[%s8738_s20 + $0xf98] sm:$0xff] }
 0x41b   : > { %8023 = vtanh.bf16 %v2918_v54  ;;  %v2551_v59 = vpop.f32.mrb[133].mxu0  ;;  %7002 = vmatpush3.bf16.xpose.msra.mxu1 %v9585_v31  ;;  %v9780_v51 = vadd.f32 %v2549_v27, %v9080_v35 }
 0x41c   : > { %8025 = vpow.bf16 %v6737_v36  ;;  %v2553_v50 = vpop.f32.mrb[134].mxu0  ;;  %v7212_v31 = vadd.f32 %v2551_v59, %v9084_v40  ;;  %v1106_v36 = vpack.c.bf16 %v842_v29, %v838_v3  ;;  %v1111_v59 = vpack.c.bf16 %v851_v9, %v847_v45  ;;  %v850_v3 = vld [vmem:[%s8738_s20 + $0xfb0] sm:$0xff]  ;;  %v855_v45 = vld [vmem:[%s8738_s20 + $0xfd8] sm:$0xff] }
 0x41d   : > { %v8016_v4 = vpop.eup %8015  ;;  %v9783_v12 = vadd.f32 %v2553_v50, %v9080_v35  ;;  %v2555_v14 = vpop.f32.mrb[135].mxu0  ;;  %v859_v9 = vld [vmem:[%s8738_s20 + $0xff8] sm:$0xff] }
 0x41e   : > { %v8018_v44 = vpop.eup %8017  ;;  %v7214_v46 = vadd.f32 %v2555_v14, %v9084_v40  ;;  %v3429_v54 = vmul.bf16 1065369472, %v8016_v4  ;;  %v9811_v14 = vpop.f32.mrb[24].mxu1 }
 0x41f   : > { %v8020_v56 = vpop.eup %8019  ;;  %v2924_v23 = vpack.c.bf16 %v9783_v12, %v9780_v51  ;;  %2818 = vmatmul.mubr.bf16.gmra.mrb[240].mxu0 %v1102_v26 }
 0x420   : > { %v3337_v0 = vadd.bf16 1065369472, %v8020_v56  ;;  %v2925_v16 = vpack.c.bf16 %v7214_v46, %v7212_v31  ;;  %v3527_v6 = vmul.bf16 %v8018_v44, %v3429_v54  ;;  %2827 = vmatprep.mubr.bf16.mxu0 %v1107_v41  ;;  %v9815_v44 = vpop.f32.mrb[25].mxu1 }
 0x421   : > { %v9819_v54 = vpop.f32.mrb[26].mxu1 }
 0x422   : > { %8027 = vrcp.bf16 %v3337_v0  ;;  %v6738_v48 = vmul.bf16 3216621497, %v2925_v16  ;;  %v2559_v28 = vpop.f32.mrb[136].mxu0  ;;  %7003 = vmatprep.subr.bf16.mxu1 %v3527_v6  ;;  %v846_v6 = vld [vmem:[%s8738_s20 + $0xf90] sm:$0xff]  ;;  %v9823_v29 = vpop.f32.mrb[27].mxu1 }
 0x423   : > { %8029 = vtanh.bf16 %v2920_v15  ;;  %v2561_v2 = vpop.f32.mrb[137].mxu0  ;;  %7004 = vmatpush3.bf16.xpose.msra.mxu1 %v9604_v42  ;;  %v9806_v50 = vadd.f32 %v2559_v28, %v9080_v35 }
 0x424   : > { %8031 = vpow.bf16 %v6738_v48  ;;  %v2563_v27 = vpop.f32.mrb[138].mxu0  ;;  %v7216_v42 = vadd.f32 %v2561_v2, %v9084_v40 }
 0x425   : > { %v8022_v26 = vpop.eup %8021  ;;  %v9809_v41 = vadd.f32 %v2563_v27, %v9080_v35  ;;  %v2565_v4 = vpop.f32.mrb[139].mxu0 }
 0x426   : > { %v8024_v38 = vpop.eup %8023  ;;  %v7218_v39 = vadd.f32 %v2565_v4, %v9084_v40  ;;  %v3431_v15 = vmul.bf16 1065369472, %v8022_v26 }
 0x427   : > { %v8026_v31 = vpop.eup %8025  ;;  %v2926_v46 = vpack.c.bf16 %v9809_v41, %v9806_v50  ;;  %2828 = vmatmul.mubr.bf16.gmra.mrb[244].mxu0 %v1106_v36  ;;  %v1110_v36 = vpack.c.bf16 %v850_v3, %v846_v6 }
 0x428   : > { %v3338_v56 = vadd.bf16 1065369472, %v8026_v31  ;;  %v2927_v0 = vpack.c.bf16 %v7218_v39, %v7216_v42  ;;  %v3528_v16 = vmul.bf16 %v8024_v38, %v3431_v15  ;;  %2837 = vmatprep.mubr.bf16.mxu0 %v1111_v59  ;;  %v1115_v59 = vpack.c.bf16 %v859_v9, %v855_v45  ;;  %v9837_v39 = vpop.f32.mrb[28].mxu1  ;;  %v854_v45 = vld [vmem:[%s8738_s20 + $0xfd0] sm:$0xff] }
 0x429   : > { %v9841_v15 = vpop.f32.mrb[29].mxu1  ;;  %v858_v9 = vld [vmem:[%s8738_s20 + $0xff0] sm:$0xff] }
 0x42a   : > { %8033 = vrcp.bf16 %v3338_v56  ;;  %v6739_v48 = vmul.bf16 3216621497, %v2927_v0  ;;  %v2569_v28 = vpop.f32.mrb[140].mxu0  ;;  %7005 = vmatprep.subr.bf16.mxu1 %v3528_v16  ;;  %v9845_v0 = vpop.f32.mrb[30].mxu1 }
 0x42b   : > { %8035 = vtanh.bf16 %v2922_v61  ;;  %v2571_v2 = vpop.f32.mrb[141].mxu0  ;;  %7006 = vmatpush3.bf16.xpose.msra.mxu1 %v9623_v10  ;;  %v9832_v4 = vadd.f32 %v2569_v28, %v9080_v35 }
 0x42c   : > { %8037 = vpow.bf16 %v6739_v48  ;;  %v2573_v27 = vpop.f32.mrb[142].mxu0  ;;  %v7220_v30 = vadd.f32 %v2571_v2, %v9084_v40  ;;  %v9849_v48 = vpop.f32.mrb[31].mxu1 }
 0x42d   : > { %v8028_v26 = vpop.eup %8027  ;;  %v9835_v38 = vadd.f32 %v2573_v27, %v9080_v35  ;;  %v2575_v42 = vpop.f32.mrb[143].mxu0 }
 0x42e   : > { %v8030_v43 = vpop.eup %8029  ;;  %v7222_v10 = vadd.f32 %v2575_v42, %v9084_v40  ;;  %v3433_v61 = vmul.bf16 1065369472, %v8028_v26 }
 0x42f   : > { %v8032_v31 = vpop.eup %8031  ;;  %2838 = vmatmul.mubr.bf16.gmra.mrb[248].mxu0 %v1110_v36  ;;  %v1114_v36 = vpack.c.bf16 %v858_v9, %v854_v45 }
 0x430   : > { %v3339_v16 = vadd.bf16 1065369472, %v8032_v31  ;;  %v2929_v6 = vpack.c.bf16 %v7222_v10, %v7220_v30  ;;  %v3529_v3 = vmul.bf16 %v8030_v43, %v3433_v61  ;;  %2847 = vmatprep.mubr.bf16.mxu0 %v1115_v59  ;;  %v9861_v10 = vpop.f32.mrb[32].mxu1 }
 0x432   : > { %8039 = vrcp.bf16 %v3339_v16  ;;  %v6740_v28 = vmul.bf16 3216621497, %v2929_v6  ;;  %v2579_v2 = vpop.f32.mrb[144].mxu0  ;;  %7007 = vmatprep.subr.bf16.mxu1 %v3529_v3 }
 0x433   : > { %8041 = vtanh.bf16 %v2924_v23  ;;  %v2581_v27 = vpop.f32.mrb[145].mxu0  ;;  %7008 = vmatpush3.bf16.xpose.msra.mxu1 %v9642_v63  ;;  %v9856_v59 = vadd.f32 %v2579_v2, %v9080_v35  ;;  %v9865_v63 = vpop.f32.mrb[33].mxu1 }
 0x434   : > { %8043 = vpow.bf16 %v6740_v28  ;;  %v2583_v26 = vpop.f32.mrb[146].mxu0  ;;  %v7224_v51 = vadd.f32 %v2581_v27, %v9084_v40  ;;  %13002 = vst [vmem:[#allocation28_spill] sm:$0xff] %v9865_v63  ;;  %v9869_v6 = vpop.f32.mrb[34].mxu1 }
 0x435   : > { %v8034_v42 = vpop.eup %8033  ;;  %v9859_v43 = vadd.f32 %v2583_v26, %v9080_v35  ;;  %v2585_v30 = vpop.f32.mrb[147].mxu0  ;;  %13003 = vst [vmem:[#allocation29_spill] sm:$0xff] %v9869_v6  ;;  %v9875_v26 = vld [vmem:[#allocation10] sm:$0x1] }
 0x436   : > { %v8036_v61 = vpop.eup %8035  ;;  %v7226_v12 = vadd.f32 %v2585_v30, %v9084_v40  ;;  %v3435_v23 = vmul.bf16 1065369472, %v8034_v42  ;;  %v9873_v28 = vpop.f32.mrb[35].mxu1  ;;  %13005 = vst [vmem:[#allocation31_spill] sm:$0xff] %v9875_v26 }
 0x437   : > { %v8038_v31 = vpop.eup %8037  ;;  %v2930_v16 = vpack.c.bf16 %v9859_v43, %v9856_v59  ;;  %2848 = vmatmul.mubr.bf16.gmra.mrb[252].mxu0 %v1114_v36  ;;  %13004 = vst [vmem:[#allocation30_spill] sm:$0xff] %v9873_v28 }
 0x438   : > { %v3340_v3 = vadd.bf16 1065369472, %v8038_v31  ;;  %v2931_v45 = vpack.c.bf16 %v7226_v12, %v7224_v51  ;;  %v9871_v9 = vmul.bf16 %v8036_v61, %v3435_v23  ;;  %v9888_v51 = vpop.f32.mrb[36].mxu1 }
 0x439   : > { %13006 = vst [vmem:[#allocation32_spill] sm:$0xff] %v9888_v51 }
 0x43a   : > { %8045 = vrcp.bf16 %v3340_v3  ;;  %v6741_v2 = vmul.bf16 3216621497, %v2931_v45  ;;  %v2589_v27 = vpop.f32.mrb[148].mxu0  ;;  %7010 = vmatmul.mubr.bf16.vlgmr.msra.gmra.mrb[80].mxu1 %v9875_v26 }
 0x43b   : > { %8047 = vtanh.bf16 %v2926_v46  ;;  %v2591_v36 = vpop.f32.mrb[149].mxu0  ;;  %7027 = vmatprep.mubr.bf16.mxu1 %v9875_v26  ;;  %v9883_v43 = vadd.f32 %v2589_v27, %v9080_v35  ;;  %v9892_v46 = vpop.f32.mrb[37].mxu1 }
 0x43c   : > { %8049 = vpow.bf16 %v6741_v2  ;;  %v2593_v42 = vpop.f32.mrb[150].mxu0  ;;  %v7228_v23 = vadd.f32 %v2591_v36, %v9084_v40  ;;  %13007 = vst [vmem:[#allocation33_spill] sm:$0xff] %v9892_v46  ;;  %v9896_v45 = vpop.f32.mrb[38].mxu1 }
 0x43d   : > { %v8040_v59 = vpop.eup %8039  ;;  %v9886_v30 = vadd.f32 %v2593_v42, %v9080_v35  ;;  %v2595_v61 = vpop.f32.mrb[151].mxu0  ;;  %13008 = vst [vmem:[#allocation34_spill] sm:$0xff] %v9896_v45 }
 0x43e   : > { %v8042_v12 = vpop.eup %8041  ;;  %v7230_v50 = vadd.f32 %v2595_v61, %v9084_v40  ;;  %v3437_v41 = vmul.bf16 1065369472, %v8040_v59  ;;  %v9900_v11 = vpop.f32.mrb[39].mxu1  ;;  %v13010_v59 = vpack.c.bf16 %v9835_v38, %v9832_v4 }
 0x43f   : > { %v8044_v31 = vpop.eup %8043  ;;  %v2932_v3 = vpack.c.bf16 %v9886_v30, %v9883_v43  ;;  %13009 = vst [vmem:[#allocation35_spill] sm:$0xff] %v9900_v11 }
 0x440   : > { %v3341_v2 = vadd.bf16 1065369472, %v8044_v31  ;;  %v2933_v27 = vpack.c.bf16 %v7230_v50, %v7228_v23  ;;  %v9898_v42 = vmul.bf16 %v8042_v12, %v3437_v41  ;;  %v9911_v23 = vpop.f32.mrb[40].mxu1 }
 0x441   : > { %13011 = vst [vmem:[#allocation36_spill] sm:$0xff] %v9911_v23  ;;  %v9915_v38 = vpop.f32.mrb[41].mxu1 }
 0x442   : > { %8051 = vrcp.bf16 %v3341_v2  ;;  %v6742_v56 = vmul.bf16 3216621497, %v2933_v27  ;;  %v2599_v36 = vpop.f32.mrb[152].mxu0  ;;  %13012 = vst [vmem:[#allocation37_spill] sm:$0xff] %v9915_v38  ;;  %v9919_v27 = vpop.f32.mrb[42].mxu1 }
 0x443   : > { %8053 = vtanh.bf16 %v13010_v59  ;;  %v2601_v61 = vpop.f32.mrb[153].mxu0  ;;  %v9906_v43 = vadd.f32 %v2599_v36, %v9080_v35  ;;  %13013 = vst [vmem:[#allocation38_spill] sm:$0xff] %v9919_v27  ;;  %v9923_v11 = vpop.f32.mrb[43].mxu1 }
 0x444   : > { %8055 = vpow.bf16 %v6742_v56  ;;  %v2603_v25 = vpop.f32.mrb[154].mxu0  ;;  %v7232_v41 = vadd.f32 %v2601_v61, %v9084_v40  ;;  %13014 = vst [vmem:[#allocation39_spill] sm:$0xff] %v9923_v11 }
 0x445   : > { %v8046_v19 = vpop.eup %8045  ;;  %v9909_v30 = vadd.f32 %v2603_v25, %v9080_v35  ;;  %v2605_v12 = vpop.f32.mrb[155].mxu0 }
 0x446   : > { %v8048_v50 = vpop.eup %8047  ;;  %v7234_v31 = vadd.f32 %v2605_v12, %v9084_v40  ;;  %v3439_v4 = vmul.bf16 1065369472, %v8046_v19 }
 0x447   : > { %v8050_v56 = vpop.eup %8049  ;;  %v2934_v2 = vpack.c.bf16 %v9909_v30, %v9906_v43 }
 0x448   : > { %v3342_v36 = vadd.bf16 1065369472, %v8050_v56  ;;  %v2935_v25 = vpack.c.bf16 %v7234_v31, %v7232_v41  ;;  %v9921_v59 = vmul.bf16 %v8048_v50, %v3439_v4  ;;  %v9931_v41 = vpop.f32.mrb[44].mxu1 }
 0x449   : > { %13015 = vst [vmem:[#allocation40_spill] sm:$0xff] %v9931_v41 }
 0x44a   : > { %8057 = vrcp.bf16 %v3342_v36  ;;  %v6743_v23 = vmul.bf16 3216621497, %v2935_v25  ;;  %v2609_v61 = vpop.f32.mrb[156].mxu0 }
 0x44b   : > { %8059 = vtanh.bf16 %v2930_v16  ;;  %v2611_v12 = vpop.f32.mrb[157].mxu0  ;;  %v9926_v45 = vadd.f32 %v2609_v61, %v9080_v35  ;;  %v9935_v16 = vpop.f32.mrb[45].mxu1 }
 0x44c   : > { %8061 = vpow.bf16 %v6743_v23  ;;  %v2613_v19 = vpop.f32.mrb[158].mxu0  ;;  %v7236_v31 = vadd.f32 %v2611_v12, %v9084_v40  ;;  %13016 = vst [vmem:[#allocation41_spill] sm:$0xff] %v9935_v16  ;;  %v9939_v25 = vpop.f32.mrb[46].mxu1 }
 0x44d   : > { %v8052_v38 = vpop.eup %8051  ;;  %v9929_v43 = vadd.f32 %v2613_v19, %v9080_v35  ;;  %v2615_v30 = vpop.f32.mrb[159].mxu0  ;;  %13017 = vst [vmem:[#allocation42_spill] sm:$0xff] %v9939_v25 }
 0x44e   : > { %v8054_v50 = vpop.eup %8053  ;;  %v7238_v4 = vadd.f32 %v2615_v30, %v9084_v40  ;;  %v3441_v56 = vmul.bf16 1065369472, %v8052_v38  ;;  %v9943_v27 = vpop.f32.mrb[47].mxu1 }
 0x44f   : > { %v8056_v23 = vpop.eup %8055  ;;  %v2936_v36 = vpack.c.bf16 %v9929_v43, %v9926_v45  ;;  %13018 = vst [vmem:[#allocation43_spill] sm:$0xff] %v9943_v27 }
 0x450   : > { %v3343_v61 = vadd.bf16 1065369472, %v8056_v23  ;;  %v2937_v19 = vpack.c.bf16 %v7238_v4, %v7236_v31  ;;  %v9941_v11 = vmul.bf16 %v8054_v50, %v3441_v56  ;;  %v9951_v31 = vpop.f32.mrb[48].mxu1 }
 0x451   : > { %13019 = vst [vmem:[#allocation44_spill] sm:$0xff] %v9951_v31 }
 0x452   : > { %8063 = vrcp.bf16 %v3343_v61  ;;  %v6744_v41 = vmul.bf16 3216621497, %v2937_v19  ;;  %v2619_v12 = vpop.f32.mrb[160].mxu0 }
 0x453   : > { %8065 = vtanh.bf16 %v2932_v3  ;;  %v2621_v30 = vpop.f32.mrb[161].mxu0  ;;  %v9946_v46 = vadd.f32 %v2619_v12, %v9080_v35  ;;  %v9955_v3 = vpop.f32.mrb[49].mxu1 }
 0x454   : > { %8067 = vpow.bf16 %v6744_v41  ;;  %v2623_v38 = vpop.f32.mrb[162].mxu0  ;;  %v7240_v4 = vadd.f32 %v2621_v30, %v9084_v40  ;;  %13020 = vst [vmem:[#allocation45_spill] sm:$0xff] %v9955_v3  ;;  %v9959_v19 = vpop.f32.mrb[50].mxu1 }
 0x455   : > { %v8058_v16 = vpop.eup %8057  ;;  %v9949_v45 = vadd.f32 %v2623_v38, %v9080_v35  ;;  %v2625_v43 = vpop.f32.mrb[163].mxu0  ;;  %13021 = vst [vmem:[#allocation46_spill] sm:$0xff] %v9959_v19 }
 0x456   : > { %v8060_v50 = vpop.eup %8059  ;;  %v7242_v56 = vadd.f32 %v2625_v43, %v9084_v40  ;;  %v3443_v23 = vmul.bf16 1065369472, %v8058_v16  ;;  %v9963_v25 = vpop.f32.mrb[51].mxu1 }
 0x457   : > { %v8062_v41 = vpop.eup %8061  ;;  %v2938_v61 = vpack.c.bf16 %v9949_v45, %v9946_v46  ;;  %13022 = vst [vmem:[#allocation47_spill] sm:$0xff] %v9963_v25 }
 0x458   : > { %v3344_v12 = vadd.bf16 1065369472, %v8062_v41  ;;  %v2939_v38 = vpack.c.bf16 %v7242_v56, %v7240_v4  ;;  %v9961_v27 = vmul.bf16 %v8060_v50, %v3443_v23  ;;  %v9971_v4 = vpop.f32.mrb[52].mxu1 }
 0x459   : > { %13023 = vst [vmem:[#allocation48_spill] sm:$0xff] %v9971_v4 }
 0x45a   : > { %8069 = vrcp.bf16 %v3344_v12  ;;  %v6745_v31 = vmul.bf16 3216621497, %v2939_v38  ;;  %v2629_v30 = vpop.f32.mrb[164].mxu0 }
 0x45b   : > { %8071 = vtanh.bf16 %v2934_v2  ;;  %v2631_v43 = vpop.f32.mrb[165].mxu0  ;;  %v9966_v51 = vadd.f32 %v2629_v30, %v9080_v35  ;;  %v9975_v2 = vpop.f32.mrb[53].mxu1 }
 0x45c   : > { %8073 = vpow.bf16 %v6745_v31  ;;  %v2633_v16 = vpop.f32.mrb[166].mxu0  ;;  %v7244_v56 = vadd.f32 %v2631_v43, %v9084_v40  ;;  %13024 = vst [vmem:[#allocation49_spill] sm:$0xff] %v9975_v2  ;;  %v9979_v38 = vpop.f32.mrb[54].mxu1 }
 0x45d   : > { %v8064_v3 = vpop.eup %8063  ;;  %v9969_v46 = vadd.f32 %v2633_v16, %v9080_v35  ;;  %v2635_v45 = vpop.f32.mrb[167].mxu0  ;;  %13025 = vst [vmem:[#allocation50_spill] sm:$0xff] %v9979_v38 }
 0x45e   : > { %v8066_v50 = vpop.eup %8065  ;;  %v7246_v23 = vadd.f32 %v2635_v45, %v9084_v40  ;;  %v3445_v41 = vmul.bf16 1065369472, %v8064_v3  ;;  %v9983_v19 = vpop.f32.mrb[55].mxu1 }
 0x45f   : > { %v8068_v31 = vpop.eup %8067  ;;  %v2940_v12 = vpack.c.bf16 %v9969_v46, %v9966_v51  ;;  %13026 = vst [vmem:[#allocation51_spill] sm:$0xff] %v9983_v19 }
 0x460   : > { %v3345_v30 = vadd.bf16 1065369472, %v8068_v31  ;;  %v2941_v16 = vpack.c.bf16 %v7246_v23, %v7244_v56  ;;  %v9981_v25 = vmul.bf16 %v8066_v50, %v3445_v41  ;;  %v9991_v56 = vpop.f32.mrb[56].mxu1 }
 0x461   : > { %13027 = vst [vmem:[#allocation52_spill] sm:$0xff] %v9991_v56 }
 0x462   : > { %8075 = vrcp.bf16 %v3345_v30  ;;  %v6746_v4 = vmul.bf16 3216621497, %v2941_v16  ;;  %v2639_v43 = vpop.f32.mrb[168].mxu0 }
 0x463   : > { %8077 = vtanh.bf16 %v2936_v36  ;;  %v2641_v45 = vpop.f32.mrb[169].mxu0  ;;  %v9986_v28 = vadd.f32 %v2639_v43, %v9080_v35  ;;  %v9995_v36 = vpop.f32.mrb[57].mxu1 }
 0x464   : > { %8079 = vpow.bf16 %v6746_v4  ;;  %v2643_v3 = vpop.f32.mrb[170].mxu0  ;;  %v7248_v23 = vadd.f32 %v2641_v45, %v9084_v40  ;;  %13028 = vst [vmem:[#allocation53_spill] sm:$0xff] %v9995_v36  ;;  %v9999_v16 = vpop.f32.mrb[58].mxu1 }
 0x465   : > { %v8070_v2 = vpop.eup %8069  ;;  %v9989_v51 = vadd.f32 %v2643_v3, %v9080_v35  ;;  %v2645_v46 = vpop.f32.mrb[171].mxu0  ;;  %13029 = vst [vmem:[#allocation54_spill] sm:$0xff] %v9999_v16 }
 0x466   : > { %v8072_v50 = vpop.eup %8071  ;;  %v7250_v41 = vadd.f32 %v2645_v46, %v9084_v40  ;;  %v3447_v31 = vmul.bf16 1065369472, %v8070_v2  ;;  %v10003_v38 = vpop.f32.mrb[59].mxu1 }
 0x467   : > { %v8074_v4 = vpop.eup %8073  ;;  %v2942_v30 = vpack.c.bf16 %v9989_v51, %v9986_v28  ;;  %13030 = vst [vmem:[#allocation55_spill] sm:$0xff] %v10003_v38 }
 0x468   : > { %v3346_v43 = vadd.bf16 1065369472, %v8074_v4  ;;  %v2943_v3 = vpack.c.bf16 %v7250_v41, %v7248_v23  ;;  %v10001_v19 = vmul.bf16 %v8072_v50, %v3447_v31  ;;  %v10011_v23 = vpop.f32.mrb[60].mxu1 }
 0x469   : > { %13031 = vst [vmem:[#allocation56_spill] sm:$0xff] %v10011_v23 }
 0x46a   : > { %8081 = vrcp.bf16 %v3346_v43  ;;  %v6747_v56 = vmul.bf16 3216621497, %v2943_v3  ;;  %v2649_v45 = vpop.f32.mrb[172].mxu0 }
 0x46b   : > { %8083 = vtanh.bf16 %v2938_v61  ;;  %v2651_v46 = vpop.f32.mrb[173].mxu0  ;;  %v10006_v6 = vadd.f32 %v2649_v45, %v9080_v35  ;;  %v10015_v61 = vpop.f32.mrb[61].mxu1 }
 0x46c   : > { %8085 = vpow.bf16 %v6747_v56  ;;  %v2653_v2 = vpop.f32.mrb[174].mxu0  ;;  %v7252_v41 = vadd.f32 %v2651_v46, %v9084_v40  ;;  %13032 = vst [vmem:[#allocation57_spill] sm:$0xff] %v10015_v61  ;;  %v10019_v3 = vpop.f32.mrb[62].mxu1 }
 0x46d   : > { %v8076_v36 = vpop.eup %8075  ;;  %v10009_v28 = vadd.f32 %v2653_v2, %v9080_v35  ;;  %v2655_v51 = vpop.f32.mrb[175].mxu0  ;;  %13033 = vst [vmem:[#allocation58_spill] sm:$0xff] %v10019_v3 }
 0x46e   : > { %v8078_v50 = vpop.eup %8077  ;;  %v7254_v31 = vadd.f32 %v2655_v51, %v9084_v40  ;;  %v3449_v4 = vmul.bf16 1065369472, %v8076_v36  ;;  %v10023_v16 = vpop.f32.mrb[63].mxu1 }
 0x46f   : > { %v8080_v56 = vpop.eup %8079  ;;  %13034 = vst [vmem:[#allocation59_spill] sm:$0xff] %v10023_v16 }
 0x470   : > { %v3347_v45 = vadd.bf16 1065369472, %v8080_v56  ;;  %v2945_v2 = vpack.c.bf16 %v7254_v31, %v7252_v41  ;;  %v10021_v38 = vmul.bf16 %v8078_v50, %v3449_v4  ;;  %v10031_v41 = vpop.f32.mrb[64].mxu1 }
 0x471   : > { %13035 = vst [vmem:[#allocation60_spill] sm:$0xff] %v10031_v41  ;;  %v1999_v41 = vadd.f32 %v9659_v13, %v9084_v40  ;;  %v2003_v13 = vadd.f32 %v9667_v7, %v9084_v40  ;;  %v2007_v7 = vadd.f32 %v9681_v5, %v9080_v35  ;;  %v2011_v5 = vadd.f32 %v9689_v53, %v9080_v35 }
 0x472   : > { %8087 = vrcp.bf16 %v3347_v45  ;;  %v6748_v23 = vmul.bf16 3216621497, %v2945_v2  ;;  %v2659_v46 = vpop.f32.mrb[176].mxu0  ;;  %v2001_v2 = vadd.f32 %v9663_v20, %v9080_v35 }
 0x473   : > { %8089 = vtanh.bf16 %v2940_v12  ;;  %v2661_v51 = vpop.f32.mrb[177].mxu0  ;;  %v10026_v26 = vadd.f32 %v2659_v46, %v9080_v35  ;;  %v10035_v12 = vpop.f32.mrb[65].mxu1  ;;  %v1997_v46 = vadd.f32 %v9655_v17, %v9080_v35 }
 0x474   : > { %8091 = vpow.bf16 %v6748_v23  ;;  %v2663_v36 = vpop.f32.mrb[178].mxu0  ;;  %v7256_v31 = vadd.f32 %v2661_v51, %v9084_v40  ;;  %13036 = vst [vmem:[#allocation61_spill] sm:$0xff] %v10035_v12 }
 0x475   : > { %v8082_v61 = vpop.eup %8081  ;;  %v10029_v43 = vadd.f32 %v2663_v36, %v9080_v35  ;;  %v2665_v56 = vpop.f32.mrb[179].mxu0 }
 0x476   : > { %v8084_v50 = vpop.eup %8083  ;;  %v7258_v4 = vadd.f32 %v2665_v56, %v9084_v40  ;;  %v3451_v45 = vmul.bf16 1065369472, %v8082_v61  ;;  %v10041_v36 = vpop.f32.mrb[66].mxu1 }
 0x477   : > { %v8086_v23 = vpop.eup %8085  ;;  %v10045_v63 = vpop.f32.mrb[67].mxu1 }
 0x478   : > { %v3348_v16 = vadd.bf16 1065369472, %v8086_v23  ;;  %v2947_v3 = vpack.c.bf16 %v7258_v4, %v7256_v31  ;;  %v3538_v51 = vmul.bf16 %v8084_v50, %v3451_v45  ;;  %v10056_v45 = vpop.f32.mrb[68].mxu1 }
 0x47a   : > { %8093 = vrcp.bf16 %v3348_v16  ;;  %v6749_v61 = vmul.bf16 3216621497, %v2947_v3  ;;  %v2669_v56 = vpop.f32.mrb[180].mxu0  ;;  %7011 = vmatprep.subr.bf16.mxu1 %v3538_v51 }
 0x47b   : > { %8095 = vtanh.bf16 %v2942_v30  ;;  %v10049_v12 = vadd.f32 %v2669_v56, %v1997_v46  ;;  %v2671_v17 = vpop.f32.mrb[181].mxu0  ;;  %7012 = vmatpush3.bf16.xpose.msra.mxu1 %v9871_v9  ;;  %v10058_v46 = vpop.f32.mrb[69].mxu1  ;;  %v2009_v56 = vadd.f32 %v9685_v18, %v9084_v40  ;;  %v2013_v18 = vadd.f32 %v9693_v60, %v9084_v40 }
 0x47c   : > { %8097 = vpow.bf16 %v6749_v61  ;;  %v2672_v50 = vadd.f32 %v2671_v17, %v1999_v41  ;;  %v2673_v31 = vpop.f32.mrb[182].mxu0  ;;  %v10064_v41 = vpop.f32.mrb[70].mxu1  ;;  %v2017_v60 = vadd.f32 %v9707_v32, %v9080_v35  ;;  %v2021_v32 = vadd.f32 %v9715_v55, %v9080_v35 }
 0x47d   : > { %v8088_v4 = vpop.eup %8087  ;;  %v10054_v16 = vadd.f32 %v2673_v31, %v2001_v2  ;;  %v2675_v3 = vpop.f32.mrb[183].mxu0 }
 0x47e   : > { %v8090_v30 = vpop.eup %8089  ;;  %v2676_v23 = vadd.f32 %v2675_v3, %v2003_v13  ;;  %v3453_v20 = vmul.bf16 1065369472, %v8088_v4  ;;  %v10068_v31 = vpop.f32.mrb[71].mxu1  ;;  %v13037_v3 = vpack.c.bf16 %v10009_v28, %v10006_v6 }
 0x47f   : > { %v8092_v51 = vpop.eup %8091  ;;  %v10082_v6 = vpop.f32.mrb[72].mxu1 }
 0x480   : > { %v3349_v61 = vadd.bf16 1065369472, %v8092_v51  ;;  %v2949_v2 = vpack.c.bf16 %v2676_v23, %v2672_v50  ;;  %v3539_v17 = vmul.bf16 %v8090_v30, %v3453_v20 }
 0x482   : > { %8099 = vrcp.bf16 %v3349_v61  ;;  %v6750_v13 = vmul.bf16 3216621497, %v2949_v2  ;;  %v2679_v4 = vpop.f32.mrb[184].mxu0  ;;  %7013 = vmatprep.subr.bf16.mxu1 %v3539_v17 }
 0x483   : > { %8101 = vtanh.bf16 %v13037_v3  ;;  %v10075_v9 = vadd.f32 %v2679_v4, %v2007_v7  ;;  %v2681_v50 = vpop.f32.mrb[185].mxu0  ;;  %7014 = vmatpush3.bf16.xpose.msra.mxu1 %v9898_v42  ;;  %v10084_v7 = vpop.f32.mrb[73].mxu1  ;;  %v2019_v3 = vadd.f32 %v9711_v49, %v9084_v40  ;;  %v2023_v49 = vadd.f32 %v9719_v62, %v9084_v40 }
 0x484   : > { %8103 = vpow.bf16 %v6750_v13  ;;  %v2682_v30 = vadd.f32 %v2681_v50, %v2009_v56  ;;  %v2683_v23 = vpop.f32.mrb[186].mxu0  ;;  %v10090_v56 = vpop.f32.mrb[74].mxu1  ;;  %v2029_v62 = vadd.f32 %v9737_v21, %v9084_v40  ;;  %v2033_v21 = vadd.f32 %v9745_v47, %v9084_v40 }
 0x485   : > { %v8094_v20 = vpop.eup %8093  ;;  %v10080_v51 = vadd.f32 %v2683_v23, %v2011_v5  ;;  %v2685_v61 = vpop.f32.mrb[187].mxu0  ;;  %v2039_v47 = vadd.f32 %v9763_v58, %v9084_v40  ;;  %v2043_v58 = vadd.f32 %v9771_v22, %v9084_v40  ;;  %v2049_v22 = vadd.f32 %v9789_v1, %v9084_v40 }
 0x486   : > { %v8096_v28 = vpop.eup %8095  ;;  %v2686_v2 = vadd.f32 %v2685_v61, %v2013_v18  ;;  %v3455_v53 = vmul.bf16 1065369472, %v8094_v20  ;;  %v10094_v50 = vpop.f32.mrb[75].mxu1  ;;  %v13038_v20 = vpack.c.bf16 %v10029_v43, %v10026_v26 }
 0x487   : > { %v8098_v17 = vpop.eup %8097  ;;  %v2950_v42 = vpack.c.bf16 %v10080_v51, %v10075_v9 }
 0x488   : > { %v3350_v13 = vadd.bf16 1065369472, %v8098_v17  ;;  %v2951_v4 = vpack.c.bf16 %v2686_v2, %v2682_v30  ;;  %v3540_v5 = vmul.bf16 %v8096_v28, %v3455_v53 }
 0x48a   : > { %8105 = vrcp.bf16 %v3350_v13  ;;  %v6751_v18 = vmul.bf16 3216621497, %v2951_v4  ;;  %v2689_v23 = vpop.f32.mrb[188].mxu0  ;;  %7015 = vmatprep.subr.bf16.mxu1 %v3540_v5 }
 0x48b   : > { %8107 = vtanh.bf16 %v13038_v20  ;;  %v10101_v61 = vadd.f32 %v2689_v23, %v2017_v60  ;;  %v2691_v30 = vpop.f32.mrb[189].mxu0  ;;  %7016 = vmatpush3.bf16.xpose.msra.mxu1 %v9921_v59  ;;  %v2027_v59 = vadd.f32 %v9733_v37, %v9080_v35 }
 0x48c   : > { %8109 = vpow.bf16 %v6751_v18  ;;  %v2692_v28 = vadd.f32 %v2691_v30, %v2019_v3  ;;  %v2693_v2 = vpop.f32.mrb[190].mxu0 }
 0x48d   : > { %v8100_v53 = vpop.eup %8099  ;;  %v10106_v17 = vadd.f32 %v2693_v2, %v2021_v32  ;;  %v2695_v13 = vpop.f32.mrb[191].mxu0  ;;  %v13039_v32 = vpack.c.bf16 %v10054_v16, %v10049_v12 }
 0x48e   : > { %v8102_v26 = vpop.eup %8101  ;;  %v2696_v43 = vadd.f32 %v2695_v13, %v2023_v49  ;;  %v3457_v4 = vmul.bf16 1065369472, %v8100_v53 }
 0x48f   : > { %v8104_v5 = vpop.eup %8103  ;;  %v2952_v55 = vpack.c.bf16 %v10106_v17, %v10101_v61  ;;  %v2031_v61 = vadd.f32 %v9741_v34, %v9080_v35 }
 0x490   : > { %v3351_v60 = vadd.bf16 1065369472, %v8104_v5  ;;  %v2953_v18 = vpack.c.bf16 %v2696_v43, %v2692_v28  ;;  %v3541_v3 = vmul.bf16 %v8102_v26, %v3457_v4 }
 0x492   : > { %8111 = vrcp.bf16 %v3351_v60  ;;  %v6752_v23 = vmul.bf16 3216621497, %v2953_v18  ;;  %v2699_v20 = vpop.f32.mrb[192].mxu0  ;;  %7017 = vmatprep.subr.bf16.mxu1 %v3541_v3  ;;  %v2041_v18 = vadd.f32 %v9767_v57, %v9080_v35 }
 0x493   : > { %8113 = vtanh.bf16 %v13039_v32  ;;  %v10119_v30 = vadd.f32 %v2699_v20, %v2027_v59  ;;  %v2701_v37 = vpop.f32.mrb[193].mxu0  ;;  %7018 = vmatpush3.bf16.xpose.msra.mxu1 %v9941_v11  ;;  %v2037_v11 = vadd.f32 %v9759_v33, %v9080_v35 }
 0x494   : > { %8115 = vpow.bf16 %v6752_v23  ;;  %v2702_v49 = vadd.f32 %v2701_v37, %v2029_v62  ;;  %v2703_v28 = vpop.f32.mrb[194].mxu0 }
 0x495   : > { %v8106_v2 = vpop.eup %8105  ;;  %v10124_v53 = vadd.f32 %v2703_v28, %v2031_v61  ;;  %v2705_v17 = vpop.f32.mrb[195].mxu0 }
 0x496   : > { %v8108_v12 = vpop.eup %8107  ;;  %v2706_v16 = vadd.f32 %v2705_v17, %v2033_v21  ;;  %v3459_v13 = vmul.bf16 1065369472, %v8106_v2 }
 0x497   : > { %v8110_v26 = vpop.eup %8109  ;;  %v2954_v34 = vpack.c.bf16 %v10124_v53, %v10119_v30  ;;  %v2051_v53 = vadd.f32 %v9793_v8, %v9080_v35 }
 0x498   : > { %v3352_v43 = vadd.bf16 1065369472, %v8110_v26  ;;  %v2955_v4 = vpack.c.bf16 %v2706_v16, %v2702_v49  ;;  %v3542_v5 = vmul.bf16 %v8108_v12, %v3459_v13 }
 0x49a   : > { %8117 = vrcp.bf16 %v3352_v43  ;;  %v6753_v59 = vmul.bf16 3216621497, %v2955_v4  ;;  %v2709_v60 = vpop.f32.mrb[196].mxu0  ;;  %7019 = vmatprep.subr.bf16.mxu1 %v3542_v5 }
 0x49b   : > { %8119 = vtanh.bf16 %v2950_v42  ;;  %v10137_v62 = vadd.f32 %v2709_v60, %v2037_v11  ;;  %v2711_v33 = vpop.f32.mrb[197].mxu0  ;;  %7020 = vmatpush3.bf16.xpose.msra.mxu1 %v9961_v27  ;;  %v2047_v27 = vadd.f32 %v9785_v24, %v9080_v35  ;;  %v2053_v24 = vadd.f32 %v9797_v52, %v9084_v40 }
 0x49c   : > { %8121 = vpow.bf16 %v6753_v59  ;;  %v2712_v3 = vadd.f32 %v2711_v33, %v2039_v47  ;;  %v2713_v23 = vpop.f32.mrb[198].mxu0  ;;  %v2059_v52 = vadd.f32 %v9815_v44, %v9084_v40  ;;  %v2061_v33 = vadd.f32 %v9819_v54, %v9080_v35 }
 0x49d   : > { %v8112_v20 = vpop.eup %8111  ;;  %v10142_v32 = vadd.f32 %v2713_v23, %v2041_v18  ;;  %v2715_v61 = vpop.f32.mrb[199].mxu0 }
 0x49e   : > { %v8114_v9 = vpop.eup %8113  ;;  %v2716_v51 = vadd.f32 %v2715_v61, %v2043_v58  ;;  %v3461_v42 = vmul.bf16 1065369472, %v8112_v20 }
 0x49f   : > { %v8116_v30 = vpop.eup %8115  ;;  %v2956_v57 = vpack.c.bf16 %v10142_v32, %v10137_v62 }
 0x4a0   : > { %v3353_v37 = vadd.bf16 1065369472, %v8116_v30  ;;  %v2957_v21 = vpack.c.bf16 %v2716_v51, %v2712_v3  ;;  %v3543_v49 = vmul.bf16 %v8114_v9, %v3461_v42 }
 0x4a2   : > { %8123 = vrcp.bf16 %v3353_v37  ;;  %v6754_v28 = vmul.bf16 3216621497, %v2957_v21  ;;  %v2719_v2 = vpop.f32.mrb[200].mxu0  ;;  %7021 = vmatprep.subr.bf16.mxu1 %v3543_v49  ;;  %v2071_v49 = vadd.f32 %v9845_v0, %v9080_v35 }
 0x4a3   : > { %8125 = vtanh.bf16 %v2952_v55  ;;  %v10152_v17 = vadd.f32 %v2719_v2, %v2047_v27  ;;  %v2721_v12 = vpop.f32.mrb[201].mxu0  ;;  %7022 = vmatpush3.bf16.xpose.msra.mxu1 %v9981_v25  ;;  %v2057_v25 = vadd.f32 %v9811_v14, %v9080_v35  ;;  %v2063_v14 = vadd.f32 %v9823_v29, %v9084_v40 }
 0x4a4   : > { %8127 = vpow.bf16 %v6754_v28  ;;  %v2722_v16 = vadd.f32 %v2721_v12, %v2049_v22  ;;  %v2723_v1 = vpop.f32.mrb[202].mxu0  ;;  %v2069_v29 = vadd.f32 %v9841_v15, %v9084_v40 }
 0x4a5   : > { %v8118_v13 = vpop.eup %8117  ;;  %v10157_v26 = vadd.f32 %v2723_v1, %v2051_v53  ;;  %v2725_v11 = vpop.f32.mrb[203].mxu0 }
 0x4a6   : > { %v8120_v43 = vpop.eup %8119  ;;  %v2726_v55 = vadd.f32 %v2725_v11, %v2053_v24  ;;  %v3463_v4 = vmul.bf16 1065369472, %v8118_v13 }
 0x4a7   : > { %v8122_v47 = vpop.eup %8121  ;;  %v2958_v8 = vpack.c.bf16 %v10157_v26, %v10152_v17 }
 0x4a8   : > { %v3354_v5 = vadd.bf16 1065369472, %v8122_v47  ;;  %v2959_v59 = vpack.c.bf16 %v2726_v55, %v2722_v16  ;;  %v3544_v60 = vmul.bf16 %v8120_v43, %v3463_v4 }
 0x4aa   : > { %8129 = vrcp.bf16 %v3354_v5  ;;  %v6755_v18 = vmul.bf16 3216621497, %v2959_v59  ;;  %v2729_v62 = vpop.f32.mrb[204].mxu0  ;;  %7023 = vmatprep.subr.bf16.mxu1 %v3544_v60  ;;  %v10198_v5 = vpop.f32.mrb[76].mxu1  ;;  %v13042_v59 = vld [vmem:[#allocation29_spill] sm:$0xff] }
 0x4ab   : > { %8131 = vtanh.bf16 %v2954_v34  ;;  %v10167_v58 = vadd.f32 %v2729_v62, %v2057_v25  ;;  %v2731_v3 = vpop.f32.mrb[205].mxu0  ;;  %7024 = vmatpush3.bf16.xpose.msra.mxu1 %v10001_v19  ;;  %v2067_v19 = vadd.f32 %v9837_v39, %v9080_v35  ;;  %v2073_v39 = vadd.f32 %v9849_v48, %v9084_v40  ;;  %v13040_v48 = vld [vmem:[#allocation28_spill] sm:$0xff]  ;;  %v13041_v25 = vld [vmem:[#allocation31_spill] sm:$0xff]  ;;  %v13043_v62 = vld [vmem:[#allocation30_spill] sm:$0xff] }
 0x4ac   : > { %8133 = vpow.bf16 %v6755_v18  ;;  %v2732_v23 = vadd.f32 %v2731_v3, %v2059_v52  ;;  %v2733_v44 = vpop.f32.mrb[206].mxu0  ;;  %v2079_v43 = vadd.f32 %v13040_v48, %v9084_v40  ;;  %v2081_v52 = vadd.f32 %v13042_v59, %v9080_v35  ;;  %v10205_v18 = vpop.f32.mrb[77].mxu1  ;;  %v13048_v48 = vld [vmem:[#allocation36_spill] sm:$0xff] }
 0x4ad   : > { %v8124_v20 = vpop.eup %8123  ;;  %v10172_v32 = vadd.f32 %v2733_v44, %v2061_v33  ;;  %v2735_v61 = vpop.f32.mrb[207].mxu0  ;;  %v2083_v33 = vadd.f32 %v13043_v62, %v9084_v40  ;;  %v13050_v62 = vld [vmem:[#allocation38_spill] sm:$0xff] }
 0x4ae   : > { %v8126_v9 = vpop.eup %8125  ;;  %v2736_v34 = vadd.f32 %v2735_v61, %v2063_v14  ;;  %v3465_v51 = vmul.bf16 1065369472, %v8124_v20 }
 0x4af   : > { %v8128_v42 = vpop.eup %8127  ;;  %v2960_v54 = vpack.c.bf16 %v10172_v32, %v10167_v58 }
 0x4b0   : > { %v3355_v30 = vadd.bf16 1065369472, %v8128_v42  ;;  %v2961_v27 = vpack.c.bf16 %v2736_v34, %v2732_v23  ;;  %v3545_v37 = vmul.bf16 %v8126_v9, %v3465_v51  ;;  %v3601_v23 = vpop.f32.mrb[78].mxu1 }
 0x4b1   : > { %v3602_v61 = vpop.f32.mrb[79].mxu1  ;;  %v13051_v23 = vld [vmem:[#allocation39_spill] sm:$0xff] }
 0x4b2   : > { %8135 = vrcp.bf16 %v3355_v30  ;;  %v6756_v21 = vmul.bf16 3216621497, %v2961_v27  ;;  %v2739_v22 = vpop.f32.mrb[208].mxu0  ;;  %7025 = vmatprep.subr.bf16.mxu1 %v3545_v37  ;;  %v13044_v30 = vld [vmem:[#allocation32_spill] sm:$0xff] }
 0x4b3   : > { %8137 = vtanh.bf16 %v2956_v57  ;;  %v10182_v28 = vadd.f32 %v2739_v22, %v2067_v19  ;;  %v2741_v2 = vpop.f32.mrb[209].mxu0  ;;  %7026 = vmatpush3.bf16.xpose.msra.mxu1 %v10021_v38  ;;  %v2077_v38 = vadd.f32 %v9861_v10, %v9080_v35  ;;  %v2087_v27 = vadd.f32 %v13044_v30, %v9080_v35 }
 0x4b4   : > { %8139 = vpow.bf16 %v6756_v21  ;;  %v2742_v53 = vadd.f32 %v2741_v2, %v2069_v29  ;;  %v2743_v15 = vpop.f32.mrb[210].mxu0  ;;  %v13045_v21 = vld [vmem:[#allocation33_spill] sm:$0xff] }
 0x4b5   : > { %v8130_v17 = vpop.eup %8129  ;;  %v10187_v12 = vadd.f32 %v2743_v15, %v2071_v49  ;;  %v2745_v24 = vpop.f32.mrb[211].mxu0  ;;  %v2089_v22 = vadd.f32 %v13045_v21, %v9084_v40 }
 0x4b6   : > { %v8132_v16 = vpop.eup %8131  ;;  %v2746_v57 = vadd.f32 %v2745_v24, %v2073_v39  ;;  %v3467_v1 = vmul.bf16 1065369472, %v8130_v17  ;;  %v13046_v39 = vld [vmem:[#allocation34_spill] sm:$0xff] }
 0x4b7   : > { %v8134_v13 = vpop.eup %8133  ;;  %v2962_v0 = vpack.c.bf16 %v10187_v12, %v10182_v28  ;;  %v13047_v12 = vld [vmem:[#allocation35_spill] sm:$0xff] }
 0x4b8   : > { %v3356_v26 = vadd.bf16 1065369472, %v8134_v13  ;;  %v2963_v11 = vpack.c.bf16 %v2746_v57, %v2742_v53  ;;  %v10195_v55 = vmul.bf16 %v8132_v16, %v3467_v1  ;;  %v2091_v53 = vadd.f32 %v13046_v39, %v9080_v35 }
 0x4b9   : > { %v2093_v24 = vadd.f32 %v13047_v12, %v9084_v40 }
 0x4ba   : > { %8141 = vrcp.bf16 %v3356_v26  ;;  %v6757_v4 = vmul.bf16 3216621497, %v2963_v11  ;;  %v2749_v47 = vpop.f32.mrb[212].mxu0  ;;  %7028 = vmatmul.mubr.bf16.vlgmr.msra.gmra.mrb[84].mxu1 %v13041_v25 }
 0x4bb   : > { %8143 = vtanh.bf16 %v2958_v8  ;;  %v10202_v60 = vadd.f32 %v2749_v47, %v2077_v38  ;;  %v2751_v10 = vpop.f32.mrb[213].mxu0  ;;  %7045 = vmatprep.mubr.bf16.mxu1 %v13041_v25  ;;  %v13049_v25 = vld [vmem:[#allocation37_spill] sm:$0xff] }
 0x4bc   : > { %8145 = vpow.bf16 %v6757_v4  ;;  %v2752_v3 = vadd.f32 %v2751_v10, %v2079_v43  ;;  %v2753_v14 = vpop.f32.mrb[214].mxu0  ;;  %v2097_v43 = vadd.f32 %v13048_v48, %v9080_v35  ;;  %v2099_v59 = vadd.f32 %v13049_v25, %v9084_v40 }
 0x4bd   : > { %v8136_v44 = vpop.eup %8135  ;;  %v10209_v20 = vadd.f32 %v2753_v14, %v2081_v52  ;;  %v2755_v8 = vpop.f32.mrb[215].mxu0 }
 0x4be   : > { %v8138_v9 = vpop.eup %8137  ;;  %v2756_v34 = vadd.f32 %v2755_v8, %v2083_v33  ;;  %v3469_v51 = vmul.bf16 1065369472, %v8136_v44  ;;  %v2101_v33 = vadd.f32 %v13050_v62, %v9080_v35  ;;  %v2103_v44 = vadd.f32 %v13051_v23, %v9084_v40  ;;  %v13058_v23 = vld [vmem:[#allocation46_spill] sm:$0xff] }
 0x4bf   : > { %v8140_v42 = vpop.eup %8139  ;;  %v2964_v19 = vpack.c.bf16 %v10209_v20, %v10202_v60 }
 0x4c0   : > { %v3357_v29 = vadd.bf16 1065369472, %v8140_v42  ;;  %v2965_v37 = vpack.c.bf16 %v2756_v34, %v2752_v3  ;;  %v10217_v49 = vmul.bf16 %v8138_v9, %v3469_v51 }
 0x4c2   : > { %8147 = vrcp.bf16 %v3357_v29  ;;  %v6758_v28 = vmul.bf16 3216621497, %v2965_v37  ;;  %v2759_v2 = vpop.f32.mrb[216].mxu0  ;;  %v13052_v29 = vld [vmem:[#allocation40_spill] sm:$0xff] }
 0x4c3   : > { %8149 = vtanh.bf16 %v2960_v54  ;;  %v10224_v15 = vadd.f32 %v2759_v2, %v2087_v27  ;;  %v2761_v17 = vpop.f32.mrb[217].mxu0  ;;  %v2107_v37 = vadd.f32 %v13052_v29, %v9080_v35 }
 0x4c4   : > { %8151 = vpow.bf16 %v6758_v28  ;;  %v2762_v16 = vadd.f32 %v2761_v17, %v2089_v22  ;;  %v2763_v57 = vpop.f32.mrb[218].mxu0  ;;  %v13053_v28 = vld [vmem:[#allocation41_spill] sm:$0xff]  ;;  %v13054_v17 = vld [vmem:[#allocation42_spill] sm:$0xff] }
 0x4c5   : > { %v8142_v1 = vpop.eup %8141  ;;  %v10228_v13 = vadd.f32 %v2763_v57, %v2091_v53  ;;  %v2765_v38 = vpop.f32.mrb[219].mxu0  ;;  %v2109_v2 = vadd.f32 %v13053_v28, %v9084_v40  ;;  %v2111_v12 = vadd.f32 %v13054_v17, %v9080_v35  ;;  %v13055_v57 = vld [vmem:[#allocation43_spill] sm:$0xff]  ;;  %v13060_v28 = vld [vmem:[#allocation48_spill] sm:$0xff]  ;;  %v13061_v17 = vld [vmem:[#allocation49_spill] sm:$0xff] }
 0x4c6   : > { %v8144_v26 = vpop.eup %8143  ;;  %v2766_v11 = vadd.f32 %v2765_v38, %v2093_v24  ;;  %v3471_v58 = vmul.bf16 1065369472, %v8142_v1  ;;  %v2113_v1 = vadd.f32 %v13055_v57, %v9084_v40 }
 0x4c7   : > { %v8146_v32 = vpop.eup %8145  ;;  %v2966_v54 = vpack.c.bf16 %v10228_v13, %v10224_v15 }
 0x4c8   : > { %v3358_v4 = vadd.bf16 1065369472, %v8146_v32  ;;  %v2967_v47 = vpack.c.bf16 %v2766_v11, %v2762_v16  ;;  %v10236_v52 = vmul.bf16 %v8144_v26, %v3471_v58 }
 0x4ca   : > { %8153 = vrcp.bf16 %v3358_v4  ;;  %v6759_v60 = vmul.bf16 3216621497, %v2967_v47  ;;  %v2769_v10 = vpop.f32.mrb[220].mxu0  ;;  %v13056_v47 = vld [vmem:[#allocation44_spill] sm:$0xff] }
 0x4cb   : > { %8155 = vtanh.bf16 %v2962_v0  ;;  %v10240_v3 = vadd.f32 %v2769_v10, %v2097_v43  ;;  %v2771_v14 = vpop.f32.mrb[221].mxu0  ;;  %v2117_v25 = vadd.f32 %v13056_v47, %v9080_v35  ;;  %v13057_v10 = vld [vmem:[#allocation45_spill] sm:$0xff] }
 0x4cc   : > { %8157 = vpow.bf16 %v6759_v60  ;;  %v2772_v20 = vadd.f32 %v2771_v14, %v2099_v59  ;;  %v2773_v8 = vpop.f32.mrb[222].mxu0  ;;  %v2119_v62 = vadd.f32 %v13057_v10, %v9084_v40 }
 0x4cd   : > { %v8148_v61 = vpop.eup %8147  ;;  %v10244_v9 = vadd.f32 %v2773_v8, %v2101_v33  ;;  %v2775_v34 = vpop.f32.mrb[223].mxu0 }
 0x4ce   : > { %v8150_v51 = vpop.eup %8149  ;;  %v2776_v42 = vadd.f32 %v2775_v34, %v2103_v44  ;;  %v3473_v30 = vmul.bf16 1065369472, %v8148_v61  ;;  %v2121_v44 = vadd.f32 %v13058_v23, %v9080_v35  ;;  %v13059_v61 = vld [vmem:[#allocation47_spill] sm:$0xff] }
 0x4cf   : > { %v8152_v0 = vpop.eup %8151  ;;  %v2968_v27 = vpack.c.bf16 %v10244_v9, %v10240_v3  ;;  %v2123_v9 = vadd.f32 %v13059_v61, %v9084_v40 }
 0x4d0   : > { %v3359_v21 = vadd.bf16 1065369472, %v8152_v0  ;;  %v2969_v22 = vpack.c.bf16 %v2776_v42, %v2772_v20  ;;  %v10252_v39 = vmul.bf16 %v8150_v51, %v3473_v30 }
 0x4d2   : > { %8159 = vrcp.bf16 %v3359_v21  ;;  %v6760_v53 = vmul.bf16 3216621497, %v2969_v22  ;;  %v2779_v15 = vpop.f32.mrb[224].mxu0 }
 0x4d3   : > { %8161 = vtanh.bf16 %v2964_v19  ;;  %v10256_v24 = vadd.f32 %v2779_v15, %v2107_v37  ;;  %v2781_v16 = vpop.f32.mrb[225].mxu0 }
 0x4d4   : > { %8163 = vpow.bf16 %v6760_v53  ;;  %v2782_v13 = vadd.f32 %v2781_v16, %v2109_v2  ;;  %v2783_v38 = vpop.f32.mrb[226].mxu0  ;;  %v2127_v2 = vadd.f32 %v13060_v28, %v9080_v35 }
 0x4d5   : > { %v8154_v26 = vpop.eup %8153  ;;  %v10260_v11 = vadd.f32 %v2783_v38, %v2111_v12  ;;  %v2785_v58 = vpop.f32.mrb[227].mxu0  ;;  %v2129_v12 = vadd.f32 %v13061_v17, %v9084_v40 }
 0x4d6   : > { %v8156_v32 = vpop.eup %8155  ;;  %v2786_v48 = vadd.f32 %v2785_v58, %v2113_v1  ;;  %v3475_v43 = vmul.bf16 1065369472, %v8154_v26  ;;  %v13062_v1 = vld [vmem:[#allocation50_spill] sm:$0xff] }
 0x4d7   : > { %v8158_v19 = vpop.eup %8157  ;;  %v2970_v4 = vpack.c.bf16 %v10260_v11, %v10256_v24  ;;  %v13063_v11 = vld [vmem:[#allocation51_spill] sm:$0xff] }
 0x4d8   : > { %v3360_v59 = vadd.bf16 1065369472, %v8158_v19  ;;  %v2971_v60 = vpack.c.bf16 %v2786_v48, %v2782_v13  ;;  %v10268_v33 = vmul.bf16 %v8156_v32, %v3475_v43  ;;  %v2131_v13 = vadd.f32 %v13062_v1, %v9080_v35 }
 0x4d9   : > { %v2133_v58 = vadd.f32 %v13063_v11, %v9084_v40 }
 0x4da   : > { %8165 = vrcp.bf16 %v3360_v59  ;;  %v6761_v3 = vmul.bf16 3216621497, %v2971_v60  ;;  %v2789_v14 = vpop.f32.mrb[228].mxu0 }
 0x4db   : > { %8167 = vtanh.bf16 %v2966_v54  ;;  %v10272_v20 = vadd.f32 %v2789_v14, %v2117_v25  ;;  %v2791_v8 = vpop.f32.mrb[229].mxu0 }
 0x4dc   : > { %8169 = vpow.bf16 %v6761_v3  ;;  %v2792_v34 = vadd.f32 %v2791_v8, %v2119_v62  ;;  %v2793_v51 = vpop.f32.mrb[230].mxu0  ;;  %v13064_v62 = vld [vmem:[#allocation52_spill] sm:$0xff] }
 0x4dd   : > { %v8160_v42 = vpop.eup %8159  ;;  %v10276_v30 = vadd.f32 %v2793_v51, %v2121_v44  ;;  %v2795_v0 = vpop.f32.mrb[231].mxu0  ;;  %v2137_v3 = vadd.f32 %v13064_v62, %v9080_v35  ;;  %v13065_v44 = vld [vmem:[#allocation53_spill] sm:$0xff] }
 0x4de   : > { %v8162_v29 = vpop.eup %8161  ;;  %v2796_v37 = vadd.f32 %v2795_v0, %v2123_v9  ;;  %v3477_v21 = vmul.bf16 1065369472, %v8160_v42  ;;  %v13067_v0 = vld [vmem:[#allocation55_spill] sm:$0xff] }
 0x4df   : > { %v8164_v54 = vpop.eup %8163  ;;  %v2972_v22 = vpack.c.bf16 %v10276_v30, %v10272_v20  ;;  %v2139_v20 = vadd.f32 %v13065_v44, %v9084_v40 }
 0x4e0   : > { %v3361_v53 = vadd.bf16 1065369472, %v8164_v54  ;;  %v2973_v15 = vpack.c.bf16 %v2796_v37, %v2792_v34  ;;  %v10284_v24 = vmul.bf16 %v8162_v29, %v3477_v21  ;;  %v13066_v34 = vld [vmem:[#allocation54_spill] sm:$0xff]  ;;  %v2143_v29 = vadd.f32 %v13067_v0, %v9084_v40 }
 0x4e1   : > { %v2141_v51 = vadd.f32 %v13066_v34, %v9080_v35 }
 0x4e2   : > { %8171 = vrcp.bf16 %v3361_v53  ;;  %v6762_v16 = vmul.bf16 3216621497, %v2973_v15  ;;  %v2799_v57 = vpop.f32.mrb[232].mxu0 }
 0x4e3   : > { %8173 = vtanh.bf16 %v2968_v27  ;;  %v10288_v38 = vadd.f32 %v2799_v57, %v2127_v2  ;;  %v2801_v26 = vpop.f32.mrb[233].mxu0 }
 0x4e4   : > { %8175 = vpow.bf16 %v6762_v16  ;;  %v2802_v32 = vadd.f32 %v2801_v26, %v2129_v12  ;;  %v2803_v48 = vpop.f32.mrb[234].mxu0  ;;  %v13068_v16 = vld [vmem:[#allocation56_spill] sm:$0xff] }
 0x4e5   : > { %v8166_v43 = vpop.eup %8165  ;;  %v10292_v19 = vadd.f32 %v2803_v48, %v2131_v13  ;;  %v2805_v47 = vpop.f32.mrb[235].mxu0  ;;  %v2147_v57 = vadd.f32 %v13068_v16, %v9080_v35  ;;  %v13070_v48 = vld [vmem:[#allocation58_spill] sm:$0xff] }
 0x4e6   : > { %v8168_v25 = vpop.eup %8167  ;;  %v2806_v59 = vadd.f32 %v2805_v47, %v2133_v58  ;;  %v3479_v60 = vmul.bf16 1065369472, %v8166_v43  ;;  %v2151_v43 = vadd.f32 %v13070_v48, %v9080_v35 }
 0x4e7   : > { %v8170_v27 = vpop.eup %8169  ;;  %v2974_v10 = vpack.c.bf16 %v10292_v19, %v10288_v38  ;;  %v13069_v38 = vld [vmem:[#allocation57_spill] sm:$0xff] }
 0x4e8   : > { %v3362_v14 = vadd.bf16 1065369472, %v8170_v27  ;;  %v2975_v23 = vpack.c.bf16 %v2806_v59, %v2802_v32  ;;  %v10300_v8 = vmul.bf16 %v8168_v25, %v3479_v60  ;;  %v2149_v26 = vadd.f32 %v13069_v38, %v9084_v40  ;;  %v13071_v25 = vld [vmem:[#allocation59_spill] sm:$0xff] }
 0x4e9   : > { %v2153_v59 = vadd.f32 %v13071_v25, %v9084_v40 }
 0x4ea   : > { %8177 = vrcp.bf16 %v3362_v14  ;;  %v6763_v61 = vmul.bf16 3216621497, %v2975_v23  ;;  %v2809_v9 = vpop.f32.mrb[236].mxu0 }
 0x4eb   : > { %8179 = vtanh.bf16 %v2970_v4  ;;  %v10304_v42 = vadd.f32 %v2809_v9, %v2137_v3  ;;  %v2811_v30 = vpop.f32.mrb[237].mxu0  ;;  %v13072_v9 = vld [vmem:[#allocation60_spill] sm:$0xff] }
 0x4ec   : > { %8181 = vpow.bf16 %v6763_v61  ;;  %v2812_v37 = vadd.f32 %v2811_v30, %v2139_v20  ;;  %v2813_v21 = vpop.f32.mrb[238].mxu0  ;;  %v2157_v34 = vadd.f32 %v13072_v9, %v9080_v35  ;;  %v13073_v30 = vld [vmem:[#allocation61_spill] sm:$0xff] }
 0x4ed   : > { %v8172_v54 = vpop.eup %8171  ;;  %v10308_v28 = vadd.f32 %v2813_v21, %v2141_v51  ;;  %v2815_v2 = vpop.f32.mrb[239].mxu0  ;;  %v2159_v0 = vadd.f32 %v13073_v30, %v9084_v40 }
 0x4ee   : > { %v8174_v53 = vpop.eup %8173  ;;  %v2816_v15 = vadd.f32 %v2815_v2, %v2143_v29  ;;  %v3481_v17 = vmul.bf16 1065369472, %v8172_v54  ;;  %v2161_v54 = vadd.f32 %v10041_v36, %v9080_v35 }
 0x4ef   : > { %v8176_v4 = vpop.eup %8175  ;;  %v2976_v12 = vpack.c.bf16 %v10308_v28, %v10304_v42 }
 0x4f0   : > { %v3363_v1 = vadd.bf16 1065369472, %v8176_v4  ;;  %v2977_v13 = vpack.c.bf16 %v2816_v15, %v2812_v37  ;;  %v10316_v11 = vmul.bf16 %v8174_v53, %v3481_v17  ;;  %v2163_v53 = vadd.f32 %v10045_v63, %v9084_v40 }
 0x4f1   : > { %v2169_v63 = vadd.f32 %v10058_v46, %v9084_v40 }
 0x4f2   : > { %8183 = vrcp.bf16 %v3363_v1  ;;  %v6764_v58 = vmul.bf16 3216621497, %v2977_v13  ;;  %v2819_v32 = vpop.f32.mrb[240].mxu0 }
 0x4f3   : > { %8185 = vtanh.bf16 %v2972_v22  ;;  %v10320_v19 = vadd.f32 %v2819_v32, %v2147_v57  ;;  %v2821_v47 = vpop.f32.mrb[241].mxu0 }
 0x4f4   : > { %8187 = vpow.bf16 %v6764_v58  ;;  %v2822_v60 = vadd.f32 %v2821_v47, %v2149_v26  ;;  %v2823_v27 = vpop.f32.mrb[242].mxu0 }
 0x4f5   : > { %v8178_v62 = vpop.eup %8177  ;;  %v10324_v3 = vadd.f32 %v2823_v27, %v2151_v43  ;;  %v2825_v14 = vpop.f32.mrb[243].mxu0 }
 0x4f6   : > { %v8180_v23 = vpop.eup %8179  ;;  %v2826_v44 = vadd.f32 %v2825_v14, %v2153_v59  ;;  %v3483_v20 = vmul.bf16 1065369472, %v8178_v62 }
 0x4f7   : > { %v8182_v22 = vpop.eup %8181  ;;  %v2978_v61 = vpack.c.bf16 %v10324_v3, %v10320_v19  ;;  %v2171_v19 = vadd.f32 %v10064_v41, %v9080_v35 }
 0x4f8   : > { %v3364_v51 = vadd.bf16 1065369472, %v8182_v22  ;;  %v2979_v42 = vpack.c.bf16 %v2826_v44, %v2822_v60  ;;  %v3554_v29 = vmul.bf16 %v8180_v23, %v3483_v20  ;;  %v2177_v44 = vadd.f32 %v10082_v6, %v9080_v35 }
 0x4f9   : > { %v2179_v22 = vadd.f32 %v10084_v7, %v9084_v40  ;;  %v2183_v6 = vadd.f32 %v10094_v50, %v9084_v40 }
 0x4fa   : > { %8189 = vrcp.bf16 %v3364_v51  ;;  %v6765_v37 = vmul.bf16 3216621497, %v2979_v42  ;;  %v2829_v21 = vpop.f32.mrb[244].mxu0  ;;  %7029 = vmatprep.subr.bf16.mxu1 %v3554_v29  ;;  %v2181_v51 = vadd.f32 %v10090_v56, %v9080_v35 }
 0x4fb   : > { %8191 = vtanh.bf16 %v2974_v10  ;;  %v10334_v28 = vadd.f32 %v2829_v21, %v2157_v34  ;;  %v2831_v2 = vpop.f32.mrb[245].mxu0  ;;  %7030 = vmatpush3.bf16.xpose.msra.mxu1 %v10195_v55  ;;  %v2167_v55 = vadd.f32 %v10056_v45, %v9080_v35  ;;  %v2173_v45 = vadd.f32 %v10068_v31, %v9084_v40 }
 0x4fc   : > { %8193 = vpow.bf16 %v6765_v37  ;;  %v2832_v15 = vadd.f32 %v2831_v2, %v2159_v0  ;;  %v2833_v17 = vpop.f32.mrb[246].mxu0 }
 0x4fd   : > { %v8184_v4 = vpop.eup %8183  ;;  %v10339_v16 = vadd.f32 %v2833_v17, %v2161_v54  ;;  %v2835_v57 = vpop.f32.mrb[247].mxu0 }
 0x4fe   : > { %v8186_v1 = vpop.eup %8185  ;;  %v2836_v10 = vadd.f32 %v2835_v57, %v2163_v53  ;;  %v3485_v13 = vmul.bf16 1065369472, %v8184_v4 }
 0x4ff   : > { %v8188_v38 = vpop.eup %8187  ;;  %v2980_v36 = vpack.c.bf16 %v10339_v16, %v10334_v28 }
 0x500   : > { %v3365_v26 = vadd.bf16 1065369472, %v8188_v38  ;;  %v2981_v58 = vpack.c.bf16 %v2836_v10, %v2832_v15  ;;  %v3555_v32 = vmul.bf16 %v8186_v1, %v3485_v13 }
 0x502   : > { %8195 = vrcp.bf16 %v3365_v26  ;;  %v6766_v48 = vmul.bf16 3216621497, %v2981_v58  ;;  %v2839_v43 = vpop.f32.mrb[248].mxu0  ;;  %7031 = vmatprep.subr.bf16.mxu1 %v3555_v32 }
 0x503   : > { %8197 = vtanh.bf16 %v2976_v12  ;;  %v10349_v47 = vadd.f32 %v2839_v43, %v2167_v55  ;;  %v2841_v25 = vpop.f32.mrb[249].mxu0  ;;  %7032 = vmatpush3.bf16.xpose.msra.mxu1 %v10217_v49 }
 0x504   : > { %8199 = vpow.bf16 %v6766_v48  ;;  %v2842_v59 = vadd.f32 %v2841_v25, %v2169_v63  ;;  %v2843_v46 = vpop.f32.mrb[250].mxu0 }
 0x505   : > { %v8190_v60 = vpop.eup %8189  ;;  %v2844_v27 = vadd.f32 %v2843_v46, %v2171_v19  ;;  %v2845_v62 = vpop.f32.mrb[251].mxu0 }
 0x506   : > { %v8192_v3 = vpop.eup %8191  ;;  %v2846_v14 = vadd.f32 %v2845_v62, %v2173_v45  ;;  %v3487_v12 = vmul.bf16 1065369472, %v8190_v60  ;;  %v8508_v62 = vmov -1e+30  }
 0x507   : > { %v8194_v23 = vpop.eup %8193  ;;  %v2982_v41 = vpack.c.bf16 %v2844_v27, %v10349_v47  ;;  %342 = vst.msk [vmem:[#allocation2] sm:$0x1] %vm12815_vm0, %v8508_v62  ;;  %v12840_v62 = vmov 0  }
 0x508   : > { %v3366_v20 = vadd.bf16 1065369472, %v8194_v23  ;;  %v2983_v49 = vpack.c.bf16 %v2846_v14, %v2842_v59  ;;  %v3556_v31 = vmul.bf16 %v8192_v3, %v3487_v12  ;;  %v8240_v59 = vld [vmem:[#allocation10] sm:$0x1]  ;;  %v13074_v3 = vlaneseq  ;;  %7739 = vset.pattern.permute.xlu0 %v12840_v62  ;;  %7740 = vset.pattern.permute.xlu1 %v12840_v62 }
 0x509   : > { %v10376_v12 = vstv %s6769_s30 }
 0x50a   : > { %8201 = vrcp.bf16 %v3366_v20  ;;  %v6767_v9 = vmul.bf16 3216621497, %v2983_v49  ;;  %v2849_v34 = vpop.f32.mrb[252].mxu0  ;;  %7033 = vmatprep.subr.bf16.mxu1 %v3556_v31 }
 0x50b   : > { %8203 = vtanh.bf16 %v2978_v61  ;;  %v2850_v42 = vadd.f32 %v2849_v34, %v2177_v44  ;;  %v2851_v30 = vpop.f32.mrb[253].mxu0  ;;  %7034 = vmatpush3.bf16.xpose.msra.mxu1 %v10236_v52 }
 0x50c   : > { %8205 = vpow.bf16 %v6767_v9  ;;  %v2852_v0 = vadd.f32 %v2851_v30, %v2179_v22  ;;  %v2853_v29 = vpop.f32.mrb[254].mxu0  ;;  %v8509_v9 = vmov 1966171168  }
 0x50d   : > { %v8196_v7 = vpop.eup %8195  ;;  %v2854_v37 = vadd.f32 %v2853_v29, %v2181_v51  ;;  %v2855_v21 = vpop.f32.mrb[255].mxu0  ;;  %v3775_v34 = vunpack.c.l.s4 %v8509_v9  ;;  %v4274_v9 = vld [vmem:[%s8738_s20 + $0x20] sm:$0xff] }
 0x50e   : > { %v10364_v54 = vpop.f32.mrb[80].mxu1  ;;  %v8198_v28 = vpop.eup %8197  ;;  %v2856_v61 = vadd.f32 %v2855_v21, %v2183_v6  ;;  %v3489_v2 = vmul.bf16 1065369472, %v8196_v7 }
 0x50f   : > { %v10366_v53 = vpop.f32.mrb[81].mxu1  ;;  %v8200_v35 = vpop.eup %8199  ;;  %v2984_v56 = vpack.c.bf16 %v2854_v37, %v2850_v42 }
 0x510   : > { %v3642_v15 = vpop.f32.mrb[82].mxu1  ;;  %v3367_v52 = vadd.bf16 1065369472, %v8200_v35  ;;  %v2985_v17 = vpack.c.bf16 %v2856_v61, %v2852_v0  ;;  %v3557_v4 = vmul.bf16 %v8198_v28, %v3489_v2  ;;  %v3776_v0 = vunpack.c.0.s8 %v3775_v34 }
 0x511   : > { %v3643_v16 = vpop.f32.mrb[83].mxu1 }
 0x512   : > { %8207 = vrcp.bf16 %v3367_v52  ;;  %v6768_v40 = vmul.bf16 3216621497, %v2985_v17  ;;  %7035 = vmatprep.subr.bf16.mxu1 %v3557_v4 }
 0x513   : > { %8209 = vtanh.bf16 %v2980_v36  ;;  %7036 = vmatpush3.bf16.xpose.msra.mxu1 %v10252_v39 }
 0x514   : > { %8211 = vpow.bf16 %v6768_v40 }
 0x515   : > { %v8202_v50 = vpop.eup %8201 }
 0x516   : > { %v8204_v57 = vpop.eup %8203  ;;  %v3491_v1 = vmul.bf16 1065369472, %v8202_v50 }
 0x517   : > { %v8206_v10 = vpop.eup %8205 }
 0x518   : > { %v3368_v13 = vadd.bf16 1065369472, %v8206_v10  ;;  %v3558_v38 = vmul.bf16 %v8204_v57, %v3491_v1 }
 0x51a   : > { %8213 = vrcp.bf16 %v3368_v13  ;;  %7037 = vmatprep.subr.bf16.mxu1 %v3558_v38 }
 0x51b   : > { %7038 = vmatpush3.bf16.xpose.msra.mxu1 %v10268_v33  ;;  %8215 = vtanh.bf16 %v2982_v41 }
 0x51d   : > { %v8208_v55 = vpop.eup %8207 }
 0x51e   : > { %v8210_v26 = vpop.eup %8209  ;;  %v3493_v58 = vmul.bf16 1065369472, %v8208_v55 }
 0x51f   : > { %v8212_v63 = vpop.eup %8211 }
 0x520   : > { %v3369_v32 = vadd.bf16 1065369472, %v8212_v63  ;;  %v3559_v36 = vmul.bf16 %v8210_v26, %v3493_v58 }
 0x522   : > { %8217 = vrcp.bf16 %v3369_v32  ;;  %7039 = vmatprep.subr.bf16.mxu1 %v3559_v36 }
 0x523   : > { %7040 = vmatpush3.bf16.xpose.msra.mxu1 %v10284_v24  ;;  %8219 = vtanh.bf16 %v2984_v56 }
 0x525   : > { %v8214_v39 = vpop.eup %8213 }
 0x526   : > { %v3495_v48 = vmul.bf16 1065369472, %v8214_v39  ;;  %v8216_v43 = vpop.eup %8215 }
 0x528   : > { %v3560_v19 = vmul.bf16 %v8216_v43, %v3495_v48 }
 0x52a   : > { %7041 = vmatprep.subr.bf16.mxu1 %v3560_v19 }
 0x52b   : > { %7042 = vmatpush3.bf16.xpose.msra.mxu1 %v10300_v8  ;;  %v3728_v8 = vand.u32 127, %v13074_v3 }
 0x52d   : > { %v8218_v33 = vpop.eup %8217  ;;  %v3729_v14 = vadd.s32 128, %v3728_v8  ;;  %v3730_v23 = vadd.s32 256, %v3728_v8  ;;  %v3731_v41 = vadd.s32 384, %v3728_v8  ;;  %v3732_v44 = vadd.s32 512, %v3728_v8 }
 0x52e   : > { %v3497_v47 = vmul.bf16 1065369472, %v8218_v33  ;;  %v8220_v25 = vpop.eup %8219  ;;  %v3738_v20 = vadd.s32 %v10376_v12, %v3728_v8  ;;  %v3734_v30 = vadd.s32 768, %v3728_v8  ;;  %v3735_v6 = vadd.s32 896, %v3728_v8 }
 0x52f   : > { %v3739_v49 = vadd.s32 %v10376_v12, %v3729_v14  ;;  %v3740_v22 = vadd.s32 %v10376_v12, %v3730_v23  ;;  %v3741_v31 = vadd.s32 %v10376_v12, %v3731_v41  ;;  %v3742_v51 = vadd.s32 %v10376_v12, %v3732_v44  ;;  %v4271_v23 = vld [vmem:[%s8738_s20 + $0x8] sm:$0xff] }
 0x530   : > { %v3561_v45 = vmul.bf16 %v8220_v25, %v3497_v47  ;;  %vm3746_vm1 = vcmp.lt.s32.totalorder %v3738_v20, 600  ;;  %v3744_v28 = vadd.s32 %v10376_v12, %v3734_v30  ;;  %v3745_v61 = vadd.s32 %v10376_v12, %v3735_v6  ;;  %v4275_v41 = vld [vmem:[%s8738_s20 + $0x28] sm:$0xff]  ;;  %v4270_v20 = vld [vmem:[%s8738_s20] sm:$0xff] }
 0x531   : > { %vm3747_vm2 = vcmp.lt.s32.totalorder %v3739_v49, 600  ;;  %vm3748_vm3 = vcmp.lt.s32.totalorder %v3740_v22, 600  ;;  %vm3749_vm4 = vcmp.lt.s32.totalorder %v3741_v31, 600  ;;  %v10385_v29 = vsel %vm3746_vm1, %v10198_v5, -1e+30  ;;  %v13075_v5 = vld [vmem:[#allocation26_spill] sm:$0xff] }
 0x532   : > { %7043 = vmatprep.subr.bf16.mxu1 %v3561_v45  ;;  %v10388_v7 = vsel %vm3747_vm2, %v10205_v18, -1e+30  ;;  %vm3750_vm5 = vcmp.lt.s32.totalorder %v3742_v51, 600  ;;  %v10391_v37 = vsel %vm3748_vm3, %v10364_v54, -1e+30  ;;  %v10401_v35 = vsub.s32 %v3776_v0, %v13075_v5  ;;  %v4279_v51 = vld [vmem:[%s8738_s20 + $0x48] sm:$0xff] }
 0x533   : > { %7044 = vmatpush3.bf16.xpose.msra.mxu1 %v10316_v11  ;;  %v3733_v11 = vadd.s32 640, %v3728_v8  ;;  %v10394_v21 = vsel %vm3749_vm4, %v10366_v53, -1e+30  ;;  %v3770_v2 = vcombine.low %v10385_v29, %v10388_v7  ;;  %vm3752_vm8 = vcmp.lt.s32.totalorder %v3744_v28, 600  ;;  %v4278_v28 = vld [vmem:[%s8738_s20 + $0x40] sm:$0xff] }
 0x534   : > { %13076 = vst [vmem:[#allocation28_spill] sm:$0xff] %v10401_v35  ;;  %v3771_v54 = vcombine.low %v10391_v37, %v10394_v21  ;;  %vm3753_vm9 = vcmp.lt.s32.totalorder %v3745_v61, 600  ;;  %v3823_v52 = vsel %vm3822_vm7, %v10385_v29, -inf  ;;  %v3824_v4 = vsel %vm3822_vm7, %v10388_v7, -inf }
 0x535   : > { %v3743_v42 = vadd.s32 %v10376_v12, %v3733_v11  ;;  %v3780_v17 = vrot.slane %v3770_v2, %v10401_v35  ;;  %v3825_v40 = vsel %vm3822_vm7, %v10391_v37, -inf  ;;  %v3826_v63 = vsel %vm3822_vm7, %v10394_v21, -inf }
 0x536   : > { %v3787_v50 = vrot.slane %v3771_v54, %v10401_v35  ;;  %v3887_v8 = vadd.s32 8, %v13075_v5  ;;  %v4014_v14 = vadd.s32 %v10376_v12, %v13075_v5  ;;  %v3888_v44 = vadd.s32 16, %v13075_v5  ;;  %v4282_v54 = vld [vmem:[%s8738_s20 + $0x60] sm:$0xff] }
 0x537   : > { %vm3751_vm6 = vcmp.lt.s32.totalorder %v3743_v42, 600  ;;  %v3889_v11 = vadd.s32 24, %v13075_v5  ;;  %v3890_v49 = vadd.s32 32, %v13075_v5  ;;  %v3891_v22 = vadd.s32 40, %v13075_v5  ;;  %v4283_v42 = vld [vmem:[%s8738_s20 + $0x68] sm:$0xff] }
 0x538   : > { %v3802_v19 = vcombine.low %v3780_v17, %v3787_v50  ;;  %v4015_v31 = vadd.s32 %v3887_v8, %v10376_v12  ;;  %vm4142_vm10 = vcmp.lt.s32.totalorder %v4014_v14, 600  ;;  %v4016_v34 = vadd.s32 %v3888_v44, %v10376_v12  ;;  %v4299_v14 = vld [vmem:[%s8738_s20 + $0xe8] sm:$0xff]  ;;  %v4298_v44 = vld [vmem:[%s8738_s20 + $0xe0] sm:$0xff] }
 0x539   : > { %v3892_v30 = vadd.s32 48, %v13075_v5  ;;  %v4783_v6 = vpack.c.bf16 %v4275_v41, %v4271_v23  ;;  %vm5294_vm11 = vmpackc.low %vm4142_vm10, %vm4142_vm10  ;;  %v4017_v0 = vadd.s32 %v3889_v11, %v10376_v12  ;;  %v4018_v61 = vadd.s32 %v3890_v49, %v10376_v12  ;;  %v4294_v41 = vld [vmem:[%s8738_s20 + $0xc0] sm:$0xff] }
 0x53a   : > { %7046 = vmatmul.mubr.bf16.vlgmr.msra.gmra.mrb[88].mxu1 %v8240_v59  ;;  %vm4143_vm12 = vcmp.lt.s32.totalorder %v4015_v31, 600  ;;  %v5422_v2 = vsel %vm5294_vm11, 65537, %v12840_v62  ;;  %vm4144_vm13 = vcmp.lt.s32.totalorder %v4016_v34, 600  ;;  %v4782_v17 = vpack.c.bf16 %v4274_v9, %v4270_v20 }
 0x53b   : > { %vm5295_vm14 = vmpackc.low %vm4143_vm12, %vm4143_vm12  ;;  %vm4145_vm15 = vcmp.lt.s32.totalorder %v4017_v0, 600  ;;  %vm4146_vm1 = vcmp.lt.s32.totalorder %v4018_v61, 600  ;;  %v4020_v50 = vadd.s32 %v3892_v30, %v10376_v12  ;;  %v3897_v31 = vadd.s32 88, %v13075_v5  ;;  %v4306_v61 = vld [vmem:[%s8738_s20 + $0x120] sm:$0xff] }
 0x53c   : > { %vm5296_vm2 = vmpackc.low %vm4144_vm13, %vm4144_vm13  ;;  %v4794_v34 = vpack.c.bf16 %v4298_v44, %v4294_v41 }
 0x53d   : > { %vm5297_vm4 = vmpackc.low %vm4145_vm15, %vm4145_vm15 }
 0x58d   : > { %v3679_v46 = vpop.f32.mrb[84].mxu1 }
 0x58e   : > { %v3681_v24 = vpop.f32.mrb[85].mxu1  ;;  %v10403_v18 = vsel %vm3750_vm5, %v3679_v46, -1e+30  ;;  %vm5298_vm5 = vmpackc.low %vm4146_vm1, %vm4146_vm1 }
 0x58f   : > { %v3683_v60 = vpop.f32.mrb[86].mxu1  ;;  %v10405_v56 = vsel %vm3751_vm6, %v3681_v24, -1e+30  ;;  %v3827_v53 = vsel %vm3822_vm7, %v10403_v18, -inf  ;;  %v3810_v24 = vrot.slane %v3802_v19, %v10401_v35  ;;  %vm4148_vm6 = vcmp.lt.s32.totalorder %v4020_v50, 600  ;;  %v4315_v50 = vld [vmem:[%s8738_s20 + $0x168] sm:$0xff] }
 0x590   : > { %v3684_v27 = vpop.f32.mrb[87].mxu1  ;;  %v3829_v15 = vsel %vm3822_vm7, %v10405_v56, -inf  ;;  %v3772_v57 = vcombine.low %v10403_v18, %v10405_v56  ;;  %v3828_v13 = vmax.f32 %v3823_v52, %v3827_v53  ;;  %v4019_v53 = vadd.s32 %v3891_v22, %v10376_v12  ;;  %v10474_v52 = vld [vmem:[%s8738_s20 + $0xa8] sm:$0xff]  ;;  %vm5300_vm10 = vmpackc.low %vm4148_vm6, %vm4148_vm6 }
 0x591   : > { %v3830_v38 = vmax.f32 %v3824_v4, %v3829_v15  ;;  %v10471_v15 = vld [vmem:[%s8738_s20 + $0x88] sm:$0xff]  ;;  %v4787_v4 = vpack.c.bf16 %v4283_v42, %v4279_v51  ;;  %v3895_v19 = vadd.s32 72, %v13075_v5  ;;  %v3896_v22 = vadd.s32 80, %v13075_v5 }
 0x592   : > { %v3794_v33 = vrot.slane %v3772_v57, %v10401_v35  ;;  %vm4147_vm3 = vcmp.lt.s32.totalorder %v4019_v53, 600  ;;  %v4303_v51 = vld [vmem:[%s8738_s20 + $0x108] sm:$0xff] }
 0x593   : > { %v3835_v25 = vmax.f32 %v3828_v13, %v3830_v38  ;;  %v4786_v13 = vpack.c.bf16 %v4282_v54, %v4278_v28  ;;  %v4791_v38 = vpack.c.bf16 %v10474_v52, %v10471_v15  ;;  %v4307_v42 = vld [vmem:[%s8738_s20 + $0x128] sm:$0xff]  ;;  %v4302_v28 = vld [vmem:[%s8738_s20 + $0x100] sm:$0xff]  ;;  %v4025_v54 = vadd.s32 %v3897_v31, %v10376_v12 }
 0x594   : > { %v3898_v15 = vadd.s32 96, %v13075_v5  ;;  %v3899_v52 = vadd.s32 104, %v13075_v5  ;;  %v3904_v31 = vadd.s32 144, %v13075_v5 }
 0x60d   : > { %v3720_v16 = vpop.f32.mrb[88].mxu1 }
 0x60e   : > { %v10423_v1 = vsel %vm3752_vm8, %v3720_v16, -1e+30  ;;  %v3722_v10 = vpop.f32.mrb[89].mxu1  ;;  %v5423_v16 = vsel %vm5295_vm14, 65537, %v12840_v62  ;;  %vm5299_vm8 = vmpackc.low %vm4147_vm3, %vm4147_vm3 }
 0x60f   : > { %v3831_v55 = vsel %vm3822_vm7, %v10423_v1, -inf  ;;  %v10427_v26 = vsel %vm3753_vm9, %v3722_v10, -1e+30  ;;  %v3724_v58 = vpop.f32.mrb[90].mxu1  ;;  %v6770_v57 = vcombine.low %v5422_v2, %v5423_v16  ;;  %v5424_v10 = vsel %vm5296_vm2, 65537, %v12840_v62 }
 0x610   : > { %v3832_v32 = vmax.f32 %v3825_v40, %v3831_v55  ;;  %v3773_v36 = vcombine.low %v10423_v1, %v10427_v26  ;;  %v3833_v39 = vsel %vm3822_vm7, %v10427_v26, -inf  ;;  %v3725_v48 = vpop.f32.mrb[91].mxu1  ;;  %v3893_v40 = vadd.s32 56, %v13075_v5 }
 0x611   : > { %v3834_v43 = vmax.f32 %v3826_v63, %v3833_v39  ;;  %v5425_v55 = vsel %vm5297_vm4, 65537, %v12840_v62  ;;  %v3894_v63 = vadd.s32 64, %v13075_v5  ;;  %vm10485_vm7 = vcmp.ne.s16.totalorder %v6770_v57, 0  ;;  %v4286_v48 = vld [vmem:[%s8738_s20 + $0x80] sm:$0xff] }
 0x612   : > { %v3801_v47 = vrot.slane %v3773_v36, %v10401_v35  ;;  %v4021_v58 = vadd.s32 %v3893_v40, %v10376_v12  ;;  %v6771_v36 = vcombine.low %v5424_v10, %v5425_v55  ;;  %v5426_v39 = vsel %vm5298_vm5, 65537, %v12840_v62  ;;  %6834 = vmatprep.subr.msk.bf16.mxu1 %vm10485_vm7, %v4783_v6  ;;  %v4311_v40 = vld [vmem:[%s8738_s20 + $0x148] sm:$0xff] }
 0x613   : > { %v3836_v45 = vmax.f32 %v3832_v32, %v3834_v43  ;;  %v4290_v43 = vld [vmem:[%s8738_s20 + $0xa0] sm:$0xff]  ;;  %v4024_v2 = vadd.s32 %v3896_v22, %v10376_v12  ;;  %vm4153_vm5 = vcmp.lt.s32.totalorder %v4025_v54, 600  ;;  %v4798_v16 = vpack.c.bf16 %v4306_v61, %v4302_v28  ;;  %v4327_v28 = vld [vmem:[%s8738_s20 + $0x1c8] sm:$0xff] }
 0x614   : > { %v3803_v59 = vcombine.low %v3794_v33, %v3801_v47  ;;  %v5806_v33 = vsel %vm10485_vm7, %v4782_v17, 0  ;;  %v5427_v47 = vsel %vm5299_vm8, 65537, %v12840_v62  ;;  %vm4149_vm9 = vcmp.lt.s32.totalorder %v4021_v58, 600  ;;  %v4331_v61 = vld [vmem:[%s8738_s20 + $0x1e8] sm:$0xff] }
 0x615   : > { %v3837_v46 = vmax.f32 %v3835_v25, %v3836_v45  ;;  %v4022_v25 = vadd.s32 %v3894_v63, %v10376_v12  ;;  %6074 = vmatpush1.bf16.msra.mxu1 %v5806_v33  ;;  %vm10499_vm11 = vcmp.ne.s16.totalorder %v6771_v36, 0  ;;  %vm5301_vm12 = vmpackc.low %vm4149_vm9, %vm4149_vm9  ;;  %v4790_v8 = vpack.c.bf16 %v4290_v43, %v4286_v48  ;;  %v4310_v63 = vld [vmem:[%s8738_s20 + $0x140] sm:$0xff] }
 0x616   : > { %v3817_v60 = vrot.slane %v3803_v59, %v10401_v35  ;;  %v6772_v59 = vcombine.low %v5426_v39, %v5427_v47  ;;  %6835 = vmatprep.subr.msk.bf16.mxu1 %vm10499_vm11, %v4787_v4  ;;  %v5429_v23 = vsel %vm5301_vm12, 65537, %v12840_v62  ;;  %v4799_v17 = vpack.c.bf16 %v4307_v42, %v4303_v51  ;;  %vm5305_vm9 = vmpackc.low %vm4153_vm5, %vm4153_vm5  ;;  %v4314_v36 = vld [vmem:[%s8738_s20 + $0x160] sm:$0xff] }
 0x617   : > { %3838 = vmax.xlane.f32.xlu0 %v3837_v46  ;;  %v4295_v46 = vld [vmem:[%s8738_s20 + $0xc8] sm:$0xff]  ;;  %vm4150_vm13 = vcmp.lt.s32.totalorder %v4022_v25, 600  ;;  %vm4152_vm4 = vcmp.lt.s32.totalorder %v4024_v2, 600  ;;  %v3900_v4 = vadd.s32 112, %v13075_v5  ;;  %v4026_v57 = vadd.s32 %v3898_v15, %v10376_v12  ;;  %v4494_v35 = vld [vmem:[%s8738_s20 + $0x700] sm:$0xff] }
 0x618   : > { %v3818_v27 = vcombine.low %v3810_v24, %v3817_v60  ;;  %v5428_v24 = vsel %vm5300_vm10, 65537, %v12840_v62  ;;  %v4023_v60 = vadd.s32 %v3895_v19, %v10376_v12  ;;  %vm10514_vm14 = vcmp.ne.s16.totalorder %v6772_v59, 0  ;;  %vm5302_vm1 = vmpackc.low %vm4150_vm13, %vm4150_vm13 }
 0x619   : > { %v6773_v20 = vcombine.low %v5428_v24, %v5429_v23  ;;  %v5430_v49 = vsel %vm5302_vm1, 65537, %v12840_v62  ;;  %v4795_v9 = vpack.c.bf16 %v4299_v14, %v4295_v46  ;;  %v5814_v6 = vsel %vm10514_vm14, %v4790_v8, 0  ;;  %vm5304_vm6 = vmpackc.low %vm4152_vm4, %vm4152_vm4 }
 0x61a   : > { %3820 = vst [vmem:[%s10443_s18] sm:$0xff] %v3818_v27  ;;  %v5810_v27 = vsel %vm10499_vm11, %v4786_v13, 0  ;;  %vm4151_vm15 = vcmp.lt.s32.totalorder %v4023_v60, 600  ;;  %v4027_v10 = vadd.s32 %v3899_v52, %v10376_v12  ;;  %v3901_v13 = vadd.s32 120, %v13075_v5  ;;  %v4319_v60 = vld [vmem:[%s8738_s20 + $0x188] sm:$0xff]  ;;  %v4326_v52 = vld [vmem:[%s8738_s20 + $0x1c0] sm:$0xff] }
 0x61b   : > { %vm5303_vm2 = vmpackc.low %vm4151_vm15, %vm4151_vm15  ;;  %6076 = vmatpush1.bf16.msra.mxu1 %v5810_v27  ;;  %vm10532_vm3 = vcmp.ne.s16.totalorder %v6773_v20, 0  ;;  %v5432_v58 = vsel %vm5304_vm6, 65537, %v12840_v62  ;;  %v4028_v39 = vadd.s32 %v3900_v4, %v10376_v12  ;;  %v5433_v48 = vsel %vm5305_vm9, 65537, %v12840_v62  ;;  %v4323_v27 = vld [vmem:[%s8738_s20 + $0x1a8] sm:$0xff]  ;;  %v4318_v20 = vld [vmem:[%s8738_s20 + $0x180] sm:$0xff] }
 0x61c   : > { %v5431_v30 = vsel %vm5303_vm2, 65537, %v12840_v62  ;;  %6836 = vmatprep.subr.msk.bf16.mxu1 %vm10514_vm14, %v4791_v38  ;;  %v5818_v38 = vsel %vm10532_vm3, %v4794_v34, 0  ;;  %vm4154_vm10 = vcmp.lt.s32.totalorder %v4026_v57, 600  ;;  %vm4155_vm12 = vcmp.lt.s32.totalorder %v4027_v10, 600 }
 0x61d   : > { %v6774_v0 = vcombine.low %v5430_v49, %v5431_v30  ;;  %v4029_v43 = vadd.s32 %v3901_v13, %v10376_v12  ;;  %v6775_v19 = vcombine.low %v5432_v58, %v5433_v48  ;;  %vm5306_vm13 = vmpackc.low %vm4154_vm10, %vm4154_vm10  ;;  %vm4156_vm15 = vcmp.lt.s32.totalorder %v4028_v39, 600  ;;  %v4322_v49 = vld [vmem:[%s8738_s20 + $0x1a0] sm:$0xff]  ;;  %v4359_v13 = vld [vmem:[%s8738_s20 + $0x2c8] sm:$0xff] }
 0x61e   : > { %v3902_v33 = vadd.s32 128, %v13075_v5  ;;  %v3903_v47 = vadd.s32 136, %v13075_v5  ;;  %v4803_v25 = vpack.c.bf16 %v4315_v50, %v4311_v40  ;;  %v4802_v59 = vpack.c.bf16 %v4314_v36, %v4310_v63  ;;  %vm5307_vm1 = vmpackc.low %vm4155_vm12, %vm4155_vm12  ;;  %v4335_v36 = vld [vmem:[%s8738_s20 + $0x208] sm:$0xff] }
 0x61f   : > { %6078 = vmatpush1.bf16.msra.mxu1 %v5814_v6  ;;  %vm10548_vm8 = vcmp.ne.s16.totalorder %v6774_v0, 0  ;;  %v5434_v46 = vsel %vm5306_vm13, 65537, %v12840_v62  ;;  %vm4157_vm2 = vcmp.lt.s32.totalorder %v4029_v43, 600  ;;  %v5435_v8 = vsel %vm5307_vm1, 65537, %v12840_v62  ;;  %vm5308_vm4 = vmpackc.low %vm4156_vm15, %vm4156_vm15 }
 0x620   : > { %6837 = vmatprep.subr.msk.bf16.mxu1 %vm10532_vm3, %v4795_v9  ;;  %v5822_v24 = vsel %vm10548_vm8, %v4798_v16, 0  ;;  %v4030_v14 = vadd.s32 %v3902_v33, %v10376_v12  ;;  %v4031_v23 = vadd.s32 %v3903_v47, %v10376_v12  ;;  %vm10570_vm5 = vcmp.ne.s16.totalorder %v6775_v19, 0  ;;  %vm5309_vm6 = vmpackc.low %vm4157_vm2, %vm4157_vm2  ;;  %v4339_v19 = vld [vmem:[%s8738_s20 + $0x228] sm:$0xff]  ;;  %v4334_v47 = vld [vmem:[%s8738_s20 + $0x200] sm:$0xff] }
 0x621   : > { %v6776_v44 = vcombine.low %v5434_v46, %v5435_v8  ;;  %v5436_v22 = vsel %vm5308_vm4, 65537, %v12840_v62  ;;  %v5437_v9 = vsel %vm5309_vm6, 65537, %v12840_v62  ;;  %v3905_v34 = vadd.s32 152, %v13075_v5 }
 0x622   : > { %vm4158_vm9 = vcmp.lt.s32.totalorder %v4030_v14, 600  ;;  %vm4159_vm10 = vcmp.lt.s32.totalorder %v4031_v23, 600  ;;  %v4032_v42 = vadd.s32 %v3904_v31, %v10376_v12  ;;  %v5826_v30 = vsel %vm10570_vm5, %v4802_v59, 0 }
 0x623   : > { %6080 = vmatpush1.bf16.msra.mxu1 %v5818_v38  ;;  %vm10580_vm12 = vmpackc.low %vm4158_vm9, %vm4158_vm9  ;;  %v4807_v6 = vpack.c.bf16 %v4323_v27, %v4319_v60  ;;  %v4806_v0 = vpack.c.bf16 %v4322_v49, %v4318_v20  ;;  %v4033_v2 = vadd.s32 %v3905_v34, %v10376_v12  ;;  %vm10592_vm15 = vcmp.ne.s16.totalorder %v6776_v44, 0  ;;  %v4343_v20 = vld [vmem:[%s8738_s20 + $0x248] sm:$0xff]  ;;  %v4346_v34 = vld [vmem:[%s8738_s20 + $0x260] sm:$0xff] }
 0x624   : > { %6838 = vmatprep.subr.msk.bf16.mxu1 %vm10548_vm8, %v4799_v17  ;;  %vm5311_vm13 = vmpackc.low %vm4159_vm10, %vm4159_vm10  ;;  %v13091_v54 = vmov 0  ;;  %v6777_v15 = vcombine.low %v5436_v22, %v5437_v9  ;;  %v4330_v17 = vld [vmem:[%s8738_s20 + $0x1e0] sm:$0xff]  ;;  %vm4160_vm1 = vcmp.lt.s32.totalorder %v4032_v42, 600  ;;  %v3906_v4 = vadd.s32 160, %v13075_v5  ;;  %v4347_v22 = vld [vmem:[%s8738_s20 + $0x268] sm:$0xff] }
 0x625   : > { %v13092_v54 = vsel %vm10592_vm15, 4294967295, %v13091_v54  ;;  %v5438_v16 = vsel %vm10580_vm12, 65537, %v12840_v62  ;;  %v5439_v40 = vsel %vm5311_vm13, 65537, %v12840_v62  ;;  %vm4161_vm2 = vcmp.lt.s32.totalorder %v4033_v2, 600  ;;  %vm10603_vm4 = vmpackc.low %vm4160_vm1, %vm4160_vm1  ;;  %v4342_v9 = vld [vmem:[%s8738_s20 + $0x240] sm:$0xff]  ;;  %v4355_v2 = vld [vmem:[%s8738_s20 + $0x2a8] sm:$0xff] }
 0x626   : > { %v3907_v57 = vadd.s32 168, %v13075_v5  ;;  %v4811_v10 = vpack.c.bf16 %v4331_v61, %v4327_v28  ;;  %vm10608_vm6 = vmpackc.low %vm4161_vm2, %vm4161_vm2  ;;  %v4034_v38 = vadd.s32 %v3906_v4, %v10376_v12  ;;  %v5830_v58 = vsel %vm10592_vm15, %v4806_v0, 0  ;;  %v4351_v28 = vld [vmem:[%s8738_s20 + $0x288] sm:$0xff] }
 0x627   : > { %6082 = vmatpush1.bf16.msra.mxu1 %v5822_v24  ;;  %v4810_v63 = vpack.c.bf16 %v4330_v17, %v4326_v52  ;;  %v3908_v48 = vadd.s32 176, %v13075_v5  ;;  %vm10620_vm9 = vcmp.ne.s16.totalorder %v6777_v15, 0  ;;  %v13097_v43 = vmov 0  ;;  %v4350_v52 = vld [vmem:[%s8738_s20 + $0x280] sm:$0xff] }
 0x628   : > { %6839 = vmatprep.subr.msk.bf16.mxu1 %vm10570_vm5, %v4803_v25  ;;  %v4035_v39 = vadd.s32 %v3907_v57, %v10376_v12  ;;  %v13098_v43 = vsel %vm10620_vm9, 4294967295, %v13097_v43  ;;  %v6778_v33 = vcombine.low %v5438_v16, %v5439_v40  ;;  %v4338_v25 = vld [vmem:[%s8738_s20 + $0x220] sm:$0xff]  ;;  %vm4162_vm10 = vcmp.lt.s32.totalorder %v4034_v38, 600  ;;  %v4363_v38 = vld [vmem:[%s8738_s20 + $0x2e8] sm:$0xff] }
 0x629   : > { %v3909_v59 = vadd.s32 184, %v13075_v5  ;;  %v5440_v46 = vsel %vm10603_vm4, 65537, %v12840_v62  ;;  %v5441_v24 = vsel %vm10608_vm6, 65537, %v12840_v62  ;;  %vm10634_vm13 = vmpackc.low %vm4162_vm10, %vm4162_vm10  ;;  %v4036_v27 = vadd.s32 %v3908_v48, %v10376_v12  ;;  %v4354_v17 = vld [vmem:[%s8738_s20 + $0x2a0] sm:$0xff] }
 0x62a   : > { %vm4163_vm12 = vcmp.lt.s32.totalorder %v4035_v39, 600  ;;  %v5834_v14 = vsel %vm10620_vm9, %v4810_v63, 0  ;;  %v4815_v23 = vpack.c.bf16 %v4339_v19, %v4335_v36  ;;  %v4814_v44 = vpack.c.bf16 %v4338_v25, %v4334_v47 }
 0x62b   : > { %6084 = vmatpush1.bf16.msra.mxu1 %v5826_v30  ;;  %vm5315_vm1 = vmpackc.low %vm4163_vm12, %vm4163_vm12  ;;  %v4037_v8 = vadd.s32 %v3909_v59, %v10376_v12  ;;  %vm4164_vm2 = vcmp.lt.s32.totalorder %v4036_v27, 600  ;;  %vm10645_vm4 = vcmp.ne.s16.totalorder %v6778_v33, 0  ;;  %v13101_v49 = vmov 0  ;;  %v3821_v33 = vld [vmem:[#allocation2] sm:$0x1]  ;;  %v4358_v59 = vld [vmem:[%s8738_s20 + $0x2c0] sm:$0xff] }
 0x62c   : > { %6840 = vmatprep.subr.msk.bf16.mxu1 %vm10592_vm15, %v4807_v6  ;;  %v13102_v49 = vsel %vm10645_vm4, 4294967295, %v13101_v49  ;;  %v6779_v31 = vcombine.low %v5440_v46, %v5441_v24  ;;  %v5442_v51 = vsel %vm10634_vm13, 65537, %v12840_v62  ;;  %v5443_v42 = vsel %vm5315_vm1, 65537, %v12840_v62  ;;  %vm5316_vm10 = vmpackc.low %vm4164_vm2, %vm4164_vm2  ;;  %v4362_v46 = vld [vmem:[%s8738_s20 + $0x2e0] sm:$0xff] }
 0x62d   : > { %vm4165_vm6 = vcmp.lt.s32.totalorder %v4037_v8, 600  ;;  %v5838_v30 = vsel %vm10645_vm4, %v4814_v44, 0  ;;  %v4819_v6 = vpack.c.bf16 %v4347_v22, %v4343_v20  ;;  %v4818_v0 = vpack.c.bf16 %v4346_v34, %v4342_v9  ;;  %v4371_v9 = vld [vmem:[%s8738_s20 + $0x328] sm:$0xff] }
 0x62e   : > { %vm5317_vm12 = vmpackc.low %vm4165_vm6, %vm4165_vm6  ;;  %vm10661_vm0 = vcmp.ne.s16.totalorder %v6779_v31, 0  ;;  %v13103_v61 = vmov 0  ;;  %v6780_v15 = vcombine.low %v5442_v51, %v5443_v42  ;;  %v5444_v4 = vsel %vm5316_vm10, 65537, %v12840_v62  ;;  %v4367_v31 = vld [vmem:[%s8738_s20 + $0x308] sm:$0xff]  ;;  %v4366_v51 = vld [vmem:[%s8738_s20 + $0x300] sm:$0xff] }
 0x62f   : > { %6086 = vmatpush1.bf16.msra.mxu1 %v5830_v58  ;;  %v13104_v61 = vsel %vm10661_vm0, 4294967295, %v13103_v61  ;;  %v5445_v16 = vsel %vm5317_vm12, 65537, %v12840_v62  ;;  %v5842_v40 = vsel %vm10661_vm0, %v4818_v0, 0  ;;  %v4823_v50 = vpack.c.bf16 %v4355_v2, %v4351_v28  ;;  %v4370_v28 = vld [vmem:[%s8738_s20 + $0x320] sm:$0xff]  ;;  %v4375_v2 = vld [vmem:[%s8738_s20 + $0x348] sm:$0xff] }
 0x630   : > { %6841 = vmatprep.subr.msk.bf16.mxu1 %vm10620_vm9, %v4811_v10  ;;  %v4822_v57 = vpack.c.bf16 %v4354_v17, %v4350_v52  ;;  %vm10674_vm13 = vcmp.ne.s16.totalorder %v6780_v15, 0  ;;  %v13105_v10 = vmov 0  ;;  %v6781_v58 = vcombine.low %v5444_v4, %v5445_v16  ;;  %v4379_v15 = vld [vmem:[%s8738_s20 + $0x368] sm:$0xff] }
 0x631   : > { %v13106_v10 = vsel %vm10674_vm13, 4294967295, %v13105_v10  ;;  %v4827_v36 = vpack.c.bf16 %v4363_v38, %v4359_v13  ;;  %v13107_v39 = vmov 0  ;;  %v3910_v48 = vadd.s32 192, %v13075_v5 }
 0x632   : > { %v5846_v63 = vsel %vm10674_vm13, %v4822_v57, 0  ;;  %vm10684_vm1 = vcmp.ne.s16.totalorder %v6781_v58, 0  ;;  %v3911_v19 = vadd.s32 200, %v13075_v5  ;;  %v4826_v60 = vpack.c.bf16 %v4362_v46, %v4358_v59  ;;  %v4386_v59 = vld [vmem:[%s8738_s20 + $0x3a0] sm:$0xff] }
 0x633   : > { %6088 = vmatpush1.bf16.msra.mxu1 %v5834_v14  ;;  %v13108_v39 = vsel %vm10684_vm1, 4294967295, %v13107_v39  ;;  %v4038_v47 = vadd.s32 %v3910_v48, %v10376_v12  ;;  %v3912_v27 = vadd.s32 208, %v13075_v5  ;;  %v3913_v14 = vadd.s32 216, %v13075_v5 }
 0x634   : > { %6842 = vmatprep.subr.msk.bf16.mxu1 %vm10645_vm4, %v4815_v23  ;;  %v4039_v25 = vadd.s32 %v3911_v19, %v10376_v12  ;;  %v5850_v23 = vsel %vm10684_vm1, %v4826_v60, 0  ;;  %v3915_v52 = vadd.s32 232, %v13075_v5  ;;  %v4830_v4 = vpack.c.bf16 %v4370_v28, %v4366_v51  ;;  %v4383_v19 = vld [vmem:[%s8738_s20 + $0x388] sm:$0xff] }
 0x635   : > { %vm4166_vm2 = vcmp.lt.s32.totalorder %v4038_v47, 600  ;;  %v4040_v20 = vadd.s32 %v3912_v27, %v10376_v12  ;;  %v4041_v42 = vadd.s32 %v3913_v14, %v10376_v12  ;;  %v4835_v16 = vpack.c.bf16 %v4379_v15, %v4375_v2  ;;  %v4391_v28 = vld [vmem:[%s8738_s20 + $0x3c8] sm:$0xff] }
 0x636   : > { %vm4167_vm6 = vcmp.lt.s32.totalorder %v4039_v25, 600  ;;  %vm5318_vm10 = vmpackc.low %vm4166_vm2, %vm4166_vm2  ;;  %v13110_v57 = vmov 0  ;;  %v4043_v48 = vadd.s32 %v3915_v52, %v10376_v12  ;;  %v4382_v25 = vld [vmem:[%s8738_s20 + $0x380] sm:$0xff]  ;;  %v13112_v46 = vmov 0  ;;  %v4395_v2 = vld [vmem:[%s8738_s20 + $0x3e8] sm:$0xff] }
 0x637   : > { %6090 = vmatpush1.bf16.msra.mxu1 %v5838_v30  ;;  %vm5319_vm12 = vmpackc.low %vm4167_vm6, %vm4167_vm6  ;;  %v5446_v44 = vsel %vm5318_vm10, 65537, %v12840_v62  ;;  %v3914_v30 = vadd.s32 224, %v13075_v5  ;;  %vm4168_vm2 = vcmp.lt.s32.totalorder %v4040_v20, 600  ;;  %v13115_v60 = vmov 0 }
 0x638   : > { %6843 = vmatprep.subr.msk.bf16.mxu1 %vm10661_vm0, %v4819_v6  ;;  %v5447_v34 = vsel %vm5319_vm12, 65537, %v12840_v62  ;;  %v4831_v6 = vpack.c.bf16 %v4371_v9, %v4367_v31  ;;  %vm5320_vm6 = vmpackc.low %vm4168_vm2, %vm4168_vm2  ;;  %v8511_v14 = vmov 0.0   ;;  %v4838_v20 = vpack.c.bf16 %v4386_v59, %v4382_v25 }
 0x639   : > { %v6782_v0 = vcombine.low %v5446_v44, %v5447_v34  ;;  %v5448_v13 = vsel %vm5320_vm6, 65537, %v12840_v62  ;;  %v4042_v58 = vadd.s32 %v3914_v30, %v10376_v12  ;;  %v3918_v34 = vadd.s32 256, %v13075_v5 }
 0x63a   : > { %v3919_v51 = vadd.s32 264, %v13075_v5  ;;  %v4843_v52 = vpack.c.bf16 %v4395_v2, %v4391_v28  ;;  %v13121_v25 = vmov 0  ;;  %v3920_v59 = vadd.s32 272, %v13075_v5 }
 0x63b   : > { %6092 = vmatpush1.bf16.msra.mxu1 %v5842_v40  ;;  %v4374_v40 = vld [vmem:[%s8738_s20 + $0x340] sm:$0xff]  ;;  %vm10715_vm10 = vcmp.ne.s16.totalorder %v6782_v0, 0  ;;  %vm4170_vm2 = vcmp.lt.s32.totalorder %v4042_v58, 600  ;;  %v4046_v30 = vadd.s32 %v3918_v34, %v10376_v12  ;;  %v13119_v58 = vmov 0 }
 0x63c   : > { %6844 = vmatprep.subr.msk.bf16.mxu1 %vm10674_vm13, %v4823_v50  ;;  %vm13109_vm13 = vcmask 0   ;;  %v4378_v50 = vld [vmem:[%s8738_s20 + $0x360] sm:$0xff]  ;;  %v13111_v57 = vsel %vm10715_vm10, 4294967295, %v13110_v57  ;;  %vm5322_vm6 = vmpackc.low %vm4170_vm2, %vm4170_vm2  ;;  %v3924_v34 = vadd.s32 304, %v13075_v5 }
 0x63d   : > { %v4834_v38 = vpack.c.bf16 %v4378_v50, %v4374_v40 }
 0x63e   : > { %v4052_v2 = vadd.s32 %v3924_v34, %v10376_v12 }
 0x63f   : > { %6094 = vmatpush1.bf16.msra.mxu1 %v5846_v63  ;;  %v5854_v63 = vsel %vm10715_vm10, %v4830_v4, 0  ;;  %v4390_v4 = vld [vmem:[%s8738_s20 + $0x3c0] sm:$0xff] }
 0x640   : > { %6845 = vmatprep.subr.msk.bf16.mxu1 %vm10684_vm1, %v4827_v36  ;;  %vm10732_vm1 = vcmp.lt.s32.totalorder %v13074_v3, 512  ;;  %vm4180_vm4 = vcmp.lt.s32.totalorder %v4052_v2, 600 }
 0x641   : > { %v13113_v46 = vsel %vm10732_vm1, 4294967295, %v13112_v46  ;;  %347 = vst.msk [vmem:[#allocation3] sm:$0xf] %vm10732_vm1, %v8511_v14  ;;  %v13123_v14 = vld [vmem:[#allocation27_spill] sm:$0xff] }
 0x642   : > { %13114 = vst [vmem:[#allocation31_spill] sm:$0xff] %v13113_v46  ;;  %v4470_v46 = vld [vmem:[%s8738_s20 + $0x640] sm:$0xff] }
 0x643   : > { %6096 = vmatpush1.bf16.msra.mxu1 %v5850_v23  ;;  %v3917_v23 = vadd.s32 248, %v13075_v5 }
 0x644   : > { %6846 = vmatprep.subr.msk.bf16.mxu1 %vm10715_vm10, %v4831_v6  ;;  %v4047_v6 = vadd.s32 %v3919_v51, %v10376_v12 }
 0x645   : > { %v4045_v9 = vadd.s32 %v3917_v23, %v10376_v12 }
 0x647   : > { %6098 = vmatpush1.bf16.msra.mxu1 %v5854_v63  ;;  %v4399_v63 = vld [vmem:[%s8738_s20 + $0x408] sm:$0xff] }
 0x6a4   : > { %v3839_v24 = vpop.xlane.xlu0 %3838 }
 0x6a5   : > { %v3840_v8 = vmax.f32 %v3821_v33, %v3839_v24  ;;  %v3916_v24 = vadd.s32 240, %v13075_v5 }
 0x6a7   : > { %v3841_v22 = vsub.f32 %v3821_v33, %v3840_v8  ;;  %6437 = vst.msk [vmem:[#allocation2] sm:$0x1] %vm13109_vm13, %v3840_v8  ;;  %3846 = vperm.xlu0 %7739, %v3840_v8   ;;  %vm4169_vm13 = vcmp.lt.s32.totalorder %v4041_v42, 600  ;;  %v4387_v33 = vld [vmem:[%s8738_s20 + $0x3a8] sm:$0xff]  ;;  %v5450_v8 = vsel %vm5322_vm6, 65537, %v12840_v62  ;;  %v13117_v42 = vmov 0 }
 0x6a8   : > { %vm5321_vm12 = vmpackc.low %vm4169_vm13, %vm4169_vm13  ;;  %vm4171_vm13 = vcmp.lt.s32.totalorder %v4043_v48, 600  ;;  %v4839_v27 = vpack.c.bf16 %v4387_v33, %v4383_v19  ;;  %vm4173_vm6 = vcmp.lt.s32.totalorder %v4045_v9, 600 }
 0x6a9   : > { %v3842_v17 = vmul.f32 1.442695, %v3841_v22  ;;  %v5449_v36 = vsel %vm5321_vm12, 65537, %v12840_v62  ;;  %vm5323_vm12 = vmpackc.low %vm4171_vm13, %vm4171_vm13  ;;  %v4044_v22 = vadd.s32 %v3916_v24, %v10376_v12  ;;  %v3921_v24 = vadd.s32 280, %v13075_v5 }
 0x6aa   : > { %v6783_v47 = vcombine.low %v5448_v13, %v5449_v36  ;;  %v5451_v44 = vsel %vm5323_vm12, 65537, %v12840_v62  ;;  %vm5325_vm1 = vmpackc.low %vm4173_vm6, %vm4173_vm6  ;;  %v4403_v36 = vld [vmem:[%s8738_s20 + $0x428] sm:$0xff] }
 0x6ab   : > { %8221 = vpow2.f32 %v3842_v17  ;;  %v6784_v31 = vcombine.low %v5450_v8, %v5451_v44  ;;  %vm4172_vm2 = vcmp.lt.s32.totalorder %v4044_v22, 600  ;;  %v5453_v17 = vsel %vm5325_vm1, 65537, %v12840_v62 }
 0x6ac   : > { %vm10737_vm10 = vcmp.ne.s16.totalorder %v6783_v47, 0  ;;  %vm5324_vm12 = vmpackc.low %vm4172_vm2, %vm4172_vm2  ;;  %vm4174_vm2 = vcmp.lt.s32.totalorder %v4046_v30, 600  ;;  %v4847_v33 = vpack.c.bf16 %v4403_v36, %v4399_v63  ;;  %v4048_v8 = vadd.s32 %v3920_v59, %v10376_v12  ;;  %v4407_v36 = vld [vmem:[%s8738_s20 + $0x448] sm:$0xff] }
 0x6ad   : > { %v13116_v60 = vsel %vm10737_vm10, 4294967295, %v13115_v60  ;;  %6847 = vmatprep.subr.msk.bf16.mxu1 %vm10737_vm10, %v4835_v16  ;;  %v5858_v3 = vsel %vm10737_vm10, %v4834_v38, 0  ;;  %vm10754_vm13 = vcmp.ne.s16.totalorder %v6784_v31, 0  ;;  %v5452_v15 = vsel %vm5324_vm12, 65537, %v12840_v62  ;;  %v4394_v16 = vld [vmem:[%s8738_s20 + $0x3e0] sm:$0xff]  ;;  %vm5326_vm0 = vmpackc.low %vm4174_vm2, %vm4174_vm2 }
 0x6ae   : > { %6100 = vmatpush1.bf16.msra.mxu1 %v5858_v3  ;;  %v13118_v42 = vsel %vm10754_vm13, 4294967295, %v13117_v42  ;;  %v5862_v0 = vsel %vm10754_vm13, %v4838_v20, 0  ;;  %vm4175_vm10 = vcmp.lt.s32.totalorder %v4047_v6, 600  ;;  %v6785_v50 = vcombine.low %v5452_v15, %v5453_v17  ;;  %v4402_v17 = vld [vmem:[%s8738_s20 + $0x420] sm:$0xff] }
 0x6af   : > { %6848 = vmatprep.subr.msk.bf16.mxu1 %vm10754_vm13, %v4839_v27  ;;  %v4842_v13 = vpack.c.bf16 %v4394_v16, %v4390_v4  ;;  %vm5327_vm13 = vmpackc.low %vm4175_vm10, %vm4175_vm10  ;;  %v5454_v38 = vsel %vm5326_vm0, 65537, %v12840_v62  ;;  %v3922_v3 = vadd.s32 288, %v13075_v5  ;;  %v4049_v44 = vadd.s32 %v3921_v24, %v10376_v12 }
 0x6b0   : > { %vm10771_vm6 = vcmp.ne.s16.totalorder %v6785_v50, 0  ;;  %v5455_v48 = vsel %vm5327_vm13, 65537, %v12840_v62  ;;  %v3923_v20 = vadd.s32 296, %v13075_v5  ;;  %vm4176_vm0 = vcmp.lt.s32.totalorder %v4048_v8, 600 }
 0x6b1   : > { %v13120_v58 = vsel %vm10771_vm6, 4294967295, %v13119_v58  ;;  %v5866_v19 = vsel %vm10771_vm6, %v4842_v13, 0  ;;  %v6786_v47 = vcombine.low %v5454_v38, %v5455_v48  ;;  %vm4177_vm10 = vcmp.lt.s32.totalorder %v4049_v44, 600  ;;  %vm5328_vm13 = vmpackc.low %vm4176_vm0, %vm4176_vm0  ;;  %v4411_v48 = vld [vmem:[%s8738_s20 + $0x468] sm:$0xff]  ;;  %v4414_v44 = vld [vmem:[%s8738_s20 + $0x480] sm:$0xff] }
 0x6b2   : > { %6102 = vmatpush1.bf16.msra.mxu1 %v5862_v0  ;;  %v4050_v0 = vadd.s32 %v3922_v3, %v10376_v12  ;;  %v4051_v28 = vadd.s32 %v3923_v20, %v10376_v12  ;;  %vm5329_vm12 = vmpackc.low %vm4177_vm10, %vm4177_vm10  ;;  %v5456_v16 = vsel %vm5328_vm13, 65537, %v12840_v62  ;;  %v3928_v13 = vadd.s32 336, %v13075_v5  ;;  %v4418_v20 = vld [vmem:[%s8738_s20 + $0x4a0] sm:$0xff] }
 0x6b3   : > { %6849 = vmatprep.subr.msk.bf16.mxu1 %vm10771_vm6, %v4843_v52  ;;  %vm10782_vm1 = vcmp.ne.s16.totalorder %v6786_v47, 0  ;;  %v4398_v52 = vld [vmem:[%s8738_s20 + $0x400] sm:$0xff]  ;;  %v3929_v38 = vadd.s32 344, %v13075_v5  ;;  %vm10825_vm13 = vmpackc.low %vm4180_vm4, %vm4180_vm4 }
 0x6b4   : > { %v13122_v25 = vsel %vm10782_vm1, 4294967295, %v13121_v25  ;;  %vm4178_vm2 = vcmp.lt.s32.totalorder %v4050_v0, 600  ;;  %vm4179_vm6 = vcmp.lt.s32.totalorder %v4051_v28, 600  ;;  %v4846_v63 = vpack.c.bf16 %v4402_v17, %v4398_v52  ;;  %v4410_v47 = vld [vmem:[%s8738_s20 + $0x460] sm:$0xff] }
 0x6b5   : > { %v8222_v40 = vpop.eup %8221  ;;  %vm5330_vm0 = vmpackc.low %vm4178_vm2, %vm4178_vm2  ;;  %v4056_v8 = vadd.s32 %v3928_v13, %v10376_v12  ;;  %v3931_v28 = vadd.s32 360, %v13075_v5  ;;  %v5460_v13 = vsel %vm10825_vm13, 65537, %v12840_v62 }
 0x6b6   : > { %6065 = vperm.xlu1 %7740, %v8222_v40   ;;  %6104 = vmatpush1.bf16.msra.mxu1 %v5866_v19  ;;  %v5457_v40 = vsel %vm5329_vm12, 65537, %v12840_v62  ;;  %vm5331_vm10 = vmpackc.low %vm4179_vm6, %vm4179_vm6  ;;  %v5458_v59 = vsel %vm5330_vm0, 65537, %v12840_v62 }
 0x6b7   : > { %6850 = vmatprep.subr.msk.bf16.mxu1 %vm10782_vm1, %v4847_v33  ;;  %v6787_v19 = vcombine.low %v5456_v16, %v5457_v40  ;;  %v4406_v33 = vld [vmem:[%s8738_s20 + $0x440] sm:$0xff]  ;;  %v5459_v24 = vsel %vm5331_vm10, 65537, %v12840_v62  ;;  %v4419_v16 = vld [vmem:[%s8738_s20 + $0x4a8] sm:$0xff]  ;;  %v4854_v40 = vpack.c.bf16 %v4418_v20, %v4414_v44 }
 0x6b8   : > { %v4850_v2 = vpack.c.bf16 %v4410_v47, %v4406_v33  ;;  %v3933_v33 = vadd.s32 376, %v13075_v5 }
 0x726   : > { %v3847_v27 = vpop.permute.xlu0 %3846 }
 0x727   : > { %v10792_v23 = vrot.slane %v3847_v27, %v13123_v14  ;;  %v4423_v27 = vld [vmem:[%s8738_s20 + $0x4c8] sm:$0xff]  ;;  %v4498_v14 = vld [vmem:[%s8738_s20 + $0x720] sm:$0xff] }
 0x729   : > { %v3854_v22 = vsub.f32 %v10388_v7, %v10792_v23  ;;  %v3853_v31 = vsub.f32 %v10385_v29, %v10792_v23  ;;  %v3856_v9 = vsub.f32 %v10394_v21, %v10792_v23  ;;  %v3925_v7 = vadd.s32 312, %v13075_v5 }
 0x72a   : > { %v3926_v29 = vadd.s32 320, %v13075_v5  ;;  %v3927_v21 = vadd.s32 328, %v13075_v5 }
 0x72b   : > { %v3863_v51 = vmul.f32 1.442695, %v3854_v22  ;;  %v3861_v30 = vmul.f32 1.442695, %v3853_v31  ;;  %v3867_v6 = vmul.f32 1.442695, %v3856_v9  ;;  %v4053_v15 = vadd.s32 %v3925_v7, %v10376_v12 }
 0x72c   : > { %v4054_v4 = vadd.s32 %v3926_v29, %v10376_v12  ;;  %v4055_v50 = vadd.s32 %v3927_v21, %v10376_v12  ;;  %v4057_v31 = vadd.s32 %v3929_v38, %v10376_v12  ;;  %v3930_v9 = vadd.s32 352, %v13075_v5  ;;  %v4422_v22 = vld [vmem:[%s8738_s20 + $0x4c0] sm:$0xff] }
 0x72d   : > { %8223 = vpow2.f32 %v3863_v51  ;;  %vm4181_vm9 = vcmp.lt.s32.totalorder %v4053_v15, 600  ;;  %v13130_v21 = vmov 0  ;;  %v6788_v15 = vcombine.low %v5458_v59, %v5459_v24 }
 0x72e   : > { %8225 = vpow2.f32 %v3861_v30  ;;  %vm4182_vm15 = vcmp.lt.s32.totalorder %v4054_v4, 600  ;;  %vm4183_vm6 = vcmp.lt.s32.totalorder %v4055_v50, 600  ;;  %vm10832_vm12 = vmpackc.low %vm4181_vm9, %vm4181_vm9  ;;  %v5870_v30 = vsel %vm10782_vm1, %v4846_v63, 0  ;;  %v4415_v4 = vld [vmem:[%s8738_s20 + $0x488] sm:$0xff] }
 0x72f   : > { %8227 = vpow2.f32 %v3867_v6  ;;  %v4851_v6 = vpack.c.bf16 %v4411_v48, %v4407_v36  ;;  %vm10844_vm4 = vmpackc.low %vm4182_vm15, %vm4182_vm15  ;;  %vm10851_vm9 = vcmp.ne.s16.totalorder %v6787_v19, 0  ;;  %vm4184_vm15 = vcmp.lt.s32.totalorder %v4056_v8, 600 }
 0x730   : > { %v13131_v21 = vsel %vm10851_vm9, 4294967295, %v13130_v21  ;;  %vm10857_vm2 = vmpackc.low %vm4183_vm6, %vm4183_vm6  ;;  %v5461_v50 = vsel %vm10832_vm12, 65537, %v12840_v62  ;;  %vm4185_vm0 = vcmp.lt.s32.totalorder %v4057_v31, 600  ;;  %v4058_v38 = vadd.s32 %v3930_v9, %v10376_v12  ;;  %v4426_v9 = vld [vmem:[%s8738_s20 + $0x4e0] sm:$0xff] }
 0x731   : > { %v3932_v63 = vadd.s32 368, %v13075_v5  ;;  %v5462_v36 = vsel %vm10844_vm4, 65537, %v12840_v62  ;;  %v5463_v48 = vsel %vm10857_vm2, 65537, %v12840_v62  ;;  %v4059_v19 = vadd.s32 %v3931_v28, %v10376_v12  ;;  %vm10896_vm13 = vmpackc.low %vm4184_vm15, %vm4184_vm15  ;;  %v4430_v28 = vld [vmem:[%s8738_s20 + $0x500] sm:$0xff] }
 0x732   : > { %v5874_v47 = vsel %vm10851_vm9, %v4850_v2, 0  ;;  %v4855_v59 = vpack.c.bf16 %v4419_v16, %v4415_v4  ;;  %vm10888_vm10 = vcmp.ne.s16.totalorder %v6788_v15, 0  ;;  %v13134_v24 = vmov 0  ;;  %vm10904_vm6 = vmpackc.low %vm4185_vm0, %vm4185_vm0 }
 0x733   : > { %v13135_v24 = vsel %vm10888_vm10, 4294967295, %v13134_v24  ;;  %v6789_v20 = vcombine.low %v5460_v13, %v5461_v50  ;;  %vm4186_vm12 = vcmp.lt.s32.totalorder %v4058_v38, 600  ;;  %v3934_v8 = vadd.s32 384, %v13075_v5  ;;  %v4431_v13 = vld [vmem:[%s8738_s20 + $0x508] sm:$0xff] }
 0x734   : > { %v5878_v0 = vsel %vm10888_vm10, %v4854_v40, 0  ;;  %vm4187_vm4 = vcmp.lt.s32.totalorder %v4059_v19, 600  ;;  %v4061_v31 = vadd.s32 %v3933_v33, %v10376_v12  ;;  %v3935_v2 = vadd.s32 392, %v13075_v5  ;;  %v4435_v50 = vld [vmem:[%s8738_s20 + $0x528] sm:$0xff]  ;;  %vm10932_vm15 = vmpackc.low %vm4186_vm12, %vm4186_vm12  ;;  %v4450_v19 = vld [vmem:[%s8738_s20 + $0x5a0] sm:$0xff] }
 0x735   : > { %v4858_v52 = vpack.c.bf16 %v4426_v9, %v4422_v22  ;;  %v5464_v4 = vsel %vm10896_vm13, 65537, %v12840_v62  ;;  %v5465_v16 = vsel %vm10904_vm6, 65537, %v12840_v62  ;;  %vm10924_vm2 = vcmp.ne.s16.totalorder %v6789_v20, 0  ;;  %vm10940_vm13 = vmpackc.low %vm4187_vm4, %vm4187_vm4  ;;  %v4439_v9 = vld [vmem:[%s8738_s20 + $0x548] sm:$0xff] }
 0x736   : > { %v13140_v40 = vmov 0  ;;  %v4062_v33 = vadd.s32 %v3934_v8, %v10376_v12  ;;  %v6791_v38 = vcombine.low %v5464_v4, %v5465_v16  ;;  %vm4189_vm12 = vcmp.lt.s32.totalorder %v4061_v31, 600 }
 0x737   : > { %v8224_v3 = vpop.eup %8223  ;;  %v13141_v40 = vsel %vm10924_vm2, 4294967295, %v13140_v40  ;;  %v5882_v44 = vsel %vm10924_vm2, %v4858_v52, 0  ;;  %v4863_v20 = vpack.c.bf16 %v4435_v50, %v4431_v13  ;;  %v3937_v22 = vadd.s32 408, %v13075_v5  ;;  %v4447_v52 = vld [vmem:[%s8738_s20 + $0x588] sm:$0xff] }
 0x738   : > { %v8226_v34 = vpop.eup %8225  ;;  %v10838_v51 = vpack.c.bf16 %v8224_v3, %v8224_v3  ;;  %v4427_v3 = vld [vmem:[%s8738_s20 + $0x4e8] sm:$0xff]  ;;  %v5467_v8 = vsel %vm10940_vm13, 65537, %v12840_v62  ;;  %vm4190_vm13 = vcmp.lt.s32.totalorder %v4062_v33, 600  ;;  %v3940_v16 = vadd.s32 432, %v13075_v5 }
 0x739   : > { %v8228_v7 = vpop.eup %8227  ;;  %v10849_v29 = vpack.c.bf16 %v8226_v34, %v8226_v34  ;;  %v4859_v15 = vpack.c.bf16 %v4427_v3, %v4423_v27  ;;  %v4063_v27 = vadd.s32 %v3935_v2, %v10376_v12  ;;  %v3936_v3 = vadd.s32 400, %v13075_v5  ;;  %v4443_v34 = vld [vmem:[%s8738_s20 + $0x568] sm:$0xff] }
 0x73a   : > { %6105 = vmatprep.mubr.bf16.mxu1 %v10838_v51  ;;  %v10862_v17 = vpack.c.bf16 %v8228_v7, %v8228_v7  ;;  %v4434_v7 = vld [vmem:[%s8738_s20 + $0x520] sm:$0xff]  ;;  %v4867_v13 = vpack.c.bf16 %v4443_v34, %v4439_v9  ;;  %v4451_v50 = vld [vmem:[%s8738_s20 + $0x5a8] sm:$0xff]  ;;  %v4068_v2 = vadd.s32 %v3940_v16, %v10376_v12  ;;  %v3942_v16 = vadd.s32 448, %v13075_v5 }
 0x73b   : > { %6106 = vmatmul.mubr.bf16.vlgmr.msra.gmra.mrb[92].mxu1 %v10849_v29  ;;  %v4064_v4 = vadd.s32 %v3936_v3, %v10376_v12  ;;  %v4871_v34 = vpack.c.bf16 %v4451_v50, %v4447_v52  ;;  %v3945_v9 = vadd.s32 472, %v13075_v5 }
 0x73c   : > { %6115 = vmatpush1.bf16.msra.mxu1 %v5870_v30  ;;  %6146 = vmatprep.mubr.bf16.mxu1 %v10862_v17  ;;  %v6790_v30 = vcombine.low %v5462_v36, %v5463_v48  ;;  %v13144_v36 = vmov 0  ;;  %v4862_v48 = vpack.c.bf16 %v4434_v7, %v4430_v28  ;;  %v3938_v28 = vadd.s32 416, %v13075_v5 }
 0x73d   : > { %6851 = vmatprep.subr.msk.bf16.mxu1 %vm10851_vm9, %v4851_v6  ;;  %v4060_v6 = vadd.s32 %v3932_v63, %v10376_v12 }
 0x73e   : > { %vm10936_vm0 = vcmp.ne.s16.totalorder %v6790_v30, 0  ;;  %v5466_v30 = vsel %vm10932_vm15, 65537, %v12840_v62  ;;  %vm10971_vm15 = vmpackc.low %vm4189_vm12, %vm4189_vm12 }
 0x73f   : > { %v13145_v36 = vsel %vm10936_vm0, 4294967295, %v13144_v36  ;;  %vm4188_vm6 = vcmp.lt.s32.totalorder %v4060_v6, 600  ;;  %v5886_v7 = vsel %vm10936_vm0, %v4862_v48, 0  ;;  %v3939_v6 = vadd.s32 424, %v13075_v5  ;;  %v4446_v48 = vld [vmem:[%s8738_s20 + $0x580] sm:$0xff]  ;;  %vm10998_vm12 = vmpackc.low %vm4190_vm13, %vm4190_vm13 }
 0x740   : > { %6117 = vmatpush1.bf16.msra.mxu1 %v5874_v47  ;;  %v4438_v47 = vld [vmem:[%s8738_s20 + $0x540] sm:$0xff]  ;;  %vm10964_vm4 = vmpackc.low %vm4188_vm6, %vm4188_vm6  ;;  %vm10976_vm6 = vcmp.ne.s16.totalorder %v6791_v38, 0  ;;  %v6792_v63 = vcombine.low %v5466_v30, %v5467_v8  ;;  %v4065_v38 = vadd.s32 %v3937_v22, %v10376_v12  ;;  %v5469_v3 = vsel %vm10971_vm15, 65537, %v12840_v62  ;;  %v4455_v8 = vld [vmem:[%s8738_s20 + $0x5c8] sm:$0xff] }
 0x741   : > { %6852 = vmatprep.subr.msk.bf16.mxu1 %vm10888_vm10, %v4855_v59  ;;  %v4442_v59 = vld [vmem:[%s8738_s20 + $0x560] sm:$0xff]  ;;  %v4067_v33 = vadd.s32 %v3939_v6, %v10376_v12  ;;  %v4870_v30 = vpack.c.bf16 %v4450_v19, %v4446_v48  ;;  %vm4192_vm15 = vcmp.lt.s32.totalorder %v4064_v4, 600  ;;  %v13160_v6 = vmov 0  }
 0x742   : > { %v4866_v31 = vpack.c.bf16 %v4442_v59, %v4438_v47  ;;  %v3941_v47 = vadd.s32 440, %v13075_v5  ;;  %v5468_v59 = vsel %vm10964_vm4, 65537, %v12840_v62  ;;  %vm11017_vm13 = vcmp.ne.s16.totalorder %v6792_v63, 0  ;;  %v4458_v62 = vld [vmem:[%s8738_s20 + $0x5e0] sm:$0xff] }
 0x743   : > { %v5470_v52 = vsel %vm10998_vm12, 65537, %v13160_v6  ;;  %v3943_v63 = vadd.s32 456, %v13075_v5  ;;  %v5894_v48 = vsel %vm11017_vm13, %v4870_v30, 0  ;;  %v4463_v30 = vld [vmem:[%s8738_s20 + $0x608] sm:$0xff] }
 0x744   : > { %6119 = vmatpush1.bf16.msra.mxu1 %v5878_v0  ;;  %v5890_v22 = vsel %vm10976_vm6, %v4866_v31, 0  ;;  %v4459_v0 = vld [vmem:[%s8738_s20 + $0x5e8] sm:$0xff]  ;;  %v4454_v31 = vld [vmem:[%s8738_s20 + $0x5c0] sm:$0xff] }
 0x745   : > { %6853 = vmatprep.subr.msk.bf16.mxu1 %vm10924_vm2, %v4859_v15  ;;  %v13152_v15 = vmov 0  ;;  %vm4191_vm2 = vcmp.lt.s32.totalorder %v4063_v27, 600  ;;  %v13158_v27 = vmov 0  ;;  %v4874_v19 = vpack.c.bf16 %v4458_v62, %v4454_v31 }
 0x746   : > { %v13153_v15 = vsel %vm10976_vm6, 4294967295, %v13152_v15  ;;  %vm11007_vm4 = vmpackc.low %vm4191_vm2, %vm4191_vm2  ;;  %v13159_v27 = vsel %vm11017_vm13, 4294967295, %v13158_v27  ;;  %vm4193_vm2 = vcmp.lt.s32.totalorder %v4065_v38, 600  ;;  %v4071_v31 = vadd.s32 %v3943_v63, %v10376_v12  ;;  %v4475_v38 = vld [vmem:[%s8738_s20 + $0x668] sm:$0xff] }
 0x747   : > { %v5471_v4 = vsel %vm11007_vm4, 65537, %v13160_v6  ;;  %vm11038_vm12 = vmpackc.low %vm4193_vm2, %vm4193_vm2  ;;  %vm13169_vm4 = vcmp.lt.s32.totalorder %v4067_v33, 600  ;;  %v13177_v63 = vmov 0 }
 0x748   : > { %6121 = vmatpush1.bf16.msra.mxu1 %v5882_v44  ;;  %v4462_v44 = vld [vmem:[%s8738_s20 + $0x600] sm:$0xff] }
 0x749   : > { %6854 = vmatprep.subr.msk.bf16.mxu1 %vm10936_vm0, %v4863_v20  ;;  %v4066_v20 = vadd.s32 %v3938_v28, %v10376_v12  ;;  %v6793_v28 = vcombine.low %v5468_v59, %v5469_v3  ;;  %vm11031_vm0 = vmpackc.low %vm4192_vm15, %vm4192_vm15  ;;  %v13165_v59 = vmov 0  ;;  %v6794_v3 = vcombine.low %v5470_v52, %v5471_v4 }
 0x74b   : > { %vm11045_vm15 = vcmp.ne.s16.totalorder %v6793_v28, 0  ;;  %v5473_v28 = vsel %vm11038_vm12, 65537, %v13160_v6  ;;  %vm11090_vm12 = vcmp.ne.s16.totalorder %v6794_v3, 0 }
 0x74c   : > { %6123 = vmatpush1.bf16.msra.mxu1 %v5886_v7  ;;  %v4069_v7 = vadd.s32 %v3941_v47, %v10376_v12  ;;  %v3944_v47 = vadd.s32 464, %v13075_v5  ;;  %v13166_v59 = vsel %vm11045_vm15, 4294967295, %v13165_v59  ;;  %v13178_v63 = vsel %vm11090_vm12, 4294967295, %v13177_v63 }
 0x74d   : > { %6855 = vmatprep.subr.msk.bf16.mxu1 %vm10976_vm6, %v4867_v13  ;;  %vm4194_vm6 = vcmp.lt.s32.totalorder %v4066_v20, 600  ;;  %v4875_v13 = vpack.c.bf16 %v4459_v0, %v4455_v8  ;;  %v4467_v8 = vld [vmem:[%s8738_s20 + $0x628] sm:$0xff]  ;;  %v4070_v20 = vadd.s32 %v3942_v16, %v10376_v12  ;;  %v5472_v0 = vsel %vm11031_vm0, 65537, %v13160_v6  ;;  %13179 = vst [vmem:[#allocation29_spill] sm:$0xff] %v13178_v63  ;;  %v4502_v63 = vld [vmem:[%s8738_s20 + $0x740] sm:$0xff] }
 0x74e   : > { %vm11053_vm10 = vmpackc.low %vm4194_vm6, %vm4194_vm6  ;;  %vm4197_vm2 = vcmp.lt.s32.totalorder %v4069_v7, 600  ;;  %vm13172_vm6 = vcmp.lt.s32.totalorder %v4068_v2, 600  ;;  %v5898_v7 = vsel %vm11045_vm15, %v4874_v19, 0  ;;  %v4072_v2 = vadd.s32 %v3944_v47, %v10376_v12  ;;  %v4474_v47 = vld [vmem:[%s8738_s20 + $0x660] sm:$0xff] }
 0x74f   : > { %vm11075_vm9 = vmpackc.low %vm13172_vm6, %vm13172_vm6  ;;  %v3946_v16 = vadd.s32 480, %v13075_v5  ;;  %v4879_v50 = vpack.c.bf16 %v4467_v8, %v4463_v30  ;;  %v4073_v19 = vadd.s32 %v3945_v9, %v10376_v12 }
 0x750   : > { %6125 = vmatpush1.bf16.msra.mxu1 %v5890_v22  ;;  %v4466_v22 = vld [vmem:[%s8738_s20 + $0x620] sm:$0xff]  ;;  %vm11082_vm0 = vmpackc.low %vm4197_vm2, %vm4197_vm2  ;;  %v5476_v9 = vsel %vm11075_vm9, 65537, %v13160_v6  ;;  %vm4199_vm2 = vcmp.lt.s32.totalorder %v4071_v31, 600  ;;  %v3949_v31 = vadd.s32 504, %v13075_v5 }
 0x751   : > { %6856 = vmatprep.subr.msk.bf16.mxu1 %vm11017_vm13, %v4871_v34  ;;  %vm11062_vm13 = vmpackc.low %vm13169_vm4, %vm13169_vm4  ;;  %v4878_v52 = vpack.c.bf16 %v4466_v22, %v4462_v44  ;;  %v3947_v44 = vadd.s32 488, %v13075_v5  ;;  %v6795_v22 = vcombine.low %v5472_v0, %v5473_v28  ;;  %vm4198_vm4 = vcmp.lt.s32.totalorder %v4070_v20, 600  ;;  %v4479_v0 = vld [vmem:[%s8738_s20 + $0x688] sm:$0xff] }
 0x752   : > { %v5475_v3 = vsel %vm11062_vm13, 65537, %v13160_v6  ;;  %v5477_v30 = vsel %vm11082_vm0, 65537, %v13160_v6  ;;  %v4074_v34 = vadd.s32 %v3946_v16, %v10376_v12  ;;  %v4882_v20 = vpack.c.bf16 %v4474_v47, %v4470_v46  ;;  %v4483_v28 = vld [vmem:[%s8738_s20 + $0x6a8] sm:$0xff]  ;;  %vm11119_vm9 = vmpackc.low %vm4198_vm4, %vm4198_vm4  ;;  %v4482_v16 = vld [vmem:[%s8738_s20 + $0x6a0] sm:$0xff] }
 0x753   : > { %v5902_v62 = vsel %vm11090_vm12, %v4878_v52, 0  ;;  %vm4201_vm13 = vcmp.lt.s32.totalorder %v4073_v19, 600  ;;  %vm11124_vm6 = vcmp.ne.s16.totalorder %v6795_v22, 0  ;;  %v13182_v52 = vmov 0  ;;  %vm11132_vm0 = vmpackc.low %vm4199_vm2, %vm4199_vm2  ;;  %v4490_v47 = vld [vmem:[%s8738_s20 + $0x6e0] sm:$0xff] }
 0x754   : > { %6127 = vmatpush1.bf16.msra.mxu1 %v5894_v48  ;;  %v4471_v48 = vld [vmem:[%s8738_s20 + $0x648] sm:$0xff]  ;;  %v13183_v52 = vsel %vm11124_vm6, 4294967295, %v13182_v52  ;;  %v4887_v22 = vpack.c.bf16 %v4483_v28, %v4479_v0 }
 0x755   : > { %6857 = vmatprep.subr.msk.bf16.mxu1 %vm11045_vm15, %v4875_v13  ;;  %v5474_v13 = vsel %vm11053_vm10, 65537, %v13160_v6  ;;  %v4883_v8 = vpack.c.bf16 %v4475_v38, %v4471_v48  ;;  %vm4200_vm10 = vcmp.lt.s32.totalorder %v4072_v2, 600  ;;  %13184 = vst [vmem:[#allocation30_spill] sm:$0xff] %v13183_v52  ;;  %v4478_v48 = vld [vmem:[%s8738_s20 + $0x680] sm:$0xff]  ;;  %v6797_v38 = vcombine.low %v5476_v9, %v5477_v30  ;;  %v4487_v9 = vld [vmem:[%s8738_s20 + $0x6c8] sm:$0xff] }
 0x756   : > { %v6796_v33 = vcombine.low %v5474_v13, %v5475_v3  ;;  %vm11140_vm4 = vmpackc.low %vm4200_vm10, %vm4200_vm10  ;;  %vm4202_vm15 = vcmp.lt.s32.totalorder %v4074_v34, 600  ;;  %v5906_v13 = vsel %vm11124_vm6, %v4882_v20, 0  ;;  %v13189_v2 = vmov 0  ;;  %v4491_v30 = vld [vmem:[%s8738_s20 + $0x6e8] sm:$0xff] }
 0x757   : > { %v4886_v3 = vpack.c.bf16 %v4482_v16, %v4478_v48  ;;  %vm11156_vm1 = vcmp.ne.s16.totalorder %v6797_v38, 0  ;;  %v5479_v20 = vsel %vm11132_vm0, 65537, %v13160_v6  ;;  %v5480_v0 = vsel %vm11140_vm4, 65537, %v13160_v6  ;;  %v4507_v48 = vld [vmem:[%s8738_s20 + $0x768] sm:$0xff] }
 0x758   : > { %6129 = vmatpush1.bf16.msra.mxu1 %v5898_v7  ;;  %v4075_v7 = vadd.s32 %v3947_v44, %v10376_v12  ;;  %v3948_v44 = vadd.s32 496, %v13075_v5  ;;  %vm11150_vm2 = vcmp.ne.s16.totalorder %v6796_v33, 0  ;;  %v4077_v16 = vadd.s32 %v3949_v31, %v10376_v12  ;;  %v4506_v31 = vld [vmem:[%s8738_s20 + $0x760] sm:$0xff] }
 0x759   : > { %6858 = vmatprep.subr.msk.bf16.mxu1 %vm11090_vm12, %v4879_v50  ;;  %v4486_v50 = vld [vmem:[%s8738_s20 + $0x6c0] sm:$0xff]  ;;  %vm5353_vm12 = vmpackc.low %vm4201_vm13, %vm4201_vm13  ;;  %v13190_v2 = vsel %vm11150_vm2, 4294967295, %v13189_v2  ;;  %v3951_v38 = vadd.s32 520, %v13075_v5  ;;  %v5910_v46 = vsel %vm11150_vm2, %v4886_v3, 0  ;;  %v3953_v33 = vadd.s32 536, %v13075_v5 }
 0x75a   : > { %vm4203_vm10 = vcmp.lt.s32.totalorder %v4075_v7, 600  ;;  %v4890_v34 = vpack.c.bf16 %v4490_v47, %v4486_v50  ;;  %v5481_v28 = vsel %vm5353_vm12, 65537, %v13160_v6  ;;  %vm11170_vm13 = vmpackc.low %vm4202_vm15, %vm4202_vm15  ;;  %v4076_v4 = vadd.s32 %v3948_v44, %v10376_v12  ;;  %v4495_v47 = vld [vmem:[%s8738_s20 + $0x708] sm:$0xff] }
 0x75b   : > { %v3950_v7 = vadd.s32 512, %v13075_v5  ;;  %v4891_v50 = vpack.c.bf16 %v4491_v30, %v4487_v9  ;;  %v4499_v44 = vld [vmem:[%s8738_s20 + $0x728] sm:$0xff]  ;;  %v6799_v52 = vcombine.low %v5480_v0, %v5481_v28  ;;  %vm4205_vm12 = vcmp.lt.s32.totalorder %v4077_v16, 600 }
 0x75c   : > { %6131 = vmatpush1.bf16.msra.mxu1 %v5902_v62  ;;  %v13191_v62 = vmov 0  ;;  %v5914_v19 = vsel %vm11156_vm1, %v4890_v34, 0  ;;  %vm4204_vm15 = vcmp.lt.s32.totalorder %v4076_v4, 600  ;;  %v3855_v30 = vsub.f32 %v10391_v37, %v10792_v23  ;;  %v4503_v37 = vld [vmem:[%s8738_s20 + $0x748] sm:$0xff]  ;;  %v4510_v4 = vld [vmem:[%s8738_s20 + $0x780] sm:$0xff] }
 0x75d   : > { %6859 = vmatprep.subr.msk.bf16.mxu1 %vm11124_vm6, %v4883_v8  ;;  %v13192_v62 = vsel %vm11156_vm1, 4294967295, %v13191_v62  ;;  %v5478_v8 = vsel %vm11119_vm9, 65537, %v13160_v6  ;;  %vm11176_vm9 = vmpackc.low %vm4203_vm10, %vm4203_vm10  ;;  %v4078_v9 = vadd.s32 %v3950_v7, %v10376_v12  ;;  %v4079_v34 = vadd.s32 %v3951_v38, %v10376_v12 }
 0x75e   : > { %13193 = vst [vmem:[#allocation32_spill] sm:$0xff] %v13192_v62  ;;  %v5483_v3 = vsel %vm11176_vm9, 65537, %v13160_v6  ;;  %v4894_v0 = vpack.c.bf16 %v4498_v14, %v4494_v35  ;;  %v3858_v28 = vsub.f32 %v10405_v56, %v10792_v23  ;;  %v13198_v7 = vmov 0  ;;  %vm11218_vm4 = vmpackc.low %vm4204_vm15, %vm4204_vm15  ;;  %v4511_v56 = vld [vmem:[%s8738_s20 + $0x788] sm:$0xff] }
 0x75f   : > { %v4898_v38 = vpack.c.bf16 %v4506_v31, %v4502_v63  ;;  %vm11222_vm10 = vcmp.ne.s16.totalorder %v6799_v52, 0  ;;  %v13203_v35 = vmov 0  ;;  %v4515_v14 = vld [vmem:[%s8738_s20 + $0x7a8] sm:$0xff]  ;;  %vm4206_vm9 = vcmp.lt.s32.totalorder %v4078_v9, 600 }
 0x760   : > { %6133 = vmatpush1.bf16.msra.mxu1 %v5906_v13  ;;  %v6798_v13 = vcombine.low %v5478_v8, %v5479_v20  ;;  %v3952_v8 = vadd.s32 528, %v13075_v5  ;;  %v4895_v20 = vpack.c.bf16 %v4499_v44, %v4495_v47  ;;  %v13204_v35 = vsel %vm11222_vm10, 4294967295, %v13203_v35  ;;  %v4514_v44 = vld [vmem:[%s8738_s20 + $0x7a0] sm:$0xff]  ;;  %v4523_v47 = vld [vmem:[%s8738_s20 + $0x7e8] sm:$0xff] }
 0x761   : > { %6860 = vmatprep.subr.msk.bf16.mxu1 %vm11150_vm2, %v4887_v22  ;;  %v5482_v22 = vsel %vm11170_vm13, 65537, %v13160_v6  ;;  %13205 = vst [vmem:[#allocation34_spill] sm:$0xff] %v13204_v35  ;;  %vm11230_vm13 = vmpackc.low %vm4205_vm12, %vm4205_vm12  ;;  %v3954_v63 = vadd.s32 544, %v13075_v5  ;;  %vm4207_vm15 = vcmp.lt.s32.totalorder %v4079_v34, 600  ;;  %v3955_v31 = vadd.s32 552, %v13075_v5  ;;  %v4534_v35 = vld [vmem:[%s8738_s20 + $0x840] sm:$0xff] }
 0x762   : > { %vm11210_vm0 = vcmp.ne.s16.totalorder %v6798_v13, 0  ;;  %v3865_v13 = vmul.f32 1.442695, %v3855_v30  ;;  %v4080_v52 = vadd.s32 %v3952_v8, %v10376_v12  ;;  %v4081_v62 = vadd.s32 %v3953_v33, %v10376_v12  ;;  %vm11254_vm12 = vmpackc.low %vm4206_vm9, %vm4206_vm9  ;;  %v4526_v33 = vld [vmem:[%s8738_s20 + $0x800] sm:$0xff] }
 0x763   : > { %v13199_v7 = vsel %vm11210_vm0, 4294967295, %v13198_v7  ;;  %v5918_v16 = vsel %vm11210_vm0, %v4894_v0, 0  ;;  %v5484_v30 = vsel %vm11218_vm4, 65537, %v13160_v6  ;;  %v5485_v34 = vsel %vm11230_vm13, 65537, %v13160_v6  ;;  %vm11262_vm4 = vmpackc.low %vm4207_vm15, %vm4207_vm15 }
 0x764   : > { %6135 = vmatpush1.bf16.msra.mxu1 %v5910_v46  ;;  %13200 = vst [vmem:[#allocation33_spill] sm:$0xff] %v13199_v7  ;;  %v13210_v0 = vmov 0  ;;  %8229 = vpow2.f32 %v3865_v13  ;;  %vm4208_vm13 = vcmp.lt.s32.totalorder %v4080_v52, 600  ;;  %v4083_v9 = vadd.s32 %v3955_v31, %v10376_v12  ;;  %v4518_v46 = vld [vmem:[%s8738_s20 + $0x7c0] sm:$0xff]  ;;  %v4539_v31 = vld [vmem:[%s8738_s20 + $0x868] sm:$0xff] }
 0x765   : > { %6861 = vmatprep.subr.msk.bf16.mxu1 %vm11156_vm1, %v4891_v50  ;;  %v6800_v50 = vcombine.low %v5482_v22, %v5483_v3  ;;  %v4899_v22 = vpack.c.bf16 %v4507_v48, %v4503_v37  ;;  %v3871_v3 = vmul.f32 1.442695, %v3858_v28  ;;  %v4902_v28 = vpack.c.bf16 %v4514_v44, %v4510_v4  ;;  %vm11284_vm15 = vmpackc.low %vm4208_vm13, %vm4208_vm13  ;;  %v4538_v7 = vld [vmem:[%s8738_s20 + $0x860] sm:$0xff] }
 0x766   : > { %v4082_v37 = vadd.s32 %v3954_v63, %v10376_v12  ;;  %v3956_v48 = vadd.s32 560, %v13075_v5  ;;  %vm4209_vm9 = vcmp.lt.s32.totalorder %v4081_v62, 600  ;;  %v5486_v63 = vsel %vm11254_vm12, 65537, %v13160_v6 }
 0x767   : > { %8231 = vpow2.f32 %v3871_v3  ;;  %v5487_v4 = vsel %vm11262_vm4, 65537, %v13160_v6  ;;  %v3958_v62 = vadd.s32 576, %v13075_v5  ;;  %vm11289_vm12 = vmpackc.low %vm4209_vm9, %vm4209_vm9  ;;  %vm4211_vm1 = vcmp.lt.s32.totalorder %v4083_v9, 600 }
 0x768   : > { %6137 = vmatpush1.bf16.msra.mxu1 %v5914_v19  ;;  %v5922_v19 = vsel %vm11222_vm10, %v4898_v38, 0  ;;  %v6801_v38 = vcombine.low %v5484_v30, %v5485_v34  ;;  %v13219_v30 = vmov 0  ;;  %v4527_v34 = vld [vmem:[%s8738_s20 + $0x808] sm:$0xff]  ;;  %v6802_v8 = vcombine.low %v5486_v63, %v5487_v4  ;;  %vm11321_vm9 = vmpackc.low %vm4211_vm1, %vm4211_vm1 }
 0x769   : > { %6862 = vmatprep.subr.msk.bf16.mxu1 %vm11210_vm0, %v4895_v20  ;;  %v4903_v20 = vpack.c.bf16 %v4515_v14, %v4511_v56  ;;  %vm11258_vm0 = vcmp.ne.s16.totalorder %v6800_v50, 0  ;;  %v4522_v56 = vld [vmem:[%s8738_s20 + $0x7e0] sm:$0xff]  ;;  %v3957_v14 = vadd.s32 568, %v13075_v5  ;;  %v4519_v50 = vld [vmem:[%s8738_s20 + $0x7c8] sm:$0xff]  ;;  %v13225_v4 = vmov 0 }
 0x76a   : > { %v13211_v0 = vsel %vm11258_vm0, 4294967295, %v13210_v0  ;;  %v5926_v44 = vsel %vm11258_vm0, %v4902_v28, 0  ;;  %v4906_v52 = vpack.c.bf16 %v4522_v56, %v4518_v46  ;;  %v4907_v3 = vpack.c.bf16 %v4523_v47, %v4519_v50  ;;  %v4530_v46 = vld [vmem:[%s8738_s20 + $0x820] sm:$0xff] }
 0x76b   : > { %13212 = vst [vmem:[#allocation35_spill] sm:$0xff] %v13211_v0  ;;  %vm11297_vm4 = vcmp.ne.s16.totalorder %v6801_v38, 0  ;;  %v4085_v28 = vadd.s32 %v3957_v14, %v10376_v12  ;;  %v5488_v38 = vsel %vm11284_vm15, 65537, %v13160_v6  ;;  %v5489_v56 = vsel %vm11289_vm12, 65537, %v13160_v6 }
 0x76c   : > { %6139 = vmatpush1.bf16.msra.mxu1 %v5918_v16  ;;  %v4084_v16 = vadd.s32 %v3956_v48, %v10376_v12  ;;  %v13220_v30 = vsel %vm11297_vm4, 4294967295, %v13219_v30  ;;  %v4086_v14 = vadd.s32 %v3958_v62, %v10376_v12  ;;  %v3961_v50 = vadd.s32 600, %v13075_v5  ;;  %v4535_v62 = vld [vmem:[%s8738_s20 + $0x848] sm:$0xff] }
 0x76d   : > { %6863 = vmatprep.subr.msk.bf16.mxu1 %vm11222_vm10, %v4899_v22  ;;  %vm4210_vm10 = vcmp.lt.s32.totalorder %v4082_v37, 600  ;;  %v3959_v22 = vadd.s32 584, %v13075_v5  ;;  %v5930_v47 = vsel %vm11297_vm4, %v4906_v52, 0  ;;  %vm11332_vm1 = vcmp.ne.s16.totalorder %v6802_v8, 0  ;;  %v4542_v37 = vld [vmem:[%s8738_s20 + $0x880] sm:$0xff] }
 0x76e   : > { %vm11308_vm13 = vmpackc.low %vm4210_vm10, %vm4210_vm10  ;;  %vm4212_vm10 = vcmp.lt.s32.totalorder %v4084_v16, 600  ;;  %v13226_v4 = vsel %vm11332_vm1, 4294967295, %v13225_v4  ;;  %v4910_v13 = vpack.c.bf16 %v4530_v46, %v4526_v33  ;;  %vm4213_vm15 = vcmp.lt.s32.totalorder %v4085_v28, 600  ;;  %v8230_v0 = vpop.eup %8229  ;;  %v4554_v46 = vld [vmem:[%s8738_s20 + $0x8e0] sm:$0xff] }
 0x76f   : > { %v4087_v63 = vadd.s32 %v3959_v22, %v10376_v12  ;;  %v5490_v52 = vsel %vm11308_vm13, 65537, %v13160_v6  ;;  %v5491_v22 = vsel %vm11321_vm9, 65537, %v13160_v6  ;;  %vm11349_vm12 = vmpackc.low %vm4212_vm10, %vm4212_vm10  ;;  %v4089_v8 = vadd.s32 %v3961_v50, %v10376_v12  ;;  %v4546_v50 = vld [vmem:[%s8738_s20 + $0x8a0] sm:$0xff] }
 0x770   : > { %6141 = vmatpush1.bf16.msra.mxu1 %v5922_v19  ;;  %v4531_v19 = vld [vmem:[%s8738_s20 + $0x828] sm:$0xff]  ;;  %v3962_v28 = vadd.s32 608, %v13075_v5  ;;  %v4915_v33 = vpack.c.bf16 %v4539_v31, %v4535_v62  ;;  %vm11355_vm13 = vmpackc.low %vm4213_vm15, %vm4213_vm15  ;;  %v3963_v16 = vadd.s32 616, %v13075_v5  ;;  %v11360_v48 = vpack.c.bf16 %v8230_v0, %v8230_v0 }
 0x771   : > { %6864 = vmatprep.subr.msk.bf16.mxu1 %vm11258_vm0, %v4903_v20  ;;  %v3960_v20 = vadd.s32 592, %v13075_v5  ;;  %v4911_v9 = vpack.c.bf16 %v4531_v19, %v4527_v34  ;;  %v8232_v34 = vpop.eup %8231  ;;  %v13233_v62 = vmov 0  ;;  %v4543_v31 = vld [vmem:[%s8738_s20 + $0x888] sm:$0xff]  ;;  %v4550_v19 = vld [vmem:[%s8738_s20 + $0x8c0] sm:$0xff] }
 0x772   : > { %13231 = vst [vmem:[#allocation36_spill] sm:$0xff] %v11360_v48  ;;  %v4547_v0 = vld [vmem:[%s8738_s20 + $0x8a8] sm:$0xff] }
 0x774   : > { %6143 = vmatpush1.bf16.msra.mxu1 %v5926_v44  ;;  %v6803_v44 = vcombine.low %v5488_v38, %v5489_v56  ;;  %v4914_v38 = vpack.c.bf16 %v4538_v7, %v4534_v35  ;;  %v6804_v56 = vcombine.low %v5490_v52, %v5491_v22  ;;  %v4551_v35 = vld [vmem:[%s8738_s20 + $0x8c8] sm:$0xff]  ;;  %v3964_v52 = vadd.s32 624, %v13075_v5 }
 0x775   : > { %6865 = vmatprep.subr.msk.bf16.mxu1 %vm11297_vm4, %v4907_v3  ;;  %v4088_v3 = vadd.s32 %v3960_v20, %v10376_v12  ;;  %vm4214_vm4 = vcmp.lt.s32.totalorder %v4086_v14, 600  ;;  %v5934_v20 = vsel %vm11332_vm1, %v4910_v13, 0  ;;  %v5493_v13 = vsel %vm11355_vm13, 65537, %v13160_v6 }
 0x776   : > { %vm11370_vm10 = vcmp.ne.s16.totalorder %v6803_v44, 0  ;;  %vm11381_vm15 = vmpackc.low %vm4214_vm4, %vm4214_vm4  ;;  %v4090_v14 = vadd.s32 %v3962_v28, %v10376_v12  ;;  %v4918_v22 = vpack.c.bf16 %v4546_v50, %v4542_v37  ;;  %vm11408_vm4 = vcmp.ne.s16.totalorder %v6804_v56, 0  ;;  %v4558_v44 = vld [vmem:[%s8738_s20 + $0x900] sm:$0xff] }
 0x777   : > { %v13234_v62 = vsel %vm11370_vm10, 4294967295, %v13233_v62  ;;  %vm4216_vm9 = vcmp.lt.s32.totalorder %v4088_v3, 600  ;;  %v5938_v28 = vsel %vm11370_vm10, %v4914_v38, 0  ;;  %v13241_v37 = vmov 0 }
 0x778   : > { %6145 = vmatpush1.bf16.msra.mxu1 %v5930_v47  ;;  %v11368_v47 = vpack.c.bf16 %v8232_v34, %v8232_v34  ;;  %13235 = vst [vmem:[#allocation38_spill] sm:$0xff] %v13234_v62  ;;  %v4555_v34 = vld [vmem:[%s8738_s20 + $0x8e8] sm:$0xff]  ;;  %v13242_v37 = vsel %vm11408_vm4, 4294967295, %v13241_v37  ;;  %v5942_v7 = vsel %vm11408_vm4, %v4918_v22, 0  ;;  %v4562_v62 = vld [vmem:[%s8738_s20 + $0x920] sm:$0xff] }
 0x779   : > { %6866 = vmatprep.subr.msk.bf16.mxu1 %vm11332_vm1, %v4911_v9  ;;  %v5492_v9 = vsel %vm11349_vm12, 65537, %v13160_v6  ;;  %vm13238_vm1 = vcmp.lt.s32.totalorder %v4087_v63, 600  ;;  %vm4217_vm12 = vcmp.lt.s32.totalorder %v4089_v8, 600  ;;  %v4091_v63 = vadd.s32 %v3963_v16, %v10376_v12  ;;  %13243 = vst [vmem:[#allocation39_spill] sm:$0xff] %v13242_v37 }
 0x77a   : > { %13232 = vst [vmem:[#allocation37_spill] sm:$0xff] %v11368_v47  ;;  %vm11392_vm0 = vmpackc.low %vm13238_vm1, %vm13238_vm1  ;;  %v6805_v50 = vcombine.low %v5492_v9, %v5493_v13  ;;  %v4923_v3 = vpack.c.bf16 %v4555_v34, %v4551_v35  ;;  %v4092_v9 = vadd.s32 %v3964_v52, %v10376_v12  ;;  %v4563_v13 = vld [vmem:[%s8738_s20 + $0x928] sm:$0xff]  ;;  %v3967_v34 = vadd.s32 648, %v13075_v5 }
 0x77b   : > { %6147 = vmatmul.mubr.bf16.vlgmr.msra.gmra.mrb[92].mxu1 %v11360_v48  ;;  %v3965_v48 = vadd.s32 632, %v13075_v5  ;;  %vm11414_vm1 = vmpackc.low %vm4216_vm9, %vm4216_vm9  ;;  %v5495_v38 = vsel %vm11392_vm0, 65537, %v13160_v6  ;;  %vm4218_vm9 = vcmp.lt.s32.totalorder %v4090_v14, 600  ;;  %vm4219_vm0 = vcmp.lt.s32.totalorder %v4091_v63, 600  ;;  %v4570_v14 = vld [vmem:[%s8738_s20 + $0x960] sm:$0xff] }
 0x77c   : > { %6156 = vmatpush1.bf16.msra.mxu1 %v5934_v20  ;;  %6187 = vmatprep.mubr.bf16.mxu1 %v11368_v47  ;;  %v4919_v20 = vpack.c.bf16 %v4547_v0, %v4543_v31  ;;  %vm11426_vm13 = vmpackc.low %vm4217_vm12, %vm4217_vm12  ;;  %v4922_v31 = vpack.c.bf16 %v4554_v46, %v4550_v19  ;;  %v4559_v0 = vld [vmem:[%s8738_s20 + $0x908] sm:$0xff]  ;;  %v3966_v47 = vadd.s32 640, %v13075_v5  ;;  %v5496_v52 = vsel %vm11414_vm1, 65537, %v13160_v6 }
 0x77d   : > { %6867 = vmatprep.subr.msk.bf16.mxu1 %vm11370_vm10, %v4915_v33  ;;  %v5494_v33 = vsel %vm11381_vm15, 65537, %v13160_v6  ;;  %v4093_v8 = vadd.s32 %v3965_v48, %v10376_v12  ;;  %v5497_v22 = vsel %vm11426_vm13, 65537, %v13160_v6  ;;  %vm11448_vm15 = vcmp.ne.s16.totalorder %v6805_v50, 0  ;;  %vm11454_vm12 = vmpackc.low %vm4218_vm9, %vm4218_vm9  ;;  %v4571_v50 = vld [vmem:[%s8738_s20 + $0x968] sm:$0xff] }
 0x77e   : > { %v6806_v35 = vcombine.low %v5494_v33, %v5495_v38  ;;  %v13248_v48 = vmov 0  ;;  %v4927_v46 = vpack.c.bf16 %v4563_v13, %v4559_v0  ;;  %v4926_v63 = vpack.c.bf16 %v4562_v62, %v4558_v44  ;;  %vm11459_vm1 = vmpackc.low %vm4219_vm0, %vm4219_vm0  ;;  %v4566_v38 = vld [vmem:[%s8738_s20 + $0x940] sm:$0xff]  ;;  %v4575_v19 = vld [vmem:[%s8738_s20 + $0x988] sm:$0xff] }
 0x77f   : > { %v13249_v48 = vsel %vm11448_vm15, 4294967295, %v13248_v48  ;;  %vm4220_vm13 = vcmp.lt.s32.totalorder %v4092_v9, 600  ;;  %v3968_v16 = vadd.s32 656, %v13075_v5  ;;  %v6807_v33 = vcombine.low %v5496_v52, %v5497_v22 }
 0x780   : > { %6158 = vmatpush1.bf16.msra.mxu1 %v5938_v28  ;;  %13250 = vst [vmem:[#allocation40_spill] sm:$0xff] %v13249_v48  ;;  %v4567_v28 = vld [vmem:[%s8738_s20 + $0x948] sm:$0xff]  ;;  %v4094_v56 = vadd.s32 %v3966_v47, %v10376_v12  ;;  %v3969_v37 = vadd.s32 664, %v13075_v5  ;;  %v5946_v62 = vsel %vm11448_vm15, %v4922_v31, 0  ;;  %vm11473_vm9 = vcmp.ne.s16.totalorder %v6806_v35, 0  ;;  %vm11487_vm0 = vmpackc.low %vm4220_vm13, %vm4220_vm13  ;;  %v4586_v48 = vld [vmem:[%s8738_s20 + $0x9e0] sm:$0xff] }
 0x781   : > { %6868 = vmatprep.subr.msk.bf16.mxu1 %vm11408_vm4, %v4919_v20  ;;  %vm4221_vm4 = vcmp.lt.s32.totalorder %v4093_v8, 600  ;;  %v13255_v0 = vmov 0  ;;  %v3970_v13 = vadd.s32 672, %v13075_v5  ;;  %v5498_v47 = vsel %vm11454_vm12, 65537, %v13160_v6 }
 0x782   : > { %v13256_v0 = vsel %vm11473_vm9, 4294967295, %v13255_v0  ;;  %v3971_v44 = vadd.s32 680, %v13075_v5  ;;  %v4931_v8 = vpack.c.bf16 %v4571_v50, %v4567_v28  ;;  %v4930_v35 = vpack.c.bf16 %v4570_v14, %v4566_v38  ;;  %v4579_v28 = vld [vmem:[%s8738_s20 + $0x9a8] sm:$0xff]  ;;  %v4574_v38 = vld [vmem:[%s8738_s20 + $0x980] sm:$0xff] }
 0x783   : > { %13257 = vst [vmem:[#allocation41_spill] sm:$0xff] %v13256_v0  ;;  %v4096_v22 = vadd.s32 %v3968_v16, %v10376_v12  ;;  %v5950_v9 = vsel %vm11473_vm9, %v4926_v63, 0  ;;  %vm11499_vm12 = vcmp.ne.s16.totalorder %v6807_v33, 0  ;;  %v4097_v20 = vadd.s32 %v3969_v37, %v10376_v12  ;;  %v4578_v16 = vld [vmem:[%s8738_s20 + $0x9a0] sm:$0xff] }
 0x784   : > { %6160 = vmatpush1.bf16.msra.mxu1 %v5942_v7  ;;  %v4095_v7 = vadd.s32 %v3967_v34, %v10376_v12  ;;  %v13262_v34 = vmov 0  ;;  %v4098_v14 = vadd.s32 %v3970_v13, %v10376_v12  ;;  %v3972_v63 = vadd.s32 688, %v13075_v5  ;;  %v4582_v0 = vld [vmem:[%s8738_s20 + $0x9c0] sm:$0xff] }
 0x785   : > { %6869 = vmatprep.subr.msk.bf16.mxu1 %vm11448_vm15, %v4923_v3  ;;  %v5499_v3 = vsel %vm11459_vm1, 65537, %v13160_v6  ;;  %vm11492_vm15 = vmpackc.low %vm4221_vm4, %vm4221_vm4  ;;  %v13263_v34 = vsel %vm11499_vm12, 4294967295, %v13262_v34  ;;  %vm4222_vm1 = vcmp.lt.s32.totalorder %v4094_v56, 600  ;;  %v5500_v33 = vsel %vm11487_vm0, 65537, %v13160_v6 }
 0x786   : > { %v6808_v50 = vcombine.low %v5498_v47, %v5499_v3  ;;  %vm4223_vm4 = vcmp.lt.s32.totalorder %v4095_v7, 600  ;;  %v5501_v37 = vsel %vm11492_vm15, 65537, %v13160_v6  ;;  %v3973_v56 = vadd.s32 696, %v13075_v5  ;;  %vm11520_vm13 = vmpackc.low %vm4222_vm1, %vm4222_vm1  ;;  %v4583_v3 = vld [vmem:[%s8738_s20 + $0x9c8] sm:$0xff] }
 0x787   : > { %v5954_v7 = vsel %vm11499_vm12, %v4930_v35, 0  ;;  %v4935_v13 = vpack.c.bf16 %v4579_v28, %v4575_v19  ;;  %v4934_v47 = vpack.c.bf16 %v4578_v16, %v4574_v38  ;;  %vm11527_vm0 = vmpackc.low %vm4223_vm4, %vm4223_vm4  ;;  %v6809_v52 = vcombine.low %v5500_v33, %v5501_v37 }
 0x788   : > { %6162 = vmatpush1.bf16.msra.mxu1 %v5946_v62  ;;  %vm4226_vm1 = vcmp.lt.s32.totalorder %v4098_v14, 600  ;;  %v3974_v35 = vadd.s32 704, %v13075_v5  ;;  %v13268_v19 = vmov 0  ;;  %vm13271_vm4 = vcmp.lt.s32.totalorder %v4096_v22, 600  ;;  %v4590_v62 = vld [vmem:[%s8738_s20 + $0xa00] sm:$0xff] }
 0x789   : > { %6870 = vmatprep.subr.msk.bf16.mxu1 %vm11473_vm9, %v4927_v46  ;;  %v4099_v46 = vadd.s32 %v3971_v44, %v10376_v12  ;;  %v4587_v44 = vld [vmem:[%s8738_s20 + $0x9e8] sm:$0xff]  ;;  %vm11538_vm9 = vcmp.ne.s16.totalorder %v6808_v50, 0  ;;  %vm11544_vm15 = vmpackc.low %vm13271_vm4, %vm13271_vm4  ;;  %v3975_v38 = vadd.s32 712, %v13075_v5  ;;  %v5502_v16 = vsel %vm11520_vm13, 65537, %v13160_v6 }
 0x78a   : > { %v13269_v19 = vsel %vm11538_vm9, 4294967295, %v13268_v19  ;;  %v5503_v22 = vsel %vm11527_vm0, 65537, %v13160_v6  ;;  %vm13274_vm10 = vcmp.lt.s32.totalorder %v4097_v20, 600  ;;  %v4939_v14 = vpack.c.bf16 %v4587_v44, %v4583_v3  ;;  %vm11562_vm2 = vmpackc.low %vm4226_vm1, %vm4226_vm1  ;;  %v4603_v50 = vld [vmem:[%s8738_s20 + $0xa68] sm:$0xff] }
 0x78b   : > { %13270 = vst [vmem:[#allocation42_spill] sm:$0xff] %v13269_v19  ;;  %vm11558_vm4 = vmpackc.low %vm13274_vm10, %vm13274_vm10  ;;  %v5958_v37 = vsel %vm11538_vm9, %v4934_v47, 0  ;;  %vm11570_vm13 = vcmp.ne.s16.totalorder %v6809_v52, 0  ;;  %v13279_v20 = vmov 0  ;;  %v3976_v3 = vadd.s32 720, %v13075_v5  ;;  %v4602_v19 = vld [vmem:[%s8738_s20 + $0xa60] sm:$0xff] }
 0x78c   : > { %6164 = vmatpush1.bf16.msra.mxu1 %v5950_v9  ;;  %v4100_v9 = vadd.s32 %v3972_v63, %v10376_v12  ;;  %v4938_v63 = vpack.c.bf16 %v4586_v48, %v4582_v0  ;;  %v13280_v20 = vsel %vm11570_vm13, 4294967295, %v13279_v20  ;;  %v4595_v48 = vld [vmem:[%s8738_s20 + $0xa28] sm:$0xff]  ;;  %v6810_v0 = vcombine.low %v5502_v16, %v5503_v22 }
 0x78d   : > { %6871 = vmatprep.subr.msk.bf16.mxu1 %vm11499_vm12, %v4931_v8  ;;  %vm4227_vm12 = vcmp.lt.s32.totalorder %v4099_v46, 600  ;;  %v4101_v8 = vadd.s32 %v3973_v56, %v10376_v12  ;;  %13281 = vst [vmem:[#allocation43_spill] sm:$0xff] %v13280_v20  ;;  %v4591_v46 = vld [vmem:[%s8738_s20 + $0xa08] sm:$0xff]  ;;  %v4102_v56 = vadd.s32 %v3974_v35, %v10376_v12  ;;  %v5504_v47 = vsel %vm11544_vm15, 65537, %v13160_v6 }
 0x78e   : > { %vm5379_vm10 = vmpackc.low %vm4227_vm12, %vm4227_vm12  ;;  %vm4228_vm0 = vcmp.lt.s32.totalorder %v4100_v9, 600  ;;  %v5505_v31 = vsel %vm11558_vm4, 65537, %v13160_v6  ;;  %v3977_v44 = vadd.s32 728, %v13075_v5  ;;  %v5506_v52 = vsel %vm11562_vm2, 65537, %v13160_v6  ;;  %v4599_v16 = vld [vmem:[%s8738_s20 + $0xa48] sm:$0xff] }
 0x78f   : > { %vm4229_vm1 = vcmp.lt.s32.totalorder %v4101_v8, 600  ;;  %v5507_v9 = vsel %vm5379_vm10, 65537, %v13160_v6  ;;  %vm11592_vm12 = vmpackc.low %vm4228_vm0, %vm4228_vm0  ;;  %v5962_v28 = vsel %vm11570_vm13, %v4938_v63, 0  ;;  %v4943_v8 = vpack.c.bf16 %v4595_v48, %v4591_v46  ;;  %v4606_v46 = vld [vmem:[%s8738_s20 + $0xa80] sm:$0xff]  ;;  %v4611_v35 = vld [vmem:[%s8738_s20 + $0xaa8] sm:$0xff] }
 0x790   : > { %6166 = vmatpush1.bf16.msra.mxu1 %v5954_v7  ;;  %v4594_v7 = vld [vmem:[%s8738_s20 + $0xa20] sm:$0xff]  ;;  %vm5381_vm15 = vmpackc.low %vm4229_vm1, %vm4229_vm1  ;;  %vm4230_vm4 = vcmp.lt.s32.totalorder %v4102_v56, 600  ;;  %vm11601_vm2 = vcmp.ne.s16.totalorder %v6810_v0, 0  ;;  %v13284_v22 = vmov 0  ;;  %v6811_v33 = vcombine.low %v5504_v47, %v5505_v31  ;;  %v4623_v31 = vld [vmem:[%s8738_s20 + $0xb08] sm:$0xff] }
 0x791   : > { %6872 = vmatprep.subr.msk.bf16.mxu1 %vm11538_vm9, %v4935_v13  ;;  %v4103_v13 = vadd.s32 %v3975_v38, %v10376_v12  ;;  %v4942_v38 = vpack.c.bf16 %v4594_v7, %v4590_v62  ;;  %v13285_v22 = vsel %vm11601_vm2, 4294967295, %v13284_v22  ;;  %v6812_v20 = vcombine.low %v5506_v52, %v5507_v9  ;;  %v4610_v48 = vld [vmem:[%s8738_s20 + $0xaa0] sm:$0xff]  ;;  %vm11616_vm0 = vmpackc.low %vm4230_vm4, %vm4230_vm4  ;;  %v4607_v9 = vld [vmem:[%s8738_s20 + $0xa88] sm:$0xff] }
 0x792   : > { %13286 = vst [vmem:[#allocation44_spill] sm:$0xff] %v13285_v22  ;;  %v4105_v63 = vadd.s32 %v3977_v44, %v10376_v12  ;;  %v5508_v56 = vsel %vm11592_vm12, 65537, %v13160_v6  ;;  %v5509_v0 = vsel %vm5381_vm15, 65537, %v13160_v6  ;;  %v3978_v7 = vadd.s32 736, %v13075_v5 }
 0x793   : > { %vm4231_vm10 = vcmp.lt.s32.totalorder %v4103_v13, 600  ;;  %v5966_v13 = vsel %vm11601_vm2, %v4942_v38, 0  ;;  %v3979_v44 = vadd.s32 744, %v13075_v5  ;;  %vm11630_vm12 = vcmp.ne.s16.totalorder %v6811_v33, 0  ;;  %v4615_v38 = vld [vmem:[%s8738_s20 + $0xac8] sm:$0xff] }
 0x794   : > { %6168 = vmatpush1.bf16.msra.mxu1 %v5958_v37  ;;  %v4598_v37 = vld [vmem:[%s8738_s20 + $0xa40] sm:$0xff]  ;;  %vm11625_vm1 = vmpackc.low %vm4231_vm10, %vm4231_vm10  ;;  %v13291_v52 = vmov 0  ;;  %vm11636_vm4 = vcmp.ne.s16.totalorder %v6812_v20, 0  ;;  %vm4233_vm10 = vcmp.lt.s32.totalorder %v4105_v63, 600  ;;  %v5510_v33 = vsel %vm11616_vm0, 65537, %v13160_v6 }
 0x795   : > { %6873 = vmatprep.subr.msk.bf16.mxu1 %vm11570_vm13, %v4939_v14  ;;  %v4104_v14 = vadd.s32 %v3976_v3, %v10376_v12  ;;  %v4947_v3 = vpack.c.bf16 %v4603_v50, %v4599_v16  ;;  %v4946_v47 = vpack.c.bf16 %v4602_v19, %v4598_v37  ;;  %v13292_v52 = vsel %vm11630_vm12, 4294967295, %v13291_v52  ;;  %v4619_v19 = vld [vmem:[%s8738_s20 + $0xae8] sm:$0xff]  ;;  %v4614_v50 = vld [vmem:[%s8738_s20 + $0xac0] sm:$0xff] }
 0x796   : > { %13293 = vst [vmem:[#allocation45_spill] sm:$0xff] %v13292_v52  ;;  %v6813_v16 = vcombine.low %v5508_v56, %v5509_v0  ;;  %v4618_v37 = vld [vmem:[%s8738_s20 + $0xae0] sm:$0xff]  ;;  %v5511_v20 = vsel %vm11625_vm1, 65537, %v13160_v6  ;;  %v4106_v22 = vadd.s32 %v3978_v7, %v10376_v12  ;;  %v4107_v56 = vadd.s32 %v3979_v44, %v10376_v12  ;;  %vm5385_vm1 = vmpackc.low %vm4233_vm10, %vm4233_vm10 }
 0x797   : > { %vm4232_vm15 = vcmp.lt.s32.totalorder %v4104_v14, 600  ;;  %v5970_v63 = vsel %vm11630_vm12, %v4946_v47, 0  ;;  %v3981_v0 = vadd.s32 760, %v13075_v5  ;;  %v4955_v62 = vpack.c.bf16 %v4619_v19, %v4615_v38  ;;  %v4627_v47 = vld [vmem:[%s8738_s20 + $0xb28] sm:$0xff]  ;;  %v4626_v44 = vld [vmem:[%s8738_s20 + $0xb20] sm:$0xff] }
 0x798   : > { %6170 = vmatpush1.bf16.msra.mxu1 %v5962_v28  ;;  %v13294_v28 = vmov 0  ;;  %vm5384_vm0 = vmpackc.low %vm4232_vm15, %vm4232_vm15  ;;  %v6814_v14 = vcombine.low %v5510_v33, %v5511_v20  ;;  %vm4234_vm15 = vcmp.lt.s32.totalorder %v4106_v22, 600  ;;  %v3982_v38 = vadd.s32 768, %v13075_v5  ;;  %v4631_v33 = vld [vmem:[%s8738_s20 + $0xb48] sm:$0xff] }
 0x799   : > { %6874 = vmatprep.subr.msk.bf16.mxu1 %vm11601_vm2, %v4943_v8  ;;  %v13295_v28 = vsel %vm11636_vm4, 4294967295, %v13294_v28  ;;  %v4950_v8 = vpack.c.bf16 %v4610_v48, %v4606_v46  ;;  %v3980_v46 = vadd.s32 752, %v13075_v5  ;;  %v4951_v48 = vpack.c.bf16 %v4611_v35, %v4607_v9  ;;  %v4622_v9 = vld [vmem:[%s8738_s20 + $0xb00] sm:$0xff]  ;;  %v4635_v20 = vld [vmem:[%s8738_s20 + $0xb68] sm:$0xff] }
 0x79a   : > { %13296 = vst [vmem:[#allocation46_spill] sm:$0xff] %v13295_v28  ;;  %vm11662_vm2 = vcmp.ne.s16.totalorder %v6813_v16, 0  ;;  %v5512_v35 = vsel %vm5384_vm0, 65537, %v13160_v6  ;;  %v5513_v19 = vsel %vm5385_vm1, 65537, %v13160_v6  ;;  %vm4235_vm10 = vcmp.lt.s32.totalorder %v4107_v56, 600  ;;  %v4630_v28 = vld [vmem:[%s8738_s20 + $0xb40] sm:$0xff]  ;;  %vm11690_vm1 = vmpackc.low %vm4234_vm15, %vm4234_vm15 }
 0x79b   : > { %v5974_v7 = vsel %vm11636_vm4, %v4950_v8, 0  ;;  %v4108_v8 = vadd.s32 %v3980_v46, %v10376_v12  ;;  %v4109_v16 = vadd.s32 %v3981_v0, %v10376_v12  ;;  %vm11682_vm0 = vcmp.ne.s16.totalorder %v6814_v14, 0 }
 0x79c   : > { %6172 = vmatpush1.bf16.msra.mxu1 %v5966_v13  ;;  %v13297_v13 = vmov 0  ;;  %v13300_v46 = vmov 0  ;;  %v4958_v52 = vpack.c.bf16 %v4626_v44, %v4622_v9  ;;  %v3857_v0 = vsub.f32 %v10403_v18, %v10792_v23  ;;  %v4639_v44 = vld [vmem:[%s8738_s20 + $0xb88] sm:$0xff] }
 0x79d   : > { %6875 = vmatprep.subr.msk.bf16.mxu1 %vm11630_vm12, %v4947_v3  ;;  %v13298_v13 = vsel %vm11662_vm2, 4294967295, %v13297_v13  ;;  %v4954_v3 = vpack.c.bf16 %v4618_v37, %v4614_v50  ;;  %v3983_v50 = vadd.s32 776, %v13075_v5  ;;  %v4959_v37 = vpack.c.bf16 %v4627_v47, %v4623_v31 }
 0x79e   : > { %13299 = vst [vmem:[#allocation47_spill] sm:$0xff] %v13298_v13  ;;  %v13301_v46 = vsel %vm11682_vm0, 4294967295, %v13300_v46  ;;  %vm4236_vm12 = vcmp.lt.s32.totalorder %v4108_v8, 600  ;;  %v4110_v31 = vadd.s32 %v3982_v38, %v10376_v12  ;;  %v3984_v47 = vadd.s32 784, %v13075_v5  ;;  %v4643_v8 = vld [vmem:[%s8738_s20 + $0xba8] sm:$0xff] }
 0x79f   : > { %13302 = vst [vmem:[#allocation48_spill] sm:$0xff] %v13301_v46  ;;  %v4111_v22 = vadd.s32 %v3983_v50, %v10376_v12  ;;  %v3860_v18 = vsub.f32 %v10427_v26, %v10792_v23  ;;  %v4963_v14 = vpack.c.bf16 %v4635_v20, %v4631_v33  ;;  %v3869_v26 = vmul.f32 1.442695, %v3857_v0  ;;  %v4642_v33 = vld [vmem:[%s8738_s20 + $0xba0] sm:$0xff] }
 0x7a0   : > { %6174 = vmatpush1.bf16.msra.mxu1 %v5970_v63  ;;  %v5978_v63 = vsel %vm11662_vm2, %v4954_v3, 0  ;;  %v6815_v3 = vcombine.low %v5512_v35, %v5513_v19  ;;  %v5982_v35 = vsel %vm11682_vm0, %v4958_v52, 0  ;;  %v13307_v50 = vmov 0 }
 0x7a1   : > { %6876 = vmatprep.subr.msk.bf16.mxu1 %vm11636_vm4, %v4951_v48  ;;  %v4634_v48 = vld [vmem:[%s8738_s20 + $0xb60] sm:$0xff]  ;;  %vm5387_vm4 = vmpackc.low %vm4235_vm10, %vm4235_vm10  ;;  %vm4238_vm9 = vcmp.lt.s32.totalorder %v4110_v31, 600  ;;  %v4112_v52 = vadd.s32 %v3984_v47, %v10376_v12  ;;  %v3986_v20 = vadd.s32 800, %v13075_v5  ;;  %v3987_v56 = vadd.s32 808, %v13075_v5 }
 0x7a2   : > { %v4962_v9 = vpack.c.bf16 %v4634_v48, %v4630_v28  ;;  %v5515_v38 = vsel %vm5387_vm4, 65537, %v13160_v6  ;;  %vm11712_vm10 = vmpackc.low %vm4236_vm12, %vm4236_vm12  ;;  %vm11716_vm15 = vcmp.ne.s16.totalorder %v6815_v3, 0  ;;  %v4638_v28 = vld [vmem:[%s8738_s20 + $0xb80] sm:$0xff]  ;;  %vm4239_vm12 = vcmp.lt.s32.totalorder %v4111_v22, 600 }
 0x7a3   : > { %v13308_v50 = vsel %vm11716_vm15, 4294967295, %v13307_v50  ;;  %v4967_v0 = vpack.c.bf16 %v4643_v8, %v4639_v44  ;;  %v4966_v3 = vpack.c.bf16 %v4642_v33, %v4638_v28  ;;  %v5516_v31 = vsel %vm11712_vm10, 65537, %v13160_v6  ;;  %vm5391_vm4 = vmpackc.low %vm4239_vm12, %vm4239_vm12 }
 0x7a4   : > { %6176 = vmatpush1.bf16.msra.mxu1 %v5974_v7  ;;  %v3985_v7 = vadd.s32 792, %v13075_v5  ;;  %13309 = vst [vmem:[#allocation49_spill] sm:$0xff] %v13308_v50  ;;  %8233 = vpow2.f32 %v3869_v26  ;;  %v5986_v22 = vsel %vm11716_vm15, %v4962_v9, 0  ;;  %v4114_v44 = vadd.s32 %v3986_v20, %v10376_v12  ;;  %v4663_v50 = vld [vmem:[%s8738_s20 + $0xc48] sm:$0xff] }
 0x7a5   : > { %6877 = vmatprep.subr.msk.bf16.mxu1 %vm11662_vm2, %v4955_v62  ;;  %v5514_v62 = vsel %vm11690_vm1, 65537, %v13160_v6  ;;  %vm13310_vm2 = vcmp.lt.s32.totalorder %v4109_v16, 600  ;;  %vm4240_vm1 = vcmp.lt.s32.totalorder %v4112_v52, 600  ;;  %v3988_v8 = vadd.s32 816, %v13075_v5 }
 0x7a6   : > { %vm5389_vm13 = vmpackc.low %vm13310_vm2, %vm13310_vm2  ;;  %v4113_v48 = vadd.s32 %v3985_v7, %v10376_v12  ;;  %v6816_v16 = vcombine.low %v5514_v62, %v5515_v38  ;;  %v4651_v7 = vld [vmem:[%s8738_s20 + $0xbe8] sm:$0xff]  ;;  %v4646_v62 = vld [vmem:[%s8738_s20 + $0xbc0] sm:$0xff]  ;;  %v3989_v9 = vadd.s32 824, %v13075_v5  ;;  %v13313_v19 = vmov 0 }
 0x7a7   : > { %v5517_v47 = vsel %vm5389_vm13, 65537, %v13160_v6  ;;  %vm11734_vm2 = vmpackc.low %vm4238_vm9, %vm4238_vm9  ;;  %v4650_v38 = vld [vmem:[%s8738_s20 + $0xbe0] sm:$0xff]  ;;  %v5519_v33 = vsel %vm5391_vm4, 65537, %v13160_v6 }
 0x7a8   : > { %6178 = vmatpush1.bf16.msra.mxu1 %v5978_v63  ;;  %v3875_v63 = vmul.f32 1.442695, %v3860_v18  ;;  %v4647_v18 = vld [vmem:[%s8738_s20 + $0xbc8] sm:$0xff]  ;;  %vm4241_vm9 = vcmp.lt.s32.totalorder %v4113_v48, 600  ;;  %vm11750_vm13 = vcmp.ne.s16.totalorder %v6816_v16, 0  ;;  %v6817_v26 = vcombine.low %v5516_v31, %v5517_v47  ;;  %vm11758_vm10 = vmpackc.low %vm4240_vm1, %vm4240_vm1 }
 0x7a9   : > { %6878 = vmatprep.subr.msk.bf16.mxu1 %vm11682_vm0, %v4959_v37  ;;  %v13314_v19 = vsel %vm11750_vm13, 4294967295, %v13313_v19  ;;  %v4971_v28 = vpack.c.bf16 %v4651_v7, %v4647_v18  ;;  %v4970_v20 = vpack.c.bf16 %v4650_v38, %v4646_v62  ;;  %v4659_v48 = vld [vmem:[%s8738_s20 + $0xc28] sm:$0xff]  ;;  %vm11764_vm12 = vmpackc.low %vm4241_vm9, %vm4241_vm9  ;;  %v4116_v16 = vadd.s32 %v3988_v8, %v10376_v12  ;;  %v4654_v37 = vld [vmem:[%s8738_s20 + $0xc00] sm:$0xff] }
 0x7aa   : > { %8235 = vpow2.f32 %v3875_v63  ;;  %13315 = vst [vmem:[#allocation50_spill] sm:$0xff] %v13314_v19  ;;  %v4655_v63 = vld [vmem:[%s8738_s20 + $0xc08] sm:$0xff]  ;;  %v3990_v31 = vadd.s32 832, %v13075_v5  ;;  %v5990_v47 = vsel %vm11750_vm13, %v4966_v3, 0  ;;  %v4117_v18 = vadd.s32 %v3989_v9, %v10376_v12  ;;  %v4670_v9 = vld [vmem:[%s8738_s20 + $0xc80] sm:$0xff] }
 0x7ab   : > { %v3991_v7 = vadd.s32 840, %v13075_v5  ;;  %vm11778_vm4 = vcmp.ne.s16.totalorder %v6817_v26, 0  ;;  %v13320_v62 = vmov 0  ;;  %v4975_v38 = vpack.c.bf16 %v4659_v48, %v4655_v63 }
 0x7ac   : > { %6180 = vmatpush1.bf16.msra.mxu1 %v5982_v35  ;;  %v4115_v35 = vadd.s32 %v3987_v56, %v10376_v12  ;;  %v13321_v62 = vsel %vm11778_vm4, 4294967295, %v13320_v62  ;;  %v5520_v3 = vsel %vm11758_vm10, 65537, %v13160_v6  ;;  %v4118_v52 = vadd.s32 %v3990_v31, %v10376_v12 }
 0x7ad   : > { %6879 = vmatprep.subr.msk.bf16.mxu1 %vm11716_vm15, %v4963_v14  ;;  %v5518_v14 = vsel %vm11734_vm2, 65537, %v13160_v6  ;;  %vm4242_vm15 = vcmp.lt.s32.totalorder %v4114_v44, 600  ;;  %v3992_v48 = vadd.s32 848, %v13075_v5  ;;  %v5994_v44 = vsel %vm11778_vm4, %v4970_v20, 0 }
 0x7ae   : > { %vm4243_vm2 = vcmp.lt.s32.totalorder %v4115_v35, 600  ;;  %v6818_v8 = vcombine.low %v5518_v14, %v5519_v33  ;;  %v5521_v35 = vsel %vm11764_vm12, 65537, %v13160_v6  ;;  %vm11792_vm1 = vmpackc.low %vm4242_vm15, %vm4242_vm15  ;;  %v4662_v14 = vld [vmem:[%s8738_s20 + $0xc40] sm:$0xff]  ;;  %v8234_v56 = vpop.eup %8233  ;;  %vm4245_vm15 = vcmp.lt.s32.totalorder %v4117_v18, 600 }
 0x7af   : > { %v4666_v33 = vld [vmem:[%s8738_s20 + $0xc60] sm:$0xff]  ;;  %vm11798_vm9 = vmpackc.low %vm4243_vm2, %vm4243_vm2  ;;  %v6819_v31 = vcombine.low %v5520_v3, %v5521_v35  ;;  %v4120_v3 = vadd.s32 %v3992_v48, %v10376_v12  ;;  %v3994_v35 = vadd.s32 864, %v13075_v5  ;;  %v3995_v63 = vadd.s32 872, %v13075_v5 }
 0x7b0   : > { %6182 = vmatpush1.bf16.msra.mxu1 %v5986_v22  ;;  %v4658_v22 = vld [vmem:[%s8738_s20 + $0xc20] sm:$0xff]  ;;  %vm11810_vm10 = vcmp.ne.s16.totalorder %v6818_v8, 0  ;;  %v4978_v13 = vpack.c.bf16 %v4666_v33, %v4662_v14  ;;  %v5523_v20 = vsel %vm11798_vm9, 65537, %v13160_v6  ;;  %v4675_v8 = vld [vmem:[%s8738_s20 + $0xca8] sm:$0xff]  ;;  %vm11830_vm2 = vmpackc.low %vm4245_vm15, %vm4245_vm15  ;;  %v13332_v48 = vmov 0 }
 0x7b1   : > { %6880 = vmatprep.subr.msk.bf16.mxu1 %vm11750_vm13, %v4967_v0  ;;  %v4667_v0 = vld [vmem:[%s8738_s20 + $0xc68] sm:$0xff]  ;;  %v4974_v26 = vpack.c.bf16 %v4658_v22, %v4654_v37  ;;  %vm4244_vm13 = vcmp.lt.s32.totalorder %v4116_v16, 600  ;;  %v3993_v37 = vadd.s32 856, %v13075_v5  ;;  %v13326_v22 = vmov 0  ;;  %v4674_v14 = vld [vmem:[%s8738_s20 + $0xca0] sm:$0xff] }
 0x7b2   : > { %v13327_v22 = vsel %vm11810_vm10, 4294967295, %v13326_v22  ;;  %v4979_v46 = vpack.c.bf16 %v4667_v0, %v4663_v50  ;;  %vm11822_vm12 = vmpackc.low %vm4244_vm13, %vm4244_vm13  ;;  %v4671_v50 = vld [vmem:[%s8738_s20 + $0xc88] sm:$0xff]  ;;  %vm11846_vm9 = vcmp.ne.s16.totalorder %v6819_v31, 0  ;;  %v4982_v31 = vpack.c.bf16 %v4674_v14, %v4670_v9  ;;  %v4682_v0 = vld [vmem:[%s8738_s20 + $0xce0] sm:$0xff] }
 0x7b3   : > { %v5998_v16 = vsel %vm11810_vm10, %v4974_v26, 0  ;;  %v4121_v33 = vadd.s32 %v3993_v37, %v10376_v12  ;;  %v13333_v48 = vsel %vm11846_vm9, 4294967295, %v13332_v48  ;;  %v5524_v26 = vsel %vm11822_vm12, 65537, %v13160_v6 }
 0x7b4   : > { %6184 = vmatpush1.bf16.msra.mxu1 %v5990_v47  ;;  %v4119_v47 = vadd.s32 %v3991_v7, %v10376_v12  ;;  %v8236_v19 = vpop.eup %8235  ;;  %v11826_v7 = vpack.c.bf16 %v8234_v56, %v8234_v56  ;;  %13334 = vst [vmem:[#allocation51_spill] sm:$0xff] %v13333_v48  ;;  %v5525_v37 = vsel %vm11830_vm2, 65537, %v13160_v6  ;;  %vm4248_vm12 = vcmp.lt.s32.totalorder %v4120_v3, 600  ;;  %v4746_v48 = vld [vmem:[%s8738_s20 + $0xee0] sm:$0xff] }
 0x7b5   : > { %6881 = vmatprep.subr.msk.bf16.mxu1 %vm11778_vm4, %v4971_v28  ;;  %v5522_v28 = vsel %vm11792_vm1, 65537, %v13160_v6  ;;  %vm4246_vm1 = vcmp.lt.s32.totalorder %v4118_v52, 600  ;;  %v11844_v56 = vpack.c.bf16 %v8236_v19, %v8236_v19  ;;  %v4122_v18 = vadd.s32 %v3994_v35, %v10376_v12 }
 0x7b6   : > { %vm4247_vm13 = vcmp.lt.s32.totalorder %v4119_v47, 600  ;;  %vm11859_vm15 = vmpackc.low %vm4246_vm1, %vm4246_vm1  ;;  %v6002_v52 = vsel %vm11846_vm9, %v4978_v13, 0  ;;  %vm4249_vm2 = vcmp.lt.s32.totalorder %v4121_v33, 600  ;;  %v4123_v47 = vadd.s32 %v3995_v63, %v10376_v12  ;;  %v4687_v63 = vld [vmem:[%s8738_s20 + $0xd08] sm:$0xff] }
 0x7b7   : > { %v13337_v3 = vmov 0  ;;  %v6821_v35 = vcombine.low %v5524_v26, %v5525_v37  ;;  %vm4250_vm4 = vcmp.lt.s32.totalorder %v4122_v18, 600  ;;  %v3998_v37 = vadd.s32 896, %v13075_v5 }
 0x7b8   : > { %6186 = vmatpush1.bf16.msra.mxu1 %v5994_v44  ;;  %v6820_v44 = vcombine.low %v5522_v28, %v5523_v20  ;;  %v4679_v28 = vld [vmem:[%s8738_s20 + $0xcc8] sm:$0xff]  ;;  %v13342_v18 = vmov 0 }
 0x7b9   : > { %6882 = vmatprep.subr.msk.bf16.mxu1 %vm11810_vm10, %v4975_v38  ;;  %v4983_v38 = vpack.c.bf16 %v4675_v8, %v4671_v50  ;;  %v4683_v20 = vld [vmem:[%s8738_s20 + $0xce8] sm:$0xff]  ;;  %vm5399_vm10 = vmpackc.low %vm4247_vm13, %vm4247_vm13  ;;  %v3996_v50 = vadd.s32 880, %v13075_v5  ;;  %v4678_v8 = vld [vmem:[%s8738_s20 + $0xcc0] sm:$0xff] }
 0x7ba   : > { %vm11878_vm1 = vcmp.ne.s16.totalorder %v6820_v44, 0  ;;  %v4987_v9 = vpack.c.bf16 %v4683_v20, %v4679_v28  ;;  %v5527_v13 = vsel %vm5399_vm10, 65537, %v13160_v6  ;;  %vm11886_vm13 = vmpackc.low %vm4248_vm12, %vm4248_vm12  ;;  %v4986_v33 = vpack.c.bf16 %v4682_v0, %v4678_v8  ;;  %v4691_v44 = vld [vmem:[%s8738_s20 + $0xd28] sm:$0xff]  ;;  %v4686_v28 = vld [vmem:[%s8738_s20 + $0xd00] sm:$0xff] }
 0x7bb   : > { %6188 = vmatmul.mubr.bf16.vlgmr.msra.gmra.mrb[92].mxu1 %v11826_v7  ;;  %v13338_v3 = vsel %vm11878_vm1, 4294967295, %v13337_v3  ;;  %v4124_v26 = vadd.s32 %v3996_v50, %v10376_v12  ;;  %v6006_v19 = vsel %vm11878_vm1, %v4982_v31, 0  ;;  %v4690_v20 = vld [vmem:[%s8738_s20 + $0xd20] sm:$0xff]  ;;  %vm4251_vm10 = vcmp.lt.s32.totalorder %v4123_v47, 600  ;;  %vm11910_vm12 = vmpackc.low %vm4250_vm4, %vm4250_vm4 }
 0x7bc   : > { %6197 = vmatpush1.bf16.msra.mxu1 %v5998_v16  ;;  %6228 = vmatprep.mubr.bf16.mxu1 %v11844_v56  ;;  %v3997_v16 = vadd.s32 888, %v13075_v5  ;;  %13339 = vst [vmem:[#allocation52_spill] sm:$0xff] %v13338_v3  ;;  %v3999_v8 = vadd.s32 904, %v13075_v5  ;;  %v4991_v0 = vpack.c.bf16 %v4691_v44, %v4687_v63  ;;  %v4699_v3 = vld [vmem:[%s8738_s20 + $0xd68] sm:$0xff]  ;;  %v4694_v63 = vld [vmem:[%s8738_s20 + $0xd40] sm:$0xff] }
 0x7bd   : > { %6883 = vmatprep.subr.msk.bf16.mxu1 %vm11846_vm9, %v4979_v46  ;;  %v5526_v46 = vsel %vm11859_vm15, 65537, %v13160_v6  ;;  %vm5401_vm9 = vmpackc.low %vm4249_vm2, %vm4249_vm2  ;;  %vm11902_vm15 = vcmp.ne.s16.totalorder %v6821_v35, 0  ;;  %v4695_v35 = vld [vmem:[%s8738_s20 + $0xd48] sm:$0xff]  ;;  %v4698_v44 = vld [vmem:[%s8738_s20 + $0xd60] sm:$0xff] }
 0x7be   : > { %v13343_v18 = vsel %vm11902_vm15, 4294967295, %v13342_v18  ;;  %v6822_v50 = vcombine.low %v5526_v46, %v5527_v13  ;;  %v5529_v31 = vsel %vm5401_vm9, 65537, %v13160_v6  ;;  %vm5403_vm2 = vmpackc.low %vm4251_vm10, %vm4251_vm10  ;;  %v4126_v46 = vadd.s32 %v3998_v37, %v10376_v12  ;;  %v4702_v47 = vld [vmem:[%s8738_s20 + $0xd80] sm:$0xff] }
 0x7bf   : > { %13344 = vst [vmem:[#allocation53_spill] sm:$0xff] %v13343_v18  ;;  %v4000_v13 = vadd.s32 912, %v13075_v5  ;;  %v6010_v14 = vsel %vm11902_vm15, %v4986_v33, 0  ;;  %v5531_v33 = vsel %vm5403_vm2, 65537, %v13160_v6  ;;  %v4707_v18 = vld [vmem:[%s8738_s20 + $0xda8] sm:$0xff] }
 0x7c0   : > { %6199 = vmatpush1.bf16.msra.mxu1 %v6002_v52  ;;  %v4125_v52 = vadd.s32 %v3997_v16, %v10376_v12  ;;  %v4990_v16 = vpack.c.bf16 %v4690_v20, %v4686_v28  ;;  %v4001_v28 = vadd.s32 920, %v13075_v5  ;;  %vm11926_vm9 = vcmp.ne.s16.totalorder %v6822_v50, 0  ;;  %v4703_v50 = vld [vmem:[%s8738_s20 + $0xd88] sm:$0xff] }
 0x7c1   : > { %6884 = vmatprep.subr.msk.bf16.mxu1 %vm11878_vm1, %v4983_v38  ;;  %v5528_v38 = vsel %vm11886_vm13, 65537, %v13160_v6  ;;  %vm4252_vm1 = vcmp.lt.s32.totalorder %v4124_v26, 600  ;;  %v13347_v26 = vmov 0  ;;  %v4995_v20 = vpack.c.bf16 %v4699_v3, %v4695_v35  ;;  %v4706_v35 = vld [vmem:[%s8738_s20 + $0xda0] sm:$0xff] }
 0x7c2   : > { %vm4253_vm4 = vcmp.lt.s32.totalorder %v4125_v52, 600  ;;  %v13348_v26 = vsel %vm11926_vm9, 4294967295, %v13347_v26  ;;  %v6823_v37 = vcombine.low %v5528_v38, %v5529_v31  ;;  %vm11934_vm13 = vmpackc.low %vm4252_vm1, %vm4252_vm1  ;;  %v4128_v38 = vadd.s32 %v4000_v13, %v10376_v12  ;;  %v4710_v52 = vld [vmem:[%s8738_s20 + $0xdc0] sm:$0xff] }
 0x7c3   : > { %13349 = vst [vmem:[#allocation54_spill] sm:$0xff] %v13348_v26  ;;  %vm5405_vm10 = vmpackc.low %vm4253_vm4, %vm4253_vm4  ;;  %v4002_v3 = vadd.s32 928, %v13075_v5  ;;  %v6014_v31 = vsel %vm11926_vm9, %v4990_v16, 0  ;;  %v4715_v26 = vld [vmem:[%s8738_s20 + $0xde8] sm:$0xff] }
 0x7c4   : > { %6201 = vmatpush1.bf16.msra.mxu1 %v6006_v19  ;;  %v4127_v19 = vadd.s32 %v3999_v8, %v10376_v12  ;;  %v4994_v8 = vpack.c.bf16 %v4698_v44, %v4694_v63  ;;  %v4003_v63 = vadd.s32 936, %v13075_v5  ;;  %v4999_v44 = vpack.c.bf16 %v4707_v18, %v4703_v50  ;;  %v4714_v50 = vld [vmem:[%s8738_s20 + $0xde0] sm:$0xff] }
 0x7c5   : > { %6885 = vmatprep.subr.msk.bf16.mxu1 %vm11902_vm15, %v4987_v9  ;;  %v5530_v9 = vsel %vm11910_vm12, 65537, %v13160_v6  ;;  %vm4254_vm15 = vcmp.lt.s32.totalorder %v4126_v46, 600  ;;  %vm11950_vm12 = vcmp.ne.s16.totalorder %v6823_v37, 0  ;;  %v13352_v46 = vmov 0  ;;  %v4711_v37 = vld [vmem:[%s8738_s20 + $0xdc8] sm:$0xff] }
 0x7c6   : > { %vm4255_vm1 = vcmp.lt.s32.totalorder %v4127_v19, 600  ;;  %v13353_v46 = vsel %vm11950_vm12, 4294967295, %v13352_v46  ;;  %v6824_v13 = vcombine.low %v5530_v9, %v5531_v33  ;;  %v5533_v16 = vsel %vm5405_vm10, 65537, %v13160_v6  ;;  %vm11958_vm2 = vmpackc.low %vm4254_vm15, %vm4254_vm15  ;;  %v4718_v19 = vld [vmem:[%s8738_s20 + $0xe00] sm:$0xff] }
 0x7c7   : > { %13354 = vst [vmem:[#allocation55_spill] sm:$0xff] %v13353_v46  ;;  %vm5407_vm4 = vmpackc.low %vm4255_vm1, %vm4255_vm1  ;;  %v4130_v9 = vadd.s32 %v4002_v3, %v10376_v12  ;;  %v4004_v18 = vadd.s32 944, %v13075_v5  ;;  %v6018_v33 = vsel %vm11950_vm12, %v4994_v8, 0  ;;  %v4723_v46 = vld [vmem:[%s8738_s20 + $0xe28] sm:$0xff] }
 0x7c8   : > { %6203 = vmatpush1.bf16.msra.mxu1 %v6010_v14  ;;  %v4129_v14 = vadd.s32 %v4001_v28, %v10376_v12  ;;  %v4998_v28 = vpack.c.bf16 %v4706_v35, %v4702_v47  ;;  %v4005_v47 = vadd.s32 952, %v13075_v5  ;;  %v5003_v35 = vpack.c.bf16 %v4715_v26, %v4711_v37  ;;  %v4722_v37 = vld [vmem:[%s8738_s20 + $0xe20] sm:$0xff] }
 0x7c9   : > { %6886 = vmatprep.subr.msk.bf16.mxu1 %vm11926_vm9, %v4991_v0  ;;  %v5532_v0 = vsel %vm11934_vm13, 65537, %v13160_v6  ;;  %vm4256_vm9 = vcmp.lt.s32.totalorder %v4128_v38, 600  ;;  %vm11974_vm13 = vcmp.ne.s16.totalorder %v6824_v13, 0  ;;  %v13357_v38 = vmov 0  ;;  %v4719_v13 = vld [vmem:[%s8738_s20 + $0xe08] sm:$0xff] }
 0x7ca   : > { %vm4257_vm15 = vcmp.lt.s32.totalorder %v4129_v14, 600  ;;  %v13358_v38 = vsel %vm11974_vm13, 4294967295, %v13357_v38  ;;  %v6825_v3 = vcombine.low %v5532_v0, %v5533_v16  ;;  %v5535_v8 = vsel %vm5407_vm4, 65537, %v13160_v6  ;;  %vm11982_vm10 = vmpackc.low %vm4256_vm9, %vm4256_vm9  ;;  %v4726_v14 = vld [vmem:[%s8738_s20 + $0xe40] sm:$0xff] }
 0x7cb   : > { %13359 = vst [vmem:[#allocation56_spill] sm:$0xff] %v13358_v38  ;;  %vm5409_vm1 = vmpackc.low %vm4257_vm15, %vm4257_vm15  ;;  %v4132_v0 = vadd.s32 %v4004_v18, %v10376_v12  ;;  %v4006_v26 = vadd.s32 960, %v13075_v5  ;;  %v6022_v16 = vsel %vm11974_vm13, %v4998_v28, 0  ;;  %v4731_v38 = vld [vmem:[%s8738_s20 + $0xe68] sm:$0xff] }
 0x7cc   : > { %6205 = vmatpush1.bf16.msra.mxu1 %v6014_v31  ;;  %v4131_v31 = vadd.s32 %v4003_v63, %v10376_v12  ;;  %v5002_v63 = vpack.c.bf16 %v4714_v50, %v4710_v52  ;;  %v4007_v52 = vadd.s32 968, %v13075_v5  ;;  %v5007_v50 = vpack.c.bf16 %v4723_v46, %v4719_v13  ;;  %v4730_v13 = vld [vmem:[%s8738_s20 + $0xe60] sm:$0xff] }
 0x7cd   : > { %6887 = vmatprep.subr.msk.bf16.mxu1 %vm11950_vm12, %v4995_v20  ;;  %v5534_v20 = vsel %vm11958_vm2, 65537, %v13160_v6  ;;  %vm4258_vm12 = vcmp.lt.s32.totalorder %v4130_v9, 600  ;;  %vm11998_vm2 = vcmp.ne.s16.totalorder %v6825_v3, 0  ;;  %v13362_v9 = vmov 0  ;;  %v4727_v3 = vld [vmem:[%s8738_s20 + $0xe48] sm:$0xff] }
 0x7ce   : > { %vm4259_vm9 = vcmp.lt.s32.totalorder %v4131_v31, 600  ;;  %v13363_v9 = vsel %vm11998_vm2, 4294967295, %v13362_v9  ;;  %v6826_v18 = vcombine.low %v5534_v20, %v5535_v8  ;;  %v5537_v28 = vsel %vm5409_vm1, 65537, %v13160_v6  ;;  %vm12006_vm4 = vmpackc.low %vm4258_vm12, %vm4258_vm12  ;;  %v4734_v31 = vld [vmem:[%s8738_s20 + $0xe80] sm:$0xff] }
 0x7cf   : > { %13364 = vst [vmem:[#allocation57_spill] sm:$0xff] %v13363_v9  ;;  %vm5411_vm15 = vmpackc.low %vm4259_vm9, %vm4259_vm9  ;;  %v4134_v20 = vadd.s32 %v4006_v26, %v10376_v12  ;;  %v4008_v46 = vadd.s32 976, %v13075_v5  ;;  %v6026_v8 = vsel %vm11998_vm2, %v5002_v63, 0  ;;  %v4739_v9 = vld [vmem:[%s8738_s20 + $0xea8] sm:$0xff] }
 0x7d0   : > { %6207 = vmatpush1.bf16.msra.mxu1 %v6018_v33  ;;  %v4133_v33 = vadd.s32 %v4005_v47, %v10376_v12  ;;  %v5006_v47 = vpack.c.bf16 %v4722_v37, %v4718_v19  ;;  %v4009_v19 = vadd.s32 984, %v13075_v5  ;;  %v5011_v37 = vpack.c.bf16 %v4731_v38, %v4727_v3  ;;  %v4738_v3 = vld [vmem:[%s8738_s20 + $0xea0] sm:$0xff] }
 0x7d1   : > { %6888 = vmatprep.subr.msk.bf16.mxu1 %vm11974_vm13, %v4999_v44  ;;  %v5536_v44 = vsel %vm11982_vm10, 65537, %v13160_v6  ;;  %vm4260_vm13 = vcmp.lt.s32.totalorder %v4132_v0, 600  ;;  %vm12022_vm10 = vcmp.ne.s16.totalorder %v6826_v18, 0  ;;  %v13367_v0 = vmov 0  ;;  %v4735_v18 = vld [vmem:[%s8738_s20 + $0xe88] sm:$0xff] }
 0x7d2   : > { %vm4261_vm12 = vcmp.lt.s32.totalorder %v4133_v33, 600  ;;  %v13368_v0 = vsel %vm12022_vm10, 4294967295, %v13367_v0  ;;  %v6827_v26 = vcombine.low %v5536_v44, %v5537_v28  ;;  %v5539_v63 = vsel %vm5411_vm15, 65537, %v13160_v6  ;;  %vm12030_vm1 = vmpackc.low %vm4260_vm13, %vm4260_vm13  ;;  %v4743_v33 = vld [vmem:[%s8738_s20 + $0xec8] sm:$0xff] }
 0x7d3   : > { %13369 = vst [vmem:[#allocation58_spill] sm:$0xff] %v13368_v0  ;;  %vm5413_vm9 = vmpackc.low %vm4261_vm12, %vm4261_vm12  ;;  %v4136_v44 = vadd.s32 %v4008_v46, %v10376_v12  ;;  %v4010_v38 = vadd.s32 992, %v13075_v5  ;;  %v6030_v28 = vsel %vm12022_vm10, %v5006_v47, 0  ;;  %v4742_v0 = vld [vmem:[%s8738_s20 + $0xec0] sm:$0xff] }
 0x7d4   : > { %6209 = vmatpush1.bf16.msra.mxu1 %v6022_v16  ;;  %v4135_v16 = vadd.s32 %v4007_v52, %v10376_v12  ;;  %v5010_v52 = vpack.c.bf16 %v4730_v13, %v4726_v14  ;;  %v4011_v14 = vadd.s32 1000, %v13075_v5  ;;  %v5015_v13 = vpack.c.bf16 %v4739_v9, %v4735_v18  ;;  %v4747_v18 = vld [vmem:[%s8738_s20 + $0xee8] sm:$0xff] }
 0x7d5   : > { %6889 = vmatprep.subr.msk.bf16.mxu1 %vm11998_vm2, %v5003_v35  ;;  %v5538_v35 = vsel %vm12006_vm4, 65537, %v13160_v6  ;;  %vm4262_vm2 = vcmp.lt.s32.totalorder %v4134_v20, 600  ;;  %vm12046_vm4 = vcmp.ne.s16.totalorder %v6827_v26, 0  ;;  %v13372_v20 = vmov 0  ;;  %v4755_v26 = vld [vmem:[%s8738_s20 + $0xf28] sm:$0xff] }
 0x7d6   : > { %vm4263_vm13 = vcmp.lt.s32.totalorder %v4135_v16, 600  ;;  %v13373_v20 = vsel %vm12046_vm4, 4294967295, %v13372_v20  ;;  %v6828_v46 = vcombine.low %v5538_v35, %v5539_v63  ;;  %v5541_v47 = vsel %vm5413_vm9, 65537, %v13160_v6  ;;  %vm12054_vm15 = vmpackc.low %vm4262_vm2, %vm4262_vm2 }
 0x7d7   : > { %vm12058_vm12 = vmpackc.low %vm4263_vm13, %vm4263_vm13  ;;  %v4138_v9 = vadd.s32 %v4010_v38, %v10376_v12  ;;  %v4012_v35 = vadd.s32 1008, %v13075_v5  ;;  %v6034_v63 = vsel %vm12046_vm4, %v5010_v52, 0  ;;  %v13382_v16 = vmov 0 }
 0x7d8   : > { %6211 = vmatpush1.bf16.msra.mxu1 %v6026_v8  ;;  %v4137_v8 = vadd.s32 %v4009_v19, %v10376_v12  ;;  %v5014_v19 = vpack.c.bf16 %v4738_v3, %v4734_v31  ;;  %v4013_v31 = vadd.s32 1016, %v13075_v5  ;;  %v13378_v3 = vmov 0 }
 0x7d9   : > { %6890 = vmatprep.subr.msk.bf16.mxu1 %vm12022_vm10, %v5007_v50  ;;  %v5540_v50 = vsel %vm12030_vm1, 65537, %v13160_v6  ;;  %vm4264_vm10 = vcmp.lt.s32.totalorder %v4136_v44, 600  ;;  %vm12072_vm1 = vcmp.ne.s16.totalorder %v6828_v46, 0  ;;  %v5543_v52 = vsel %vm12058_vm12, 65537, %v13160_v6 }
 0x7da   : > { %vm4265_vm2 = vcmp.lt.s32.totalorder %v4137_v8, 600  ;;  %v13379_v3 = vsel %vm12072_vm1, 4294967295, %v13378_v3  ;;  %v6829_v38 = vcombine.low %v5540_v50, %v5541_v47  ;;  %vm12086_vm9 = vmpackc.low %vm4264_vm10, %vm4264_vm10  ;;  %v5019_v8 = vpack.c.bf16 %v4747_v18, %v4743_v33  ;;  %v4751_v50 = vld [vmem:[%s8738_s20 + $0xf08] sm:$0xff] }
 0x7db   : > { %vm5417_vm13 = vmpackc.low %vm4265_vm2, %vm4265_vm2  ;;  %v6038_v46 = vsel %vm12072_vm1, %v5014_v19, 0  ;;  %v5018_v44 = vpack.c.bf16 %v4746_v48, %v4742_v0  ;;  %v4141_v47 = vadd.s32 %v4013_v31, %v10376_v12  ;;  %v3859_v0 = vsub.f32 %v10423_v1, %v10792_v23  ;;  %v4762_v1 = vld [vmem:[%s8738_s20 + $0xf60] sm:$0xff]  ;;  %v4777_v31 = vld [vmem:[%s8738_s20 + $0xfd8] sm:$0xff] }
 0x7dc   : > { %6213 = vmatpush1.bf16.msra.mxu1 %v6030_v28  ;;  %v4139_v28 = vadd.s32 %v4011_v14, %v10376_v12  ;;  %v4140_v14 = vadd.s32 %v4012_v35, %v10376_v12  ;;  %vm12097_vm10 = vcmp.ne.s16.totalorder %v6829_v38, 0  ;;  %v4754_v35 = vld [vmem:[%s8738_s20 + $0xf20] sm:$0xff]  ;;  %v5545_v48 = vsel %vm5417_vm13, 65537, %v13160_v6  ;;  %v4763_v38 = vld [vmem:[%s8738_s20 + $0xf68] sm:$0xff] }
 0x7dd   : > { %6891 = vmatprep.subr.msk.bf16.mxu1 %vm12046_vm4, %v5011_v37  ;;  %v5542_v37 = vsel %vm12054_vm15, 65537, %v13160_v6  ;;  %vm4266_vm4 = vcmp.lt.s32.totalorder %v4138_v9, 600  ;;  %v13383_v16 = vsel %vm12097_vm10, 4294967295, %v13382_v16  ;;  %v6042_v19 = vsel %vm12097_vm10, %v5018_v44, 0 }
 0x7de   : > { %vm4267_vm15 = vcmp.lt.s32.totalorder %v4139_v28, 600  ;;  %v6830_v9 = vcombine.low %v5542_v37, %v5543_v52  ;;  %vm12108_vm12 = vmpackc.low %vm4266_vm4, %vm4266_vm4  ;;  %v5023_v33 = vpack.c.bf16 %v4755_v26, %v4751_v50  ;;  %v4759_v28 = vld [vmem:[%s8738_s20 + $0xf48] sm:$0xff]  ;;  %v4758_v52 = vld [vmem:[%s8738_s20 + $0xf40] sm:$0xff] }
 0x7df   : > { %vm5419_vm2 = vmpackc.low %vm4267_vm15, %vm4267_vm15  ;;  %v5546_v23 = vsel %vm12108_vm12, 65537, %v13160_v6  ;;  %v5026_v44 = vpack.c.bf16 %v4762_v1, %v4758_v52  ;;  %v4767_v50 = vld [vmem:[%s8738_s20 + $0xf88] sm:$0xff] }
 0x7e0   : > { %6215 = vmatpush1.bf16.msra.mxu1 %v6034_v63  ;;  %v4750_v63 = vld [vmem:[%s8738_s20 + $0xf00] sm:$0xff]  ;;  %vm12119_vm4 = vcmp.ne.s16.totalorder %v6830_v9, 0  ;;  %v5547_v5 = vsel %vm5419_vm2, 65537, %v13160_v6  ;;  %v4771_v26 = vld [vmem:[%s8738_s20 + $0xfa8] sm:$0xff]  ;;  %vm13400_vm2 = vnez %v13111_v57 }
 0x7e1   : > { %6892 = vmatprep.subr.msk.bf16.mxu1 %vm12072_vm1, %v5015_v13  ;;  %v5544_v13 = vsel %vm12086_vm9, 65537, %v13160_v6  ;;  %vm4268_vm1 = vcmp.lt.s32.totalorder %v4140_v14, 600  ;;  %v5022_v18 = vpack.c.bf16 %v4754_v35, %v4750_v63  ;;  %vm4269_vm9 = vcmp.lt.s32.totalorder %v4141_v47, 600  ;;  %v4766_v63 = vld [vmem:[%s8738_s20 + $0xf80] sm:$0xff] }
 0x7e2   : > { %v6831_v37 = vcombine.low %v5544_v13, %v5545_v48  ;;  %vm5420_vm13 = vmpackc.low %vm4268_vm1, %vm4268_vm1  ;;  %v6832_v9 = vcombine.low %v5546_v23, %v5547_v5  ;;  %v4770_v35 = vld [vmem:[%s8738_s20 + $0xfa0] sm:$0xff]  ;;  %v4273_v5 = vld [vmem:[%s8738_s20 + $0x18] sm:$0xff] }
 0x7e3   : > { %vm5421_vm15 = vmpackc.low %vm4269_vm9, %vm4269_vm9  ;;  %v6046_v14 = vsel %vm12119_vm4, %v5022_v18, 0  ;;  %v5548_v13 = vsel %vm5420_vm13, 65537, %v13160_v6  ;;  %vm13401_vm9 = vnez %v13116_v60  ;;  %vm13402_vm13 = vnez %v13118_v42 }
 0x7e4   : > { %6217 = vmatpush1.bf16.msra.mxu1 %v6038_v46  ;;  %v5027_v46 = vpack.c.bf16 %v4763_v38, %v4759_v28  ;;  %v5549_v48 = vsel %vm5421_vm15, 65537, %v13160_v6  ;;  %vm12149_vm1 = vcmp.ne.s16.totalorder %v6832_v9, 0  ;;  %v4779_v6 = vld [vmem:[%s8738_s20 + $0xfe8] sm:$0xff]  ;;  %v4774_v38 = vld [vmem:[%s8738_s20 + $0xfc0] sm:$0xff]  ;;  %vm13403_vm15 = vnez %v13120_v58 }
 0x7e5   : > { %6893 = vmatprep.subr.msk.bf16.mxu1 %vm12097_vm10, %v5019_v8  ;;  %v3873_v8 = vmul.f32 1.442695, %v3859_v0  ;;  %vm12135_vm10 = vcmp.ne.s16.totalorder %v6831_v37, 0  ;;  %v5031_v0 = vpack.c.bf16 %v4771_v26, %v4767_v50  ;;  %v6833_v28 = vcombine.low %v5548_v13, %v5549_v48  ;;  %v4778_v37 = vld [vmem:[%s8738_s20 + $0xfe0] sm:$0xff]  ;;  %v4285_v13 = vld [vmem:[%s8738_s20 + $0x78] sm:$0xff]  ;;  %v4280_v48 = vld [vmem:[%s8738_s20 + $0x50] sm:$0xff] }
 0x7e6   : > { %v6050_v12 = vsel %vm12135_vm10, %v5026_v44, 0  ;;  %v5034_v23 = vpack.c.bf16 %v4778_v37, %v4774_v38  ;;  %v4276_v44 = vld [vmem:[%s8738_s20 + $0x30] sm:$0xff]  ;;  %v4293_v38 = vld [vmem:[%s8738_s20 + $0xb8] sm:$0xff] }
 0x7e7   : > { %8237 = vpow2.f32 %v3873_v8  ;;  %vm12161_vm12 = vcmp.ne.s16.totalorder %v6833_v28, 0  ;;  %v4289_v28 = vld [vmem:[%s8738_s20 + $0x98] sm:$0xff]  ;;  %v4288_v37 = vld [vmem:[%s8738_s20 + $0x90] sm:$0xff] }
 0x7e8   : > { %6219 = vmatpush1.bf16.msra.mxu1 %v6042_v19  ;;  %v5030_v19 = vpack.c.bf16 %v4770_v35, %v4766_v63  ;;  %v6058_v50 = vsel %vm12161_vm12, %v5034_v23, 0  ;;  %v4281_v63 = vld [vmem:[%s8738_s20 + $0x58] sm:$0xff] }
 0x7e9   : > { %6894 = vmatprep.subr.msk.bf16.mxu1 %vm12119_vm4, %v5023_v33  ;;  %v4775_v33 = vld [vmem:[%s8738_s20 + $0xfc8] sm:$0xff] }
 0x7ea   : > { %v6054_v52 = vsel %vm12149_vm1, %v5030_v19, 0  ;;  %v5035_v1 = vpack.c.bf16 %v4779_v6, %v4775_v33  ;;  %v4789_v33 = vpack.c.bf16 %v4285_v13, %v4281_v63  ;;  %v4304_v63 = vld [vmem:[%s8738_s20 + $0x110] sm:$0xff] }
 0x7ec   : > { %6221 = vmatpush1.bf16.msra.mxu1 %v6046_v14  ;;  %v4277_v14 = vld [vmem:[%s8738_s20 + $0x38] sm:$0xff] }
 0x7ed   : > { %6895 = vmatprep.subr.msk.bf16.mxu1 %vm12135_vm10, %v5027_v46  ;;  %v4272_v46 = vld [vmem:[%s8738_s20 + $0x10] sm:$0xff]  ;;  %v4785_v26 = vpack.c.bf16 %v4277_v14, %v4273_v5  ;;  %v4297_v5 = vld [vmem:[%s8738_s20 + $0xd8] sm:$0xff] }
 0x7ee   : > { %v4784_v9 = vpack.c.bf16 %v4276_v44, %v4272_v46  ;;  %v4301_v14 = vld [vmem:[%s8738_s20 + $0xf8] sm:$0xff]  ;;  %v4296_v46 = vld [vmem:[%s8738_s20 + $0xd0] sm:$0xff] }
 0x7ef   : > { %v4300_v44 = vld [vmem:[%s8738_s20 + $0xf0] sm:$0xff]  ;;  %v4797_v45 = vpack.c.bf16 %v4301_v14, %v4297_v5  ;;  %v4329_v14 = vld [vmem:[%s8738_s20 + $0x1d8] sm:$0xff] }
 0x7f0   : > { %6223 = vmatpush1.bf16.msra.mxu1 %v6050_v12  ;;  %v4284_v12 = vld [vmem:[%s8738_s20 + $0x70] sm:$0xff]  ;;  %v5808_v19 = vsel %vm10485_vm7, %v4784_v9, 0  ;;  %v4309_v9 = vld [vmem:[%s8738_s20 + $0x138] sm:$0xff] }
 0x7f1   : > { %6896 = vmatprep.subr.msk.bf16.mxu1 %vm12149_vm1, %v5031_v0  ;;  %v8238_v35 = vpop.eup %8237  ;;  %v4788_v6 = vpack.c.bf16 %v4284_v12, %v4280_v48  ;;  %v4313_v12 = vld [vmem:[%s8738_s20 + $0x158] sm:$0xff] }
 0x7f2   : > { %v12176_v0 = vpack.c.bf16 %v8238_v35, %v8238_v35  ;;  %v4308_v35 = vld [vmem:[%s8738_s20 + $0x130] sm:$0xff] }
 0x7f3   : > { %v5812_v32 = vsel %vm10499_vm11, %v4788_v6, 0  ;;  %v4800_v48 = vpack.c.bf16 %v4308_v35, %v4304_v63  ;;  %v4316_v6 = vld [vmem:[%s8738_s20 + $0x170] sm:$0xff] }
 0x7f4   : > { %6225 = vmatpush1.bf16.msra.mxu1 %v6054_v52  ;;  %v4292_v52 = vld [vmem:[%s8738_s20 + $0xb0] sm:$0xff] }
 0x7f5   : > { %6897 = vmatprep.subr.msk.bf16.mxu1 %vm12161_vm12, %v5035_v1  ;;  %v4793_v1 = vpack.c.bf16 %v4293_v38, %v4289_v28  ;;  %v4792_v23 = vpack.c.bf16 %v4292_v52, %v4288_v37  ;;  %v5824_v28 = vsel %vm10548_vm8, %v4800_v48, 0  ;;  %v4321_v37 = vld [vmem:[%s8738_s20 + $0x198] sm:$0xff]  ;;  %v4336_v63 = vld [vmem:[%s8738_s20 + $0x210] sm:$0xff] }
 0x7f6   : > { %v4325_v52 = vld [vmem:[%s8738_s20 + $0x1b8] sm:$0xff]  ;;  %v4340_v35 = vld [vmem:[%s8738_s20 + $0x230] sm:$0xff] }
 0x7f7   : > { %v4809_v55 = vpack.c.bf16 %v4325_v52, %v4321_v37  ;;  %v4345_v48 = vld [vmem:[%s8738_s20 + $0x258] sm:$0xff]  ;;  %v4352_v37 = vld [vmem:[%s8738_s20 + $0x290] sm:$0xff] }
 0x7f8   : > { %6227 = vmatpush1.bf16.msra.mxu1 %v6058_v50  ;;  %v4796_v50 = vpack.c.bf16 %v4300_v44, %v4296_v46  ;;  %v4333_v46 = vld [vmem:[%s8738_s20 + $0x1f8] sm:$0xff]  ;;  %v4328_v44 = vld [vmem:[%s8738_s20 + $0x1d0] sm:$0xff] }
 0x7f9   : > { %6898 = vmatprep.subr.msk.bf16.mxu1 %vm10485_vm7, %v4785_v26  ;;  %v4305_v26 = vld [vmem:[%s8738_s20 + $0x118] sm:$0xff]  ;;  %vm13394_vm7 = vnez %v13092_v54  ;;  %v4813_v41 = vpack.c.bf16 %v4333_v46, %v4329_v14  ;;  %v4356_v52 = vld [vmem:[%s8738_s20 + $0x2b0] sm:$0xff] }
 0x7fa   : > { %v5820_v13 = vsel %vm10532_vm3, %v4796_v50, 0  ;;  %v4801_v11 = vpack.c.bf16 %v4309_v9, %v4305_v26  ;;  %v4337_v26 = vld [vmem:[%s8738_s20 + $0x218] sm:$0xff]  ;;  %v4364_v14 = vld [vmem:[%s8738_s20 + $0x2f0] sm:$0xff] }
 0x7fb   : > { %6229 = vmatmul.mubr.bf16.vlgmr.msra.gmra.mrb[92].mxu1 %v12176_v0  ;;  %v4341_v9 = vld [vmem:[%s8738_s20 + $0x238] sm:$0xff] }
 0x7fc   : > { %6238 = vmatpush1.bf16.msra.mxu1 %v5808_v19  ;;  %6269 = vmatprep.mubr.bf16.mxu1 %v10838_v51  ;;  %v5816_v51 = vsel %vm10514_vm14, %v4792_v23, 0  ;;  %v4317_v19 = vld [vmem:[%s8738_s20 + $0x178] sm:$0xff]  ;;  %v4817_v54 = vpack.c.bf16 %v4341_v9, %v4337_v26 }
 0x7fd   : > { %6899 = vmatprep.subr.msk.bf16.mxu1 %vm10499_vm11, %v4789_v33  ;;  %v4312_v33 = vld [vmem:[%s8738_s20 + $0x150] sm:$0xff]  ;;  %v4805_v53 = vpack.c.bf16 %v4317_v19, %v4313_v12  ;;  %vm13395_vm11 = vnez %v13098_v43  ;;  %v4349_v12 = vld [vmem:[%s8738_s20 + $0x278] sm:$0xff] }
 0x7fe   : > { %v4804_v38 = vpack.c.bf16 %v4316_v6, %v4312_v33  ;;  %v4344_v19 = vld [vmem:[%s8738_s20 + $0x250] sm:$0xff]  ;;  %v4821_v43 = vpack.c.bf16 %v4349_v12, %v4345_v48  ;;  %v4385_v12 = vld [vmem:[%s8738_s20 + $0x398] sm:$0xff] }
 0x7ff   : > { %v4348_v33 = vld [vmem:[%s8738_s20 + $0x270] sm:$0xff] }
 0x800   : > { %6240 = vmatpush1.bf16.msra.mxu1 %v5812_v32  ;;  %v4320_v32 = vld [vmem:[%s8738_s20 + $0x190] sm:$0xff]  ;;  %v5828_v23 = vsel %vm10570_vm5, %v4804_v38, 0  ;;  %v4357_v38 = vld [vmem:[%s8738_s20 + $0x2b8] sm:$0xff] }
 0x801   : > { %6900 = vmatprep.subr.msk.bf16.mxu1 %vm10514_vm14, %v4793_v1  ;;  %v4324_v1 = vld [vmem:[%s8738_s20 + $0x1b0] sm:$0xff]  ;;  %vm13396_vm14 = vnez %v13102_v49 }
 0x802   : > { %v4808_v5 = vpack.c.bf16 %v4324_v1, %v4320_v32  ;;  %v4824_v1 = vpack.c.bf16 %v4356_v52, %v4352_v37  ;;  %v4392_v37 = vld [vmem:[%s8738_s20 + $0x3d0] sm:$0xff] }
 0x803   : > { %v4396_v52 = vld [vmem:[%s8738_s20 + $0x3f0] sm:$0xff] }
 0x804   : > { %6242 = vmatpush1.bf16.msra.mxu1 %v5816_v51  ;;  %v4332_v51 = vld [vmem:[%s8738_s20 + $0x1f0] sm:$0xff] }
 0x805   : > { %6901 = vmatprep.subr.msk.bf16.mxu1 %vm10532_vm3, %v4797_v45  ;;  %v5832_v45 = vsel %vm13394_vm7, %v4808_v5, 0  ;;  %v4812_v50 = vpack.c.bf16 %v4332_v51, %v4328_v44  ;;  %vm13397_vm3 = vnez %v13104_v61  ;;  %v4360_v5 = vld [vmem:[%s8738_s20 + $0x2d0] sm:$0xff]  ;;  %v4369_v51 = vld [vmem:[%s8738_s20 + $0x318] sm:$0xff] }
 0x806   : > { %v4828_v44 = vpack.c.bf16 %v4364_v14, %v4360_v5  ;;  %v4404_v5 = vld [vmem:[%s8738_s20 + $0x430] sm:$0xff] }
 0x808   : > { %6244 = vmatpush1.bf16.msra.mxu1 %v5820_v13  ;;  %v5836_v13 = vsel %vm13395_vm11, %v4812_v50, 0  ;;  %v4372_v50 = vld [vmem:[%s8738_s20 + $0x330] sm:$0xff] }
 0x809   : > { %6902 = vmatprep.subr.msk.bf16.mxu1 %vm10548_vm8, %v4801_v11  ;;  %v4816_v11 = vpack.c.bf16 %v4340_v35, %v4336_v63  ;;  %vm13398_vm8 = vnez %v13106_v10  ;;  %v4377_v63 = vld [vmem:[%s8738_s20 + $0x358] sm:$0xff] }
 0x80a   : > { %v5848_v46 = vsel %vm13398_vm8, %v4824_v1, 0  ;;  %v4381_v35 = vld [vmem:[%s8738_s20 + $0x378] sm:$0xff] }
 0x80b   : > { %v5840_v6 = vsel %vm13396_vm14, %v4816_v11, 0  ;;  %v4401_v1 = vld [vmem:[%s8738_s20 + $0x418] sm:$0xff] }
 0x80c   : > { %6246 = vmatpush1.bf16.msra.mxu1 %v5824_v28  ;;  %v4820_v28 = vpack.c.bf16 %v4348_v33, %v4344_v19  ;;  %v4389_v19 = vld [vmem:[%s8738_s20 + $0x3b8] sm:$0xff]  ;;  %v4384_v33 = vld [vmem:[%s8738_s20 + $0x390] sm:$0xff] }
 0x80d   : > { %6903 = vmatprep.subr.msk.bf16.mxu1 %vm10570_vm5, %v4805_v53  ;;  %v4353_v53 = vld [vmem:[%s8738_s20 + $0x298] sm:$0xff]  ;;  %vm13399_vm5 = vnez %v13108_v39  ;;  %v4837_v39 = vpack.c.bf16 %v4381_v35, %v4377_v63  ;;  %v4841_v57 = vpack.c.bf16 %v4389_v19, %v4385_v12  ;;  %v4420_v63 = vld [vmem:[%s8738_s20 + $0x4b0] sm:$0xff] }
 0x80e   : > { %v5844_v32 = vsel %vm13397_vm3, %v4820_v28, 0  ;;  %v4825_v49 = vpack.c.bf16 %v4357_v38, %v4353_v53  ;;  %v5852_v26 = vsel %vm13399_vm5, %v4828_v44, 0  ;;  %v4393_v53 = vld [vmem:[%s8738_s20 + $0x3d8] sm:$0xff] }
 0x80f   : > { %v4397_v38 = vld [vmem:[%s8738_s20 + $0x3f8] sm:$0xff] }
 0x810   : > { %6248 = vmatpush1.bf16.msra.mxu1 %v5828_v23  ;;  %v4361_v23 = vld [vmem:[%s8738_s20 + $0x2d8] sm:$0xff]  ;;  %v4845_v60 = vpack.c.bf16 %v4397_v38, %v4393_v53  ;;  %v4440_v38 = vld [vmem:[%s8738_s20 + $0x550] sm:$0xff] }
 0x811   : > { %6904 = vmatprep.subr.msk.bf16.mxu1 %vm13394_vm7, %v4809_v55  ;;  %v4365_v55 = vld [vmem:[%s8738_s20 + $0x2f8] sm:$0xff]  ;;  %vm13404_vm7 = vnez %v13122_v25 }
 0x812   : > { %v4829_v61 = vpack.c.bf16 %v4365_v55, %v4361_v23  ;;  %v4405_v23 = vld [vmem:[%s8738_s20 + $0x438] sm:$0xff]  ;;  %v4400_v55 = vld [vmem:[%s8738_s20 + $0x410] sm:$0xff] }
 0x813   : > { %v4849_v42 = vpack.c.bf16 %v4405_v23, %v4401_v1  ;;  %v4413_v44 = vld [vmem:[%s8738_s20 + $0x478] sm:$0xff]  ;;  %v4448_v1 = vld [vmem:[%s8738_s20 + $0x590] sm:$0xff] }
 0x814   : > { %6250 = vmatpush1.bf16.msra.mxu1 %v5832_v45  ;;  %v4373_v45 = vld [vmem:[%s8738_s20 + $0x338] sm:$0xff]  ;;  %v4452_v23 = vld [vmem:[%s8738_s20 + $0x5b0] sm:$0xff] }
 0x815   : > { %6905 = vmatprep.subr.msk.bf16.mxu1 %vm13395_vm11, %v4813_v41  ;;  %v4368_v41 = vld [vmem:[%s8738_s20 + $0x310] sm:$0xff]  ;;  %v4833_v10 = vpack.c.bf16 %v4373_v45, %v4369_v51  ;;  %vm13405_vm11 = vnez %v13131_v21  ;;  %v4433_v12 = vld [vmem:[%s8738_s20 + $0x518] sm:$0xff] }
 0x816   : > { %v4832_v9 = vpack.c.bf16 %v4372_v50, %v4368_v41  ;;  %v4408_v51 = vld [vmem:[%s8738_s20 + $0x450] sm:$0xff]  ;;  %v4437_v19 = vld [vmem:[%s8738_s20 + $0x538] sm:$0xff] }
 0x817   : > { %v4412_v45 = vld [vmem:[%s8738_s20 + $0x470] sm:$0xff]  ;;  %v4445_v53 = vld [vmem:[%s8738_s20 + $0x578] sm:$0xff] }
 0x818   : > { %6252 = vmatpush1.bf16.msra.mxu1 %v5836_v13  ;;  %v4376_v13 = vld [vmem:[%s8738_s20 + $0x350] sm:$0xff]  ;;  %v5856_v11 = vsel %vm13400_vm2, %v4832_v9, 0  ;;  %v4852_v58 = vpack.c.bf16 %v4412_v45, %v4408_v51  ;;  %v4465_v45 = vld [vmem:[%s8738_s20 + $0x618] sm:$0xff] }
 0x819   : > { %6906 = vmatprep.subr.msk.bf16.mxu1 %vm13396_vm14, %v4817_v54  ;;  %v4380_v54 = vld [vmem:[%s8738_s20 + $0x370] sm:$0xff]  ;;  %vm13406_vm14 = vnez %v13135_v24  ;;  %v4865_v24 = vpack.c.bf16 %v4437_v19, %v4433_v12 }
 0x81a   : > { %v4836_v48 = vpack.c.bf16 %v4380_v54, %v4376_v13  ;;  %v4416_v9 = vld [vmem:[%s8738_s20 + $0x490] sm:$0xff]  ;;  %v5876_v25 = vsel %vm13405_vm11, %v4852_v58, 0  ;;  %v4425_v54 = vld [vmem:[%s8738_s20 + $0x4d8] sm:$0xff] }
 0x81b   : > { %v4856_v13 = vpack.c.bf16 %v4420_v63, %v4416_v9  ;;  %v4468_v58 = vld [vmem:[%s8738_s20 + $0x630] sm:$0xff]  ;;  %v4473_v9 = vld [vmem:[%s8738_s20 + $0x658] sm:$0xff] }
 0x81c   : > { %6254 = vmatpush1.bf16.msra.mxu1 %v5840_v6  ;;  %v4388_v6 = vld [vmem:[%s8738_s20 + $0x3b0] sm:$0xff]  ;;  %v4477_v63 = vld [vmem:[%s8738_s20 + $0x678] sm:$0xff] }
 0x81d   : > { %6907 = vmatprep.subr.msk.bf16.mxu1 %vm13397_vm3, %v4821_v43  ;;  %v5860_v43 = vsel %vm13401_vm9, %v4836_v48, 0  ;;  %v4840_v28 = vpack.c.bf16 %v4388_v6, %v4384_v33  ;;  %v4432_v33 = vld [vmem:[%s8738_s20 + $0x510] sm:$0xff]  ;;  %vm13407_vm3 = vnez %v13141_v40 }
 0x81e   : > { %v4436_v6 = vld [vmem:[%s8738_s20 + $0x530] sm:$0xff] }
 0x820   : > { %6256 = vmatpush1.bf16.msra.mxu1 %v5844_v32  ;;  %v5864_v32 = vsel %vm13402_vm13, %v4840_v28, 0  ;;  %v4441_v28 = vld [vmem:[%s8738_s20 + $0x558] sm:$0xff] }
 0x821   : > { %6908 = vmatprep.subr.msk.bf16.mxu1 %vm13398_vm8, %v4825_v49  ;;  %v4844_v49 = vpack.c.bf16 %v4396_v52, %v4392_v37  ;;  %v4444_v37 = vld [vmem:[%s8738_s20 + $0x570] sm:$0xff]  ;;  %vm13408_vm8 = vnez %v13145_v36  ;;  %v4869_v40 = vpack.c.bf16 %v4445_v53, %v4441_v28 }
 0x823   : > { %v5868_v14 = vsel %vm13403_vm15, %v4844_v49, 0  ;;  %v4453_v49 = vld [vmem:[%s8738_s20 + $0x5b8] sm:$0xff] }
 0x824   : > { %6258 = vmatpush1.bf16.msra.mxu1 %v5848_v46  ;;  %v4848_v46 = vpack.c.bf16 %v4404_v5, %v4400_v55  ;;  %v4872_v5 = vpack.c.bf16 %v4452_v23, %v4448_v1  ;;  %v4505_v23 = vld [vmem:[%s8738_s20 + $0x758] sm:$0xff] }
 0x825   : > { %6909 = vmatprep.subr.msk.bf16.mxu1 %vm13399_vm5, %v4829_v61  ;;  %v4409_v61 = vld [vmem:[%s8738_s20 + $0x458] sm:$0xff]  ;;  %vm13409_vm5 = vnez %v13153_v15 }
 0x826   : > { %v5872_v41 = vsel %vm13404_vm7, %v4848_v46, 0  ;;  %v4853_v50 = vpack.c.bf16 %v4413_v44, %v4409_v61  ;;  %v4456_v46 = vld [vmem:[%s8738_s20 + $0x5d0] sm:$0xff] }
 0x827   : > { %v4460_v61 = vld [vmem:[%s8738_s20 + $0x5f0] sm:$0xff] }
 0x828   : > { %6260 = vmatpush1.bf16.msra.mxu1 %v5852_v26  ;;  %v4417_v26 = vld [vmem:[%s8738_s20 + $0x498] sm:$0xff]  ;;  %v4876_v51 = vpack.c.bf16 %v4460_v61, %v4456_v46 }
 0x829   : > { %6910 = vmatprep.subr.msk.bf16.mxu1 %vm13400_vm2, %v4833_v10  ;;  %v4421_v10 = vld [vmem:[%s8738_s20 + $0x4b8] sm:$0xff]  ;;  %vm13410_vm2 = vnez %v13159_v27 }
 0x82a   : > { %v4857_v35 = vpack.c.bf16 %v4421_v10, %v4417_v26  ;;  %v5896_v44 = vsel %vm13410_vm2, %v4872_v5, 0  ;;  %v4508_v5 = vld [vmem:[%s8738_s20 + $0x770] sm:$0xff] }
 0x82c   : > { %6262 = vmatpush1.bf16.msra.mxu1 %v5856_v11  ;;  %v4429_v11 = vld [vmem:[%s8738_s20 + $0x4f8] sm:$0xff] }
 0x82d   : > { %6911 = vmatprep.subr.msk.bf16.mxu1 %vm13401_vm9, %v4837_v39  ;;  %v4424_v39 = vld [vmem:[%s8738_s20 + $0x4d0] sm:$0xff]  ;;  %v4861_v21 = vpack.c.bf16 %v4429_v11, %v4425_v54  ;;  %vm13411_vm9 = vnez %v13166_v59  ;;  %v4885_v59 = vpack.c.bf16 %v4477_v63, %v4473_v9 }
 0x82e   : > { %v5900_v26 = vsel %vm13411_vm9, %v4876_v51, 0  ;;  %v4512_v51 = vld [vmem:[%s8738_s20 + $0x790] sm:$0xff] }
 0x82f   : > { %v4520_v9 = vld [vmem:[%s8738_s20 + $0x7d0] sm:$0xff] }
 0x830   : > { %6264 = vmatpush1.bf16.msra.mxu1 %v5860_v43  ;;  %v4524_v63 = vld [vmem:[%s8738_s20 + $0x7f0] sm:$0xff] }
 0x831   : > { %6912 = vmatprep.subr.msk.bf16.mxu1 %vm13402_vm13, %v4841_v57  ;;  %v4864_v57 = vpack.c.bf16 %v4436_v6, %v4432_v33  ;;  %v4489_v6 = vld [vmem:[%s8738_s20 + $0x6d8] sm:$0xff] }
 0x833   : > { %v5888_v52 = vsel %vm13408_vm8, %v4864_v57, 0  ;;  %v4492_v57 = vld [vmem:[%s8738_s20 + $0x6f0] sm:$0xff] }
 0x834   : > { %6266 = vmatpush1.bf16.msra.mxu1 %v5864_v32  ;;  %v4868_v32 = vpack.c.bf16 %v4444_v37, %v4440_v38  ;;  %v4497_v37 = vld [vmem:[%s8738_s20 + $0x718] sm:$0xff] }
 0x835   : > { %6913 = vmatprep.subr.msk.bf16.mxu1 %vm13403_vm15, %v4845_v60  ;;  %v4449_v60 = vld [vmem:[%s8738_s20 + $0x598] sm:$0xff]  ;;  %vm13415_vm15 = vnez %v13190_v2 }
 0x836   : > { %v5892_v55 = vsel %vm13409_vm5, %v4868_v32, 0  ;;  %v4873_v36 = vpack.c.bf16 %v4453_v49, %v4449_v60  ;;  %v4500_v32 = vld [vmem:[%s8738_s20 + $0x730] sm:$0xff] }
 0x837   : > { %v13416_v60 = vld [vmem:[#allocation32_spill] sm:$0xff] }
 0x838   : > { %6268 = vmatpush1.bf16.msra.mxu1 %v5868_v14  ;;  %v4457_v14 = vld [vmem:[%s8738_s20 + $0x5d8] sm:$0xff] }
 0x839   : > { %6914 = vmatprep.subr.msk.bf16.mxu1 %vm13404_vm7, %v4849_v42  ;;  %v4461_v42 = vld [vmem:[%s8738_s20 + $0x5f8] sm:$0xff] }
 0x83a   : > { %v4877_v15 = vpack.c.bf16 %v4461_v42, %v4457_v14  ;;  %v13418_v14 = vld [vmem:[#allocation33_spill] sm:$0xff] }
 0x83b   : > { %6270 = vmatmul.mubr.bf16.vlgmr.msra.gmra.mrb[96].mxu1 %v10849_v29  ;;  %v4428_v29 = vld [vmem:[%s8738_s20 + $0x4f0] sm:$0xff]  ;;  %vm13419_vm7 = vnez %v13418_v14 }
 0x83c   : > { %6279 = vmatpush1.bf16.msra.mxu1 %v5872_v41  ;;  %6310 = vmatprep.mubr.bf16.mxu1 %v10862_v17  ;;  %v5880_v17 = vsel %vm13406_vm14, %v4856_v13, 0  ;;  %v4860_v48 = vpack.c.bf16 %v4428_v29, %v4424_v39  ;;  %v4469_v41 = vld [vmem:[%s8738_s20 + $0x638] sm:$0xff] }
 0x83d   : > { %6915 = vmatprep.subr.msk.bf16.mxu1 %vm13405_vm11, %v4853_v50  ;;  %v4464_v50 = vld [vmem:[%s8738_s20 + $0x610] sm:$0xff]  ;;  %v4881_v27 = vpack.c.bf16 %v4469_v41, %v4465_v45  ;;  %v4481_v39 = vld [vmem:[%s8738_s20 + $0x698] sm:$0xff] }
 0x83e   : > { %v5884_v43 = vsel %vm13407_vm3, %v4860_v48, 0  ;;  %v4880_v10 = vpack.c.bf16 %v4468_v58, %v4464_v50  ;;  %v13412_v13 = vld [vmem:[#allocation29_spill] sm:$0xff]  ;;  %v13420_v41 = vld [vmem:[#allocation34_spill] sm:$0xff] }
 0x83f   : > { %vm13413_vm13 = vnez %v13412_v13  ;;  %v4485_v29 = vld [vmem:[%s8738_s20 + $0x6b8] sm:$0xff]  ;;  %v4516_v45 = vld [vmem:[%s8738_s20 + $0x7b0] sm:$0xff]  ;;  %vm13421_vm11 = vnez %v13420_v41 }
 0x840   : > { %6281 = vmatpush1.bf16.msra.mxu1 %v5876_v25  ;;  %v4472_v25 = vld [vmem:[%s8738_s20 + $0x650] sm:$0xff]  ;;  %v5904_v54 = vsel %vm13413_vm13, %v4880_v10, 0  ;;  %v4889_v19 = vpack.c.bf16 %v4485_v29, %v4481_v39  ;;  %v4525_v10 = vld [vmem:[%s8738_s20 + $0x7f8] sm:$0xff] }
 0x841   : > { %6916 = vmatprep.subr.msk.bf16.mxu1 %vm13406_vm14, %v4857_v35  ;;  %v4476_v35 = vld [vmem:[%s8738_s20 + $0x670] sm:$0xff] }
 0x842   : > { %v4884_v11 = vpack.c.bf16 %v4476_v35, %v4472_v25  ;;  %v13422_v25 = vld [vmem:[#allocation35_spill] sm:$0xff]  ;;  %v4528_v39 = vld [vmem:[%s8738_s20 + $0x810] sm:$0xff] }
 0x843   : > { %vm13423_vm14 = vnez %v13422_v25  ;;  %v4532_v29 = vld [vmem:[%s8738_s20 + $0x830] sm:$0xff] }
 0x844   : > { %6283 = vmatpush1.bf16.msra.mxu1 %v5880_v17  ;;  %v4480_v17 = vld [vmem:[%s8738_s20 + $0x690] sm:$0xff]  ;;  %v5908_v12 = vsel %vm11124_vm6, %v4884_v11, 0  ;;  %v4533_v11 = vld [vmem:[%s8738_s20 + $0x838] sm:$0xff]  ;;  %v4912_v48 = vpack.c.bf16 %v4532_v29, %v4528_v39 }
 0x845   : > { %6917 = vmatprep.subr.msk.bf16.mxu1 %vm13407_vm3, %v4861_v21  ;;  %v4484_v21 = vld [vmem:[%s8738_s20 + $0x6b0] sm:$0xff]  ;;  %vm13424_vm3 = vnez %v13220_v30 }
 0x846   : > { %v4888_v33 = vpack.c.bf16 %v4484_v21, %v4480_v17 }
 0x848   : > { %6285 = vmatpush1.bf16.msra.mxu1 %v5884_v43  ;;  %v4493_v43 = vld [vmem:[%s8738_s20 + $0x6f8] sm:$0xff]  ;;  %v5912_v28 = vsel %vm13415_vm15, %v4888_v33, 0  ;;  %v4536_v33 = vld [vmem:[%s8738_s20 + $0x850] sm:$0xff] }
 0x849   : > { %6918 = vmatprep.subr.msk.bf16.mxu1 %vm13408_vm8, %v4865_v24  ;;  %v4488_v24 = vld [vmem:[%s8738_s20 + $0x6d0] sm:$0xff]  ;;  %v4893_v53 = vpack.c.bf16 %v4493_v43, %v4489_v6  ;;  %vm13425_vm8 = vnez %v13226_v4 }
 0x84a   : > { %v4892_v38 = vpack.c.bf16 %v4492_v57, %v4488_v24  ;;  %v4540_v6 = vld [vmem:[%s8738_s20 + $0x870] sm:$0xff]  ;;  %v5936_v43 = vsel %vm13425_vm8, %v4912_v48, 0  ;;  %v4545_v57 = vld [vmem:[%s8738_s20 + $0x898] sm:$0xff] }
 0x84b   : > { %v4916_v30 = vpack.c.bf16 %v4540_v6, %v4536_v33  ;;  %v4584_v48 = vld [vmem:[%s8738_s20 + $0x9d0] sm:$0xff] }
 0x84c   : > { %6287 = vmatpush1.bf16.msra.mxu1 %v5888_v52  ;;  %v4501_v52 = vld [vmem:[%s8738_s20 + $0x738] sm:$0xff] }
 0x84d   : > { %6919 = vmatprep.subr.msk.bf16.mxu1 %vm13409_vm5, %v4869_v40  ;;  %v4496_v40 = vld [vmem:[%s8738_s20 + $0x710] sm:$0xff]  ;;  %v4897_v2 = vpack.c.bf16 %v4501_v52, %v4497_v37 }
 0x84e   : > { %v4896_v1 = vpack.c.bf16 %v4500_v32, %v4496_v40  ;;  %v13426_v37 = vld [vmem:[#allocation36_spill] sm:$0xff]  ;;  %v13427_v52 = vld [vmem:[#allocation37_spill] sm:$0xff]  ;;  %v13428_v40 = vld [vmem:[#allocation38_spill] sm:$0xff] }
 0x84f   : > { %vm13429_vm5 = vnez %v13428_v40  ;;  %v4605_v40 = vld [vmem:[%s8738_s20 + $0xa78] sm:$0xff] }
 0x850   : > { %6289 = vmatpush1.bf16.msra.mxu1 %v5892_v55  ;;  %v4509_v55 = vld [vmem:[%s8738_s20 + $0x778] sm:$0xff]  ;;  %v5920_v42 = vsel %vm13419_vm7, %v4896_v1, 0  ;;  %v5940_v4 = vsel %vm13429_vm5, %v4916_v30, 0  ;;  %v4552_v1 = vld [vmem:[%s8738_s20 + $0x8d0] sm:$0xff] }
 0x851   : > { %6920 = vmatprep.subr.msk.bf16.mxu1 %vm13410_vm2, %v4873_v36  ;;  %v4504_v36 = vld [vmem:[%s8738_s20 + $0x750] sm:$0xff]  ;;  %v4901_v46 = vpack.c.bf16 %v4509_v55, %v4505_v23  ;;  %v13430_v55 = vld [vmem:[#allocation39_spill] sm:$0xff] }
 0x852   : > { %v4900_v61 = vpack.c.bf16 %v4508_v5, %v4504_v36  ;;  %v4556_v23 = vld [vmem:[%s8738_s20 + $0x8f0] sm:$0xff]  ;;  %vm13431_vm2 = vnez %v13430_v55  ;;  %v4613_v55 = vld [vmem:[%s8738_s20 + $0xab8] sm:$0xff] }
 0x853   : > { %v4924_v14 = vpack.c.bf16 %v4556_v23, %v4552_v1  ;;  %v4592_v30 = vld [vmem:[%s8738_s20 + $0xa10] sm:$0xff]  ;;  %v4609_v23 = vld [vmem:[%s8738_s20 + $0xa98] sm:$0xff] }
 0x854   : > { %6291 = vmatpush1.bf16.msra.mxu1 %v5896_v44  ;;  %v4513_v44 = vld [vmem:[%s8738_s20 + $0x798] sm:$0xff]  ;;  %v5924_v50 = vsel %vm13421_vm11, %v4900_v61, 0  ;;  %v4560_v61 = vld [vmem:[%s8738_s20 + $0x910] sm:$0xff] }
 0x855   : > { %6921 = vmatprep.subr.msk.bf16.mxu1 %vm13411_vm9, %v4877_v15  ;;  %v4517_v15 = vld [vmem:[%s8738_s20 + $0x7b8] sm:$0xff] }
 0x856   : > { %v4905_v58 = vpack.c.bf16 %v4517_v15, %v4513_v44  ;;  %v4564_v44 = vld [vmem:[%s8738_s20 + $0x930] sm:$0xff] }
 0x857   : > { %v13432_v15 = vld [vmem:[#allocation40_spill] sm:$0xff]  ;;  %v4928_v41 = vpack.c.bf16 %v4564_v44, %v4560_v61  ;;  %v4617_v44 = vld [vmem:[%s8738_s20 + $0xad8] sm:$0xff] }
 0x858   : > { %6293 = vmatpush1.bf16.msra.mxu1 %v5900_v26  ;;  %v4904_v26 = vpack.c.bf16 %v4516_v45, %v4512_v51  ;;  %vm13433_vm9 = vnez %v13432_v15  ;;  %v4621_v15 = vld [vmem:[%s8738_s20 + $0xaf8] sm:$0xff] }
 0x859   : > { %6922 = vmatprep.subr.msk.bf16.mxu1 %vm13413_vm13, %v4881_v27  ;;  %v4521_v27 = vld [vmem:[%s8738_s20 + $0x7d8] sm:$0xff]  ;;  %v5948_v51 = vsel %vm13433_vm9, %v4924_v14, 0 }
 0x85a   : > { %v5928_v35 = vsel %vm13423_vm14, %v4904_v26, 0  ;;  %v4909_v13 = vpack.c.bf16 %v4525_v10, %v4521_v27  ;;  %v4568_v26 = vld [vmem:[%s8738_s20 + $0x950] sm:$0xff] }
 0x85b   : > { %v4572_v27 = vld [vmem:[%s8738_s20 + $0x970] sm:$0xff] }
 0x85c   : > { %6295 = vmatpush1.bf16.msra.mxu1 %v5904_v54  ;;  %v4908_v54 = vpack.c.bf16 %v4524_v63, %v4520_v9  ;;  %v13434_v10 = vld [vmem:[#allocation41_spill] sm:$0xff]  ;;  %v4932_v25 = vpack.c.bf16 %v4572_v27, %v4568_v26 }
 0x85d   : > { %6923 = vmatprep.subr.msk.bf16.mxu1 %vm11124_vm6, %v4885_v59  ;;  %vm13417_vm6 = vnez %v13416_v60  ;;  %v4529_v59 = vld [vmem:[%s8738_s20 + $0x818] sm:$0xff]  ;;  %vm13435_vm13 = vnez %v13434_v10 }
 0x85e   : > { %v5916_v49 = vsel %vm13417_vm6, %v4892_v38, 0  ;;  %v5932_v17 = vsel %vm13424_vm3, %v4908_v54, 0  ;;  %v4913_v21 = vpack.c.bf16 %v4533_v11, %v4529_v59  ;;  %v4548_v38 = vld [vmem:[%s8738_s20 + $0x8b0] sm:$0xff]  ;;  %v5952_v9 = vsel %vm13435_vm13, %v4928_v41, 0  ;;  %v13445_v41 = vld [vmem:[#allocation46_spill] sm:$0xff] }
 0x85f   : > { %v4576_v54 = vld [vmem:[%s8738_s20 + $0x990] sm:$0xff]  ;;  %v4625_v27 = vld [vmem:[%s8738_s20 + $0xb18] sm:$0xff] }
 0x860   : > { %6297 = vmatpush1.bf16.msra.mxu1 %v5908_v12  ;;  %v4537_v12 = vld [vmem:[%s8738_s20 + $0x858] sm:$0xff]  ;;  %v4580_v59 = vld [vmem:[%s8738_s20 + $0x9b0] sm:$0xff] }
 0x861   : > { %6924 = vmatprep.subr.msk.bf16.mxu1 %vm13415_vm15, %v4889_v19  ;;  %v4541_v19 = vld [vmem:[%s8738_s20 + $0x878] sm:$0xff]  ;;  %vm13436_vm15 = vnez %v13263_v34  ;;  %v4936_v29 = vpack.c.bf16 %v4580_v59, %v4576_v54 }
 0x862   : > { %v4917_v24 = vpack.c.bf16 %v4541_v19, %v4537_v12  ;;  %v5956_v11 = vsel %vm13436_vm15, %v4932_v25, 0  ;;  %v4588_v12 = vld [vmem:[%s8738_s20 + $0x9f0] sm:$0xff]  ;;  %v13437_v19 = vld [vmem:[#allocation42_spill] sm:$0xff]  ;;  %v13447_v25 = vld [vmem:[#allocation47_spill] sm:$0xff] }
 0x863   : > { %v4940_v6 = vpack.c.bf16 %v4588_v12, %v4584_v48  ;;  %v13443_v14 = vld [vmem:[#allocation45_spill] sm:$0xff] }
 0x864   : > { %6299 = vmatpush1.bf16.msra.mxu1 %v5912_v28  ;;  %v4549_v28 = vld [vmem:[%s8738_s20 + $0x8b8] sm:$0xff] }
 0x865   : > { %6925 = vmatprep.subr.msk.bf16.mxu1 %vm13417_vm6, %v4893_v53  ;;  %v4544_v53 = vld [vmem:[%s8738_s20 + $0x890] sm:$0xff]  ;;  %v4921_v32 = vpack.c.bf16 %v4549_v28, %v4545_v57  ;;  %vm13438_vm6 = vnez %v13437_v19  ;;  %v13439_v28 = vld [vmem:[#allocation43_spill] sm:$0xff]  ;;  %v4629_v10 = vld [vmem:[%s8738_s20 + $0xb38] sm:$0xff] }
 0x866   : > { %v4920_v60 = vpack.c.bf16 %v4548_v38, %v4544_v53  ;;  %v5960_v33 = vsel %vm13438_vm6, %v4936_v29, 0  ;;  %v4596_v57 = vld [vmem:[%s8738_s20 + $0xa30] sm:$0xff]  ;;  %v4633_v59 = vld [vmem:[%s8738_s20 + $0xb58] sm:$0xff] }
 0x867   : > { %v4636_v29 = vld [vmem:[%s8738_s20 + $0xb70] sm:$0xff]  ;;  %v4641_v19 = vld [vmem:[%s8738_s20 + $0xb98] sm:$0xff] }
 0x868   : > { %6301 = vmatpush1.bf16.msra.mxu1 %v5916_v49  ;;  %v4553_v49 = vld [vmem:[%s8738_s20 + $0x8d8] sm:$0xff]  ;;  %v5944_v36 = vsel %vm13431_vm2, %v4920_v60, 0  ;;  %v13441_v60 = vld [vmem:[#allocation44_spill] sm:$0xff] }
 0x869   : > { %6926 = vmatprep.subr.msk.bf16.mxu1 %vm13419_vm7, %v4897_v2  ;;  %v4557_v2 = vld [vmem:[%s8738_s20 + $0x8f8] sm:$0xff]  ;;  %vm13440_vm7 = vnez %v13439_v28 }
 0x86a   : > { %v4925_v5 = vpack.c.bf16 %v4557_v2, %v4553_v49  ;;  %v5964_v53 = vsel %vm13440_vm7, %v4940_v6, 0  ;;  %v4644_v6 = vld [vmem:[%s8738_s20 + $0xbb0] sm:$0xff]  ;;  %v4649_v28 = vld [vmem:[%s8738_s20 + $0xbd8] sm:$0xff] }
 0x86c   : > { %6303 = vmatpush1.bf16.msra.mxu1 %v5920_v42  ;;  %v4561_v42 = vld [vmem:[%s8738_s20 + $0x918] sm:$0xff] }
 0x86d   : > { %6927 = vmatprep.subr.msk.bf16.mxu1 %vm13421_vm11, %v4901_v46  ;;  %v4565_v46 = vld [vmem:[%s8738_s20 + $0x938] sm:$0xff]  ;;  %vm13442_vm11 = vnez %v13441_v60 }
 0x86e   : > { %v4929_v45 = vpack.c.bf16 %v4565_v46, %v4561_v42  ;;  %v4953_v46 = vpack.c.bf16 %v4613_v55, %v4609_v23  ;;  %v4657_v60 = vld [vmem:[%s8738_s20 + $0xc18] sm:$0xff] }
 0x870   : > { %6305 = vmatpush1.bf16.msra.mxu1 %v5924_v50  ;;  %v4569_v50 = vld [vmem:[%s8738_s20 + $0x958] sm:$0xff] }
 0x871   : > { %6928 = vmatprep.subr.msk.bf16.mxu1 %vm13423_vm14, %v4905_v58  ;;  %v4573_v58 = vld [vmem:[%s8738_s20 + $0x978] sm:$0xff]  ;;  %vm13444_vm14 = vnez %v13443_v14 }
 0x872   : > { %v4933_v63 = vpack.c.bf16 %v4573_v58, %v4569_v50  ;;  %v4957_v58 = vpack.c.bf16 %v4621_v15, %v4617_v44  ;;  %v4669_v14 = vld [vmem:[%s8738_s20 + $0xc78] sm:$0xff] }
 0x873   : > { %v4673_v15 = vld [vmem:[%s8738_s20 + $0xc98] sm:$0xff] }
 0x874   : > { %6307 = vmatpush1.bf16.msra.mxu1 %v5928_v35  ;;  %v4577_v35 = vld [vmem:[%s8738_s20 + $0x998] sm:$0xff] }
 0x875   : > { %6929 = vmatprep.subr.msk.bf16.mxu1 %vm13424_vm3, %v4909_v13  ;;  %v4581_v13 = vld [vmem:[%s8738_s20 + $0x9b8] sm:$0xff]  ;;  %vm13446_vm3 = vnez %v13445_v41  ;;  %v4676_v41 = vld [vmem:[%s8738_s20 + $0xcb0] sm:$0xff] }
 0x876   : > { %v4937_v39 = vpack.c.bf16 %v4581_v13, %v4577_v35  ;;  %v4961_v13 = vpack.c.bf16 %v4629_v10, %v4625_v27  ;;  %v4681_v27 = vld [vmem:[%s8738_s20 + $0xcd8] sm:$0xff] }
 0x877   : > { %v4685_v10 = vld [vmem:[%s8738_s20 + $0xcf8] sm:$0xff] }
 0x878   : > { %6309 = vmatpush1.bf16.msra.mxu1 %v5932_v17  ;;  %v4585_v17 = vld [vmem:[%s8738_s20 + $0x9d8] sm:$0xff] }
 0x879   : > { %6930 = vmatprep.subr.msk.bf16.mxu1 %vm13425_vm8, %v4913_v21  ;;  %v4589_v21 = vld [vmem:[%s8738_s20 + $0x9f8] sm:$0xff]  ;;  %vm13448_vm8 = vnez %v13447_v25  ;;  %v4989_v25 = vpack.c.bf16 %v4685_v10, %v4681_v27  ;;  %v4732_v27 = vld [vmem:[%s8738_s20 + $0xe70] sm:$0xff] }
 0x87a   : > { %v4941_v34 = vpack.c.bf16 %v4589_v21, %v4585_v17  ;;  %v13470_v10 = vld [vmem:[#allocation58_spill] sm:$0xff] }
 0x87b   : > { %6311 = vmatmul.mubr.bf16.vlgmr.msra.gmra.mrb[96].mxu1 %v13426_v37  ;;  %v4944_v37 = vpack.c.bf16 %v4596_v57, %v4592_v30 }
 0x87c   : > { %6320 = vmatpush1.bf16.msra.mxu1 %v5936_v43  ;;  %6351 = vmatprep.mubr.bf16.mxu1 %v13427_v52  ;;  %v4593_v43 = vld [vmem:[%s8738_s20 + $0xa18] sm:$0xff] }
 0x87d   : > { %6931 = vmatprep.subr.msk.bf16.mxu1 %vm13429_vm5, %v4917_v24  ;;  %v4597_v24 = vld [vmem:[%s8738_s20 + $0xa38] sm:$0xff]  ;;  %v5968_v49 = vsel %vm13442_vm11, %v4944_v37, 0  ;;  %v4652_v37 = vld [vmem:[%s8738_s20 + $0xbf0] sm:$0xff] }
 0x87e   : > { %v4945_v38 = vpack.c.bf16 %v4597_v24, %v4593_v43  ;;  %v4601_v52 = vld [vmem:[%s8738_s20 + $0xa58] sm:$0xff] }
 0x87f   : > { %v4949_v2 = vpack.c.bf16 %v4605_v40, %v4601_v52  ;;  %v13450_v43 = vld [vmem:[#allocation49_spill] sm:$0xff]  ;;  %v13452_v52 = vld [vmem:[#allocation50_spill] sm:$0xff] }
 0x880   : > { %6322 = vmatpush1.bf16.msra.mxu1 %v5940_v4  ;;  %v4600_v4 = vld [vmem:[%s8738_s20 + $0xa50] sm:$0xff]  ;;  %vm13451_vm5 = vnez %v13450_v43 }
 0x881   : > { %6932 = vmatprep.subr.msk.bf16.mxu1 %vm13431_vm2, %v4921_v32  ;;  %v4604_v32 = vld [vmem:[%s8738_s20 + $0xa70] sm:$0xff]  ;;  %vm13454_vm2 = vnez %v13321_v62 }
 0x882   : > { %v4948_v1 = vpack.c.bf16 %v4604_v32, %v4600_v4 }
 0x884   : > { %6324 = vmatpush1.bf16.msra.mxu1 %v5944_v36  ;;  %v4608_v36 = vld [vmem:[%s8738_s20 + $0xa90] sm:$0xff]  ;;  %v5972_v42 = vsel %vm13444_vm14, %v4948_v1, 0 }
 0x885   : > { %6933 = vmatprep.subr.msk.bf16.mxu1 %vm13433_vm9, %v4925_v5  ;;  %v4612_v5 = vld [vmem:[%s8738_s20 + $0xab0] sm:$0xff]  ;;  %vm13455_vm9 = vnez %v13327_v22 }
 0x886   : > { %v4952_v61 = vpack.c.bf16 %v4612_v5, %v4608_v36  ;;  %v4660_v1 = vld [vmem:[%s8738_s20 + $0xc30] sm:$0xff]  ;;  %v4665_v5 = vld [vmem:[%s8738_s20 + $0xc58] sm:$0xff] }
 0x887   : > { %v4981_v44 = vpack.c.bf16 %v4669_v14, %v4665_v5  ;;  %v13466_v5 = vld [vmem:[#allocation56_spill] sm:$0xff] }
 0x888   : > { %6326 = vmatpush1.bf16.msra.mxu1 %v5948_v51  ;;  %v4616_v51 = vld [vmem:[%s8738_s20 + $0xad0] sm:$0xff]  ;;  %v5976_v50 = vsel %vm13446_vm3, %v4952_v61, 0 }
 0x889   : > { %6934 = vmatprep.subr.msk.bf16.mxu1 %vm13435_vm13, %v4929_v45  ;;  %v4620_v45 = vld [vmem:[%s8738_s20 + $0xaf0] sm:$0xff] }
 0x88a   : > { %v4956_v26 = vpack.c.bf16 %v4620_v45, %v4616_v51  ;;  %v4677_v51 = vld [vmem:[%s8738_s20 + $0xcb8] sm:$0xff]  ;;  %v4672_v45 = vld [vmem:[%s8738_s20 + $0xc90] sm:$0xff] }
 0x88c   : > { %6328 = vmatpush1.bf16.msra.mxu1 %v5952_v9  ;;  %v4624_v9 = vld [vmem:[%s8738_s20 + $0xb10] sm:$0xff]  ;;  %v5980_v35 = vsel %vm13448_vm8, %v4956_v26, 0  ;;  %v4984_v26 = vpack.c.bf16 %v4676_v41, %v4672_v45 }
 0x88d   : > { %6935 = vmatprep.subr.msk.bf16.mxu1 %vm13436_vm15, %v4933_v63  ;;  %v4628_v63 = vld [vmem:[%s8738_s20 + $0xb30] sm:$0xff] }
 0x88e   : > { %v4960_v54 = vpack.c.bf16 %v4628_v63, %v4624_v9  ;;  %v4680_v9 = vld [vmem:[%s8738_s20 + $0xcd0] sm:$0xff] }
 0x88f   : > { %v13458_v63 = vld [vmem:[#allocation52_spill] sm:$0xff] }
 0x890   : > { %6330 = vmatpush1.bf16.msra.mxu1 %v5956_v11  ;;  %v4637_v11 = vld [vmem:[%s8738_s20 + $0xb78] sm:$0xff]  ;;  %v5984_v21 = vsel %vm11682_vm0, %v4960_v54, 0  ;;  %vm13459_vm15 = vnez %v13458_v63 }
 0x891   : > { %6936 = vmatprep.subr.msk.bf16.mxu1 %vm13438_vm6, %v4937_v39  ;;  %v4632_v39 = vld [vmem:[%s8738_s20 + $0xb50] sm:$0xff]  ;;  %v4965_v48 = vpack.c.bf16 %v4637_v11, %v4633_v59  ;;  %v4693_v54 = vld [vmem:[%s8738_s20 + $0xd38] sm:$0xff] }
 0x892   : > { %v4964_v12 = vpack.c.bf16 %v4636_v29, %v4632_v39  ;;  %v4688_v59 = vld [vmem:[%s8738_s20 + $0xd10] sm:$0xff] }
 0x893   : > { %v4692_v11 = vld [vmem:[%s8738_s20 + $0xd30] sm:$0xff] }
 0x894   : > { %6332 = vmatpush1.bf16.msra.mxu1 %v5960_v33  ;;  %v4645_v33 = vld [vmem:[%s8738_s20 + $0xbb8] sm:$0xff]  ;;  %v5988_v24 = vsel %vm13451_vm5, %v4964_v12, 0 }
 0x895   : > { %6937 = vmatprep.subr.msk.bf16.mxu1 %vm13440_vm7, %v4941_v34  ;;  %v4640_v34 = vld [vmem:[%s8738_s20 + $0xb90] sm:$0xff]  ;;  %v4969_v30 = vpack.c.bf16 %v4645_v33, %v4641_v19  ;;  %v4701_v12 = vld [vmem:[%s8738_s20 + $0xd78] sm:$0xff] }
 0x896   : > { %v4968_v57 = vpack.c.bf16 %v4644_v6, %v4640_v34  ;;  %v13460_v39 = vld [vmem:[#allocation53_spill] sm:$0xff]  ;;  %v13462_v34 = vld [vmem:[#allocation54_spill] sm:$0xff] }
 0x897   : > { %vm13461_vm6 = vnez %v13460_v39  ;;  %v4696_v19 = vld [vmem:[%s8738_s20 + $0xd50] sm:$0xff]  ;;  %vm13463_vm7 = vnez %v13462_v34  ;;  %v4745_v39 = vld [vmem:[%s8738_s20 + $0xed8] sm:$0xff] }
 0x898   : > { %6334 = vmatpush1.bf16.msra.mxu1 %v5964_v53  ;;  %v4653_v53 = vld [vmem:[%s8738_s20 + $0xbf8] sm:$0xff]  ;;  %v4700_v33 = vld [vmem:[%s8738_s20 + $0xd70] sm:$0xff] }
 0x899   : > { %6938 = vmatprep.subr.msk.bf16.mxu1 %vm13442_vm11, %v4945_v38  ;;  %v4648_v38 = vld [vmem:[%s8738_s20 + $0xbd0] sm:$0xff]  ;;  %v4973_v4 = vpack.c.bf16 %v4653_v53, %v4649_v28 }
 0x89a   : > { %v4972_v32 = vpack.c.bf16 %v4652_v37, %v4648_v38  ;;  %v4704_v28 = vld [vmem:[%s8738_s20 + $0xd90] sm:$0xff]  ;;  %v13464_v38 = vld [vmem:[#allocation55_spill] sm:$0xff] }
 0x89b   : > { %v4708_v53 = vld [vmem:[%s8738_s20 + $0xdb0] sm:$0xff]  ;;  %vm13465_vm11 = vnez %v13464_v38 }
 0x89c   : > { %6336 = vmatpush1.bf16.msra.mxu1 %v5968_v49  ;;  %v4661_v49 = vld [vmem:[%s8738_s20 + $0xc38] sm:$0xff]  ;;  %v5996_v23 = vsel %vm13454_vm2, %v4972_v32, 0  ;;  %v4752_v34 = vld [vmem:[%s8738_s20 + $0xf10] sm:$0xff] }
 0x89d   : > { %6939 = vmatprep.subr.msk.bf16.mxu1 %vm13444_vm14, %v4949_v2  ;;  %v4656_v2 = vld [vmem:[%s8738_s20 + $0xc10] sm:$0xff]  ;;  %v4977_v55 = vpack.c.bf16 %v4661_v49, %v4657_v60  ;;  %v4717_v60 = vld [vmem:[%s8738_s20 + $0xdf8] sm:$0xff]  ;;  %vm13467_vm14 = vnez %v13466_v5 }
 0x89e   : > { %v4976_v36 = vpack.c.bf16 %v4660_v1, %v4656_v2  ;;  %v4712_v49 = vld [vmem:[%s8738_s20 + $0xdd0] sm:$0xff] }
 0x89f   : > { %v4716_v2 = vld [vmem:[%s8738_s20 + $0xdf0] sm:$0xff] }
 0x8a0   : > { %6338 = vmatpush1.bf16.msra.mxu1 %v5972_v42  ;;  %v4664_v42 = vld [vmem:[%s8738_s20 + $0xc50] sm:$0xff]  ;;  %v6000_v61 = vsel %vm13455_vm9, %v4976_v36, 0 }
 0x8a1   : > { %6940 = vmatprep.subr.msk.bf16.mxu1 %vm13446_vm3, %v4953_v46  ;;  %v4668_v46 = vld [vmem:[%s8738_s20 + $0xc70] sm:$0xff] }
 0x8a2   : > { %v4980_v62 = vpack.c.bf16 %v4668_v46, %v4664_v42  ;;  %v5004_v46 = vpack.c.bf16 %v4716_v2, %v4712_v49  ;;  %v4776_v5 = vld [vmem:[%s8738_s20 + $0xfd0] sm:$0xff] }
 0x8a4   : > { %6340 = vmatpush1.bf16.msra.mxu1 %v5976_v50  ;;  %v13456_v50 = vld [vmem:[#allocation51_spill] sm:$0xff] }
 0x8a5   : > { %6941 = vmatprep.subr.msk.bf16.mxu1 %vm13448_vm8, %v4957_v58  ;;  %vm13457_vm13 = vnez %v13456_v50  ;;  %v4985_v58 = vpack.c.bf16 %v4677_v51, %v4673_v15  ;;  %v4724_v15 = vld [vmem:[%s8738_s20 + $0xe30] sm:$0xff]  ;;  %vm13471_vm8 = vnez %v13470_v10 }
 0x8a6   : > { %v6004_v22 = vsel %vm13457_vm13, %v4980_v62, 0  ;;  %v4720_v62 = vld [vmem:[%s8738_s20 + $0xe10] sm:$0xff] }
 0x8a7   : > { %v13468_v51 = vld [vmem:[#allocation57_spill] sm:$0xff]  ;;  %v5008_v50 = vpack.c.bf16 %v4724_v15, %v4720_v62 }
 0x8a8   : > { %6342 = vmatpush1.bf16.msra.mxu1 %v5980_v35  ;;  %vm13469_vm3 = vnez %v13468_v51 }
 0x8a9   : > { %6942 = vmatprep.subr.msk.bf16.mxu1 %vm11682_vm0, %v4961_v13  ;;  %vm13453_vm0 = vnez %v13452_v52  ;;  %v4689_v13 = vld [vmem:[%s8738_s20 + $0xd18] sm:$0xff]  ;;  %v6028_v45 = vsel %vm13469_vm3, %v5004_v46, 0 }
 0x8aa   : > { %v5992_v40 = vsel %vm13453_vm0, %v4968_v57, 0  ;;  %v4993_v17 = vpack.c.bf16 %v4693_v54, %v4689_v13  ;;  %v4709_v57 = vld [vmem:[%s8738_s20 + $0xdb8] sm:$0xff]  ;;  %v4740_v13 = vld [vmem:[%s8738_s20 + $0xeb0] sm:$0xff] }
 0x8ac   : > { %6344 = vmatpush1.bf16.msra.mxu1 %v5984_v21  ;;  %v4992_v21 = vpack.c.bf16 %v4692_v11, %v4688_v59 }
 0x8ad   : > { %6943 = vmatprep.subr.msk.bf16.mxu1 %vm13451_vm5, %v4965_v48  ;;  %v4697_v48 = vld [vmem:[%s8738_s20 + $0xd58] sm:$0xff]  ;;  %vm13472_vm5 = vnez %v13373_v20 }
 0x8ae   : > { %v6016_v6 = vsel %vm13463_vm7, %v4992_v21, 0  ;;  %v4997_v43 = vpack.c.bf16 %v4701_v12, %v4697_v48  ;;  %v4748_v21 = vld [vmem:[%s8738_s20 + $0xef0] sm:$0xff] }
 0x8b0   : > { %6346 = vmatpush1.bf16.msra.mxu1 %v5988_v24  ;;  %v4996_v24 = vpack.c.bf16 %v4700_v33, %v4696_v19  ;;  %v4753_v19 = vld [vmem:[%s8738_s20 + $0xf18] sm:$0xff] }
 0x8b1   : > { %6944 = vmatprep.subr.msk.bf16.mxu1 %vm13453_vm0, %v4969_v30  ;;  %v4705_v30 = vld [vmem:[%s8738_s20 + $0xd98] sm:$0xff]  ;;  %vm13473_vm0 = vnez %v13379_v3 }
 0x8b2   : > { %v6020_v37 = vsel %vm13465_vm11, %v4996_v24, 0  ;;  %v5001_v52 = vpack.c.bf16 %v4709_v57, %v4705_v30  ;;  %v4757_v33 = vld [vmem:[%s8738_s20 + $0xf38] sm:$0xff] }
 0x8b3   : > { %v5025_v3 = vpack.c.bf16 %v4757_v33, %v4753_v19  ;;  %v4761_v30 = vld [vmem:[%s8738_s20 + $0xf58] sm:$0xff] }
 0x8b4   : > { %6348 = vmatpush1.bf16.msra.mxu1 %v5992_v40  ;;  %v5000_v40 = vpack.c.bf16 %v4708_v53, %v4704_v28  ;;  %v4765_v57 = vld [vmem:[%s8738_s20 + $0xf78] sm:$0xff]  ;;  %v4760_v28 = vld [vmem:[%s8738_s20 + $0xf50] sm:$0xff] }
 0x8b5   : > { %6945 = vmatprep.subr.msk.bf16.mxu1 %vm13454_vm2, %v4973_v4  ;;  %v4713_v4 = vld [vmem:[%s8738_s20 + $0xdd8] sm:$0xff]  ;;  %vm13474_vm2 = vnez %v13383_v16  ;;  %v4764_v53 = vld [vmem:[%s8738_s20 + $0xf70] sm:$0xff]  ;;  %v5029_v16 = vpack.c.bf16 %v4765_v57, %v4761_v30 }
 0x8b6   : > { %v6024_v14 = vsel %vm13467_vm14, %v5000_v40, 0  ;;  %v5005_v42 = vpack.c.bf16 %v4717_v60, %v4713_v4  ;;  %v4773_v40 = vld [vmem:[%s8738_s20 + $0xfb8] sm:$0xff]  ;;  %v4768_v4 = vld [vmem:[%s8738_s20 + $0xf90] sm:$0xff] }
 0x8b7   : > { %v4772_v60 = vld [vmem:[%s8738_s20 + $0xfb0] sm:$0xff] }
 0x8b8   : > { %6350 = vmatpush1.bf16.msra.mxu1 %v5996_v23 }
 0x8b9   : > { %6946 = vmatprep.subr.msk.bf16.mxu1 %vm13455_vm9, %v4977_v55 }
 0x8bb   : > { %6352 = vmatmul.mubr.bf16.vlgmr.msra.gmra.mrb[96].mxu1 %v11826_v7  ;;  %v4684_v7 = vld [vmem:[%s8738_s20 + $0xcf0] sm:$0xff] }
 0x8bc   : > { %6361 = vmatpush1.bf16.msra.mxu1 %v6000_v61  ;;  %6392 = vmatprep.mubr.bf16.mxu1 %v11844_v56  ;;  %v6008_v56 = vsel %vm13459_vm15, %v4984_v26, 0  ;;  %v4988_v35 = vpack.c.bf16 %v4684_v7, %v4680_v9  ;;  %v4721_v61 = vld [vmem:[%s8738_s20 + $0xe18] sm:$0xff]  ;;  %v4728_v26 = vld [vmem:[%s8738_s20 + $0xe50] sm:$0xff]  ;;  %v6032_v9 = vsel %vm13471_vm8, %v5008_v50, 0 }
 0x8bd   : > { %6947 = vmatprep.subr.msk.bf16.mxu1 %vm13457_vm13, %v4981_v44  ;;  %v4725_v44 = vld [vmem:[%s8738_s20 + $0xe38] sm:$0xff]  ;;  %v5012_v63 = vpack.c.bf16 %v4732_v27, %v4728_v26 }
 0x8be   : > { %v6012_v29 = vsel %vm13461_vm6, %v4988_v35, 0  ;;  %v5009_v41 = vpack.c.bf16 %v4725_v44, %v4721_v61  ;;  %v4736_v35 = vld [vmem:[%s8738_s20 + $0xe90] sm:$0xff] }
 0x8bf   : > { %v6036_v54 = vsel %vm13472_vm5, %v5012_v63, 0  ;;  %v5016_v11 = vpack.c.bf16 %v4740_v13, %v4736_v35 }
 0x8c0   : > { %6363 = vmatpush1.bf16.msra.mxu1 %v6004_v22  ;;  %v4729_v22 = vld [vmem:[%s8738_s20 + $0xe58] sm:$0xff] }
 0x8c1   : > { %6948 = vmatprep.subr.msk.bf16.mxu1 %vm13459_vm15, %v4985_v58  ;;  %v4733_v58 = vld [vmem:[%s8738_s20 + $0xe78] sm:$0xff]  ;;  %v6040_v48 = vsel %vm13473_vm0, %v5016_v11, 0 }
 0x8c2   : > { %v5013_v7 = vpack.c.bf16 %v4733_v58, %v4729_v22 }
 0x8c4   : > { %6365 = vmatpush1.bf16.msra.mxu1 %v6008_v56  ;;  %v4737_v56 = vld [vmem:[%s8738_s20 + $0xe98] sm:$0xff] }
 0x8c5   : > { %6949 = vmatprep.subr.msk.bf16.mxu1 %vm13461_vm6, %v4989_v25  ;;  %v4741_v25 = vld [vmem:[%s8738_s20 + $0xeb8] sm:$0xff] }
 0x8c6   : > { %v5017_v59 = vpack.c.bf16 %v4741_v25, %v4737_v56 }
 0x8c8   : > { %6367 = vmatpush1.bf16.msra.mxu1 %v6012_v29  ;;  %v4749_v29 = vld [vmem:[%s8738_s20 + $0xef8] sm:$0xff] }
 0x8c9   : > { %6950 = vmatprep.subr.msk.bf16.mxu1 %vm13463_vm7, %v4993_v17  ;;  %v4744_v17 = vld [vmem:[%s8738_s20 + $0xed0] sm:$0xff]  ;;  %v5021_v20 = vpack.c.bf16 %v4749_v29, %v4745_v39 }
 0x8ca   : > { %v5020_v12 = vpack.c.bf16 %v4748_v21, %v4744_v17 }
 0x8cc   : > { %6369 = vmatpush1.bf16.msra.mxu1 %v6016_v6  ;;  %v4756_v6 = vld [vmem:[%s8738_s20 + $0xf30] sm:$0xff] }
 0x8cd   : > { %6951 = vmatprep.subr.msk.bf16.mxu1 %vm13465_vm11, %v4997_v43  ;;  %v6044_v43 = vsel %vm13474_vm2, %v5020_v12, 0  ;;  %v5024_v24 = vpack.c.bf16 %v4756_v6, %v4752_v34 }
 0x8ce   : > { %v12615_v32 = vpop.f32.mrb[92].mxu1 }
 0x8cf   : > { %v12620_v1 = vpop.f32.mrb[93].mxu1  ;;  %v6048_v38 = vsel %vm12119_vm4, %v5024_v24, 0 }
 0x8d0   : > { %v6405_v23 = vcombine.low %v12615_v32, %v12620_v1  ;;  %v6234_v55 = vpop.f32.mrb[94].mxu1  ;;  %6371 = vmatpush1.bf16.msra.mxu1 %v6020_v37  ;;  %v5028_v37 = vpack.c.bf16 %v4764_v53, %v4760_v28 }
 0x8d1   : > { %v6235_v36 = vpop.f32.mrb[95].mxu1  ;;  %6952 = vmatprep.subr.msk.bf16.mxu1 %vm13467_vm14, %v5001_v52  ;;  %v4769_v52 = vld [vmem:[%s8738_s20 + $0xf98] sm:$0xff]  ;;  %v5032_v55 = vpack.c.bf16 %v4772_v60, %v4768_v4 }
 0x8d2   : > { %v6052_v49 = vsel %vm12135_vm10, %v5028_v37, 0  ;;  %v5033_v2 = vpack.c.bf16 %v4773_v40, %v4769_v52  ;;  %v4781_v36 = vld [vmem:[%s8738_s20 + $0xff8] sm:$0xff] }
 0x8d3   : > { %v5037_v46 = vpack.c.bf16 %v4781_v36, %v4777_v31 }
 0x8d4   : > { %6373 = vmatpush1.bf16.msra.mxu1 %v6024_v14  ;;  %v4780_v14 = vld [vmem:[%s8738_s20 + $0xff0] sm:$0xff] }
 0x8d5   : > { %6953 = vmatprep.subr.msk.bf16.mxu1 %vm13469_vm3, %v5005_v42  ;;  %v6056_v42 = vsel %vm12149_vm1, %v5032_v55, 0  ;;  %v5036_v47 = vpack.c.bf16 %v4780_v14, %v4776_v5 }
 0x8d7   : > { %v6060_v61 = vsel %vm12161_vm12, %v5036_v47, 0 }
 0x8d8   : > { %6375 = vmatpush1.bf16.msra.mxu1 %v6028_v45 }
 0x8d9   : > { %6954 = vmatprep.subr.msk.bf16.mxu1 %vm13471_vm8, %v5009_v41 }
 0x8dc   : > { %6377 = vmatpush1.bf16.msra.mxu1 %v6032_v9 }
 0x8dd   : > { %6955 = vmatprep.subr.msk.bf16.mxu1 %vm13472_vm5, %v5013_v7 }
 0x8e0   : > { %6379 = vmatpush1.bf16.msra.mxu1 %v6036_v54 }
 0x8e1   : > { %6956 = vmatprep.subr.msk.bf16.mxu1 %vm13473_vm0, %v5017_v59 }
 0x8e4   : > { %6381 = vmatpush1.bf16.msra.mxu1 %v6040_v48 }
 0x8e5   : > { %6957 = vmatprep.subr.msk.bf16.mxu1 %vm13474_vm2, %v5021_v20 }
 0x8e8   : > { %6383 = vmatpush1.bf16.msra.mxu1 %v6044_v43 }
 0x8e9   : > { %6958 = vmatprep.subr.msk.bf16.mxu1 %vm12119_vm4, %v5025_v3 }
 0x8ec   : > { %6385 = vmatpush1.bf16.msra.mxu1 %v6048_v38 }
 0x8ed   : > { %6959 = vmatprep.subr.msk.bf16.mxu1 %vm12135_vm10, %v5029_v16 }
 0x8f0   : > { %6387 = vmatpush1.bf16.msra.mxu1 %v6052_v49 }
 0x8f1   : > { %6960 = vmatprep.subr.msk.bf16.mxu1 %vm12149_vm1, %v5033_v2 }
 0x8f4   : > { %6389 = vmatpush1.bf16.msra.mxu1 %v6056_v42 }
 0x8f5   : > { %6961 = vmatprep.subr.msk.bf16.mxu1 %vm12161_vm12, %v5037_v46 }
 0x8f8   : > { %6391 = vmatpush1.bf16.msra.mxu1 %v6060_v61 }
 0x8fb   : > { %6393 = vmatmul.mubr.bf16.vlgmr.msra.gmra.mrb[96].mxu1 %v12176_v0 }
 0x8fc   : > { %8366 = shalt.err (!%p8363_p8)
}
 0x8fd   : > { %s8367_s17 = scalar_lea.hbm %s12702_s26, 128  ;;  %s8371_s14 = scalar_lea.hbm %s12797_s5, 256 }
 0x8fe   : > { %p8368_p10 = scmp.ne.s32.totalorder %s12702_s26, %s8367_s17  ;;  %p8372_p12 = scmp.lt.u32.totalorder %s12702_s26, %s12797_s5 }
 0x8ff   : > { %p8373_p0 = scmp.lt.u32.totalorder %s8371_s14, %s8367_s17  ;;  %p8375_p9 = scmp.lt.u32.totalorder %s8367_s17, %s12702_s26 }
 0x900   : > { %p8369_p5 = pnand %p8368_p10, %p13475_p7 }
 0x901   : > { %p8374_p2 = por %p8373_p0, %p8372_p12 }
 0x902   : > { %p8370_p6 = pneg %p8369_p5 }
 0x903   : > { %p8376_p13 = por %p8375_p9, %p8374_p2 }
 0x905   : > { %p8377_p1 = pnand %p8376_p13, %p8370_p6 }
 0x907   : > { %8380 = shalt.err (!%p8377_p1)
}
 0x908   : > { %7629 = dma.vmem_to_hbm [thread:$0]  (%p13475_p7), %s6479_s15, 128, %s12702_s26, %s6449_s7   ;;  %v6066_v8 = vpop.permute.xlu1 %6065  ;;  %v13476_v51 = vld [vmem:[#allocation27_spill] sm:$0xff]  ;;  %v13477_v41 = vld [vmem:[#allocation28_spill] sm:$0xff]  ;;  %v6062_v58 = vld [vmem:[#allocation3] sm:$0xf] }
 0x909   : > { %v6071_v45 = vrot.slane %v6066_v8, %v13476_v51  ;;  %v6413_v50 = vrot.slane %v6405_v23, %v13477_v41  ;;  %s6639_s30 = sshll.u32 %s10436_s6, 2  ;;  %v13478_v7 = vld [vmem:[#allocation31_spill] sm:$0xff]  ;;  %s6973_s12 = sshll.u32 %s8490_s23, 6 }
 0x90a   : > { %vm13479_vm10 = vnez %v13478_v7  ;;  %s315_s18 = scalar_lea.vmem [#allocation12], %s6639_s30  ;;  %s12736_s27 = scalar_lea.hbm %s12796_s4, %s6973_s12 }
 0x90b   : > { %v6072_v27 = vmul.f32 %v6071_v45, %v6062_v58  ;;  %s6463_s9 = sshll.u32 %s315_s18, 4  ;;  %s6444_s26 = scalar_lea.sflag [#allocation6], %s10436_s6  ;;  %s12738_s9 = int_to_ptr.vmem [resolvable:$true] %s6463_s9 }
 0x90c   : > { %s8381_s7 = scalar_lea.vmem %s12738_s9, 64  ;;  %s8513_s23 = smov [#allocation12]  }
 0x90d   : > { %p8382_p3 = scmp.ne.s32.totalorder %s12738_s9, %s8381_s7  ;;  %s8385_s29 = sshll.u32 %s8513_s23, 4  ;;  %s8386_s29 = int_to_ptr.vmem [resolvable:$false] %s8385_s29 }
 0x90e   : > { %s8387_s8 = scalar_lea.vmem %s8386_s29, 128  ;;  %p8388_p10 = scmp.lt.s32.totalorder %s12738_s9, %s8386_s29 }
 0x90f   : > { %p8383_p4 = pnand %p8382_p3, %p13475_p7  ;;  %p8389_p5 = scmp.lt.s32.totalorder %s8387_s8, %s8381_s7 }
 0x911   : > { %p8384_p8 = pneg %p8383_p4  ;;  %p8390_p6 = por %p8389_p5, %p8388_p10 }
 0x913   : > { %p8391_p12 = pnand %p8390_p6, %p8384_p8 }
 0x9ce   : > { %v6394_v18 = vpop.f32.mrb[96].mxu1 }
 0x9cf   : > { %v6396_v0 = vpop.f32.mrb[97].mxu1 }
 0x9d0   : > { %v6406_v44 = vcombine.low %v6394_v18, %v6396_v0  ;;  %v6398_v62 = vpop.f32.mrb[98].mxu1 }
 0x9d1   : > { %v6399_v15 = vpop.f32.mrb[99].mxu1 }
 0x9d2   : > { %v6420_v22 = vrot.slane %v6406_v44, %v13477_v41 }
 0x9d4   : > { %v6421_v26 = vcombine.low %v6413_v50, %v6420_v22 }
 0x9d6   : > { %v6428_v10 = vrot.slane %v6421_v26, %v13477_v41 }
 0x9d8   : > { %v6430_v9 = vadd.f32 %v6428_v10, %v6072_v27 }
 0x9da   : > { %6435 = vst.msk [vmem:[#allocation3] sm:$0xf] %vm13479_vm10, %v6430_v9 }
 0x9e1   : > { %v6441_v32 = vld [vmem:[#allocation3] sm:$0xf] }
 0x9e2   : > { %6442 = vst.msk [vmem:[%s315_s18] sm:$0xf] %vm13479_vm10, %v6441_v32 }
 0x9e3   : > { %8394 = shalt.err (!%p8391_p12)
}
 0x9e4   : > { %s8395_s6 = scalar_lea.hbm %s12736_s27, 64  ;;  %s8399_s17 = scalar_lea.hbm %s12796_s4, 128 }
 0x9e5   : > { %p8396_p0 = scmp.ne.s32.totalorder %s12736_s27, %s8395_s6  ;;  %p8400_p13 = scmp.lt.u32.totalorder %s12736_s27, %s12796_s4 }
 0x9e6   : > { %p8401_p1 = scmp.lt.u32.totalorder %s8399_s17, %s8395_s6  ;;  %p8403_p4 = scmp.lt.u32.totalorder %s8395_s6, %s12736_s27 }
 0x9e7   : > { %p8397_p2 = pnand %p8396_p0, %p13475_p7 }
 0x9e8   : > { %p8402_p3 = por %p8401_p1, %p8400_p13 }
 0x9e9   : > { %p8398_p9 = pneg %p8397_p2 }
 0x9ea   : > { %p8404_p8 = por %p8403_p4, %p8402_p3 }
 0x9ec   : > { %p8405_p10 = pnand %p8404_p8, %p8398_p9 }
 0x9ee   : > { %8408 = shalt.err (!%p8405_p10)
}
 0x9ef   : > { %7628 = dma.vmem_to_hbm [thread:$0]  (%p13475_p7), %s12738_s9, 64, %s12736_s27, %s6444_s26  }
 0x9f0 PF: > { %s13480_s14 = sld [smem:[#allocation20_spill]]  ;;  %s13481_s24 = sld [smem:[#allocation25_spill]] }
 0x9f6   : > { %s6490_s20 = sand.u32 1, %s13480_s14   ;;  %p13482_p5 = scmp.ne.s32.totalorder %s13481_s24, 0 }
 0x9f7   : > { %s6491_s30 = scalar_lea.sflag [#allocation6], %s6490_s20 }
 0x9f8   : > { %p7643_p6 = pnand %p6624_p11, %p13482_p5 }
 0x9fa   : > { %8458 = dma.done.wait (!%p7643_p6), %s6491_s30, 64  }
 0x9fb   : > { %8460 = vsyncadd (!%p7643_p6), %s6491_s30, 4294967232  ;;  %s6500_s12 = scalar_lea.sflag [#allocation14], %s6490_s20 }
 0x9fc   : > { %8462 = dma.done.wait (!%p7643_p6), %s6500_s12, 128  }
 0x9fd   : > { %8464 = vsyncadd (!%p7643_p6), %s6500_s12, 4294967168  ;;  %s27_s25 = sadd.s32 1, %s8498_s25   ;;  %s13483_s10 = sld [smem:[#allocation21_spill]] }
 0x9fe   : > { %p24_p12 = scmp.ge.s32.totalorder %s27_s25, 4   ;;  %s13484_s20 = sld [smem:[#allocation24_spill]] }
 0x9ff   : > { %s13485_s23 = sld [smem:[#allocation22_spill]]  ;;  %s13486_s24 = sld [smem:[#allocation23_spill]] }
 0xa00   : > { %s13487_s18 = smov %s8474_s19  ;;  %s13489_s21 = smov %s8486_s22 }
 0xa01   : > { %s12782_s22 = smov 0   ;;  %26 = sbr.rel (!%p24_p12) target bundleno = 11 (0xb), region = 118 }
 0xa03   : > { %s13488_s19 = smov %s13483_s10 }
 0xa08   :  { %6505 = vsyncpa [#allocation5], 1 }
 0xa09   :  { %6507 = vsyncpa [#allocation5 + $0x1], 1 }
 0xa0a   :  { %6508 = vsyncpa [#allocation8], 1 }
 0xa0b   :  { %6509 = vsyncpa [#allocation11], 1 }
 0xa0c   :  { %6510 = vsyncpa [#allocation6], 1 }
 0xa0d   :  { %6512 = vsyncpa [#allocation6 + $0x1], 1 }
 0xa0e   :  { %6513 = vsyncpa [#allocation14], 1 }
 0xa0f   :  { %6515 = vsyncpa [#allocation14 + $0x1], 1 }

</bundles_post_ra>
